<compile_context>
chip_gen: v7x
topology: tpu7x:2x2x1
jax: 0.10.0
libtpu: 0.0.40
codegen_flags: <defaults>
</compile_context>

<pallas_src>
import functools

import jax
import jax.numpy as jnp
from jax.experimental import pallas as pl
from jax.experimental.pallas import tpu as pltpu

BN_EPS = 1e-5

_PARALLEL1 = pltpu.CompilerParams(dimension_semantics=("parallel",))


def _round_up(x, m):
    return ((x + m - 1) // m) * m


# ----------------------------------------------------------------------------
# Kernel 1: fused Linear (+ folded BN) (+ residual) (+ ReLU / per-column floor)
# ----------------------------------------------------------------------------
def _linear_kernel(x_ref, w_ref, b_ref, *rest, relu, has_lo, has_res):
    idx = 0
    lo_ref = rest[idx] if has_lo else None
    idx += 1 if has_lo else 0
    res_ref = rest[idx] if has_res else None
    idx += 1 if has_res else 0
    o_ref = rest[idx]

    y = jnp.dot(x_ref[...], w_ref[...], preferred_element_type=jnp.float32)
    y = y + b_ref[...]
    if has_res:
        y = y + res_ref[...]
    if has_lo:
        y = jnp.maximum(y, lo_ref[...])     # per-column floor: 0 -> ReLU, -inf -> identity
    elif relu:
        y = jnp.maximum(y, 0.0)
    o_ref[...] = y.astype(o_ref.dtype)


def fused_linear(x, w, b=None, *, lo=None, residual=None, relu=True, tm=512):
    """y = act(x @ w + b [+ residual]);  x: [M, Cin], w: [Cin, Cout]."""
    M, Cin = x.shape
    Cout = w.shape[1]
    if b is None:
        b = jnp.zeros((Cout,), jnp.float32)
    b2 = b.reshape(1, Cout).astype(jnp.float32)

    tm = min(tm, _round_up(M, 8))           # big row tiles, partial last block OK
    has_lo = lo is not None
    has_res = residual is not None

    in_specs = [
        pl.BlockSpec((tm, Cin), lambda i: (i, 0)),
        pl.BlockSpec((Cin, Cout), lambda i: (0, 0)),
        pl.BlockSpec((1, Cout), lambda i: (0, 0)),
    ]
    args = [x, w, b2]
    if has_lo:
        in_specs.append(pl.BlockSpec((1, Cout), lambda i: (0, 0)))
        args.append(lo.reshape(1, Cout).astype(jnp.float32))
    if has_res:
        in_specs.append(pl.BlockSpec((tm, Cout), lambda i: (i, 0)))
        args.append(residual)

    return pl.pallas_call(
        functools.partial(_linear_kernel, relu=relu, has_lo=has_lo, has_res=has_res),
        out_shape=jax.ShapeDtypeStruct((M, Cout), jnp.float32),
        grid=(pl.cdiv(M, tm),),
        in_specs=in_specs,
        out_specs=pl.BlockSpec((tm, Cout), lambda i: (i, 0)),
        compiler_params=_PARALLEL1,
    )(*args)


# ----------------------------------------------------------------------------
# Kernel 2: fused two-layer MLP  (Linear + folded-BN + ReLU + Linear)
#           used for the positional-bias MLP on [N*S, 3] rows.
# ----------------------------------------------------------------------------
def _mlp2_kernel(x_ref, w1_ref, b1_ref, w2_ref, b2_ref, o_ref):
    h = jnp.dot(x_ref[...], w1_ref[...], preferred_element_type=jnp.float32)
    h = jnp.maximum(h + b1_ref[...], 0.0)
    y = jnp.dot(h, w2_ref[...], preferred_element_type=jnp.float32) + b2_ref[...]
    o_ref[...] = y.astype(o_ref.dtype)


def fused_mlp2(x, w1, b1, w2, b2, *, tm=512):
    M, Cin = x.shape
    Ch = w1.shape[1]
    Cout = w2.shape[1]
    tm = min(tm, _round_up(M, 8))
    return pl.pallas_call(
        _mlp2_kernel,
        out_shape=jax.ShapeDtypeStruct((M, Cout), jnp.float32),
        grid=(pl.cdiv(M, tm),),
        in_specs=[
            pl.BlockSpec((tm, Cin), lambda i: (i, 0)),
            pl.BlockSpec((Cin, Ch), lambda i: (0, 0)),
            pl.BlockSpec((1, Ch), lambda i: (0, 0)),
            pl.BlockSpec((Ch, Cout), lambda i: (0, 0)),
            pl.BlockSpec((1, Cout), lambda i: (0, 0)),
        ],
        out_specs=pl.BlockSpec((tm, Cout), lambda i: (i, 0)),
        compiler_params=_PARALLEL1,
    )(x, w1, b1.reshape(1, Ch), w2, b2.reshape(1, Cout))


# ----------------------------------------------------------------------------
# Kernel 3: grouped vector attention
#   relation = key - q + peb ; value = val + peb
#   wlog = (ReLU(relation @ We1 + b1)) @ We2 + b2        (weight-encoding MLP)
#   weight = softmax_S(wlog) * mask                       (reference order)
#   out[n, g*I+i] = sum_s value[n,s,g*I+i] * weight[n,s,g]
#   out = ReLU(out * scale2 + shift2)                     (fused BN2 + ReLU)
# ----------------------------------------------------------------------------
def _gva_kernel(q_ref, key_ref, val_ref, peb_ref, mask_ref,
                we1_ref, we1b_ref, we2_ref, we2b_ref, s2_ref, sh2_ref,
                o_ref, *, groups):
    key = key_ref[...]                       # (tn, S, C)
    peb = peb_ref[...]                       # (tn, S, C)
    tn, S, C = key.shape
    G = groups
    I = C // G

    rel = key - q_ref[...][:, None, :] + peb          # relation_qk + pe bias
    val = val_ref[...] + peb                          # value + pe bias

    # fused weight-encoding MLP (2D MXU matmuls on flattened rows)
    rel2 = rel.reshape(tn * S, C)
    h = jnp.dot(rel2, we1_ref[...], preferred_element_type=jnp.float32)
    h = jnp.maximum(h + we1b_ref[...], 0.0)
    wlog = jnp.dot(h, we2_ref[...], preferred_element_type=jnp.float32) + we2b_ref[...]
    w = wlog.reshape(tn, S, G)

    # softmax over neighbours (torch dim=1), then mask (matches the reference order)
    w = w - jnp.max(w, axis=1, keepdims=True)
    w = jnp.exp(w)
    w = w / jnp.sum(w, axis=1, keepdims=True)
    w = w * mask_ref[...]                             # (tn, S, 1) -> broadcast over G

    # expand group weights to channels on the VPU (no identity matmul)
    wf = jnp.concatenate(
        [jnp.broadcast_to(w[:, :, g:g + 1], (tn, S, I)) for g in range(G)], axis=-1)

    out = jnp.sum(val * wf, axis=1)                   # (tn, C) reduce over neighbours
    out = out * s2_ref[...] + sh2_ref[...]            # fused BN2
    o_ref[...] = jnp.maximum(out, 0.0).astype(o_ref.dtype)   # fused ReLU


def gva_attention(q, key_g, val_g, peb, mask, we1_w, we1_b, we2_w, we2_b,
                  scale2, shift2, groups, *, tn=512):
    N, S, C = key_g.shape
    G = groups
    tn = min(tn, _round_up(N, 8))
    mask3 = mask.reshape(N, S, 1).astype(jnp.float32)

    return pl.pallas_call(
        functools.partial(_gva_kernel, groups=G),
        out_shape=jax.ShapeDtypeStruct((N, C), jnp.float32),
        grid=(pl.cdiv(N, tn),),
        in_specs=[
            pl.BlockSpec((tn, C), lambda i: (i, 0)),
            pl.BlockSpec((tn, S, C), lambda i: (i, 0, 0)),
            pl.BlockSpec((tn, S, C), lambda i: (i, 0, 0)),
            pl.BlockSpec((tn, S, C), lambda i: (i, 0, 0)),
            pl.BlockSpec((tn, S, 1), lambda i: (i, 0, 0)),
            pl.BlockSpec((C, G), lambda i: (0, 0)),
            pl.BlockSpec((1, G), lambda i: (0, 0)),
            pl.BlockSpec((G, G), lambda i: (0, 0)),
            pl.BlockSpec((1, G), lambda i: (0, 0)),
            pl.BlockSpec((1, C), lambda i: (0, 0)),
            pl.BlockSpec((1, C), lambda i: (0, 0)),
        ],
        out_specs=pl.BlockSpec((tn, C), lambda i: (i, 0)),
        compiler_params=_PARALLEL1,
    )(q, key_g, val_g, peb, mask3,
      we1_w, we1_b.reshape(1, G), we2_w, we2_b.reshape(1, G),
      scale2.reshape(1, C), shift2.reshape(1, C))


# ----------------------------------------------------------------------------
# JAX glue: BN folding, knn_query, module forward
# ----------------------------------------------------------------------------
def fold_bn(bn):
    scale = bn["gamma"] * jax.lax.rsqrt(bn["var"] + BN_EPS)
    shift = bn["beta"] - bn["mean"] * scale
    return scale, shift


def fold_linear_bn(w, b, bn):
    """Fold inference-mode BatchNorm1d into the preceding Linear: y = x @ w' + b'."""
    scale, shift = fold_bn(bn)
    w2 = w * scale[None, :]
    b2 = (b * scale if b is not None else 0.0) + shift
    return w2, b2


def knn_query(k, coord, offset):
    """pointops.knn_query equivalent (per-batch kNN, global indices).
    TODO(synk): dense O(N^2) distance matrix; fine for small N, glue only."""
    N = coord.shape[0]
    batch = jnp.searchsorted(offset, jnp.arange(N, dtype=jnp.int32), side="right")
    d2 = jnp.sum((coord[:, None, :] - coord[None, :, :]) ** 2, axis=-1)
    same = batch[:, None] == batch[None, :]
    d2 = jnp.where(same, d2, jnp.inf)
    _, idx = jax.lax.top_k(-d2, k)
    return idx.astype(jnp.int32)


def block_forward(p, coord, feat, ref_idx, groups):
    N, C = feat.shape
    S = ref_idx.shape[1]
    identity = feat

    # fc1 + BN1 + ReLU  (BN folded into weights)
    w1, b1 = fold_linear_bn(p["fc1_w"], None, p["bn1"])
    h = fused_linear(feat, w1, b1, relu=True)

    # fused q/k/v projection: q,k = Linear+BN+ReLU (folded), v = plain Linear.
    qw, qb = fold_linear_bn(p["q_w"], p["q_b"], p["q_bn"])
    kw, kb = fold_linear_bn(p["k_w"], p["k_b"], p["k_bn"])
    wqkv = jnp.concatenate([qw, kw, p["v_w"]], axis=1)               # (C, 3C)
    bqkv = jnp.concatenate([qb, kb, p["v_b"]], axis=0)               # (3C,)
    lo = jnp.concatenate([jnp.zeros((2 * C,), jnp.float32),
                          jnp.full((C,), -jnp.inf, jnp.float32)])    # ReLU q,k only
    qkv = fused_linear(h, wqkv, bqkv, lo=lo, relu=False)
    q, k, v = qkv[:, :C], qkv[:, C:2 * C], qkv[:, 2 * C:]

    # neighbour gathers (pointops.grouping equivalent) -- plain JAX glue
    mask = jnp.sign(ref_idx + 1).astype(jnp.float32)                 # (N, S)
    pos = (coord[ref_idx] - coord[:, None, :]) * mask[:, :, None]    # (N, S, 3)
    key_g = k[ref_idx]                                               # (N, S, C)
    val_g = v[ref_idx]                                               # (N, S, C)

    # fused positional-bias MLP: Linear(3,C)+BN+ReLU (folded) + Linear(C,C)
    pw1, pb1 = fold_linear_bn(p["p1_w"], p["p1_b"], p["p1_bn"])
    peb = fused_mlp2(pos.reshape(N * S, 3), pw1, pb1,
                     p["p2_w"], p["p2_b"]).reshape(N, S, C)

    # fused weight-encoding MLP + softmax + mask + grouped aggregation + BN2 + ReLU
    we1w, we1b = fold_linear_bn(p["we1_w"], p["we1_b"], p["we1_bn"])
    s2, sh2 = fold_bn(p["bn2"])
    attn = gva_attention(q, key_g, val_g, peb, mask,
                         we1w, we1b, p["we2_w"], p["we2_b"], s2, sh2, groups)

    # relu(identity + bn3(fc3(x)))   (drop_path is identity at rate 0.0)
    w3, b3 = fold_linear_bn(p["fc3_w"], None, p["bn3"])
    out = fused_linear(attn, w3, b3, residual=identity, relu=True)
    return out


def gva_patch_embed(params, coord, feat, offset, *, neighbours, groups):
    wp, bp = fold_linear_bn(params["proj_w"], None, params["proj_bn"])
    feat = fused_linear(feat, wp, bp, relu=True)
    ref_idx = knn_query(neighbours, coord, offset)
    for blk in params["blocks"]:
        feat = block_forward(blk, coord, feat, ref_idx, groups)
    return coord, feat, offset


# ----------------------------------------------------------------------------
# Deterministic parameter init (synthetic, shapes from module __init__)
# ----------------------------------------------------------------------------
def init_bn(key, c):
    k1, k2, k3, k4 = jax.random.split(key, 4)
    return dict(
        gamma=1.0 + 0.1 * jax.random.normal(k1, (c,), jnp.float32),
        beta=0.1 * jax.random.normal(k2, (c,), jnp.float32),
        mean=0.1 * jax.random.normal(k3, (c,), jnp.float32),
        var=1.0 + 0.1 * jnp.abs(jax.random.normal(k4, (c,), jnp.float32)),
    )


def init_params(key, depth, in_channels, C, G):
    keys = iter(jax.random.split(key, 256))

    def lin(cin, cout, bias=True):
        w = jax.random.normal(next(keys), (cin, cout), jnp.float32) / jnp.sqrt(cin)
        b = (0.05 * jax.random.normal(next(keys), (cout,), jnp.float32)
             if bias else None)
        return w, b

    params = {}
    params["proj_w"], _ = lin(in_channels, C, bias=False)
    params["proj_bn"] = init_bn(next(keys), C)
    blocks = []
    for _ in range(depth):
        b = {}
        b["fc1_w"], _ = lin(C, C, bias=False)
        b["bn1"] = init_bn(next(keys), C)
        b["fc3_w"], _ = lin(C, C, bias=False)
        b["bn3"] = init_bn(next(keys), C)
        b["bn2"] = init_bn(next(keys), C)
        b["q_w"], b["q_b"] = lin(C, C)
        b["q_bn"] = init_bn(next(keys), C)
        b["k_w"], b["k_b"] = lin(C, C)
        b["k_bn"] = init_bn(next(keys), C)
        b["v_w"], b["v_b"] = lin(C, C)
        b["p1_w"], b["p1_b"] = lin(3, C)
        b["p1_bn"] = init_bn(next(keys), C)
        b["p2_w"], b["p2_b"] = lin(C, C)
        b["we1_w"], b["we1_b"] = lin(C, G)
        b["we1_bn"] = init_bn(next(keys), G)
        b["we2_w"], b["we2_b"] = lin(G, G)
        blocks.append(b)
    params["blocks"] = blocks
    return params


# ----------------------------------------------------------------------------
if __name__ == "__main__":
    # small, module-consistent shapes
    N, C_IN, C, GROUPS, NEIGHBOURS, DEPTH = 64, 6, 32, 4, 8, 2

    key = jax.random.PRNGKey(0)
    kc, kf, kp = jax.random.split(key, 3)
    coord = jax.random.normal(kc, (N, 3), jnp.float32)       # point coordinates
    feat = jax.random.normal(kf, (N, C_IN), jnp.float32)     # point features
    offset = jnp.array([32, 64], jnp.int32)                  # two batch segments

    params = init_params(kp, DEPTH, C_IN, C, GROUPS)

    fwd = jax.jit(functools.partial(gva_patch_embed,
                                    neighbours=NEIGHBOURS, groups=GROUPS))
    coord_o, feat_o, offset_o = fwd(params, coord, feat, offset)
    jax.block_until_ready(feat_o)
    assert feat_o.shape == (N, C) and coord_o.shape == (N, 3)
    print("KERNEL_OK")
</pallas_src>

<mosaic_0001>
module attributes {stable_mosaic.version = 11 : i64} {
  func.func @_linear_kernel(%arg0: i32, %arg1: memref<64x32xf32, #tpu.memory_space<vmem>>, %arg2: memref<32x32xf32, #tpu.memory_space<vmem>>, %arg3: memref<1x32xf32, #tpu.memory_space<vmem>>, %arg4: memref<64x32xf32, #tpu.memory_space<vmem>>) attributes {dimension_semantics = [#tpu.dimension_semantics<parallel>], iteration_bounds = array<i64: 1>, scalar_prefetch = 0 : i64, scratch_operands = 0 : i64, tpu.core_type = #tpu.core_type<tc>, window_params = [{transform_indices = @transform_0, window_bounds = array<i64: 64, 32>}, {pipeline_mode = #tpu.pipeline_mode<synchronous>, transform_indices = @transform_1, window_bounds = array<i64: 32, 32>}, {pipeline_mode = #tpu.pipeline_mode<synchronous>, transform_indices = @transform_2, window_bounds = array<i64: 1, 32>}, {transform_indices = @transform_3, window_bounds = array<i64: 64, 32>}]} {
    %c0 = arith.constant 0 : index
    %c0_0 = arith.constant 0 : index
    %0 = vector.load %arg1[%c0, %c0_0] : memref<64x32xf32, #tpu.memory_space<vmem>>, vector<64x32xf32>
    %c0_1 = arith.constant 0 : index
    %c0_2 = arith.constant 0 : index
    %1 = vector.load %arg2[%c0_1, %c0_2] : memref<32x32xf32, #tpu.memory_space<vmem>>, vector<32x32xf32>
    %cst = arith.constant dense<0.000000e+00> : vector<64x32xf32>
    %2 = tpu.matmul %0, %1, %cst {dimension_numbers = #tpu.dot_dimension_numbers<[1], [0], [0], [1], [0, 0, 1, 1], [], []>} : vector<64x32xf32>, vector<32x32xf32>, vector<64x32xf32> -> vector<64x32xf32>
    %c0_3 = arith.constant 0 : index
    %c0_4 = arith.constant 0 : index
    %3 = vector.load %arg3[%c0_3, %c0_4] : memref<1x32xf32, #tpu.memory_space<vmem>>, vector<1x32xf32>
    %4 = vector.broadcast %3 : vector<1x32xf32> to vector<64x32xf32>
    %5 = arith.addf %2, %4 : vector<64x32xf32>
    %cst_5 = arith.constant 0.000000e+00 : f32
    %6 = vector.broadcast %cst_5 : f32 to vector<64x32xf32>
    %7 = arith.maximumf %5, %6 : vector<64x32xf32>
    %c0_6 = arith.constant 0 : index
    %c0_7 = arith.constant 0 : index
    %8 = vector.load %arg4[%c0_6, %c0_7] : memref<64x32xf32, #tpu.memory_space<vmem>>, vector<64x32xf32>
    tpu.vector_store %arg4[%c0_6, %c0_7], %7 {strides = array<i32>} : memref<64x32xf32, #tpu.memory_space<vmem>>, vector<64x32xf32>,
    return
  }
  func.func @transform_0(%arg0: i32) -> (i32, i32) {
    %c0_i32 = arith.constant 0 : i32
    %c0_i32_0 = arith.constant 0 : i32
    return %arg0, %c0_i32 : i32, i32
  }
  func.func @transform_1(%arg0: i32) -> (i32, i32) {
    %c0_i32 = arith.constant 0 : i32
    %c0_i32_0 = arith.constant 0 : i32
    %c0_i32_1 = arith.constant 0 : i32
    return %c0_i32, %c0_i32_0 : i32, i32
  }
  func.func @transform_2(%arg0: i32) -> (i32, i32) {
    %c0_i32 = arith.constant 0 : i32
    %c0_i32_0 = arith.constant 0 : i32
    %c0_i32_1 = arith.constant 0 : i32
    return %c0_i32, %c0_i32_0 : i32, i32
  }
  func.func @transform_3(%arg0: i32) -> (i32, i32) {
    %c0_i32 = arith.constant 0 : i32
    %c0_i32_0 = arith.constant 0 : i32
    return %arg0, %c0_i32 : i32, i32
  }
}

module attributes {stable_mosaic.version = 11 : i64} {
  func.func @_linear_kernel(%arg0: i32, %arg1: memref<64x32xf32, #tpu.memory_space<vmem>>, %arg2: memref<32x96xf32, #tpu.memory_space<vmem>>, %arg3: memref<1x96xf32, #tpu.memory_space<vmem>>, %arg4: memref<1x96xf32, #tpu.memory_space<vmem>>, %arg5: memref<64x96xf32, #tpu.memory_space<vmem>>) attributes {dimension_semantics = [#tpu.dimension_semantics<parallel>], iteration_bounds = array<i64: 1>, scalar_prefetch = 0 : i64, scratch_operands = 0 : i64, tpu.core_type = #tpu.core_type<tc>, window_params = [{transform_indices = @transform_0, window_bounds = array<i64: 64, 32>}, {pipeline_mode = #tpu.pipeline_mode<synchronous>, transform_indices = @transform_1, window_bounds = array<i64: 32, 96>}, {pipeline_mode = #tpu.pipeline_mode<synchronous>, transform_indices = @transform_2, window_bounds = array<i64: 1, 96>}, {pipeline_mode = #tpu.pipeline_mode<synchronous>, transform_indices = @transform_3, window_bounds = array<i64: 1, 96>}, {transform_indices = @transform_4, window_bounds = array<i64: 64, 96>}]} {
    %c0 = arith.constant 0 : index
    %c0_0 = arith.constant 0 : index
    %0 = vector.load %arg1[%c0, %c0_0] : memref<64x32xf32, #tpu.memory_space<vmem>>, vector<64x32xf32>
    %c0_1 = arith.constant 0 : index
    %c0_2 = arith.constant 0 : index
    %1 = vector.load %arg2[%c0_1, %c0_2] : memref<32x96xf32, #tpu.memory_space<vmem>>, vector<32x96xf32>
    %cst = arith.constant dense<0.000000e+00> : vector<64x96xf32>
    %2 = tpu.matmul %0, %1, %cst {dimension_numbers = #tpu.dot_dimension_numbers<[1], [0], [0], [1], [0, 0, 1, 1], [], []>} : vector<64x32xf32>, vector<32x96xf32>, vector<64x96xf32> -> vector<64x96xf32>
    %c0_3 = arith.constant 0 : index
    %c0_4 = arith.constant 0 : index
    %3 = vector.load %arg3[%c0_3, %c0_4] : memref<1x96xf32, #tpu.memory_space<vmem>>, vector<1x96xf32>
    %4 = vector.broadcast %3 : vector<1x96xf32> to vector<64x96xf32>
    %5 = arith.addf %2, %4 : vector<64x96xf32>
    %c0_5 = arith.constant 0 : index
    %c0_6 = arith.constant 0 : index
    %6 = vector.load %arg4[%c0_5, %c0_6] : memref<1x96xf32, #tpu.memory_space<vmem>>, vector<1x96xf32>
    %7 = vector.broadcast %6 : vector<1x96xf32> to vector<64x96xf32>
    %8 = arith.maximumf %5, %7 : vector<64x96xf32>
    %c0_7 = arith.constant 0 : index
    %c0_8 = arith.constant 0 : index
    %9 = vector.load %arg5[%c0_7, %c0_8] : memref<64x96xf32, #tpu.memory_space<vmem>>, vector<64x96xf32>
    tpu.vector_store %arg5[%c0_7, %c0_8], %8 {strides = array<i32>} : memref<64x96xf32, #tpu.memory_space<vmem>>, vector<64x96xf32>,
    return
  }
  func.func @transform_0(%arg0: i32) -> (i32, i32) {
    %c0_i32 = arith.constant 0 : i32
    %c0_i32_0 = arith.constant 0 : i32
    return %arg0, %c0_i32 : i32, i32
  }
  func.func @transform_1(%arg0: i32) -> (i32, i32) {
    %c0_i32 = arith.constant 0 : i32
    %c0_i32_0 = arith.constant 0 : i32
    %c0_i32_1 = arith.constant 0 : i32
    return %c0_i32, %c0_i32_0 : i32, i32
  }
  func.func @transform_2(%arg0: i32) -> (i32, i32) {
    %c0_i32 = arith.constant 0 : i32
    %c0_i32_0 = arith.constant 0 : i32
    %c0_i32_1 = arith.constant 0 : i32
    return %c0_i32, %c0_i32_0 : i32, i32
  }
  func.func @transform_3(%arg0: i32) -> (i32, i32) {
    %c0_i32 = arith.constant 0 : i32
    %c0_i32_0 = arith.constant 0 : i32
    %c0_i32_1 = arith.constant 0 : i32
    return %c0_i32, %c0_i32_0 : i32, i32
  }
  func.func @transform_4(%arg0: i32) -> (i32, i32) {
    %c0_i32 = arith.constant 0 : i32
    %c0_i32_0 = arith.constant 0 : i32
    return %arg0, %c0_i32 : i32, i32
  }
}

module attributes {stable_mosaic.version = 11 : i64} {
  func.func @_linear_kernel(%arg0: i32, %arg1: memref<64x6xf32, #tpu.memory_space<vmem>>, %arg2: memref<6x32xf32, #tpu.memory_space<vmem>>, %arg3: memref<1x32xf32, #tpu.memory_space<vmem>>, %arg4: memref<64x32xf32, #tpu.memory_space<vmem>>) attributes {dimension_semantics = [#tpu.dimension_semantics<parallel>], iteration_bounds = array<i64: 1>, scalar_prefetch = 0 : i64, scratch_operands = 0 : i64, tpu.core_type = #tpu.core_type<tc>, window_params = [{transform_indices = @transform_0, window_bounds = array<i64: 64, 6>}, {pipeline_mode = #tpu.pipeline_mode<synchronous>, transform_indices = @transform_1, window_bounds = array<i64: 6, 32>}, {pipeline_mode = #tpu.pipeline_mode<synchronous>, transform_indices = @transform_2, window_bounds = array<i64: 1, 32>}, {transform_indices = @transform_3, window_bounds = array<i64: 64, 32>}]} {
    %c0 = arith.constant 0 : index
    %c0_0 = arith.constant 0 : index
    %0 = vector.load %arg1[%c0, %c0_0] : memref<64x6xf32, #tpu.memory_space<vmem>>, vector<64x6xf32>
    %c0_1 = arith.constant 0 : index
    %c0_2 = arith.constant 0 : index
    %1 = vector.load %arg2[%c0_1, %c0_2] : memref<6x32xf32, #tpu.memory_space<vmem>>, vector<6x32xf32>
    %cst = arith.constant dense<0.000000e+00> : vector<64x32xf32>
    %2 = tpu.matmul %0, %1, %cst {dimension_numbers = #tpu.dot_dimension_numbers<[1], [0], [0], [1], [0, 0, 1, 1], [], []>} : vector<64x6xf32>, vector<6x32xf32>, vector<64x32xf32> -> vector<64x32xf32>
    %c0_3 = arith.constant 0 : index
    %c0_4 = arith.constant 0 : index
    %3 = vector.load %arg3[%c0_3, %c0_4] : memref<1x32xf32, #tpu.memory_space<vmem>>, vector<1x32xf32>
    %4 = vector.broadcast %3 : vector<1x32xf32> to vector<64x32xf32>
    %5 = arith.addf %2, %4 : vector<64x32xf32>
    %cst_5 = arith.constant 0.000000e+00 : f32
    %6 = vector.broadcast %cst_5 : f32 to vector<64x32xf32>
    %7 = arith.maximumf %5, %6 : vector<64x32xf32>
    %c0_6 = arith.constant 0 : index
    %c0_7 = arith.constant 0 : index
    %8 = vector.load %arg4[%c0_6, %c0_7] : memref<64x32xf32, #tpu.memory_space<vmem>>, vector<64x32xf32>
    tpu.vector_store %arg4[%c0_6, %c0_7], %7 {strides = array<i32>} : memref<64x32xf32, #tpu.memory_space<vmem>>, vector<64x32xf32>,
    return
  }
  func.func @transform_0(%arg0: i32) -> (i32, i32) {
    %c0_i32 = arith.constant 0 : i32
    %c0_i32_0 = arith.constant 0 : i32
    return %arg0, %c0_i32 : i32, i32
  }
  func.func @transform_1(%arg0: i32) -> (i32, i32) {
    %c0_i32 = arith.constant 0 : i32
    %c0_i32_0 = arith.constant 0 : i32
    %c0_i32_1 = arith.constant 0 : i32
    return %c0_i32, %c0_i32_0 : i32, i32
  }
  func.func @transform_2(%arg0: i32) -> (i32, i32) {
    %c0_i32 = arith.constant 0 : i32
    %c0_i32_0 = arith.constant 0 : i32
    %c0_i32_1 = arith.constant 0 : i32
    return %c0_i32, %c0_i32_0 : i32, i32
  }
  func.func @transform_3(%arg0: i32) -> (i32, i32) {
    %c0_i32 = arith.constant 0 : i32
    %c0_i32_0 = arith.constant 0 : i32
    return %arg0, %c0_i32 : i32, i32
  }
}

module attributes {stable_mosaic.version = 11 : i64} {
  func.func @_mlp2_kernel(%arg0: i32, %arg1: memref<512x3xf32, #tpu.memory_space<vmem>>, %arg2: memref<3x32xf32, #tpu.memory_space<vmem>>, %arg3: memref<1x32xf32, #tpu.memory_space<vmem>>, %arg4: memref<32x32xf32, #tpu.memory_space<vmem>>, %arg5: memref<1x32xf32, #tpu.memory_space<vmem>>, %arg6: memref<512x32xf32, #tpu.memory_space<vmem>>) attributes {dimension_semantics = [#tpu.dimension_semantics<parallel>], iteration_bounds = array<i64: 1>, scalar_prefetch = 0 : i64, scratch_operands = 0 : i64, tpu.core_type = #tpu.core_type<tc>, window_params = [{transform_indices = @transform_0, window_bounds = array<i64: 512, 3>}, {pipeline_mode = #tpu.pipeline_mode<synchronous>, transform_indices = @transform_1, window_bounds = array<i64: 3, 32>}, {pipeline_mode = #tpu.pipeline_mode<synchronous>, transform_indices = @transform_2, window_bounds = array<i64: 1, 32>}, {pipeline_mode = #tpu.pipeline_mode<synchronous>, transform_indices = @transform_3, window_bounds = array<i64: 32, 32>}, {pipeline_mode = #tpu.pipeline_mode<synchronous>, transform_indices = @transform_4, window_bounds = array<i64: 1, 32>}, {transform_indices = @transform_5, window_bounds = array<i64: 512, 32>}]} {
    %c0 = arith.constant 0 : index
    %c0_0 = arith.constant 0 : index
    %0 = vector.load %arg1[%c0, %c0_0] : memref<512x3xf32, #tpu.memory_space<vmem>>, vector<512x3xf32>
    %c0_1 = arith.constant 0 : index
    %c0_2 = arith.constant 0 : index
    %1 = vector.load %arg2[%c0_1, %c0_2] : memref<3x32xf32, #tpu.memory_space<vmem>>, vector<3x32xf32>
    %cst = arith.constant dense<0.000000e+00> : vector<512x32xf32>
    %2 = tpu.matmul %0, %1, %cst {dimension_numbers = #tpu.dot_dimension_numbers<[1], [0], [0], [1], [0, 0, 1, 1], [], []>} : vector<512x3xf32>, vector<3x32xf32>, vector<512x32xf32> -> vector<512x32xf32>
    %c0_3 = arith.constant 0 : index
    %c0_4 = arith.constant 0 : index
    %3 = vector.load %arg3[%c0_3, %c0_4] : memref<1x32xf32, #tpu.memory_space<vmem>>, vector<1x32xf32>
    %4 = vector.broadcast %3 : vector<1x32xf32> to vector<512x32xf32>
    %5 = arith.addf %2, %4 : vector<512x32xf32>
    %cst_5 = arith.constant 0.000000e+00 : f32
    %6 = vector.broadcast %cst_5 : f32 to vector<512x32xf32>
    %7 = arith.maximumf %5, %6 : vector<512x32xf32>
    %c0_6 = arith.constant 0 : index
    %c0_7 = arith.constant 0 : index
    %8 = vector.load %arg4[%c0_6, %c0_7] : memref<32x32xf32, #tpu.memory_space<vmem>>, vector<32x32xf32>
    %cst_8 = arith.constant dense<0.000000e+00> : vector<512x32xf32>
    %9 = tpu.matmul %7, %8, %cst_8 {dimension_numbers = #tpu.dot_dimension_numbers<[1], [0], [0], [1], [0, 0, 1, 1], [], []>} : vector<512x32xf32>, vector<32x32xf32>, vector<512x32xf32> -> vector<512x32xf32>
    %c0_9 = arith.constant 0 : index
    %c0_10 = arith.constant 0 : index
    %10 = vector.load %arg5[%c0_9, %c0_10] : memref<1x32xf32, #tpu.memory_space<vmem>>, vector<1x32xf32>
    %11 = vector.broadcast %10 : vector<1x32xf32> to vector<512x32xf32>
    %12 = arith.addf %9, %11 : vector<512x32xf32>
    %c0_11 = arith.constant 0 : index
    %c0_12 = arith.constant 0 : index
    %13 = vector.load %arg6[%c0_11, %c0_12] : memref<512x32xf32, #tpu.memory_space<vmem>>, vector<512x32xf32>
    tpu.vector_store %arg6[%c0_11, %c0_12], %12 {strides = array<i32>} : memref<512x32xf32, #tpu.memory_space<vmem>>, vector<512x32xf32>,
    return
  }
  func.func @transform_0(%arg0: i32) -> (i32, i32) {
    %c0_i32 = arith.constant 0 : i32
    %c0_i32_0 = arith.constant 0 : i32
    return %arg0, %c0_i32 : i32, i32
  }
  func.func @transform_1(%arg0: i32) -> (i32, i32) {
    %c0_i32 = arith.constant 0 : i32
    %c0_i32_0 = arith.constant 0 : i32
    %c0_i32_1 = arith.constant 0 : i32
    return %c0_i32, %c0_i32_0 : i32, i32
  }
  func.func @transform_2(%arg0: i32) -> (i32, i32) {
    %c0_i32 = arith.constant 0 : i32
    %c0_i32_0 = arith.constant 0 : i32
    %c0_i32_1 = arith.constant 0 : i32
    return %c0_i32, %c0_i32_0 : i32, i32
  }
  func.func @transform_3(%arg0: i32) -> (i32, i32) {
    %c0_i32 = arith.constant 0 : i32
    %c0_i32_0 = arith.constant 0 : i32
    %c0_i32_1 = arith.constant 0 : i32
    return %c0_i32, %c0_i32_0 : i32, i32
  }
  func.func @transform_4(%arg0: i32) -> (i32, i32) {
    %c0_i32 = arith.constant 0 : i32
    %c0_i32_0 = arith.constant 0 : i32
    %c0_i32_1 = arith.constant 0 : i32
    return %c0_i32, %c0_i32_0 : i32, i32
  }
  func.func @transform_5(%arg0: i32) -> (i32, i32) {
    %c0_i32 = arith.constant 0 : i32
    %c0_i32_0 = arith.constant 0 : i32
    return %arg0, %c0_i32 : i32, i32
  }
}

module attributes {stable_mosaic.version = 11 : i64} {
  func.func @_gva_kernel(%arg0: i32, %arg1: memref<64x32xf32, #tpu.memory_space<vmem>>, %arg2: memref<64x8x32xf32, #tpu.memory_space<vmem>>, %arg3: memref<64x8x32xf32, #tpu.memory_space<vmem>>, %arg4: memref<64x8x32xf32, #tpu.memory_space<vmem>>, %arg5: memref<64x8x1xf32, #tpu.memory_space<vmem>>, %arg6: memref<32x4xf32, #tpu.memory_space<vmem>>, %arg7: memref<1x4xf32, #tpu.memory_space<vmem>>, %arg8: memref<4x4xf32, #tpu.memory_space<vmem>>, %arg9: memref<1x4xf32, #tpu.memory_space<vmem>>, %arg10: memref<1x32xf32, #tpu.memory_space<vmem>>, %arg11: memref<1x32xf32, #tpu.memory_space<vmem>>, %arg12: memref<64x32xf32, #tpu.memory_space<vmem>>) attributes {dimension_semantics = [#tpu.dimension_semantics<parallel>], iteration_bounds = array<i64: 1>, scalar_prefetch = 0 : i64, scratch_operands = 0 : i64, tpu.core_type = #tpu.core_type<tc>, window_params = [{transform_indices = @transform_0, window_bounds = array<i64: 64, 32>}, {transform_indices = @transform_1, window_bounds = array<i64: 64, 8, 32>}, {transform_indices = @transform_2, window_bounds = array<i64: 64, 8, 32>}, {transform_indices = @transform_3, window_bounds = array<i64: 64, 8, 32>}, {transform_indices = @transform_4, window_bounds = array<i64: 64, 8, 1>}, {pipeline_mode = #tpu.pipeline_mode<synchronous>, transform_indices = @transform_5, window_bounds = array<i64: 32, 4>}, {pipeline_mode = #tpu.pipeline_mode<synchronous>, transform_indices = @transform_6, window_bounds = array<i64: 1, 4>}, {pipeline_mode = #tpu.pipeline_mode<synchronous>, transform_indices = @transform_7, window_bounds = array<i64: 4, 4>}, {pipeline_mode = #tpu.pipeline_mode<synchronous>, transform_indices = @transform_8, window_bounds = array<i64: 1, 4>}, {pipeline_mode = #tpu.pipeline_mode<synchronous>, transform_indices = @transform_9, window_bounds = array<i64: 1, 32>}, {pipeline_mode = #tpu.pipeline_mode<synchronous>, transform_indices = @transform_10, window_bounds = array<i64: 1, 32>}, {transform_indices = @transform_11, window_bounds = array<i64: 64, 32>}]} {
    %c0 = arith.constant 0 : index
    %c0_0 = arith.constant 0 : index
    %c0_1 = arith.constant 0 : index
    %0 = vector.load %arg2[%c0, %c0_0, %c0_1] : memref<64x8x32xf32, #tpu.memory_space<vmem>>, vector<64x8x32xf32>
    %c0_2 = arith.constant 0 : index
    %c0_3 = arith.constant 0 : index
    %c0_4 = arith.constant 0 : index
    %1 = vector.load %arg4[%c0_2, %c0_3, %c0_4] : memref<64x8x32xf32, #tpu.memory_space<vmem>>, vector<64x8x32xf32>
    %c0_5 = arith.constant 0 : index
    %c0_6 = arith.constant 0 : index
    %2 = vector.load %arg1[%c0_5, %c0_6] : memref<64x32xf32, #tpu.memory_space<vmem>>, vector<64x32xf32>
    %3 = vector.shape_cast %2 : vector<64x32xf32> to vector<64x1x32xf32>
    %4 = vector.broadcast %3 : vector<64x1x32xf32> to vector<64x8x32xf32>
    %5 = arith.subf %0, %4 : vector<64x8x32xf32>
    %6 = arith.addf %5, %1 : vector<64x8x32xf32>
    %c0_7 = arith.constant 0 : index
    %c0_8 = arith.constant 0 : index
    %c0_9 = arith.constant 0 : index
    %7 = vector.load %arg3[%c0_7, %c0_8, %c0_9] : memref<64x8x32xf32, #tpu.memory_space<vmem>>, vector<64x8x32xf32>
    %8 = arith.addf %7, %1 : vector<64x8x32xf32>
    %9 = vector.shape_cast %6 : vector<64x8x32xf32> to vector<512x32xf32>
    %c0_10 = arith.constant 0 : index
    %c0_11 = arith.constant 0 : index
    %10 = vector.load %arg6[%c0_10, %c0_11] : memref<32x4xf32, #tpu.memory_space<vmem>>, vector<32x4xf32>
    %cst = arith.constant dense<0.000000e+00> : vector<512x4xf32>
    %11 = tpu.matmul %9, %10, %cst {dimension_numbers = #tpu.dot_dimension_numbers<[1], [0], [0], [1], [0, 0, 1, 1], [], []>} : vector<512x32xf32>, vector<32x4xf32>, vector<512x4xf32> -> vector<512x4xf32>
    %c0_12 = arith.constant 0 : index
    %c0_13 = arith.constant 0 : index
    %12 = vector.load %arg7[%c0_12, %c0_13] : memref<1x4xf32, #tpu.memory_space<vmem>>, vector<1x4xf32>
    %13 = vector.broadcast %12 : vector<1x4xf32> to vector<512x4xf32>
    %14 = arith.addf %11, %13 : vector<512x4xf32>
    %cst_14 = arith.constant 0.000000e+00 : f32
    %15 = vector.broadcast %cst_14 : f32 to vector<512x4xf32>
    %16 = arith.maximumf %14, %15 : vector<512x4xf32>
    %c0_15 = arith.constant 0 : index
    %c0_16 = arith.constant 0 : index
    %17 = vector.load %arg8[%c0_15, %c0_16] : memref<4x4xf32, #tpu.memory_space<vmem>>, vector<4x4xf32>
    %cst_17 = arith.constant dense<0.000000e+00> : vector<512x4xf32>
    %18 = tpu.matmul %16, %17, %cst_17 {dimension_numbers = #tpu.dot_dimension_numbers<[1], [0], [0], [1], [0, 0, 1, 1], [], []>} : vector<512x4xf32>, vector<4x4xf32>, vector<512x4xf32> -> vector<512x4xf32>
    %c0_18 = arith.constant 0 : index
    %c0_19 = arith.constant 0 : index
    %19 = vector.load %arg9[%c0_18, %c0_19] : memref<1x4xf32, #tpu.memory_space<vmem>>, vector<1x4xf32>
    %20 = vector.broadcast %19 : vector<1x4xf32> to vector<512x4xf32>
    %21 = arith.addf %18, %20 : vector<512x4xf32>
    %22 = vector.shape_cast %21 : vector<512x4xf32> to vector<64x8x4xf32>
    %cst_20 = arith.constant dense<0xFF800000> : vector<64x4xf32>
    %23 = vector.multi_reduction <maximumf>, %22, %cst_20 [1] : vector<64x8x4xf32> to vector<64x4xf32>
    %24 = vector.shape_cast %23 : vector<64x4xf32> to vector<64x1x4xf32>
    %25 = vector.broadcast %24 : vector<64x1x4xf32> to vector<64x8x4xf32>
    %26 = arith.subf %22, %25 : vector<64x8x4xf32>
    %27 = math.exp %26 : vector<64x8x4xf32>
    %cst_21 = arith.constant dense<0.000000e+00> : vector<64x4xf32>
    %28 = vector.multi_reduction <add>, %27, %cst_21 [1] : vector<64x8x4xf32> to vector<64x4xf32>
    %29 = vector.shape_cast %28 : vector<64x4xf32> to vector<64x1x4xf32>
    %30 = vector.broadcast %29 : vector<64x1x4xf32> to vector<64x8x4xf32>
    %31 = arith.divf %27, %30 : vector<64x8x4xf32>
    %c0_22 = arith.constant 0 : index
    %c0_23 = arith.constant 0 : index
    %c0_24 = arith.constant 0 : index
    %32 = vector.load %arg5[%c0_22, %c0_23, %c0_24] : memref<64x8x1xf32, #tpu.memory_space<vmem>>, vector<64x8x1xf32>
    %33 = vector.broadcast %32 : vector<64x8x1xf32> to vector<64x8x4xf32>
    %34 = arith.mulf %31, %33 : vector<64x8x4xf32>
    %35 = vector.extract_strided_slice %34 {offsets = [0, 0, 0], sizes = [64, 8, 1], strides = [1, 1, 1]} : vector<64x8x4xf32> to vector<64x8x1xf32>
    %36 = vector.shape_cast %35 : vector<64x8x1xf32> to vector<64x8x1xf32>
    %37 = vector.broadcast %36 : vector<64x8x1xf32> to vector<64x8x8xf32>
    %38 = vector.extract_strided_slice %34 {offsets = [0, 0, 1], sizes = [64, 8, 1], strides = [1, 1, 1]} : vector<64x8x4xf32> to vector<64x8x1xf32>
    %39 = vector.shape_cast %38 : vector<64x8x1xf32> to vector<64x8x1xf32>
    %40 = vector.broadcast %39 : vector<64x8x1xf32> to vector<64x8x8xf32>
    %41 = vector.extract_strided_slice %34 {offsets = [0, 0, 2], sizes = [64, 8, 1], strides = [1, 1, 1]} : vector<64x8x4xf32> to vector<64x8x1xf32>
    %42 = vector.shape_cast %41 : vector<64x8x1xf32> to vector<64x8x1xf32>
    %43 = vector.broadcast %42 : vector<64x8x1xf32> to vector<64x8x8xf32>
    %44 = vector.extract_strided_slice %34 {offsets = [0, 0, 3], sizes = [64, 8, 1], strides = [1, 1, 1]} : vector<64x8x4xf32> to vector<64x8x1xf32>
    %45 = vector.shape_cast %44 : vector<64x8x1xf32> to vector<64x8x1xf32>
    %46 = vector.broadcast %45 : vector<64x8x1xf32> to vector<64x8x8xf32>
    %47 = tpu.concatenate %37, %40, %43, %46 in 2 : vector<64x8x8xf32>, vector<64x8x8xf32>, vector<64x8x8xf32>, vector<64x8x8xf32> -> vector<64x8x32xf32>
    %48 = arith.mulf %8, %47 : vector<64x8x32xf32>
    %cst_25 = arith.constant dense<0.000000e+00> : vector<64x32xf32>
    %49 = vector.multi_reduction <add>, %48, %cst_25 [1] : vector<64x8x32xf32> to vector<64x32xf32>
    %c0_26 = arith.constant 0 : index
    %c0_27 = arith.constant 0 : index
    %50 = vector.load %arg10[%c0_26, %c0_27] : memref<1x32xf32, #tpu.memory_space<vmem>>, vector<1x32xf32>
    %51 = vector.broadcast %50 : vector<1x32xf32> to vector<64x32xf32>
    %52 = arith.mulf %49, %51 : vector<64x32xf32>
    %c0_28 = arith.constant 0 : index
    %c0_29 = arith.constant 0 : index
    %53 = vector.load %arg11[%c0_28, %c0_29] : memref<1x32xf32, #tpu.memory_space<vmem>>, vector<1x32xf32>
    %54 = vector.broadcast %53 : vector<1x32xf32> to vector<64x32xf32>
    %55 = arith.addf %52, %54 : vector<64x32xf32>
    %cst_30 = arith.constant 0.000000e+00 : f32
    %56 = vector.broadcast %cst_30 : f32 to vector<64x32xf32>
    %57 = arith.maximumf %55, %56 : vector<64x32xf32>
    %c0_31 = arith.constant 0 : index
    %c0_32 = arith.constant 0 : index
    %58 = vector.load %arg12[%c0_31, %c0_32] : memref<64x32xf32, #tpu.memory_space<vmem>>, vector<64x32xf32>
    tpu.vector_store %arg12[%c0_31, %c0_32], %57 {strides = array<i32>} : memref<64x32xf32, #tpu.memory_space<vmem>>, vector<64x32xf32>,
    return
  }
  func.func @transform_0(%arg0: i32) -> (i32, i32) {
    %c0_i32 = arith.constant 0 : i32
    %c0_i32_0 = arith.constant 0 : i32
    return %arg0, %c0_i32 : i32, i32
  }
  func.func @transform_1(%arg0: i32) -> (i32, i32, i32) {
    %c0_i32 = arith.constant 0 : i32
    %c0_i32_0 = arith.constant 0 : i32
    %c0_i32_1 = arith.constant 0 : i32
    return %arg0, %c0_i32, %c0_i32_0 : i32, i32, i32
  }
  func.func @transform_2(%arg0: i32) -> (i32, i32, i32) {
    %c0_i32 = arith.constant 0 : i32
    %c0_i32_0 = arith.constant 0 : i32
    %c0_i32_1 = arith.constant 0 : i32
    return %arg0, %c0_i32, %c0_i32_0 : i32, i32, i32
  }
  func.func @transform_3(%arg0: i32) -> (i32, i32, i32) {
    %c0_i32 = arith.constant 0 : i32
    %c0_i32_0 = arith.constant 0 : i32
    %c0_i32_1 = arith.constant 0 : i32
    return %arg0, %c0_i32, %c0_i32_0 : i32, i32, i32
  }
  func.func @transform_4(%arg0: i32) -> (i32, i32, i32) {
    %c0_i32 = arith.constant 0 : i32
    %c0_i32_0 = arith.constant 0 : i32
    %c0_i32_1 = arith.constant 0 : i32
    return %arg0, %c0_i32, %c0_i32_0 : i32, i32, i32
  }
  func.func @transform_5(%arg0: i32) -> (i32, i32) {
    %c0_i32 = arith.constant 0 : i32
    %c0_i32_0 = arith.constant 0 : i32
    %c0_i32_1 = arith.constant 0 : i32
    return %c0_i32, %c0_i32_0 : i32, i32
  }
  func.func @transform_6(%arg0: i32) -> (i32, i32) {
    %c0_i32 = arith.constant 0 : i32
    %c0_i32_0 = arith.constant 0 : i32
    %c0_i32_1 = arith.constant 0 : i32
    return %c0_i32, %c0_i32_0 : i32, i32
  }
  func.func @transform_7(%arg0: i32) -> (i32, i32) {
    %c0_i32 = arith.constant 0 : i32
    %c0_i32_0 = arith.constant 0 : i32
    %c0_i32_1 = arith.constant 0 : i32
    return %c0_i32, %c0_i32_0 : i32, i32
  }
  func.func @transform_8(%arg0: i32) -> (i32, i32) {
    %c0_i32 = arith.constant 0 : i32
    %c0_i32_0 = arith.constant 0 : i32
    %c0_i32_1 = arith.constant 0 : i32
    return %c0_i32, %c0_i32_0 : i32, i32
  }
  func.func @transform_9(%arg0: i32) -> (i32, i32) {
    %c0_i32 = arith.constant 0 : i32
    %c0_i32_0 = arith.constant 0 : i32
    %c0_i32_1 = arith.constant 0 : i32
    return %c0_i32, %c0_i32_0 : i32, i32
  }
  func.func @transform_10(%arg0: i32) -> (i32, i32) {
    %c0_i32 = arith.constant 0 : i32
    %c0_i32_0 = arith.constant 0 : i32
    %c0_i32_1 = arith.constant 0 : i32
    return %c0_i32, %c0_i32_0 : i32, i32
  }
  func.func @transform_11(%arg0: i32) -> (i32, i32) {
    %c0_i32 = arith.constant 0 : i32
    %c0_i32_0 = arith.constant 0 : i32
    return %arg0, %c0_i32 : i32, i32
  }
}

module attributes {stable_mosaic.version = 11 : i64} {
  func.func @_linear_kernel(%arg0: i32, %arg1: memref<64x32xf32, #tpu.memory_space<vmem>>, %arg2: memref<32x32xf32, #tpu.memory_space<vmem>>, %arg3: memref<1x32xf32, #tpu.memory_space<vmem>>, %arg4: memref<64x32xf32, #tpu.memory_space<vmem>>, %arg5: memref<64x32xf32, #tpu.memory_space<vmem>>) attributes {dimension_semantics = [#tpu.dimension_semantics<parallel>], iteration_bounds = array<i64: 1>, scalar_prefetch = 0 : i64, scratch_operands = 0 : i64, tpu.core_type = #tpu.core_type<tc>, window_params = [{transform_indices = @transform_0, window_bounds = array<i64: 64, 32>}, {pipeline_mode = #tpu.pipeline_mode<synchronous>, transform_indices = @transform_1, window_bounds = array<i64: 32, 32>}, {pipeline_mode = #tpu.pipeline_mode<synchronous>, transform_indices = @transform_2, window_bounds = array<i64: 1, 32>}, {transform_indices = @transform_3, window_bounds = array<i64: 64, 32>}, {transform_indices = @transform_4, window_bounds = array<i64: 64, 32>}]} {
    %c0 = arith.constant 0 : index
    %c0_0 = arith.constant 0 : index
    %0 = vector.load %arg1[%c0, %c0_0] : memref<64x32xf32, #tpu.memory_space<vmem>>, vector<64x32xf32>
    %c0_1 = arith.constant 0 : index
    %c0_2 = arith.constant 0 : index
    %1 = vector.load %arg2[%c0_1, %c0_2] : memref<32x32xf32, #tpu.memory_space<vmem>>, vector<32x32xf32>
    %cst = arith.constant dense<0.000000e+00> : vector<64x32xf32>
    %2 = tpu.matmul %0, %1, %cst {dimension_numbers = #tpu.dot_dimension_numbers<[1], [0], [0], [1], [0, 0, 1, 1], [], []>} : vector<64x32xf32>, vector<32x32xf32>, vector<64x32xf32> -> vector<64x32xf32>
    %c0_3 = arith.constant 0 : index
    %c0_4 = arith.constant 0 : index
    %3 = vector.load %arg3[%c0_3, %c0_4] : memref<1x32xf32, #tpu.memory_space<vmem>>, vector<1x32xf32>
    %4 = vector.broadcast %3 : vector<1x32xf32> to vector<64x32xf32>
    %5 = arith.addf %2, %4 : vector<64x32xf32>
    %c0_5 = arith.constant 0 : index
    %c0_6 = arith.constant 0 : index
    %6 = vector.load %arg4[%c0_5, %c0_6] : memref<64x32xf32, #tpu.memory_space<vmem>>, vector<64x32xf32>
    %7 = arith.addf %5, %6 : vector<64x32xf32>
    %cst_7 = arith.constant 0.000000e+00 : f32
    %8 = vector.broadcast %cst_7 : f32 to vector<64x32xf32>
    %9 = arith.maximumf %7, %8 : vector<64x32xf32>
    %c0_8 = arith.constant 0 : index
    %c0_9 = arith.constant 0 : index
    %10 = vector.load %arg5[%c0_8, %c0_9] : memref<64x32xf32, #tpu.memory_space<vmem>>, vector<64x32xf32>
    tpu.vector_store %arg5[%c0_8, %c0_9], %9 {strides = array<i32>} : memref<64x32xf32, #tpu.memory_space<vmem>>, vector<64x32xf32>,
    return
  }
  func.func @transform_0(%arg0: i32) -> (i32, i32) {
    %c0_i32 = arith.constant 0 : i32
    %c0_i32_0 = arith.constant 0 : i32
    return %arg0, %c0_i32 : i32, i32
  }
  func.func @transform_1(%arg0: i32) -> (i32, i32) {
    %c0_i32 = arith.constant 0 : i32
    %c0_i32_0 = arith.constant 0 : i32
    %c0_i32_1 = arith.constant 0 : i32
    return %c0_i32, %c0_i32_0 : i32, i32
  }
  func.func @transform_2(%arg0: i32) -> (i32, i32) {
    %c0_i32 = arith.constant 0 : i32
    %c0_i32_0 = arith.constant 0 : i32
    %c0_i32_1 = arith.constant 0 : i32
    return %c0_i32, %c0_i32_0 : i32, i32
  }
  func.func @transform_3(%arg0: i32) -> (i32, i32) {
    %c0_i32 = arith.constant 0 : i32
    %c0_i32_0 = arith.constant 0 : i32
    return %arg0, %c0_i32 : i32, i32
  }
  func.func @transform_4(%arg0: i32) -> (i32, i32) {
    %c0_i32 = arith.constant 0 : i32
    %c0_i32_0 = arith.constant 0 : i32
    return %arg0, %c0_i32 : i32, i32
  }
}

</mosaic_0001>

<bundles_post_ra>
// kernel: custom-call
= control target key start
LH: loop header
LB: loop body
LE: loop exit
PB: predicated region body
PF: predicated region fallthrough
CT: control target
= control target key end

     0   :  { %s6_s0 = inlined_call_operand.vmem [shape: u32[64], index: 0, kind: output, shape index: {}]  }

// kernel: gva_patch_embed.11
= control target key start
LH: loop header
LB: loop body
LE: loop exit
PB: predicated region body
PF: predicated region fallthrough
CT: control target
= control target key end

     0   :  { %vm55_vm0 = vcmask 1045504   ;;  %vm30_vm1 = vcmask 48128   ;;  %vm172_vm2 = vcmask 261120   ;;  %s310_s1 = inlined_call_operand.vmem [shape: f32[6,32], index: 1, kind: input, shape index: {}]   ;;  %s311_s0 = inlined_call_operand.vmem [shape: f32[64,6], index: 0, kind: input, shape index: {}]   ;;  %s312_s2 = inlined_call_operand.vmem [shape: f32[1,32], index: 2, kind: input, shape index: {}]   ;;  %s313_s3 = inlined_call_operand.vmem [shape: f32[64,32], index: 3, kind: output, shape index: {}]  }
   0x1   :  { %v22_v0 = vld [vmem:[%s310_s1] sm:$0x3f]  ;;  %v15_v3 = vld [vmem:[%s311_s0 + $0x8] sm:$0xff]  ;;  %v16_v5 = vld [vmem:[%s311_s0 + $0x10] sm:$0xff] }
   0x2   :  { %v14_v1 = vld [vmem:[%s311_s0] sm:$0xff]  ;;  %204 = vmatprep.subr.msk.mxu0 %vm55_vm0, %v22_v0  ;;  %218 = vmatprep.subr.msk.mxu1 %vm55_vm0, %v22_v0  ;;  %v19_v4 = vld [vmem:[%s311_s0 + $0x28] sm:$0xff]  ;;  %v20_v6 = vld [vmem:[%s311_s0 + $0x30] sm:$0xff] }
   0x3   :  { %v18_v2 = vld [vmem:[%s311_s0 + $0x20] sm:$0xff]  ;;  %205 = vmatpush3.msk.msra.mxu0 %vm55_vm0, %v22_v0  ;;  %219 = vmatpush3.msk.msra.mxu1 %vm55_vm0, %v22_v0  ;;  %v17_v7 = vld [vmem:[%s311_s0 + $0x18] sm:$0xff] }
   0x4   :  { %206 = vmatprep.mubr.msk.f32.mxu0 %vm30_vm1, %v14_v1  ;;  %212 = vmatprep.mubr.msk.f32.mxu1 %vm30_vm1, %v18_v2  ;;  %v21_v8 = vld [vmem:[%s311_s0 + $0x38] sm:$0xff]  ;;  %v185_v9 = vld [vmem:[%s312_s2] ss:$0 sm:$0xff] }
   0x5   :  { %207 = vmatmul.mubr.msk.f32.vlgmr.msra.gmra.mrb[0].mxu0 %vm30_vm1, %v15_v3  ;;  %213 = vmatmul.mubr.msk.f32.vlgmr.msra.gmra.mrb[0].mxu1 %vm30_vm1, %v19_v4 }
   0x6   :  { %209 = vmatprep.mubr.msk.f32.mxu0 %vm30_vm1, %v16_v5  ;;  %215 = vmatprep.mubr.msk.f32.mxu1 %vm30_vm1, %v20_v6 }
   0x9   :  { %210 = vmatmul.mubr.msk.f32.gmra.mrb[2].mxu0 %vm30_vm1, %v17_v7  ;;  %216 = vmatmul.mubr.msk.f32.gmra.mrb[2].mxu1 %vm30_vm1, %v21_v8 }
  0xd8   :  { %v208_v10 = vpop.f32.mrb[0].mxu0  ;;  %v214_v11 = vpop.f32.mrb[0].mxu1 }
  0xd9   :  { %v131_v12 = vadd.f32 %v208_v10, %v185_v9  ;;  %v151_v13 = vadd.f32 %v214_v11, %v185_v9  ;;  %v125_v14 = vpop.f32.mrb[1].mxu0  ;;  %v145_v15 = vpop.f32.mrb[1].mxu1 }
  0xda   :  { %v126_v16 = vadd.f32 %v185_v9, %v125_v14  ;;  %v146_v17 = vadd.f32 %v185_v9, %v145_v15 }
  0xdb   :  { %v165_v18 = vmax.f32 %v131_v12, 0.0  ;;  %v169_v19 = vmax.f32 %v151_v13, 0.0 }
  0xdc   :  { %v164_v20 = vmax.f32 %v126_v16, 0.0  ;;  %v168_v21 = vmax.f32 %v146_v17, 0.0  ;;  %v211_v22 = vpop.f32.mrb[2].mxu0  ;;  %v217_v23 = vpop.f32.mrb[2].mxu1 }
  0xdd   :  { %174 = vst.msk [vmem:[%s313_s3 + $0x8] sm:$0xff] %vm172_vm2, %v165_v18  ;;  %178 = vst.msk [vmem:[%s313_s3 + $0x28] sm:$0xff] %vm172_vm2, %v169_v19  ;;  %v141_v24 = vadd.f32 %v211_v22, %v185_v9  ;;  %v161_v25 = vadd.f32 %v217_v23, %v185_v9  ;;  %v135_v26 = vpop.f32.mrb[3].mxu0  ;;  %v155_v27 = vpop.f32.mrb[3].mxu1 }
  0xde   :  { %173 = vst.msk [vmem:[%s313_s3] sm:$0xff] %vm172_vm2, %v164_v20  ;;  %177 = vst.msk [vmem:[%s313_s3 + $0x20] sm:$0xff] %vm172_vm2, %v168_v21  ;;  %v136_v28 = vadd.f32 %v185_v9, %v135_v26  ;;  %v156_v29 = vadd.f32 %v185_v9, %v155_v27 }
  0xdf   :  { %v167_v30 = vmax.f32 %v141_v24, 0.0  ;;  %v171_v31 = vmax.f32 %v161_v25, 0.0 }
  0xe0   :  { %v166_v32 = vmax.f32 %v136_v28, 0.0  ;;  %v170_v33 = vmax.f32 %v156_v29, 0.0 }
  0xe1   :  { %176 = vst.msk [vmem:[%s313_s3 + $0x18] sm:$0xff] %vm172_vm2, %v167_v30  ;;  %180 = vst.msk [vmem:[%s313_s3 + $0x38] sm:$0xff] %vm172_vm2, %v171_v31 }
  0xe2   :  { %175 = vst.msk [vmem:[%s313_s3 + $0x10] sm:$0xff] %vm172_vm2, %v166_v32  ;;  %179 = vst.msk [vmem:[%s313_s3 + $0x30] sm:$0xff] %vm172_vm2, %v170_v33 }

// kernel: gva_patch_embed.12
= control target key start
LH: loop header
LB: loop body
LE: loop exit
PB: predicated region body
PF: predicated region fallthrough
CT: control target
= control target key end

     0   :  { %vm33_vm0 = vcmask 261120   ;;  %s335_s1 = inlined_call_operand.vmem [shape: f32[32,32], index: 1, kind: input, shape index: {}]   ;;  %s336_s0 = inlined_call_operand.vmem [shape: f32[64,32], index: 0, kind: input, shape index: {}]   ;;  %s337_s2 = inlined_call_operand.vmem [shape: f32[1,32], index: 2, kind: input, shape index: {}]   ;;  %s338_s3 = inlined_call_operand.vmem [shape: f32[64,32], index: 3, kind: output, shape index: {}]  }
   0x1   :  { %v22_v0 = vld [vmem:[%s335_s1] sm:$0xff]  ;;  %v23_v1 = vld [vmem:[%s335_s1 + $0x8] sm:$0xff]  ;;  %v24_v2 = vld [vmem:[%s335_s1 + $0x10] sm:$0xff] }
   0x2   :  { %v224_v3 = vpack.c.bf16 %v23_v1, %v22_v0  ;;  %v25_v4 = vld [vmem:[%s335_s1 + $0x18] sm:$0xff]  ;;  %v14_v5 = vld [vmem:[%s336_s0] sm:$0xff]  ;;  %v15_v8 = vld [vmem:[%s336_s0 + $0x8] sm:$0xff] }
   0x3   :  { %v18_v6 = vld [vmem:[%s336_s0 + $0x20] sm:$0xff]  ;;  %v228_v7 = vpack.c.bf16 %v25_v4, %v24_v2  ;;  %212 = vmatprep.mubr.msk.f32.mxu0 %vm33_vm0, %v14_v5  ;;  %v19_v9 = vld [vmem:[%s336_s0 + $0x28] sm:$0xff]  ;;  %v16_v10 = vld [vmem:[%s336_s0 + $0x10] sm:$0xff] }
   0x4   :  { %218 = vmatprep.mubr.msk.f32.mxu1 %vm33_vm0, %v18_v6  ;;  %225 = vmatprep.subr.bf16.mxu0 %v224_v3  ;;  %v20_v11 = vld [vmem:[%s336_s0 + $0x30] sm:$0xff]  ;;  %v17_v12 = vld [vmem:[%s336_s0 + $0x18] sm:$0xff]  ;;  %v183_v14 = vld [vmem:[%s337_s2] ss:$0 sm:$0xff] }
   0x5   :  { %232 = vmatprep.subr.bf16.mxu1 %v224_v3  ;;  %227 = vmatpush3.bf16.msra.mxu0 %v224_v3  ;;  %v21_v13 = vld [vmem:[%s336_s0 + $0x38] sm:$0xff] }
   0x6   :  { %234 = vmatpush3.bf16.msra.mxu1 %v224_v3  ;;  %229 = vmatprep.subr.bf16.mxu0 %v228_v7 }
   0x7   :  { %233 = vmatprep.subr.bf16.mxu1 %v228_v7 }
   0x9   :  { %231 = vmatpush3.bf16.msra.mxu0 %v228_v7 }
   0xa   :  { %235 = vmatpush3.bf16.msra.mxu1 %v228_v7 }
   0xc   :  { %213 = vmatmul.mubr.msk.f32.vlgmr.msra.gmra.mrb[0].mxu0 %vm33_vm0, %v15_v8 }
   0xd   :  { %219 = vmatmul.mubr.msk.f32.vlgmr.msra.gmra.mrb[0].mxu1 %vm33_vm0, %v19_v9  ;;  %215 = vmatprep.mubr.msk.f32.mxu0 %vm33_vm0, %v16_v10 }
   0xe   :  { %221 = vmatprep.mubr.msk.f32.mxu1 %vm33_vm0, %v20_v11 }
  0x10   :  { %216 = vmatmul.mubr.msk.f32.gmra.mrb[2].mxu0 %vm33_vm0, %v17_v12 }
  0x11   :  { %222 = vmatmul.mubr.msk.f32.gmra.mrb[2].mxu1 %vm33_vm0, %v21_v13 }
  0xdf   :  { %v214_v15 = vpop.f32.mrb[0].mxu0 }
  0xe0   :  { %v220_v16 = vpop.f32.mrb[0].mxu1  ;;  %v130_v17 = vadd.f32 %v214_v15, %v183_v14  ;;  %v124_v19 = vpop.f32.mrb[1].mxu0 }
  0xe1   :  { %v150_v18 = vadd.f32 %v220_v16, %v183_v14  ;;  %v144_v20 = vpop.f32.mrb[1].mxu1  ;;  %v125_v21 = vadd.f32 %v183_v14, %v124_v19 }
  0xe2   :  { %v145_v22 = vadd.f32 %v183_v14, %v144_v20  ;;  %v164_v23 = vmax.f32 %v130_v17, 0.0 }
  0xe3   :  { %v168_v24 = vmax.f32 %v150_v18, 0.0  ;;  %v163_v25 = vmax.f32 %v125_v21, 0.0  ;;  %v217_v27 = vpop.f32.mrb[2].mxu0 }
  0xe4   :  { %v167_v26 = vmax.f32 %v145_v22, 0.0  ;;  %v223_v28 = vpop.f32.mrb[2].mxu1  ;;  %172 = vst.msk [vmem:[%s338_s3 + $0x8] sm:$0xff] %vm33_vm0, %v164_v23  ;;  %v140_v29 = vadd.f32 %v217_v27, %v183_v14  ;;  %v134_v31 = vpop.f32.mrb[3].mxu0 }
  0xe5   :  { %176 = vst.msk [vmem:[%s338_s3 + $0x28] sm:$0xff] %vm33_vm0, %v168_v24  ;;  %v160_v30 = vadd.f32 %v223_v28, %v183_v14  ;;  %v154_v32 = vpop.f32.mrb[3].mxu1  ;;  %171 = vst.msk [vmem:[%s338_s3] sm:$0xff] %vm33_vm0, %v163_v25  ;;  %v135_v33 = vadd.f32 %v183_v14, %v134_v31 }
  0xe6   :  { %175 = vst.msk [vmem:[%s338_s3 + $0x20] sm:$0xff] %vm33_vm0, %v167_v26  ;;  %v155_v34 = vadd.f32 %v183_v14, %v154_v32  ;;  %v166_v35 = vmax.f32 %v140_v29, 0.0 }
  0xe7   :  { %v170_v36 = vmax.f32 %v160_v30, 0.0  ;;  %v165_v37 = vmax.f32 %v135_v33, 0.0 }
  0xe8   :  { %v169_v38 = vmax.f32 %v155_v34, 0.0  ;;  %174 = vst.msk [vmem:[%s338_s3 + $0x18] sm:$0xff] %vm33_vm0, %v166_v35 }
  0xe9   :  { %178 = vst.msk [vmem:[%s338_s3 + $0x38] sm:$0xff] %vm33_vm0, %v170_v36  ;;  %173 = vst.msk [vmem:[%s338_s3 + $0x10] sm:$0xff] %vm33_vm0, %v165_v37 }
  0xea   :  { %177 = vst.msk [vmem:[%s338_s3 + $0x30] sm:$0xff] %vm33_vm0, %v169_v38 }

// kernel: gva_patch_embed.13
= control target key start
LH: loop header
LB: loop body
LE: loop exit
PB: predicated region body
PF: predicated region fallthrough
CT: control target
= control target key end

     0   :  { %vm36_vm0 = vcmask 261120   ;;  %vm181_vm1 = vcmask 785408   ;;  %s355_s1 = inlined_call_operand.vmem [shape: f32[32,96], index: 1, kind: input, shape index: {}]   ;;  %s356_s0 = inlined_call_operand.vmem [shape: f32[64,32], index: 0, kind: input, shape index: {}]   ;;  %s357_s2 = inlined_call_operand.vmem [shape: f32[1,96], index: 2, kind: input, shape index: {}]   ;;  %s358_s3 = inlined_call_operand.vmem [shape: f32[1,96], index: 3, kind: input, shape index: {}]   ;;  %s359_s4 = inlined_call_operand.vmem [shape: f32[64,96], index: 4, kind: output, shape index: {}]  }
   0x1   :  { %v25_v0 = vld [vmem:[%s355_s1] sm:$0xff]  ;;  %v26_v1 = vld [vmem:[%s355_s1 + $0x8] sm:$0xff]  ;;  %v27_v2 = vld [vmem:[%s355_s1 + $0x10] sm:$0xff] }
   0x2   :  { %v236_v3 = vpack.c.bf16 %v26_v1, %v25_v0  ;;  %v28_v4 = vld [vmem:[%s355_s1 + $0x18] sm:$0xff]  ;;  %v17_v5 = vld [vmem:[%s356_s0] sm:$0xff]  ;;  %v18_v8 = vld [vmem:[%s356_s0 + $0x8] sm:$0xff] }
   0x3   :  { %v21_v6 = vld [vmem:[%s356_s0 + $0x20] sm:$0xff]  ;;  %v240_v7 = vpack.c.bf16 %v28_v4, %v27_v2  ;;  %224 = vmatprep.mubr.msk.f32.mxu0 %vm36_vm0, %v17_v5  ;;  %v22_v9 = vld [vmem:[%s356_s0 + $0x28] sm:$0xff]  ;;  %v19_v10 = vld [vmem:[%s356_s0 + $0x10] sm:$0xff] }
   0x4   :  { %230 = vmatprep.mubr.msk.f32.mxu1 %vm36_vm0, %v21_v6  ;;  %237 = vmatprep.subr.bf16.mxu0 %v236_v3  ;;  %v23_v11 = vld [vmem:[%s356_s0 + $0x30] sm:$0xff]  ;;  %v20_v12 = vld [vmem:[%s356_s0 + $0x18] sm:$0xff]  ;;  %v194_v14 = vld [vmem:[%s357_s2] ss:$0 sm:$0xff] }
   0x5   :  { %244 = vmatprep.subr.bf16.mxu1 %v236_v3  ;;  %239 = vmatpush3.bf16.msra.mxu0 %v236_v3  ;;  %v24_v13 = vld [vmem:[%s356_s0 + $0x38] sm:$0xff]  ;;  %v203_v16 = vld [vmem:[%s358_s3] ss:$0 sm:$0xff] }
   0x6   :  { %246 = vmatpush3.bf16.msra.mxu1 %v236_v3  ;;  %241 = vmatprep.subr.bf16.mxu0 %v240_v7 }
   0x7   :  { %245 = vmatprep.subr.bf16.mxu1 %v240_v7 }
   0x9   :  { %243 = vmatpush3.bf16.msra.mxu0 %v240_v7 }
   0xa   :  { %247 = vmatpush3.bf16.msra.mxu1 %v240_v7 }
   0xc   :  { %225 = vmatmul.mubr.msk.f32.vlgmr.msra.gmra.mrb[0].mxu0 %vm36_vm0, %v18_v8 }
   0xd   :  { %231 = vmatmul.mubr.msk.f32.vlgmr.msra.gmra.mrb[0].mxu1 %vm36_vm0, %v22_v9  ;;  %227 = vmatprep.mubr.msk.f32.mxu0 %vm36_vm0, %v19_v10 }
   0xe   :  { %233 = vmatprep.mubr.msk.f32.mxu1 %vm36_vm0, %v23_v11 }
  0x10   :  { %228 = vmatmul.mubr.msk.f32.gmra.mrb[2].mxu0 %vm36_vm0, %v20_v12 }
  0x11   :  { %234 = vmatmul.mubr.msk.f32.gmra.mrb[2].mxu1 %vm36_vm0, %v24_v13 }
  0xdf   :  { %v226_v15 = vpop.f32.mrb[0].mxu0 }
  0xe0   :  { %v232_v17 = vpop.f32.mrb[0].mxu1  ;;  %v133_v18 = vadd.f32 %v226_v15, %v194_v14  ;;  %v127_v20 = vpop.f32.mrb[1].mxu0 }
  0xe1   :  { %v153_v19 = vadd.f32 %v232_v17, %v194_v14  ;;  %v147_v21 = vpop.f32.mrb[1].mxu1  ;;  %v128_v22 = vadd.f32 %v194_v14, %v127_v20 }
  0xe2   :  { %v148_v23 = vadd.f32 %v194_v14, %v147_v21  ;;  %v174_v24 = vmax.f32 %v133_v18, %v203_v16 }
  0xe3   :  { %v178_v25 = vmax.f32 %v153_v19, %v203_v16  ;;  %v173_v26 = vmax.f32 %v128_v22, %v203_v16  ;;  %v229_v28 = vpop.f32.mrb[2].mxu0 }
  0xe4   :  { %v177_v27 = vmax.f32 %v148_v23, %v203_v16  ;;  %v235_v29 = vpop.f32.mrb[2].mxu1  ;;  %183 = vst.msk [vmem:[%s359_s4 + $0x8] sm:$0xff] %vm181_vm1, %v174_v24  ;;  %v143_v30 = vadd.f32 %v229_v28, %v194_v14  ;;  %v137_v32 = vpop.f32.mrb[3].mxu0 }
  0xe5   :  { %187 = vst.msk [vmem:[%s359_s4 + $0x28] sm:$0xff] %vm181_vm1, %v178_v25  ;;  %v163_v31 = vadd.f32 %v235_v29, %v194_v14  ;;  %v157_v33 = vpop.f32.mrb[3].mxu1  ;;  %182 = vst.msk [vmem:[%s359_s4] sm:$0xff] %vm181_vm1, %v173_v26  ;;  %v138_v34 = vadd.f32 %v194_v14, %v137_v32 }
  0xe6   :  { %186 = vst.msk [vmem:[%s359_s4 + $0x20] sm:$0xff] %vm181_vm1, %v177_v27  ;;  %v158_v35 = vadd.f32 %v194_v14, %v157_v33  ;;  %v176_v36 = vmax.f32 %v143_v30, %v203_v16 }
  0xe7   :  { %v180_v37 = vmax.f32 %v163_v31, %v203_v16  ;;  %v175_v38 = vmax.f32 %v138_v34, %v203_v16 }
  0xe8   :  { %v179_v39 = vmax.f32 %v158_v35, %v203_v16  ;;  %185 = vst.msk [vmem:[%s359_s4 + $0x18] sm:$0xff] %vm181_vm1, %v176_v36 }
  0xe9   :  { %189 = vst.msk [vmem:[%s359_s4 + $0x38] sm:$0xff] %vm181_vm1, %v180_v37  ;;  %184 = vst.msk [vmem:[%s359_s4 + $0x10] sm:$0xff] %vm181_vm1, %v175_v38 }
  0xea   :  { %188 = vst.msk [vmem:[%s359_s4 + $0x30] sm:$0xff] %vm181_vm1, %v179_v39 }

// kernel: gva_patch_embed.16
= control target key start
LH: loop header
LB: loop body
LE: loop exit
PB: predicated region body
PF: predicated region fallthrough
CT: control target
= control target key end

     0   :  { %vm36_vm0 = vcmask 261120   ;;  %s383_s1 = inlined_call_operand.vmem [shape: f32[32,32], index: 1, kind: input, shape index: {}]   ;;  %s384_s0 = inlined_call_operand.vmem [shape: f32[64,32], index: 0, kind: input, shape index: {}]   ;;  %s385_s2 = inlined_call_operand.vmem [shape: f32[1,32], index: 2, kind: input, shape index: {}]   ;;  %s386_s3 = inlined_call_operand.vmem [shape: f32[64,32], index: 3, kind: input, shape index: {}]   ;;  %s387_s4 = inlined_call_operand.vmem [shape: f32[64,32], index: 4, kind: output, shape index: {}]  }
   0x1   :  { %v25_v0 = vld [vmem:[%s383_s1] sm:$0xff]  ;;  %v26_v1 = vld [vmem:[%s383_s1 + $0x8] sm:$0xff]  ;;  %v27_v2 = vld [vmem:[%s383_s1 + $0x10] sm:$0xff] }
   0x2   :  { %v243_v3 = vpack.c.bf16 %v26_v1, %v25_v0  ;;  %v28_v4 = vld [vmem:[%s383_s1 + $0x18] sm:$0xff]  ;;  %v17_v5 = vld [vmem:[%s384_s0] sm:$0xff]  ;;  %v18_v8 = vld [vmem:[%s384_s0 + $0x8] sm:$0xff] }
   0x3   :  { %v21_v6 = vld [vmem:[%s384_s0 + $0x20] sm:$0xff]  ;;  %v247_v7 = vpack.c.bf16 %v28_v4, %v27_v2  ;;  %231 = vmatprep.mubr.msk.f32.mxu0 %vm36_vm0, %v17_v5  ;;  %v22_v9 = vld [vmem:[%s384_s0 + $0x28] sm:$0xff]  ;;  %v19_v10 = vld [vmem:[%s384_s0 + $0x10] sm:$0xff] }
   0x4   :  { %237 = vmatprep.mubr.msk.f32.mxu1 %vm36_vm0, %v21_v6  ;;  %244 = vmatprep.subr.bf16.mxu0 %v243_v3  ;;  %v23_v11 = vld [vmem:[%s384_s0 + $0x30] sm:$0xff]  ;;  %v20_v12 = vld [vmem:[%s384_s0 + $0x18] sm:$0xff]  ;;  %v202_v14 = vld [vmem:[%s385_s2] ss:$0 sm:$0xff] }
   0x5   :  { %251 = vmatprep.subr.bf16.mxu1 %v243_v3  ;;  %246 = vmatpush3.bf16.msra.mxu0 %v243_v3  ;;  %v24_v13 = vld [vmem:[%s384_s0 + $0x38] sm:$0xff]  ;;  %v167_v16 = vld [vmem:[%s386_s3 + $0x8] sm:$0xff]  ;;  %v166_v22 = vld [vmem:[%s386_s3] sm:$0xff] }
   0x6   :  { %253 = vmatpush3.bf16.msra.mxu1 %v243_v3  ;;  %248 = vmatprep.subr.bf16.mxu0 %v247_v7  ;;  %v171_v18 = vld [vmem:[%s386_s3 + $0x28] sm:$0xff]  ;;  %v170_v24 = vld [vmem:[%s386_s3 + $0x20] sm:$0xff]  ;;  %v169_v32 = vld [vmem:[%s386_s3 + $0x18] sm:$0xff] }
   0x7   :  { %252 = vmatprep.subr.bf16.mxu1 %v247_v7  ;;  %v173_v34 = vld [vmem:[%s386_s3 + $0x38] sm:$0xff]  ;;  %v168_v40 = vld [vmem:[%s386_s3 + $0x10] sm:$0xff] }
   0x8   :  { %v172_v42 = vld [vmem:[%s386_s3 + $0x30] sm:$0xff] }
   0x9   :  { %250 = vmatpush3.bf16.msra.mxu0 %v247_v7 }
   0xa   :  { %254 = vmatpush3.bf16.msra.mxu1 %v247_v7 }
   0xc   :  { %232 = vmatmul.mubr.msk.f32.vlgmr.msra.gmra.mrb[0].mxu0 %vm36_vm0, %v18_v8 }
   0xd   :  { %238 = vmatmul.mubr.msk.f32.vlgmr.msra.gmra.mrb[0].mxu1 %vm36_vm0, %v22_v9  ;;  %234 = vmatprep.mubr.msk.f32.mxu0 %vm36_vm0, %v19_v10 }
   0xe   :  { %240 = vmatprep.mubr.msk.f32.mxu1 %vm36_vm0, %v23_v11 }
  0x10   :  { %235 = vmatmul.mubr.msk.f32.gmra.mrb[2].mxu0 %vm36_vm0, %v20_v12 }
  0x11   :  { %241 = vmatmul.mubr.msk.f32.gmra.mrb[2].mxu1 %vm36_vm0, %v24_v13 }
  0xdf   :  { %v233_v15 = vpop.f32.mrb[0].mxu0 }
  0xe0   :  { %v239_v17 = vpop.f32.mrb[0].mxu1  ;;  %v133_v19 = vadd.f32 %v233_v15, %v202_v14  ;;  %v127_v21 = vpop.f32.mrb[1].mxu0 }
  0xe1   :  { %v153_v20 = vadd.f32 %v239_v17, %v202_v14  ;;  %v147_v23 = vpop.f32.mrb[1].mxu1  ;;  %v128_v25 = vadd.f32 %v202_v14, %v127_v21 }
  0xe2   :  { %v148_v26 = vadd.f32 %v202_v14, %v147_v23  ;;  %v175_v27 = vadd.f32 %v167_v16, %v133_v19 }
  0xe3   :  { %v179_v28 = vadd.f32 %v171_v18, %v153_v20  ;;  %v174_v29 = vadd.f32 %v166_v22, %v128_v25  ;;  %v236_v31 = vpop.f32.mrb[2].mxu0 }
  0xe4   :  { %v178_v30 = vadd.f32 %v170_v24, %v148_v26  ;;  %v242_v33 = vpop.f32.mrb[2].mxu1  ;;  %v183_v35 = vmax.f32 %v175_v27, 0.0  ;;  %v143_v37 = vadd.f32 %v236_v31, %v202_v14  ;;  %v137_v39 = vpop.f32.mrb[3].mxu0 }
  0xe5   :  { %v187_v36 = vmax.f32 %v179_v28, 0.0  ;;  %v163_v38 = vadd.f32 %v242_v33, %v202_v14  ;;  %v157_v41 = vpop.f32.mrb[3].mxu1  ;;  %v182_v43 = vmax.f32 %v174_v29, 0.0  ;;  %v138_v45 = vadd.f32 %v202_v14, %v137_v39 }
  0xe6   :  { %v186_v44 = vmax.f32 %v178_v30, 0.0  ;;  %v158_v46 = vadd.f32 %v202_v14, %v157_v41  ;;  %191 = vst.msk [vmem:[%s387_s4 + $0x8] sm:$0xff] %vm36_vm0, %v183_v35  ;;  %v177_v47 = vadd.f32 %v169_v32, %v143_v37 }
  0xe7   :  { %195 = vst.msk [vmem:[%s387_s4 + $0x28] sm:$0xff] %vm36_vm0, %v187_v36  ;;  %v181_v48 = vadd.f32 %v173_v34, %v163_v38  ;;  %190 = vst.msk [vmem:[%s387_s4] sm:$0xff] %vm36_vm0, %v182_v43  ;;  %v176_v49 = vadd.f32 %v168_v40, %v138_v45 }
  0xe8   :  { %194 = vst.msk [vmem:[%s387_s4 + $0x20] sm:$0xff] %vm36_vm0, %v186_v44  ;;  %v180_v50 = vadd.f32 %v172_v42, %v158_v46  ;;  %v185_v51 = vmax.f32 %v177_v47, 0.0 }
  0xe9   :  { %v189_v52 = vmax.f32 %v181_v48, 0.0  ;;  %v184_v53 = vmax.f32 %v176_v49, 0.0 }
  0xea   :  { %v188_v54 = vmax.f32 %v180_v50, 0.0  ;;  %193 = vst.msk [vmem:[%s387_s4 + $0x18] sm:$0xff] %vm36_vm0, %v185_v51 }
  0xeb   :  { %197 = vst.msk [vmem:[%s387_s4 + $0x38] sm:$0xff] %vm36_vm0, %v189_v52  ;;  %192 = vst.msk [vmem:[%s387_s4 + $0x10] sm:$0xff] %vm36_vm0, %v184_v53 }
  0xec   :  { %196 = vst.msk [vmem:[%s387_s4 + $0x30] sm:$0xff] %vm36_vm0, %v188_v54 }

// kernel: gva_patch_embed.14
= control target key start
LH: loop header
LB: loop body
LE: loop exit
PB: predicated region body
PF: predicated region fallthrough
CT: control target
= control target key end

     0   :  { %vm285_vm0 = vcmask 1042432   ;;  %vm92_vm1 = vcmask 23552   ;;  %vm749_vm2 = vcmask 261120   ;;  %s2628_s1 = inlined_call_operand.vmem [shape: f32[3,32], index: 1, kind: input, shape index: {}]   ;;  %s2629_s0 = inlined_call_operand.vmem [shape: f32[512,3], index: 0, kind: input, shape index: {}]   ;;  %s2630_s3 = inlined_call_operand.vmem [shape: f32[32,32], index: 3, kind: input, shape index: {}]   ;;  %s2631_s2 = inlined_call_operand.vmem [shape: f32[1,32], index: 2, kind: input, shape index: {}]   ;;  %s2632_s4 = inlined_call_operand.vmem [shape: f32[1,32], index: 4, kind: input, shape index: {}]   ;;  %s2633_s5 = inlined_call_operand.vmem [shape: f32[512,32], index: 5, kind: output, shape index: {}]  }
   0x1   :  { %v84_v0 = vld [vmem:[%s2628_s1] sm:$0x7]  ;;  %v21_v2 = vld [vmem:[%s2629_s0 + $0x8] sm:$0xff]  ;;  %v22_v3 = vld [vmem:[%s2629_s0 + $0x10] sm:$0xff] }
   0x2   :  { %v20_v1 = vld [vmem:[%s2629_s0] sm:$0xff]  ;;  %1659 = vmatprep.subr.msk.mxu0 %vm285_vm0, %v84_v0  ;;  %v23_v4 = vld [vmem:[%s2629_s0 + $0x18] sm:$0xff]  ;;  %v25_v6 = vld [vmem:[%s2629_s0 + $0x28] sm:$0xff] }
   0x3   :  { %1661 = vmatprep.mubr.msk.f32.mxu0 %vm92_vm1, %v20_v1  ;;  %1660 = vmatpush3.msk.msra.mxu0 %vm285_vm0, %v84_v0  ;;  %v24_v5 = vld [vmem:[%s2629_s0 + $0x20] sm:$0xff]  ;;  %v26_v7 = vld [vmem:[%s2629_s0 + $0x30] sm:$0xff]  ;;  %v27_v8 = vld [vmem:[%s2629_s0 + $0x38] sm:$0xff] }
   0x4   :  { %1662 = vmatmul.mubr.msk.f32.vlgmr.msra.gmra.mrb[0].mxu0 %vm92_vm1, %v21_v2  ;;  %v28_v9 = vld [vmem:[%s2629_s0 + $0x40] sm:$0xff]  ;;  %v29_v10 = vld [vmem:[%s2629_s0 + $0x48] sm:$0xff]  ;;  %v30_v11 = vld [vmem:[%s2629_s0 + $0x50] sm:$0xff] }
   0x5   :  { %1664 = vmatprep.mubr.msk.f32.mxu0 %vm92_vm1, %v22_v3  ;;  %v31_v12 = vld [vmem:[%s2629_s0 + $0x58] sm:$0xff]  ;;  %v32_v13 = vld [vmem:[%s2629_s0 + $0x60] sm:$0xff]  ;;  %v739_v15 = vld [vmem:[%s2630_s3 + $0x8] sm:$0xff] }
   0x6   :  { %v738_v14 = vld [vmem:[%s2630_s3] sm:$0xff]  ;;  %v33_v17 = vld [vmem:[%s2629_s0 + $0x68] sm:$0xff]  ;;  %v34_v18 = vld [vmem:[%s2629_s0 + $0x70] sm:$0xff] }
   0x7   :  { %v1861_v16 = vpack.c.bf16 %v739_v15, %v738_v14  ;;  %v35_v19 = vld [vmem:[%s2629_s0 + $0x78] sm:$0xff]  ;;  %v36_v20 = vld [vmem:[%s2629_s0 + $0x80] sm:$0xff]  ;;  %v37_v21 = vld [vmem:[%s2629_s0 + $0x88] sm:$0xff] }
   0x8   :  { %1665 = vmatmul.mubr.msk.f32.gmra.mrb[2].mxu0 %vm92_vm1, %v23_v4  ;;  %v38_v22 = vld [vmem:[%s2629_s0 + $0x90] sm:$0xff]  ;;  %v39_v23 = vld [vmem:[%s2629_s0 + $0x98] sm:$0xff]  ;;  %v40_v24 = vld [vmem:[%s2629_s0 + $0xa0] sm:$0xff] }
   0x9   :  { %1667 = vmatprep.mubr.msk.f32.mxu0 %vm92_vm1, %v24_v5  ;;  %1862 = vmatprep.subr.bf16.mxu1 %v1861_v16  ;;  %v41_v25 = vld [vmem:[%s2629_s0 + $0xa8] sm:$0xff]  ;;  %v42_v26 = vld [vmem:[%s2629_s0 + $0xb0] sm:$0xff]  ;;  %v43_v27 = vld [vmem:[%s2629_s0 + $0xb8] sm:$0xff] }
   0xa   :  { %1864 = vmatpush3.bf16.msra.mxu1 %v1861_v16  ;;  %v44_v28 = vld [vmem:[%s2629_s0 + $0xc0] sm:$0xff]  ;;  %v45_v29 = vld [vmem:[%s2629_s0 + $0xc8] sm:$0xff]  ;;  %v46_v30 = vld [vmem:[%s2629_s0 + $0xd0] sm:$0xff] }
   0xb   :  { %v47_v31 = vld [vmem:[%s2629_s0 + $0xd8] sm:$0xff]  ;;  %v48_v32 = vld [vmem:[%s2629_s0 + $0xe0] sm:$0xff]  ;;  %v49_v33 = vld [vmem:[%s2629_s0 + $0xe8] sm:$0xff] }
   0xc   :  { %1668 = vmatmul.mubr.msk.f32.gmra.mrb[4].mxu0 %vm92_vm1, %v25_v6  ;;  %v50_v34 = vld [vmem:[%s2629_s0 + $0xf0] sm:$0xff]  ;;  %v51_v35 = vld [vmem:[%s2629_s0 + $0xf8] sm:$0xff]  ;;  %v52_v36 = vld [vmem:[%s2629_s0 + $0x100] sm:$0xff] }
   0xd   :  { %1670 = vmatprep.mubr.msk.f32.mxu0 %vm92_vm1, %v26_v7  ;;  %v53_v37 = vld [vmem:[%s2629_s0 + $0x108] sm:$0xff]  ;;  %v54_v38 = vld [vmem:[%s2629_s0 + $0x110] sm:$0xff]  ;;  %v55_v39 = vld [vmem:[%s2629_s0 + $0x118] sm:$0xff] }
   0xe   :  { %v56_v40 = vld [vmem:[%s2629_s0 + $0x120] sm:$0xff]  ;;  %v57_v41 = vld [vmem:[%s2629_s0 + $0x128] sm:$0xff]  ;;  %v58_v42 = vld [vmem:[%s2629_s0 + $0x130] sm:$0xff] }
   0xf   :  { %v59_v43 = vld [vmem:[%s2629_s0 + $0x138] sm:$0xff]  ;;  %v60_v44 = vld [vmem:[%s2629_s0 + $0x140] sm:$0xff]  ;;  %v61_v45 = vld [vmem:[%s2629_s0 + $0x148] sm:$0xff] }
  0x10   :  { %1671 = vmatmul.mubr.msk.f32.gmra.mrb[6].mxu0 %vm92_vm1, %v27_v8  ;;  %v62_v46 = vld [vmem:[%s2629_s0 + $0x150] sm:$0xff]  ;;  %v63_v47 = vld [vmem:[%s2629_s0 + $0x158] sm:$0xff]  ;;  %v64_v48 = vld [vmem:[%s2629_s0 + $0x160] sm:$0xff] }
  0x11   :  { %1673 = vmatprep.mubr.msk.f32.mxu0 %vm92_vm1, %v28_v9  ;;  %v740_v49 = vld [vmem:[%s2630_s3 + $0x10] sm:$0xff]  ;;  %v741_v50 = vld [vmem:[%s2630_s3 + $0x18] sm:$0xff]  ;;  %v65_v52 = vld [vmem:[%s2629_s0 + $0x168] sm:$0xff] }
  0x12   :  { %v1865_v51 = vpack.c.bf16 %v741_v50, %v740_v49  ;;  %v66_v53 = vld [vmem:[%s2629_s0 + $0x170] sm:$0xff]  ;;  %v67_v54 = vld [vmem:[%s2629_s0 + $0x178] sm:$0xff]  ;;  %v68_v55 = vld [vmem:[%s2629_s0 + $0x180] sm:$0xff] }
  0x13   :  { %v69_v56 = vld [vmem:[%s2629_s0 + $0x188] sm:$0xff]  ;;  %v70_v57 = vld [vmem:[%s2629_s0 + $0x190] sm:$0xff]  ;;  %v71_v58 = vld [vmem:[%s2629_s0 + $0x198] sm:$0xff] }
  0x14   :  { %1674 = vmatmul.mubr.msk.f32.gmra.mrb[8].mxu0 %vm92_vm1, %v29_v10  ;;  %1866 = vmatprep.subr.bf16.mxu1 %v1865_v51  ;;  %v72_v59 = vld [vmem:[%s2629_s0 + $0x1a0] sm:$0xff]  ;;  %v73_v60 = vld [vmem:[%s2629_s0 + $0x1a8] sm:$0xff]  ;;  %v74_v61 = vld [vmem:[%s2629_s0 + $0x1b0] sm:$0xff] }
  0x15   :  { %1676 = vmatprep.mubr.msk.f32.mxu0 %vm92_vm1, %v30_v11  ;;  %1868 = vmatpush3.bf16.msra.mxu1 %v1865_v51  ;;  %v75_v62 = vld [vmem:[%s2629_s0 + $0x1b8] sm:$0xff]  ;;  %v76_v63 = vld [vmem:[%s2629_s0 + $0x1c0] sm:$0xff]  ;;  %v77_v0 = vld [vmem:[%s2629_s0 + $0x1c8] sm:$0xff] }
  0x16   :  { %v78_v1 = vld [vmem:[%s2629_s0 + $0x1d0] sm:$0xff]  ;;  %v79_v2 = vld [vmem:[%s2629_s0 + $0x1d8] sm:$0xff]  ;;  %v80_v3 = vld [vmem:[%s2629_s0 + $0x1e0] sm:$0xff] }
  0x17   :  { %v81_v4 = vld [vmem:[%s2629_s0 + $0x1e8] sm:$0xff]  ;;  %v82_v5 = vld [vmem:[%s2629_s0 + $0x1f0] sm:$0xff]  ;;  %v83_v6 = vld [vmem:[%s2629_s0 + $0x1f8] sm:$0xff] }
  0x18   :  { %1677 = vmatmul.mubr.msk.f32.gmra.mrb[10].mxu0 %vm92_vm1, %v31_v12  ;;  %v2173_v7 = vld [vmem:[%s2631_s2] ss:$0 sm:$0xff] }
  0x19   :  { %1679 = vmatprep.mubr.msk.f32.mxu0 %vm92_vm1, %v32_v13 }
  0x1c   :  { %1680 = vmatmul.mubr.msk.f32.gmra.mrb[12].mxu0 %vm92_vm1, %v33_v17 }
  0x1d   :  { %1682 = vmatprep.mubr.msk.f32.mxu0 %vm92_vm1, %v34_v18 }
  0x20   :  { %1683 = vmatmul.mubr.msk.f32.gmra.mrb[14].mxu0 %vm92_vm1, %v35_v19 }
  0x21   :  { %1685 = vmatprep.mubr.msk.f32.mxu0 %vm92_vm1, %v36_v20 }
  0x24   :  { %1686 = vmatmul.mubr.msk.f32.gmra.mrb[16].mxu0 %vm92_vm1, %v37_v21 }
  0x25   :  { %1688 = vmatprep.mubr.msk.f32.mxu0 %vm92_vm1, %v38_v22 }
  0x28   :  { %1689 = vmatmul.mubr.msk.f32.gmra.mrb[18].mxu0 %vm92_vm1, %v39_v23 }
  0x29   :  { %1691 = vmatprep.mubr.msk.f32.mxu0 %vm92_vm1, %v40_v24 }
  0x2c   :  { %1692 = vmatmul.mubr.msk.f32.gmra.mrb[20].mxu0 %vm92_vm1, %v41_v25 }
  0x2d   :  { %1694 = vmatprep.mubr.msk.f32.mxu0 %vm92_vm1, %v42_v26 }
  0x30   :  { %1695 = vmatmul.mubr.msk.f32.gmra.mrb[22].mxu0 %vm92_vm1, %v43_v27 }
  0x31   :  { %1697 = vmatprep.mubr.msk.f32.mxu0 %vm92_vm1, %v44_v28 }
  0x34   :  { %1698 = vmatmul.mubr.msk.f32.gmra.mrb[24].mxu0 %vm92_vm1, %v45_v29 }
  0x35   :  { %1700 = vmatprep.mubr.msk.f32.mxu0 %vm92_vm1, %v46_v30 }
  0x38   :  { %1701 = vmatmul.mubr.msk.f32.gmra.mrb[26].mxu0 %vm92_vm1, %v47_v31 }
  0x39   :  { %1703 = vmatprep.mubr.msk.f32.mxu0 %vm92_vm1, %v48_v32 }
  0x3c   :  { %1704 = vmatmul.mubr.msk.f32.gmra.mrb[28].mxu0 %vm92_vm1, %v49_v33 }
  0x3d   :  { %1706 = vmatprep.mubr.msk.f32.mxu0 %vm92_vm1, %v50_v34 }
  0x40   :  { %1707 = vmatmul.mubr.msk.f32.gmra.mrb[30].mxu0 %vm92_vm1, %v51_v35 }
  0x41   :  { %1709 = vmatprep.mubr.msk.f32.mxu0 %vm92_vm1, %v52_v36 }
  0x44   :  { %1710 = vmatmul.mubr.msk.f32.gmra.mrb[32].mxu0 %vm92_vm1, %v53_v37 }
  0x45   :  { %1712 = vmatprep.mubr.msk.f32.mxu0 %vm92_vm1, %v54_v38 }
  0x48   :  { %1713 = vmatmul.mubr.msk.f32.gmra.mrb[34].mxu0 %vm92_vm1, %v55_v39 }
  0x49   :  { %1715 = vmatprep.mubr.msk.f32.mxu0 %vm92_vm1, %v56_v40 }
  0x4c   :  { %1716 = vmatmul.mubr.msk.f32.gmra.mrb[36].mxu0 %vm92_vm1, %v57_v41 }
  0x4d   :  { %1718 = vmatprep.mubr.msk.f32.mxu0 %vm92_vm1, %v58_v42 }
  0x50   :  { %1719 = vmatmul.mubr.msk.f32.gmra.mrb[38].mxu0 %vm92_vm1, %v59_v43 }
  0x51   :  { %1721 = vmatprep.mubr.msk.f32.mxu0 %vm92_vm1, %v60_v44 }
  0x54   :  { %1722 = vmatmul.mubr.msk.f32.gmra.mrb[40].mxu0 %vm92_vm1, %v61_v45 }
  0x55   :  { %1724 = vmatprep.mubr.msk.f32.mxu0 %vm92_vm1, %v62_v46 }
  0x58   :  { %1725 = vmatmul.mubr.msk.f32.gmra.mrb[42].mxu0 %vm92_vm1, %v63_v47 }
  0x59   :  { %1727 = vmatprep.mubr.msk.f32.mxu0 %vm92_vm1, %v64_v48 }
  0x5c   :  { %1728 = vmatmul.mubr.msk.f32.gmra.mrb[44].mxu0 %vm92_vm1, %v65_v52 }
  0x5d   :  { %1730 = vmatprep.mubr.msk.f32.mxu0 %vm92_vm1, %v66_v53 }
  0x60   :  { %1731 = vmatmul.mubr.msk.f32.gmra.mrb[46].mxu0 %vm92_vm1, %v67_v54 }
  0x61   :  { %1733 = vmatprep.mubr.msk.f32.mxu0 %vm92_vm1, %v68_v55 }
  0x64   :  { %1734 = vmatmul.mubr.msk.f32.gmra.mrb[48].mxu0 %vm92_vm1, %v69_v56 }
  0x65   :  { %1736 = vmatprep.mubr.msk.f32.mxu0 %vm92_vm1, %v70_v57 }
  0x68   :  { %1737 = vmatmul.mubr.msk.f32.gmra.mrb[50].mxu0 %vm92_vm1, %v71_v58 }
  0x69   :  { %1739 = vmatprep.mubr.msk.f32.mxu0 %vm92_vm1, %v72_v59 }
  0x6c   :  { %1740 = vmatmul.mubr.msk.f32.gmra.mrb[52].mxu0 %vm92_vm1, %v73_v60 }
  0x6d   :  { %1742 = vmatprep.mubr.msk.f32.mxu0 %vm92_vm1, %v74_v61 }
  0x70   :  { %1743 = vmatmul.mubr.msk.f32.gmra.mrb[54].mxu0 %vm92_vm1, %v75_v62 }
  0x71   :  { %1745 = vmatprep.mubr.msk.f32.mxu0 %vm92_vm1, %v76_v63 }
  0x74   :  { %1746 = vmatmul.mubr.msk.f32.gmra.mrb[56].mxu0 %vm92_vm1, %v77_v0 }
  0x75   :  { %1748 = vmatprep.mubr.msk.f32.mxu0 %vm92_vm1, %v78_v1 }
  0x78   :  { %1749 = vmatmul.mubr.msk.f32.gmra.mrb[58].mxu0 %vm92_vm1, %v79_v2 }
  0x79   :  { %1751 = vmatprep.mubr.msk.f32.mxu0 %vm92_vm1, %v80_v3 }
  0x7c   :  { %1752 = vmatmul.mubr.msk.f32.gmra.mrb[60].mxu0 %vm92_vm1, %v81_v4 }
  0x7d   :  { %1754 = vmatprep.mubr.msk.f32.mxu0 %vm92_vm1, %v82_v5 }
  0x80   :  { %1755 = vmatmul.mubr.msk.f32.gmra.mrb[62].mxu0 %vm92_vm1, %v83_v6 }
  0xd7   :  { %v1663_v8 = vpop.f32.mrb[0].mxu0 }
  0xd8   :  { %v361_v9 = vadd.f32 %v1663_v8, %v2173_v7  ;;  %v355_v10 = vpop.f32.mrb[1].mxu0 }
  0xd9   :  { %v356_v11 = vadd.f32 %v2173_v7, %v355_v10 }
  0xda   :  { %v675_v14 = vmax.f32 %v361_v9, 0.0 }
  0xdb   :  { %v674_v12 = vmax.f32 %v356_v11, 0.0  ;;  %v1666_v13 = vpop.f32.mrb[2].mxu0 }
  0xdc   :  { %v371_v15 = vadd.f32 %v1666_v13, %v2173_v7  ;;  %v365_v16 = vpop.f32.mrb[3].mxu0 }
  0xdd   :  { %v366_v17 = vadd.f32 %v2173_v7, %v365_v16  ;;  %1765 = vmatprep.mubr.msk.f32.mxu1 %vm749_vm2, %v674_v12 }
  0xde   :  { %1766 = vmatmul.mubr.msk.f32.vlgmr.msra.gmra.mrb[0].mxu1 %vm749_vm2, %v675_v14  ;;  %v677_v20 = vmax.f32 %v371_v15, 0.0 }
  0xdf   :  { %v676_v18 = vmax.f32 %v366_v17, 0.0  ;;  %v1669_v19 = vpop.f32.mrb[4].mxu0 }
  0xe0   :  { %v381_v21 = vadd.f32 %v1669_v19, %v2173_v7  ;;  %v375_v22 = vpop.f32.mrb[5].mxu0 }
  0xe1   :  { %v376_v23 = vadd.f32 %v2173_v7, %v375_v22  ;;  %1768 = vmatprep.mubr.msk.f32.mxu1 %vm749_vm2, %v676_v18 }
  0xe2   :  { %1769 = vmatmul.mubr.msk.f32.gmra.mrb[2].mxu1 %vm749_vm2, %v677_v20  ;;  %v679_v26 = vmax.f32 %v381_v21, 0.0 }
  0xe3   :  { %v678_v24 = vmax.f32 %v376_v23, 0.0  ;;  %v1672_v25 = vpop.f32.mrb[6].mxu0 }
  0xe4   :  { %v391_v27 = vadd.f32 %v1672_v25, %v2173_v7  ;;  %v385_v28 = vpop.f32.mrb[7].mxu0 }
  0xe5   :  { %v386_v29 = vadd.f32 %v2173_v7, %v385_v28  ;;  %1771 = vmatprep.mubr.msk.f32.mxu1 %vm749_vm2, %v678_v24 }
  0xe6   :  { %1772 = vmatmul.mubr.msk.f32.gmra.mrb[4].mxu1 %vm749_vm2, %v679_v26  ;;  %v681_v32 = vmax.f32 %v391_v27, 0.0 }
  0xe7   :  { %v680_v30 = vmax.f32 %v386_v29, 0.0  ;;  %v1675_v31 = vpop.f32.mrb[8].mxu0 }
  0xe8   :  { %v401_v33 = vadd.f32 %v1675_v31, %v2173_v7  ;;  %v395_v34 = vpop.f32.mrb[9].mxu0 }
  0xe9   :  { %v396_v35 = vadd.f32 %v2173_v7, %v395_v34  ;;  %1774 = vmatprep.mubr.msk.f32.mxu1 %vm749_vm2, %v680_v30 }
  0xea   :  { %1775 = vmatmul.mubr.msk.f32.gmra.mrb[6].mxu1 %vm749_vm2, %v681_v32  ;;  %v683_v38 = vmax.f32 %v401_v33, 0.0 }
  0xeb   :  { %v682_v36 = vmax.f32 %v396_v35, 0.0  ;;  %v1678_v37 = vpop.f32.mrb[10].mxu0 }
  0xec   :  { %v411_v39 = vadd.f32 %v1678_v37, %v2173_v7  ;;  %v405_v40 = vpop.f32.mrb[11].mxu0 }
  0xed   :  { %v406_v41 = vadd.f32 %v2173_v7, %v405_v40  ;;  %1777 = vmatprep.mubr.msk.f32.mxu1 %vm749_vm2, %v682_v36 }
  0xee   :  { %1778 = vmatmul.mubr.msk.f32.gmra.mrb[8].mxu1 %vm749_vm2, %v683_v38  ;;  %v685_v44 = vmax.f32 %v411_v39, 0.0 }
  0xef   :  { %v684_v42 = vmax.f32 %v406_v41, 0.0  ;;  %v1681_v43 = vpop.f32.mrb[12].mxu0 }
  0xf0   :  { %v421_v45 = vadd.f32 %v1681_v43, %v2173_v7  ;;  %v415_v46 = vpop.f32.mrb[13].mxu0 }
  0xf1   :  { %v416_v47 = vadd.f32 %v2173_v7, %v415_v46  ;;  %1780 = vmatprep.mubr.msk.f32.mxu1 %vm749_vm2, %v684_v42 }
  0xf2   :  { %1781 = vmatmul.mubr.msk.f32.gmra.mrb[10].mxu1 %vm749_vm2, %v685_v44  ;;  %v687_v50 = vmax.f32 %v421_v45, 0.0 }
  0xf3   :  { %v686_v48 = vmax.f32 %v416_v47, 0.0  ;;  %v1684_v49 = vpop.f32.mrb[14].mxu0 }
  0xf4   :  { %v431_v51 = vadd.f32 %v1684_v49, %v2173_v7  ;;  %v425_v52 = vpop.f32.mrb[15].mxu0 }
  0xf5   :  { %v426_v53 = vadd.f32 %v2173_v7, %v425_v52  ;;  %1783 = vmatprep.mubr.msk.f32.mxu1 %vm749_vm2, %v686_v48 }
  0xf6   :  { %1784 = vmatmul.mubr.msk.f32.gmra.mrb[12].mxu1 %vm749_vm2, %v687_v50  ;;  %v689_v56 = vmax.f32 %v431_v51, 0.0 }
  0xf7   :  { %v688_v54 = vmax.f32 %v426_v53, 0.0  ;;  %v1687_v55 = vpop.f32.mrb[16].mxu0 }
  0xf8   :  { %v441_v57 = vadd.f32 %v1687_v55, %v2173_v7  ;;  %v435_v58 = vpop.f32.mrb[17].mxu0 }
  0xf9   :  { %v436_v59 = vadd.f32 %v2173_v7, %v435_v58  ;;  %1786 = vmatprep.mubr.msk.f32.mxu1 %vm749_vm2, %v688_v54 }
  0xfa   :  { %1787 = vmatmul.mubr.msk.f32.gmra.mrb[14].mxu1 %vm749_vm2, %v689_v56  ;;  %v691_v62 = vmax.f32 %v441_v57, 0.0 }
  0xfb   :  { %v690_v60 = vmax.f32 %v436_v59, 0.0  ;;  %v1690_v61 = vpop.f32.mrb[18].mxu0 }
  0xfc   :  { %v451_v63 = vadd.f32 %v1690_v61, %v2173_v7  ;;  %v445_v0 = vpop.f32.mrb[19].mxu0 }
  0xfd   :  { %v446_v1 = vadd.f32 %v2173_v7, %v445_v0  ;;  %1789 = vmatprep.mubr.msk.f32.mxu1 %vm749_vm2, %v690_v60 }
  0xfe   :  { %1790 = vmatmul.mubr.msk.f32.gmra.mrb[16].mxu1 %vm749_vm2, %v691_v62  ;;  %v693_v4 = vmax.f32 %v451_v63, 0.0 }
  0xff   :  { %v692_v2 = vmax.f32 %v446_v1, 0.0  ;;  %v1693_v3 = vpop.f32.mrb[20].mxu0 }
 0x100   :  { %v461_v5 = vadd.f32 %v1693_v3, %v2173_v7  ;;  %v455_v6 = vpop.f32.mrb[21].mxu0 }
 0x101   :  { %v456_v8 = vadd.f32 %v2173_v7, %v455_v6  ;;  %1792 = vmatprep.mubr.msk.f32.mxu1 %vm749_vm2, %v692_v2 }
 0x102   :  { %1793 = vmatmul.mubr.msk.f32.gmra.mrb[18].mxu1 %vm749_vm2, %v693_v4  ;;  %v695_v11 = vmax.f32 %v461_v5, 0.0 }
 0x103   :  { %v694_v9 = vmax.f32 %v456_v8, 0.0  ;;  %v1696_v10 = vpop.f32.mrb[22].mxu0 }
 0x104   :  { %v471_v12 = vadd.f32 %v1696_v10, %v2173_v7  ;;  %v465_v13 = vpop.f32.mrb[23].mxu0 }
 0x105   :  { %v466_v14 = vadd.f32 %v2173_v7, %v465_v13  ;;  %1795 = vmatprep.mubr.msk.f32.mxu1 %vm749_vm2, %v694_v9 }
 0x106   :  { %1796 = vmatmul.mubr.msk.f32.gmra.mrb[20].mxu1 %vm749_vm2, %v695_v11  ;;  %v697_v17 = vmax.f32 %v471_v12, 0.0 }
 0x107   :  { %v696_v15 = vmax.f32 %v466_v14, 0.0  ;;  %v1699_v16 = vpop.f32.mrb[24].mxu0 }
 0x108   :  { %v481_v18 = vadd.f32 %v1699_v16, %v2173_v7  ;;  %v475_v19 = vpop.f32.mrb[25].mxu0 }
 0x109   :  { %v476_v20 = vadd.f32 %v2173_v7, %v475_v19  ;;  %1798 = vmatprep.mubr.msk.f32.mxu1 %vm749_vm2, %v696_v15 }
 0x10a   :  { %1799 = vmatmul.mubr.msk.f32.gmra.mrb[22].mxu1 %vm749_vm2, %v697_v17  ;;  %v699_v23 = vmax.f32 %v481_v18, 0.0 }
 0x10b   :  { %v698_v21 = vmax.f32 %v476_v20, 0.0  ;;  %v1702_v22 = vpop.f32.mrb[26].mxu0 }
 0x10c   :  { %v491_v24 = vadd.f32 %v1702_v22, %v2173_v7  ;;  %v485_v25 = vpop.f32.mrb[27].mxu0 }
 0x10d   :  { %v486_v26 = vadd.f32 %v2173_v7, %v485_v25  ;;  %1801 = vmatprep.mubr.msk.f32.mxu1 %vm749_vm2, %v698_v21 }
 0x10e   :  { %1802 = vmatmul.mubr.msk.f32.gmra.mrb[24].mxu1 %vm749_vm2, %v699_v23  ;;  %v701_v29 = vmax.f32 %v491_v24, 0.0 }
 0x10f   :  { %v700_v27 = vmax.f32 %v486_v26, 0.0  ;;  %v1705_v28 = vpop.f32.mrb[28].mxu0 }
 0x110   :  { %v501_v30 = vadd.f32 %v1705_v28, %v2173_v7  ;;  %v495_v31 = vpop.f32.mrb[29].mxu0 }
 0x111   :  { %v496_v32 = vadd.f32 %v2173_v7, %v495_v31  ;;  %1804 = vmatprep.mubr.msk.f32.mxu1 %vm749_vm2, %v700_v27 }
 0x112   :  { %1805 = vmatmul.mubr.msk.f32.gmra.mrb[26].mxu1 %vm749_vm2, %v701_v29  ;;  %v703_v35 = vmax.f32 %v501_v30, 0.0 }
 0x113   :  { %v702_v33 = vmax.f32 %v496_v32, 0.0  ;;  %v1708_v34 = vpop.f32.mrb[30].mxu0 }
 0x114   :  { %v511_v36 = vadd.f32 %v1708_v34, %v2173_v7  ;;  %v505_v37 = vpop.f32.mrb[31].mxu0 }
 0x115   :  { %v506_v38 = vadd.f32 %v2173_v7, %v505_v37  ;;  %1807 = vmatprep.mubr.msk.f32.mxu1 %vm749_vm2, %v702_v33 }
 0x116   :  { %1808 = vmatmul.mubr.msk.f32.gmra.mrb[28].mxu1 %vm749_vm2, %v703_v35  ;;  %v705_v41 = vmax.f32 %v511_v36, 0.0 }
 0x117   :  { %v704_v39 = vmax.f32 %v506_v38, 0.0  ;;  %v1711_v40 = vpop.f32.mrb[32].mxu0 }
 0x118   :  { %v521_v42 = vadd.f32 %v1711_v40, %v2173_v7  ;;  %v515_v43 = vpop.f32.mrb[33].mxu0 }
 0x119   :  { %v516_v44 = vadd.f32 %v2173_v7, %v515_v43  ;;  %1810 = vmatprep.mubr.msk.f32.mxu1 %vm749_vm2, %v704_v39 }
 0x11a   :  { %1811 = vmatmul.mubr.msk.f32.gmra.mrb[30].mxu1 %vm749_vm2, %v705_v41  ;;  %v707_v47 = vmax.f32 %v521_v42, 0.0 }
 0x11b   :  { %v706_v45 = vmax.f32 %v516_v44, 0.0  ;;  %v1714_v46 = vpop.f32.mrb[34].mxu0 }
 0x11c   :  { %v531_v48 = vadd.f32 %v1714_v46, %v2173_v7  ;;  %v525_v49 = vpop.f32.mrb[35].mxu0 }
 0x11d   :  { %v526_v50 = vadd.f32 %v2173_v7, %v525_v49  ;;  %1813 = vmatprep.mubr.msk.f32.mxu1 %vm749_vm2, %v706_v45 }
 0x11e   :  { %1814 = vmatmul.mubr.msk.f32.gmra.mrb[32].mxu1 %vm749_vm2, %v707_v47  ;;  %v709_v53 = vmax.f32 %v531_v48, 0.0 }
 0x11f   :  { %v708_v51 = vmax.f32 %v526_v50, 0.0  ;;  %v1717_v52 = vpop.f32.mrb[36].mxu0 }
 0x120   :  { %v541_v54 = vadd.f32 %v1717_v52, %v2173_v7  ;;  %v535_v55 = vpop.f32.mrb[37].mxu0 }
 0x121   :  { %v536_v56 = vadd.f32 %v2173_v7, %v535_v55  ;;  %1816 = vmatprep.mubr.msk.f32.mxu1 %vm749_vm2, %v708_v51 }
 0x122   :  { %1817 = vmatmul.mubr.msk.f32.gmra.mrb[34].mxu1 %vm749_vm2, %v709_v53  ;;  %v711_v59 = vmax.f32 %v541_v54, 0.0 }
 0x123   :  { %v710_v57 = vmax.f32 %v536_v56, 0.0  ;;  %v1720_v58 = vpop.f32.mrb[38].mxu0 }
 0x124   :  { %v551_v60 = vadd.f32 %v1720_v58, %v2173_v7  ;;  %v545_v61 = vpop.f32.mrb[39].mxu0 }
 0x125   :  { %v546_v62 = vadd.f32 %v2173_v7, %v545_v61  ;;  %1819 = vmatprep.mubr.msk.f32.mxu1 %vm749_vm2, %v710_v57 }
 0x126   :  { %1820 = vmatmul.mubr.msk.f32.gmra.mrb[36].mxu1 %vm749_vm2, %v711_v59  ;;  %v713_v1 = vmax.f32 %v551_v60, 0.0 }
 0x127   :  { %v712_v63 = vmax.f32 %v546_v62, 0.0  ;;  %v1723_v0 = vpop.f32.mrb[40].mxu0 }
 0x128   :  { %v561_v2 = vadd.f32 %v1723_v0, %v2173_v7  ;;  %v555_v3 = vpop.f32.mrb[41].mxu0 }
 0x129   :  { %v556_v4 = vadd.f32 %v2173_v7, %v555_v3  ;;  %1822 = vmatprep.mubr.msk.f32.mxu1 %vm749_vm2, %v712_v63 }
 0x12a   :  { %1823 = vmatmul.mubr.msk.f32.gmra.mrb[38].mxu1 %vm749_vm2, %v713_v1  ;;  %v715_v8 = vmax.f32 %v561_v2, 0.0 }
 0x12b   :  { %v714_v5 = vmax.f32 %v556_v4, 0.0  ;;  %v1726_v6 = vpop.f32.mrb[42].mxu0 }
 0x12c   :  { %v571_v9 = vadd.f32 %v1726_v6, %v2173_v7  ;;  %v565_v10 = vpop.f32.mrb[43].mxu0 }
 0x12d   :  { %v566_v11 = vadd.f32 %v2173_v7, %v565_v10  ;;  %1825 = vmatprep.mubr.msk.f32.mxu1 %vm749_vm2, %v714_v5 }
 0x12e   :  { %1826 = vmatmul.mubr.msk.f32.gmra.mrb[40].mxu1 %vm749_vm2, %v715_v8  ;;  %v717_v14 = vmax.f32 %v571_v9, 0.0 }
 0x12f   :  { %v716_v12 = vmax.f32 %v566_v11, 0.0  ;;  %v1729_v13 = vpop.f32.mrb[44].mxu0  ;;  %v2306_v11 = vld [vmem:[%s2632_s4] ss:$0 sm:$0xff] }
 0x130   :  { %v581_v15 = vadd.f32 %v1729_v13, %v2173_v7  ;;  %v575_v16 = vpop.f32.mrb[45].mxu0 }
 0x131   :  { %v576_v17 = vadd.f32 %v2173_v7, %v575_v16  ;;  %1828 = vmatprep.mubr.msk.f32.mxu1 %vm749_vm2, %v716_v12 }
 0x132   :  { %1829 = vmatmul.mubr.msk.f32.gmra.mrb[42].mxu1 %vm749_vm2, %v717_v14  ;;  %v719_v20 = vmax.f32 %v581_v15, 0.0 }
 0x133   :  { %v718_v18 = vmax.f32 %v576_v17, 0.0  ;;  %v1732_v19 = vpop.f32.mrb[46].mxu0 }
 0x134   :  { %v591_v21 = vadd.f32 %v1732_v19, %v2173_v7  ;;  %v585_v22 = vpop.f32.mrb[47].mxu0 }
 0x135   :  { %v586_v23 = vadd.f32 %v2173_v7, %v585_v22  ;;  %1831 = vmatprep.mubr.msk.f32.mxu1 %vm749_vm2, %v718_v18 }
 0x136   :  { %1832 = vmatmul.mubr.msk.f32.gmra.mrb[44].mxu1 %vm749_vm2, %v719_v20  ;;  %v721_v26 = vmax.f32 %v591_v21, 0.0 }
 0x137   :  { %v720_v24 = vmax.f32 %v586_v23, 0.0  ;;  %v1735_v25 = vpop.f32.mrb[48].mxu0 }
 0x138   :  { %v601_v27 = vadd.f32 %v1735_v25, %v2173_v7  ;;  %v595_v28 = vpop.f32.mrb[49].mxu0 }
 0x139   :  { %v596_v29 = vadd.f32 %v2173_v7, %v595_v28  ;;  %1834 = vmatprep.mubr.msk.f32.mxu1 %vm749_vm2, %v720_v24 }
 0x13a   :  { %1835 = vmatmul.mubr.msk.f32.gmra.mrb[46].mxu1 %vm749_vm2, %v721_v26  ;;  %v723_v32 = vmax.f32 %v601_v27, 0.0 }
 0x13b   :  { %v722_v30 = vmax.f32 %v596_v29, 0.0  ;;  %v1738_v31 = vpop.f32.mrb[50].mxu0 }
 0x13c   :  { %v611_v33 = vadd.f32 %v1738_v31, %v2173_v7  ;;  %v605_v34 = vpop.f32.mrb[51].mxu0 }
 0x13d   :  { %v606_v35 = vadd.f32 %v2173_v7, %v605_v34  ;;  %1837 = vmatprep.mubr.msk.f32.mxu1 %vm749_vm2, %v722_v30 }
 0x13e   :  { %1838 = vmatmul.mubr.msk.f32.gmra.mrb[48].mxu1 %vm749_vm2, %v723_v32  ;;  %v725_v38 = vmax.f32 %v611_v33, 0.0 }
 0x13f   :  { %v724_v36 = vmax.f32 %v606_v35, 0.0  ;;  %v1741_v37 = vpop.f32.mrb[52].mxu0 }
 0x140   :  { %v621_v39 = vadd.f32 %v1741_v37, %v2173_v7  ;;  %v615_v40 = vpop.f32.mrb[53].mxu0 }
 0x141   :  { %v616_v41 = vadd.f32 %v2173_v7, %v615_v40  ;;  %1840 = vmatprep.mubr.msk.f32.mxu1 %vm749_vm2, %v724_v36 }
 0x142   :  { %1841 = vmatmul.mubr.msk.f32.gmra.mrb[50].mxu1 %vm749_vm2, %v725_v38  ;;  %v727_v44 = vmax.f32 %v621_v39, 0.0 }
 0x143   :  { %v726_v42 = vmax.f32 %v616_v41, 0.0  ;;  %v1744_v43 = vpop.f32.mrb[54].mxu0 }
 0x144   :  { %v631_v45 = vadd.f32 %v1744_v43, %v2173_v7  ;;  %v625_v46 = vpop.f32.mrb[55].mxu0 }
 0x145   :  { %v626_v47 = vadd.f32 %v2173_v7, %v625_v46  ;;  %1843 = vmatprep.mubr.msk.f32.mxu1 %vm749_vm2, %v726_v42 }
 0x146   :  { %1844 = vmatmul.mubr.msk.f32.gmra.mrb[52].mxu1 %vm749_vm2, %v727_v44  ;;  %v729_v50 = vmax.f32 %v631_v45, 0.0 }
 0x147   :  { %v728_v48 = vmax.f32 %v626_v47, 0.0  ;;  %v1747_v49 = vpop.f32.mrb[56].mxu0 }
 0x148   :  { %v641_v51 = vadd.f32 %v1747_v49, %v2173_v7  ;;  %v635_v52 = vpop.f32.mrb[57].mxu0 }
 0x149   :  { %v636_v53 = vadd.f32 %v2173_v7, %v635_v52  ;;  %1846 = vmatprep.mubr.msk.f32.mxu1 %vm749_vm2, %v728_v48 }
 0x14a   :  { %1847 = vmatmul.mubr.msk.f32.gmra.mrb[54].mxu1 %vm749_vm2, %v729_v50  ;;  %v731_v56 = vmax.f32 %v641_v51, 0.0 }
 0x14b   :  { %v730_v54 = vmax.f32 %v636_v53, 0.0  ;;  %v1750_v55 = vpop.f32.mrb[58].mxu0 }
 0x14c   :  { %v651_v57 = vadd.f32 %v1750_v55, %v2173_v7  ;;  %v645_v58 = vpop.f32.mrb[59].mxu0 }
 0x14d   :  { %v646_v59 = vadd.f32 %v2173_v7, %v645_v58  ;;  %1849 = vmatprep.mubr.msk.f32.mxu1 %vm749_vm2, %v730_v54 }
 0x14e   :  { %1850 = vmatmul.mubr.msk.f32.gmra.mrb[56].mxu1 %vm749_vm2, %v731_v56  ;;  %v733_v62 = vmax.f32 %v651_v57, 0.0 }
 0x14f   :  { %v732_v60 = vmax.f32 %v646_v59, 0.0  ;;  %v1753_v61 = vpop.f32.mrb[60].mxu0 }
 0x150   :  { %v661_v63 = vadd.f32 %v1753_v61, %v2173_v7  ;;  %v655_v0 = vpop.f32.mrb[61].mxu0 }
 0x151   :  { %v656_v1 = vadd.f32 %v2173_v7, %v655_v0  ;;  %1852 = vmatprep.mubr.msk.f32.mxu1 %vm749_vm2, %v732_v60 }
 0x152   :  { %1853 = vmatmul.mubr.msk.f32.gmra.mrb[58].mxu1 %vm749_vm2, %v733_v62  ;;  %v735_v4 = vmax.f32 %v661_v63, 0.0 }
 0x153   :  { %v734_v2 = vmax.f32 %v656_v1, 0.0  ;;  %v1756_v3 = vpop.f32.mrb[62].mxu0 }
 0x154   :  { %v671_v5 = vadd.f32 %v1756_v3, %v2173_v7  ;;  %v665_v6 = vpop.f32.mrb[63].mxu0 }
 0x155   :  { %v666_v8 = vadd.f32 %v2173_v7, %v665_v6  ;;  %1855 = vmatprep.mubr.msk.f32.mxu1 %vm749_vm2, %v734_v2 }
 0x156   :  { %1856 = vmatmul.mubr.msk.f32.gmra.mrb[60].mxu1 %vm749_vm2, %v735_v4  ;;  %v737_v10 = vmax.f32 %v671_v5, 0.0 }
 0x157   :  { %v736_v9 = vmax.f32 %v666_v8, 0.0 }
 0x159   :  { %1858 = vmatprep.mubr.msk.f32.mxu1 %vm749_vm2, %v736_v9 }
 0x15a   :  { %1859 = vmatmul.mubr.msk.f32.gmra.mrb[62].mxu1 %vm749_vm2, %v737_v10 }
 0x1b1   :  { %v1767_v12 = vpop.f32.mrb[0].mxu1 }
 0x1b2   :  { %v1014_v13 = vadd.f32 %v1767_v12, %v2306_v11  ;;  %v1008_v14 = vpop.f32.mrb[1].mxu1 }
 0x1b3   :  { %v1009_v7 = vadd.f32 %v2306_v11, %v1008_v14 }
 0x1b4   :  { %1328 = vst.msk [vmem:[%s2633_s5 + $0x8] sm:$0xff] %vm749_vm2, %v1014_v13 }
 0x1b5   :  { %1327 = vst.msk [vmem:[%s2633_s5] sm:$0xff] %vm749_vm2, %v1009_v7  ;;  %v1770_v15 = vpop.f32.mrb[2].mxu1 }
 0x1b6   :  { %v1024_v16 = vadd.f32 %v1770_v15, %v2306_v11  ;;  %v1018_v17 = vpop.f32.mrb[3].mxu1 }
 0x1b7   :  { %v1019_v18 = vadd.f32 %v2306_v11, %v1018_v17 }
 0x1b8   :  { %1330 = vst.msk [vmem:[%s2633_s5 + $0x18] sm:$0xff] %vm749_vm2, %v1024_v16 }
 0x1b9   :  { %1329 = vst.msk [vmem:[%s2633_s5 + $0x10] sm:$0xff] %vm749_vm2, %v1019_v18  ;;  %v1773_v19 = vpop.f32.mrb[4].mxu1 }
 0x1ba   :  { %v1034_v20 = vadd.f32 %v1773_v19, %v2306_v11  ;;  %v1028_v21 = vpop.f32.mrb[5].mxu1 }
 0x1bb   :  { %v1029_v22 = vadd.f32 %v2306_v11, %v1028_v21 }
 0x1bc   :  { %1332 = vst.msk [vmem:[%s2633_s5 + $0x28] sm:$0xff] %vm749_vm2, %v1034_v20 }
 0x1bd   :  { %1331 = vst.msk [vmem:[%s2633_s5 + $0x20] sm:$0xff] %vm749_vm2, %v1029_v22  ;;  %v1776_v23 = vpop.f32.mrb[6].mxu1 }
 0x1be   :  { %v1044_v24 = vadd.f32 %v1776_v23, %v2306_v11  ;;  %v1038_v25 = vpop.f32.mrb[7].mxu1 }
 0x1bf   :  { %v1039_v26 = vadd.f32 %v2306_v11, %v1038_v25 }
 0x1c0   :  { %1334 = vst.msk [vmem:[%s2633_s5 + $0x38] sm:$0xff] %vm749_vm2, %v1044_v24 }
 0x1c1   :  { %1333 = vst.msk [vmem:[%s2633_s5 + $0x30] sm:$0xff] %vm749_vm2, %v1039_v26  ;;  %v1779_v27 = vpop.f32.mrb[8].mxu1 }
 0x1c2   :  { %v1054_v28 = vadd.f32 %v1779_v27, %v2306_v11  ;;  %v1048_v29 = vpop.f32.mrb[9].mxu1 }
 0x1c3   :  { %v1049_v30 = vadd.f32 %v2306_v11, %v1048_v29 }
 0x1c4   :  { %1336 = vst.msk [vmem:[%s2633_s5 + $0x48] sm:$0xff] %vm749_vm2, %v1054_v28 }
 0x1c5   :  { %1335 = vst.msk [vmem:[%s2633_s5 + $0x40] sm:$0xff] %vm749_vm2, %v1049_v30  ;;  %v1782_v31 = vpop.f32.mrb[10].mxu1 }
 0x1c6   :  { %v1064_v32 = vadd.f32 %v1782_v31, %v2306_v11  ;;  %v1058_v33 = vpop.f32.mrb[11].mxu1 }
 0x1c7   :  { %v1059_v34 = vadd.f32 %v2306_v11, %v1058_v33 }
 0x1c8   :  { %1338 = vst.msk [vmem:[%s2633_s5 + $0x58] sm:$0xff] %vm749_vm2, %v1064_v32 }
 0x1c9   :  { %1337 = vst.msk [vmem:[%s2633_s5 + $0x50] sm:$0xff] %vm749_vm2, %v1059_v34  ;;  %v1785_v35 = vpop.f32.mrb[12].mxu1 }
 0x1ca   :  { %v1074_v36 = vadd.f32 %v1785_v35, %v2306_v11  ;;  %v1068_v37 = vpop.f32.mrb[13].mxu1 }
 0x1cb   :  { %v1069_v38 = vadd.f32 %v2306_v11, %v1068_v37 }
 0x1cc   :  { %1340 = vst.msk [vmem:[%s2633_s5 + $0x68] sm:$0xff] %vm749_vm2, %v1074_v36 }
 0x1cd   :  { %1339 = vst.msk [vmem:[%s2633_s5 + $0x60] sm:$0xff] %vm749_vm2, %v1069_v38  ;;  %v1788_v39 = vpop.f32.mrb[14].mxu1 }
 0x1ce   :  { %v1084_v40 = vadd.f32 %v1788_v39, %v2306_v11  ;;  %v1078_v41 = vpop.f32.mrb[15].mxu1 }
 0x1cf   :  { %v1079_v42 = vadd.f32 %v2306_v11, %v1078_v41 }
 0x1d0   :  { %1342 = vst.msk [vmem:[%s2633_s5 + $0x78] sm:$0xff] %vm749_vm2, %v1084_v40 }
 0x1d1   :  { %1341 = vst.msk [vmem:[%s2633_s5 + $0x70] sm:$0xff] %vm749_vm2, %v1079_v42  ;;  %v1791_v43 = vpop.f32.mrb[16].mxu1 }
 0x1d2   :  { %v1094_v44 = vadd.f32 %v1791_v43, %v2306_v11  ;;  %v1088_v45 = vpop.f32.mrb[17].mxu1 }
 0x1d3   :  { %v1089_v46 = vadd.f32 %v2306_v11, %v1088_v45 }
 0x1d4   :  { %1344 = vst.msk [vmem:[%s2633_s5 + $0x88] sm:$0xff] %vm749_vm2, %v1094_v44 }
 0x1d5   :  { %1343 = vst.msk [vmem:[%s2633_s5 + $0x80] sm:$0xff] %vm749_vm2, %v1089_v46  ;;  %v1794_v47 = vpop.f32.mrb[18].mxu1 }
 0x1d6   :  { %v1104_v48 = vadd.f32 %v1794_v47, %v2306_v11  ;;  %v1098_v49 = vpop.f32.mrb[19].mxu1 }
 0x1d7   :  { %v1099_v50 = vadd.f32 %v2306_v11, %v1098_v49 }
 0x1d8   :  { %1346 = vst.msk [vmem:[%s2633_s5 + $0x98] sm:$0xff] %vm749_vm2, %v1104_v48 }
 0x1d9   :  { %1345 = vst.msk [vmem:[%s2633_s5 + $0x90] sm:$0xff] %vm749_vm2, %v1099_v50  ;;  %v1797_v51 = vpop.f32.mrb[20].mxu1 }
 0x1da   :  { %v1114_v52 = vadd.f32 %v1797_v51, %v2306_v11  ;;  %v1108_v53 = vpop.f32.mrb[21].mxu1 }
 0x1db   :  { %v1109_v54 = vadd.f32 %v2306_v11, %v1108_v53 }
 0x1dc   :  { %1348 = vst.msk [vmem:[%s2633_s5 + $0xa8] sm:$0xff] %vm749_vm2, %v1114_v52 }
 0x1dd   :  { %1347 = vst.msk [vmem:[%s2633_s5 + $0xa0] sm:$0xff] %vm749_vm2, %v1109_v54  ;;  %v1800_v55 = vpop.f32.mrb[22].mxu1 }
 0x1de   :  { %v1124_v56 = vadd.f32 %v1800_v55, %v2306_v11  ;;  %v1118_v57 = vpop.f32.mrb[23].mxu1 }
 0x1df   :  { %v1119_v58 = vadd.f32 %v2306_v11, %v1118_v57 }
 0x1e0   :  { %1350 = vst.msk [vmem:[%s2633_s5 + $0xb8] sm:$0xff] %vm749_vm2, %v1124_v56 }
 0x1e1   :  { %1349 = vst.msk [vmem:[%s2633_s5 + $0xb0] sm:$0xff] %vm749_vm2, %v1119_v58  ;;  %v1803_v59 = vpop.f32.mrb[24].mxu1 }
 0x1e2   :  { %v1134_v60 = vadd.f32 %v1803_v59, %v2306_v11  ;;  %v1128_v61 = vpop.f32.mrb[25].mxu1 }
 0x1e3   :  { %v1129_v62 = vadd.f32 %v2306_v11, %v1128_v61 }
 0x1e4   :  { %1352 = vst.msk [vmem:[%s2633_s5 + $0xc8] sm:$0xff] %vm749_vm2, %v1134_v60 }
 0x1e5   :  { %1351 = vst.msk [vmem:[%s2633_s5 + $0xc0] sm:$0xff] %vm749_vm2, %v1129_v62  ;;  %v1806_v63 = vpop.f32.mrb[26].mxu1 }
 0x1e6   :  { %v1144_v0 = vadd.f32 %v1806_v63, %v2306_v11  ;;  %v1138_v1 = vpop.f32.mrb[27].mxu1 }
 0x1e7   :  { %v1139_v2 = vadd.f32 %v2306_v11, %v1138_v1 }
 0x1e8   :  { %1354 = vst.msk [vmem:[%s2633_s5 + $0xd8] sm:$0xff] %vm749_vm2, %v1144_v0 }
 0x1e9   :  { %1353 = vst.msk [vmem:[%s2633_s5 + $0xd0] sm:$0xff] %vm749_vm2, %v1139_v2  ;;  %v1809_v3 = vpop.f32.mrb[28].mxu1 }
 0x1ea   :  { %v1154_v4 = vadd.f32 %v1809_v3, %v2306_v11  ;;  %v1148_v5 = vpop.f32.mrb[29].mxu1 }
 0x1eb   :  { %v1149_v6 = vadd.f32 %v2306_v11, %v1148_v5 }
 0x1ec   :  { %1356 = vst.msk [vmem:[%s2633_s5 + $0xe8] sm:$0xff] %vm749_vm2, %v1154_v4 }
 0x1ed   :  { %1355 = vst.msk [vmem:[%s2633_s5 + $0xe0] sm:$0xff] %vm749_vm2, %v1149_v6  ;;  %v1812_v8 = vpop.f32.mrb[30].mxu1 }
 0x1ee   :  { %v1164_v9 = vadd.f32 %v1812_v8, %v2306_v11  ;;  %v1158_v10 = vpop.f32.mrb[31].mxu1 }
 0x1ef   :  { %v1159_v12 = vadd.f32 %v2306_v11, %v1158_v10 }
 0x1f0   :  { %1358 = vst.msk [vmem:[%s2633_s5 + $0xf8] sm:$0xff] %vm749_vm2, %v1164_v9 }
 0x1f1   :  { %1357 = vst.msk [vmem:[%s2633_s5 + $0xf0] sm:$0xff] %vm749_vm2, %v1159_v12  ;;  %v1815_v13 = vpop.f32.mrb[32].mxu1 }
 0x1f2   :  { %v1174_v14 = vadd.f32 %v1815_v13, %v2306_v11  ;;  %v1168_v7 = vpop.f32.mrb[33].mxu1 }
 0x1f3   :  { %v1169_v15 = vadd.f32 %v2306_v11, %v1168_v7 }
 0x1f4   :  { %1360 = vst.msk [vmem:[%s2633_s5 + $0x108] sm:$0xff] %vm749_vm2, %v1174_v14 }
 0x1f5   :  { %1359 = vst.msk [vmem:[%s2633_s5 + $0x100] sm:$0xff] %vm749_vm2, %v1169_v15  ;;  %v1818_v16 = vpop.f32.mrb[34].mxu1 }
 0x1f6   :  { %v1184_v17 = vadd.f32 %v1818_v16, %v2306_v11  ;;  %v1178_v18 = vpop.f32.mrb[35].mxu1 }
 0x1f7   :  { %v1179_v19 = vadd.f32 %v2306_v11, %v1178_v18 }
 0x1f8   :  { %1362 = vst.msk [vmem:[%s2633_s5 + $0x118] sm:$0xff] %vm749_vm2, %v1184_v17 }
 0x1f9   :  { %1361 = vst.msk [vmem:[%s2633_s5 + $0x110] sm:$0xff] %vm749_vm2, %v1179_v19  ;;  %v1821_v20 = vpop.f32.mrb[36].mxu1 }
 0x1fa   :  { %v1194_v21 = vadd.f32 %v1821_v20, %v2306_v11  ;;  %v1188_v22 = vpop.f32.mrb[37].mxu1 }
 0x1fb   :  { %v1189_v23 = vadd.f32 %v2306_v11, %v1188_v22 }
 0x1fc   :  { %1364 = vst.msk [vmem:[%s2633_s5 + $0x128] sm:$0xff] %vm749_vm2, %v1194_v21 }
 0x1fd   :  { %1363 = vst.msk [vmem:[%s2633_s5 + $0x120] sm:$0xff] %vm749_vm2, %v1189_v23  ;;  %v1824_v24 = vpop.f32.mrb[38].mxu1 }
 0x1fe   :  { %v1204_v25 = vadd.f32 %v1824_v24, %v2306_v11  ;;  %v1198_v26 = vpop.f32.mrb[39].mxu1 }
 0x1ff   :  { %v1199_v27 = vadd.f32 %v2306_v11, %v1198_v26 }
 0x200   :  { %1366 = vst.msk [vmem:[%s2633_s5 + $0x138] sm:$0xff] %vm749_vm2, %v1204_v25 }
 0x201   :  { %1365 = vst.msk [vmem:[%s2633_s5 + $0x130] sm:$0xff] %vm749_vm2, %v1199_v27  ;;  %v1827_v28 = vpop.f32.mrb[40].mxu1 }
 0x202   :  { %v1214_v29 = vadd.f32 %v1827_v28, %v2306_v11  ;;  %v1208_v30 = vpop.f32.mrb[41].mxu1 }
 0x203   :  { %v1209_v31 = vadd.f32 %v2306_v11, %v1208_v30 }
 0x204   :  { %1368 = vst.msk [vmem:[%s2633_s5 + $0x148] sm:$0xff] %vm749_vm2, %v1214_v29 }
 0x205   :  { %1367 = vst.msk [vmem:[%s2633_s5 + $0x140] sm:$0xff] %vm749_vm2, %v1209_v31  ;;  %v1830_v32 = vpop.f32.mrb[42].mxu1 }
 0x206   :  { %v1224_v33 = vadd.f32 %v1830_v32, %v2306_v11  ;;  %v1218_v34 = vpop.f32.mrb[43].mxu1 }
 0x207   :  { %v1219_v35 = vadd.f32 %v2306_v11, %v1218_v34 }
 0x208   :  { %1370 = vst.msk [vmem:[%s2633_s5 + $0x158] sm:$0xff] %vm749_vm2, %v1224_v33 }
 0x209   :  { %1369 = vst.msk [vmem:[%s2633_s5 + $0x150] sm:$0xff] %vm749_vm2, %v1219_v35  ;;  %v1833_v36 = vpop.f32.mrb[44].mxu1 }
 0x20a   :  { %v1234_v37 = vadd.f32 %v1833_v36, %v2306_v11  ;;  %v1228_v38 = vpop.f32.mrb[45].mxu1 }
 0x20b   :  { %v1229_v39 = vadd.f32 %v2306_v11, %v1228_v38 }
 0x20c   :  { %1372 = vst.msk [vmem:[%s2633_s5 + $0x168] sm:$0xff] %vm749_vm2, %v1234_v37 }
 0x20d   :  { %1371 = vst.msk [vmem:[%s2633_s5 + $0x160] sm:$0xff] %vm749_vm2, %v1229_v39  ;;  %v1836_v40 = vpop.f32.mrb[46].mxu1 }
 0x20e   :  { %v1244_v41 = vadd.f32 %v1836_v40, %v2306_v11  ;;  %v1238_v42 = vpop.f32.mrb[47].mxu1 }
 0x20f   :  { %v1239_v43 = vadd.f32 %v2306_v11, %v1238_v42 }
 0x210   :  { %1374 = vst.msk [vmem:[%s2633_s5 + $0x178] sm:$0xff] %vm749_vm2, %v1244_v41 }
 0x211   :  { %1373 = vst.msk [vmem:[%s2633_s5 + $0x170] sm:$0xff] %vm749_vm2, %v1239_v43  ;;  %v1839_v44 = vpop.f32.mrb[48].mxu1 }
 0x212   :  { %v1254_v45 = vadd.f32 %v1839_v44, %v2306_v11  ;;  %v1248_v46 = vpop.f32.mrb[49].mxu1 }
 0x213   :  { %v1249_v47 = vadd.f32 %v2306_v11, %v1248_v46 }
 0x214   :  { %1376 = vst.msk [vmem:[%s2633_s5 + $0x188] sm:$0xff] %vm749_vm2, %v1254_v45 }
 0x215   :  { %1375 = vst.msk [vmem:[%s2633_s5 + $0x180] sm:$0xff] %vm749_vm2, %v1249_v47  ;;  %v1842_v48 = vpop.f32.mrb[50].mxu1 }
 0x216   :  { %v1264_v49 = vadd.f32 %v1842_v48, %v2306_v11  ;;  %v1258_v50 = vpop.f32.mrb[51].mxu1 }
 0x217   :  { %v1259_v51 = vadd.f32 %v2306_v11, %v1258_v50 }
 0x218   :  { %1378 = vst.msk [vmem:[%s2633_s5 + $0x198] sm:$0xff] %vm749_vm2, %v1264_v49 }
 0x219   :  { %1377 = vst.msk [vmem:[%s2633_s5 + $0x190] sm:$0xff] %vm749_vm2, %v1259_v51  ;;  %v1845_v52 = vpop.f32.mrb[52].mxu1 }
 0x21a   :  { %v1274_v53 = vadd.f32 %v1845_v52, %v2306_v11  ;;  %v1268_v54 = vpop.f32.mrb[53].mxu1 }
 0x21b   :  { %v1269_v55 = vadd.f32 %v2306_v11, %v1268_v54 }
 0x21c   :  { %1380 = vst.msk [vmem:[%s2633_s5 + $0x1a8] sm:$0xff] %vm749_vm2, %v1274_v53 }
 0x21d   :  { %1379 = vst.msk [vmem:[%s2633_s5 + $0x1a0] sm:$0xff] %vm749_vm2, %v1269_v55  ;;  %v1848_v56 = vpop.f32.mrb[54].mxu1 }
 0x21e   :  { %v1284_v57 = vadd.f32 %v1848_v56, %v2306_v11  ;;  %v1278_v58 = vpop.f32.mrb[55].mxu1 }
 0x21f   :  { %v1279_v59 = vadd.f32 %v2306_v11, %v1278_v58 }
 0x220   :  { %1382 = vst.msk [vmem:[%s2633_s5 + $0x1b8] sm:$0xff] %vm749_vm2, %v1284_v57 }
 0x221   :  { %1381 = vst.msk [vmem:[%s2633_s5 + $0x1b0] sm:$0xff] %vm749_vm2, %v1279_v59  ;;  %v1851_v60 = vpop.f32.mrb[56].mxu1 }
 0x222   :  { %v1294_v61 = vadd.f32 %v1851_v60, %v2306_v11  ;;  %v1288_v62 = vpop.f32.mrb[57].mxu1 }
 0x223   :  { %v1289_v63 = vadd.f32 %v2306_v11, %v1288_v62 }
 0x224   :  { %1384 = vst.msk [vmem:[%s2633_s5 + $0x1c8] sm:$0xff] %vm749_vm2, %v1294_v61 }
 0x225   :  { %1383 = vst.msk [vmem:[%s2633_s5 + $0x1c0] sm:$0xff] %vm749_vm2, %v1289_v63  ;;  %v1854_v0 = vpop.f32.mrb[58].mxu1 }
 0x226   :  { %v1304_v1 = vadd.f32 %v1854_v0, %v2306_v11  ;;  %v1298_v2 = vpop.f32.mrb[59].mxu1 }
 0x227   :  { %v1299_v3 = vadd.f32 %v2306_v11, %v1298_v2 }
 0x228   :  { %1386 = vst.msk [vmem:[%s2633_s5 + $0x1d8] sm:$0xff] %vm749_vm2, %v1304_v1 }
 0x229   :  { %1385 = vst.msk [vmem:[%s2633_s5 + $0x1d0] sm:$0xff] %vm749_vm2, %v1299_v3  ;;  %v1857_v4 = vpop.f32.mrb[60].mxu1 }
 0x22a   :  { %v1314_v5 = vadd.f32 %v1857_v4, %v2306_v11  ;;  %v1308_v6 = vpop.f32.mrb[61].mxu1 }
 0x22b   :  { %v1309_v8 = vadd.f32 %v2306_v11, %v1308_v6 }
 0x22c   :  { %1388 = vst.msk [vmem:[%s2633_s5 + $0x1e8] sm:$0xff] %vm749_vm2, %v1314_v5 }
 0x22d   :  { %1387 = vst.msk [vmem:[%s2633_s5 + $0x1e0] sm:$0xff] %vm749_vm2, %v1309_v8  ;;  %v1860_v9 = vpop.f32.mrb[62].mxu1 }
 0x22e   :  { %v1324_v10 = vadd.f32 %v1860_v9, %v2306_v11  ;;  %v1318_v12 = vpop.f32.mrb[63].mxu1 }
 0x22f   :  { %v1319_v13 = vadd.f32 %v2306_v11, %v1318_v12 }
 0x230   :  { %1390 = vst.msk [vmem:[%s2633_s5 + $0x1f8] sm:$0xff] %vm749_vm2, %v1324_v10 }
 0x231   :  { %1389 = vst.msk [vmem:[%s2633_s5 + $0x1f0] sm:$0xff] %vm749_vm2, %v1319_v13 }

// kernel: gva_patch_embed.15
= control target key start
LH: loop header
LB: loop body
LE: loop exit
PB: predicated region body
PF: predicated region fallthrough
CT: control target
= control target key end

     0   :  { %v186_v0 = vlaneseq  ;;  %v7336_v4 = vmov 1966171168   ;;  %vm1161_vm0 = vcmask 261120   ;;  %vm2004_vm1 = vcmask 1043456   ;;  %s11375_s5 = inlined_call_operand.vmem [shape: f32[32,4], index: 5, kind: input, shape index: {}]   ;;  %s11376_s0 = inlined_call_operand.vmem [shape: f32[64,32], index: 0, kind: input, shape index: {}]   ;;  %s11377_s1 = inlined_call_operand.vmem [shape: f32[64,8,32], index: 1, kind: input, shape index: {}]   ;;  %s11378_s3 = inlined_call_operand.vmem [shape: f32[64,8,32], index: 3, kind: input, shape index: {}]   ;;  %s11379_s7 = inlined_call_operand.vmem [shape: f32[4,4], index: 7, kind: input, shape index: {}]   ;;  %s11380_s4 = inlined_call_operand.vmem [shape: f32[64,8,1], index: 4, kind: input, shape index: {}]   ;;  %s11381_s6 = inlined_call_operand.vmem [shape: f32[1,4], index: 6, kind: input, shape index: {}]   ;;  %s11382_s8 = inlined_call_operand.vmem [shape: f32[1,4], index: 8, kind: input, shape index: {}]   ;;  %s11383_s2 = inlined_call_operand.vmem [shape: f32[64,8,32], index: 2, kind: input, shape index: {}]   ;;  %s11384_s9 = inlined_call_operand.vmem [shape: f32[1,32], index: 9, kind: input, shape index: {}]   ;;  %s11385_s10 = inlined_call_operand.vmem [shape: f32[1,32], index: 10, kind: input, shape index: {}]   ;;  %s11386_s11 = inlined_call_operand.vmem [shape: f32[64,32], index: 11, kind: output, shape index: {}]  }
   0x1   :  { %v1150_v1 = vld [vmem:[%s11375_s5] sm:$0xff]  ;;  %v1151_v2 = vld [vmem:[%s11375_s5 + $0x8] sm:$0xff]  ;;  %v1152_v3 = vld [vmem:[%s11375_s5 + $0x10] sm:$0xff]  ;;  %v184_v5 = vunpack.c.l.s4 %v7336_v4  ;;  %vm1811_vm2 = vcmask 31744   ;;  %vm5145_vm3 = vcmask 64512   ;;  %vm5210_vm4 = vcmask 130048  }
   0x2   :  { %v6729_v6 = vpack.c.bf16 %v1151_v2, %v1150_v1  ;;  %v1153_v7 = vld [vmem:[%s11375_s5 + $0x18] sm:$0xff]  ;;  %v187_v8 = vshrl.u32 %v186_v0, 7  ;;  %v166_v10 = vld [vmem:[%s11376_s0] sm:$0xff]  ;;  %v167_v21 = vld [vmem:[%s11376_s0 + $0x8] sm:$0xff]  ;;  %vm5275_vm5 = vcmask 195584   ;;  %vm6123_vm6 = vcmask 1041409  }
   0x3   :  { %v6733_v9 = vpack.c.bf16 %v1153_v7, %v1152_v3  ;;  %v185_v11 = vunpack.c.0.s8 %v184_v5  ;;  %v182_v12 = vcombine.high %v166_v10, %v166_v10  ;;  %v38_v22 = vld [vmem:[%s11377_s1] sm:$0xff]  ;;  %v39_v28 = vld [vmem:[%s11377_s1 + $0x8] sm:$0xff]  ;;  %v40_v29 = vld [vmem:[%s11377_s1 + $0x10] sm:$0xff]  ;;  %v231_v44 = vcombine.high %v167_v21, %v167_v21 }
   0x4   :  { %6730 = vmatprep.subr.bf16.mxu0 %v6729_v6  ;;  %v7420_v16 = vsub.s32 0, %v187_v8  ;;  %v102_v27 = vld [vmem:[%s11378_s3] sm:$0xff]  ;;  %v103_v38 = vld [vmem:[%s11378_s3 + $0x8] sm:$0xff]  ;;  %v104_v39 = vld [vmem:[%s11378_s3 + $0x10] sm:$0xff]  ;;  %vm6126_vm7 = vcmask 1042434   ;;  %vm6129_vm8 = vcmask 1043459  }
   0x5   :  { %6732 = vmatpush3.bf16.msra.mxu0 %v6729_v6  ;;  %v7416_v13 = vsub.s32 %v185_v11, %v187_v8  ;;  %v42_v37 = vld [vmem:[%s11377_s1 + $0x20] sm:$0xff]  ;;  %v41_v40 = vld [vmem:[%s11377_s1 + $0x18] sm:$0xff]  ;;  %v43_v49 = vld [vmem:[%s11377_s1 + $0x28] sm:$0xff]  ;;  %vm6132_vm9 = vcmask 1044484   ;;  %vm6135_vm10 = vcmask 1045509   ;;  %vm6138_vm11 = vcmask 1046534  }
   0x6   :  { %6734 = vmatprep.subr.bf16.mxu0 %v6733_v9  ;;  %v105_v50 = vld [vmem:[%s11378_s3 + $0x18] sm:$0xff]  ;;  %v106_v57 = vld [vmem:[%s11378_s3 + $0x20] sm:$0xff]  ;;  %v44_v58 = vld [vmem:[%s11377_s1 + $0x30] sm:$0xff]  ;;  %vm6141_vm12 = vcmask 1047559  }
   0x7   :  { %v189_v14 = vrot.slane %v166_v10, %v7416_v13  ;;  %v196_v15 = vrot.slane %v182_v12, %v7416_v13  ;;  %v238_v23 = vrot.slane %v167_v21, %v7416_v13  ;;  %v245_v63 = vrot.slane %v231_v44, %v7416_v13  ;;  %v107_v1 = vld [vmem:[%s11378_s3 + $0x28] sm:$0xff]  ;;  %v45_v3 = vld [vmem:[%s11377_s1 + $0x38] sm:$0xff]  ;;  %v108_v6 = vld [vmem:[%s11378_s3 + $0x30] sm:$0xff] }
   0x8   :  { %v46_v7 = vld [vmem:[%s11377_s1 + $0x40] sm:$0xff] }
   0x9   :  { %6736 = vmatpush3.bf16.msra.mxu0 %v6733_v9  ;;  %v197_v17 = vcombine.high %v189_v14, %v189_v14  ;;  %v205_v18 = vrot.slane %v189_v14, %v7416_v13  ;;  %v212_v19 = vrot.slane %v196_v15, %v7416_v13  ;;  %v198_v20 = vcombine.high %v196_v15, %v196_v15  ;;  %v168_v14 = vld [vmem:[%s11376_s0 + $0x10] sm:$0xff] }
   0xa   :  { %v246_v43 = vcombine.high %v238_v23, %v238_v23  ;;  %v254_v53 = vrot.slane %v238_v23, %v7416_v13  ;;  %v247_v8 = vcombine.high %v245_v63, %v245_v63  ;;  %v261_v21 = vrot.slane %v245_v63, %v7416_v13  ;;  %v48_v23 = vld [vmem:[%s11377_s1 + $0x50] sm:$0xff] }
   0xb   :  { %v227_v24 = vcombine.high %v205_v18, %v205_v18  ;;  %v577_v25 = vrot.slane %v205_v18, %v7420_v16  ;;  %v219_v26 = vrot.slane %v197_v17, %v7416_v13  ;;  %v593_v30 = vrot.slane %v212_v19, %v7420_v16  ;;  %v109_v17 = vld [vmem:[%s11378_s3 + $0x38] sm:$0xff] }
   0xc   :  { %v226_v31 = vrot.slane %v198_v20, %v7416_v13  ;;  %v228_v32 = vcombine.high %v212_v19, %v212_v19  ;;  %v268_v62 = vrot.slane %v246_v43, %v7416_v13  ;;  %v609_v4 = vrot.slane %v254_v53, %v7420_v16  ;;  %v47_v19 = vld [vmem:[%s11377_s1 + $0x48] sm:$0xff] }
   0xd   :  { %v894_v33 = vsub.f32 %v38_v22, %v577_v25  ;;  %v581_v34 = vrot.slane %v219_v26, %v7420_v16  ;;  %v585_v35 = vrot.slane %v227_v24, %v7420_v16  ;;  %v229_v36 = vcombine.high %v219_v26, %v219_v26  ;;  %v110_v22 = vld [vmem:[%s11378_s3 + $0x40] sm:$0xff] }
   0xe   :  { %v597_v41 = vrot.slane %v226_v31, %v7420_v16  ;;  %v230_v42 = vcombine.high %v226_v31, %v226_v31  ;;  %v898_v51 = vsub.f32 %v42_v37, %v593_v30  ;;  %v601_v52 = vrot.slane %v228_v32, %v7420_v16  ;;  %v111_v31 = vld [vmem:[%s11378_s3 + $0x48] sm:$0xff]  ;;  %v50_v37 = vld [vmem:[%s11377_s1 + $0x60] sm:$0xff] }
   0xf   :  { %v958_v45 = vadd.f32 %v894_v33, %v102_v27  ;;  %v895_v46 = vsub.f32 %v39_v28, %v581_v34  ;;  %v896_v47 = vsub.f32 %v40_v29, %v585_v35  ;;  %v589_v48 = vrot.slane %v229_v36, %v7420_v16  ;;  %v169_v29 = vld [vmem:[%s11376_s0 + $0x18] sm:$0xff]  ;;  %v112_v36 = vld [vmem:[%s11378_s3 + $0x50] sm:$0xff] }
  0x10   :  { %v899_v59 = vsub.f32 %v43_v49, %v597_v41  ;;  %v605_v61 = vrot.slane %v230_v42, %v7420_v16  ;;  %v962_v0 = vadd.f32 %v898_v51, %v106_v57  ;;  %v900_v2 = vsub.f32 %v44_v58, %v601_v52  ;;  %v49_v33 = vld [vmem:[%s11377_s1 + $0x58] sm:$0xff]  ;;  %v114_v52 = vld [vmem:[%s11378_s3 + $0x60] sm:$0xff] }
  0x11   :  { %6535 = vmatprep.mubr.msk.f32.mxu0 %vm1161_vm0, %v958_v45  ;;  %v959_v54 = vadd.f32 %v895_v46, %v103_v38  ;;  %v960_v55 = vadd.f32 %v896_v47, %v104_v39  ;;  %v897_v56 = vsub.f32 %v41_v40, %v589_v48  ;;  %v276_v5 = vcombine.high %v254_v53, %v254_v53  ;;  %v51_v45 = vld [vmem:[%s11377_s1 + $0x68] sm:$0xff]  ;;  %v113_v49 = vld [vmem:[%s11378_s3 + $0x58] sm:$0xff]  ;;  %v52_v53 = vld [vmem:[%s11377_s1 + $0x70] sm:$0xff] }
  0x12   :  { %v963_v9 = vadd.f32 %v899_v59, %v107_v1  ;;  %v901_v10 = vsub.f32 %v45_v3, %v605_v61  ;;  %v613_v11 = vrot.slane %v268_v62, %v7420_v16  ;;  %v278_v12 = vcombine.high %v268_v62, %v268_v62 }
  0x13   :  { %6536 = vmatmul.mubr.msk.f32.vlgmr.msra.gmra.mrb[0].mxu0 %vm1161_vm0, %v959_v54  ;;  %v961_v60 = vadd.f32 %v897_v56, %v105_v50  ;;  %v964_v15 = vadd.f32 %v900_v2, %v108_v6  ;;  %v902_v18 = vsub.f32 %v46_v7, %v609_v4  ;;  %v617_v20 = vrot.slane %v276_v5, %v7420_v16  ;;  %v53_v2 = vld [vmem:[%s11377_s1 + $0x78] sm:$0xff]  ;;  %v116_v5 = vld [vmem:[%s11378_s3 + $0x70] sm:$0xff]  ;;  %v54_v6 = vld [vmem:[%s11377_s1 + $0x80] sm:$0xff] }
  0x14   :  { %6538 = vmatprep.mubr.msk.f32.mxu0 %vm1161_vm0, %v960_v55  ;;  %v275_v24 = vrot.slane %v247_v8, %v7416_v13  ;;  %v287_v25 = vrot.slane %v168_v14, %v7416_v13  ;;  %v965_v26 = vadd.f32 %v901_v10, %v109_v17  ;;  %v903_v27 = vsub.f32 %v47_v19, %v613_v11  ;;  %v55_v17 = vld [vmem:[%s11377_s1 + $0x88] sm:$0xff] }
  0x15   :  { %v621_v28 = vrot.slane %v278_v12, %v7420_v16  ;;  %v966_v30 = vadd.f32 %v902_v18, %v110_v22  ;;  %v904_v32 = vsub.f32 %v48_v23, %v617_v20  ;;  %v625_v34 = vrot.slane %v261_v21, %v7420_v16  ;;  %v117_v22 = vld [vmem:[%s11378_s3 + $0x78] sm:$0xff]  ;;  %v118_v23 = vld [vmem:[%s11378_s3 + $0x80] sm:$0xff] }
  0x16   :  { %v277_v35 = vcombine.high %v261_v21, %v261_v21  ;;  %v280_v38 = vcombine.high %v168_v14, %v168_v14  ;;  %v629_v39 = vrot.slane %v275_v24, %v7420_v16  ;;  %v303_v40 = vrot.slane %v287_v25, %v7416_v13 }
  0x17   :  { %6539 = vmatmul.mubr.msk.f32.gmra.mrb[2].mxu0 %vm1161_vm0, %v961_v60  ;;  %v295_v41 = vcombine.high %v287_v25, %v287_v25  ;;  %v336_v42 = vrot.slane %v169_v29, %v7416_v13  ;;  %v967_v43 = vadd.f32 %v903_v27, %v111_v31  ;;  %v905_v44 = vsub.f32 %v49_v33, %v621_v28  ;;  %v115_v60 = vld [vmem:[%s11378_s3 + $0x68] sm:$0xff]  ;;  %v56_v25 = vld [vmem:[%s11377_s1 + $0x90] sm:$0xff]  ;;  %v57_v28 = vld [vmem:[%s11377_s1 + $0x98] sm:$0xff] }
  0x18   :  { %6541 = vmatprep.mubr.msk.f32.mxu0 %vm1161_vm0, %v962_v0  ;;  %v279_v46 = vcombine.high %v275_v24, %v275_v24  ;;  %v294_v47 = vrot.slane %v280_v38, %v7416_v13  ;;  %v968_v48 = vadd.f32 %v904_v32, %v112_v36  ;;  %v906_v50 = vsub.f32 %v50_v37, %v625_v34  ;;  %v7612_v34 = vld [vmem:[%s11376_s0 + $0x20] sm:$0xff]  ;;  %v63_v38 = vld [vmem:[%s11377_s1 + $0xc8] sm:$0xff] }
  0x19   :  { %v633_v51 = vrot.slane %v277_v35, %v7420_v16  ;;  %v344_v55 = vcombine.high %v336_v42, %v336_v42  ;;  %v907_v56 = vsub.f32 %v51_v45, %v629_v39  ;;  %v317_v57 = vrot.slane %v295_v41, %v7416_v13  ;;  %v62_v37 = vld [vmem:[%s11377_s1 + $0xc0] sm:$0xff]  ;;  %v64_v39 = vld [vmem:[%s11377_s1 + $0xd0] sm:$0xff] }
  0x1a   :  { %v296_v54 = vcombine.high %v294_v47, %v294_v47  ;;  %v329_v58 = vcombine.high %v169_v29, %v169_v29  ;;  %v969_v59 = vadd.f32 %v905_v44, %v113_v49  ;;  %v637_v61 = vrot.slane %v279_v46, %v7420_v16  ;;  %v58_v29 = vld [vmem:[%s11377_s1 + $0xa0] sm:$0xff]  ;;  %v60_v44 = vld [vmem:[%s11377_s1 + $0xb0] sm:$0xff] }
  0x1b   :  { %6542 = vmatmul.mubr.msk.f32.gmra.mrb[4].mxu0 %vm1161_vm0, %v963_v9  ;;  %v641_v62 = vrot.slane %v303_v40, %v7420_v16  ;;  %v7561_v63 = vrot.slane %v336_v42, %v7416_v13  ;;  %v970_v0 = vadd.f32 %v906_v50, %v114_v52  ;;  %v908_v1 = vsub.f32 %v52_v53, %v633_v51  ;;  %v119_v42 = vld [vmem:[%s11378_s3 + $0x88] sm:$0xff]  ;;  %v61_v51 = vld [vmem:[%s11377_s1 + $0xb8] sm:$0xff] }
  0x1c   :  { %6544 = vmatprep.mubr.msk.f32.mxu0 %vm1161_vm0, %v964_v15  ;;  %v325_v3 = vcombine.high %v303_v40, %v303_v40  ;;  %v327_v4 = vcombine.high %v317_v57, %v317_v57  ;;  %v310_v7 = vrot.slane %v294_v47, %v7416_v13  ;;  %v324_v8 = vrot.slane %v296_v54, %v7416_v13  ;;  %v65_v52 = vld [vmem:[%s11377_s1 + $0xd8] sm:$0xff]  ;;  %v7651_v54 = vld [vmem:[%s11376_s0 + $0x28] sm:$0xff] }
  0x1d   :  { %v366_v9 = vrot.slane %v344_v55, %v7416_v13  ;;  %v374_v10 = vcombine.high %v7561_v63, %v7561_v63  ;;  %v971_v11 = vadd.f32 %v907_v56, %v115_v60  ;;  %v645_v12 = vrot.slane %v317_v57, %v7420_v16  ;;  %v120_v55 = vld [vmem:[%s11378_s3 + $0x90] sm:$0xff]  ;;  %v121_v56 = vld [vmem:[%s11378_s3 + $0x98] sm:$0xff]  ;;  %v122_v57 = vld [vmem:[%s11378_s3 + $0xa0] sm:$0xff] }
  0x1e   :  { %v7580_v14 = vrot.slane %v329_v58, %v7416_v13  ;;  %v909_v15 = vsub.f32 %v53_v2, %v637_v61  ;;  %v326_v18 = vcombine.high %v310_v7, %v310_v7  ;;  %v328_v19 = vcombine.high %v324_v8, %v324_v8  ;;  %v128_v2 = vld [vmem:[%s11378_s3 + $0xd0] sm:$0xff] }
  0x1f   :  { %6545 = vmatmul.mubr.msk.f32.gmra.mrb[6].mxu0 %vm1161_vm0, %v965_v26  ;;  %v376_v20 = vcombine.high %v366_v9, %v366_v9  ;;  %v972_v21 = vadd.f32 %v908_v1, %v116_v5  ;;  %v910_v24 = vsub.f32 %v54_v6, %v641_v62  ;;  %v649_v26 = vrot.slane %v325_v3, %v7420_v16  ;;  %v127_v1 = vld [vmem:[%s11378_s3 + $0xc8] sm:$0xff] }
  0x20   :  { %6547 = vmatprep.mubr.msk.f32.mxu0 %vm1161_vm0, %v966_v30  ;;  %v653_v27 = vrot.slane %v327_v4, %v7420_v16  ;;  %v657_v30 = vrot.slane %v310_v7, %v7420_v16  ;;  %v673_v31 = vrot.slane %v7561_v63, %v7420_v16  ;;  %v677_v32 = vrot.slane %v366_v9, %v7420_v16  ;;  %v123_v5 = vld [vmem:[%s11378_s3 + $0xa8] sm:$0xff]  ;;  %v66_v9 = vld [vmem:[%s11377_s1 + $0xe0] sm:$0xff] }
  0x21   :  { %v681_v33 = vrot.slane %v374_v10, %v7420_v16  ;;  %v911_v35 = vsub.f32 %v55_v17, %v645_v12  ;;  %v661_v36 = vrot.slane %v324_v8, %v7420_v16  ;;  %v359_v40 = vrot.slane %v7580_v14, %v7416_v13  ;;  %v129_v17 = vld [vmem:[%s11378_s3 + $0xd8] sm:$0xff] }
  0x22   :  { %v973_v41 = vadd.f32 %v909_v15, %v117_v22  ;;  %v665_v45 = vrot.slane %v326_v18, %v7420_v16  ;;  %v669_v46 = vrot.slane %v328_v19, %v7420_v16  ;;  %v685_v47 = vrot.slane %v376_v20, %v7420_v16  ;;  %v125_v15 = vld [vmem:[%s11378_s3 + $0xb8] sm:$0xff] }
  0x23   :  { %6548 = vmatmul.mubr.msk.f32.gmra.mrb[8].mxu0 %vm1161_vm0, %v967_v43  ;;  %v59_v43 = vld [vmem:[%s11377_s1 + $0xa8] sm:$0xff]  ;;  %v912_v49 = vsub.f32 %v56_v25, %v649_v26  ;;  %v913_v50 = vsub.f32 %v57_v28, %v653_v27  ;;  %v385_v53 = vrot.slane %v7612_v34, %v7416_v13  ;;  %v914_v58 = vsub.f32 %v58_v29, %v657_v30 }
  0x24   :  { %6550 = vmatprep.mubr.msk.f32.mxu0 %vm1161_vm0, %v968_v48  ;;  %v974_v48 = vadd.f32 %v910_v24, %v118_v23  ;;  %v919_v60 = vsub.f32 %v63_v38, %v677_v32  ;;  %v920_v61 = vsub.f32 %v64_v39, %v681_v33  ;;  %v975_v62 = vadd.f32 %v911_v35, %v119_v42  ;;  %v68_v39 = vld [vmem:[%s11377_s1 + $0xf0] sm:$0xff] }
  0x25   :  { %v915_v63 = vsub.f32 %v59_v43, %v661_v36  ;;  %v689_v3 = vrot.slane %v359_v40, %v7420_v16  ;;  %v345_v4 = vcombine.high %v7580_v14, %v7580_v14  ;;  %v916_v6 = vsub.f32 %v60_v44, %v665_v45  ;;  %v124_v14 = vld [vmem:[%s11378_s3 + $0xb0] sm:$0xff] }
  0x26   :  { %v917_v7 = vsub.f32 %v61_v51, %v669_v46  ;;  %v921_v8 = vsub.f32 %v65_v52, %v685_v47  ;;  %v434_v10 = vrot.slane %v7651_v54, %v7416_v13  ;;  %v977_v12 = vadd.f32 %v913_v50, %v121_v56  ;;  %v7730_v44 = vld [vmem:[%s11376_s0 + $0x30] sm:$0xff]  ;;  %v67_v50 = vld [vmem:[%s11377_s1 + $0xe8] sm:$0xff] }
  0x27   :  { %6551 = vmatmul.mubr.msk.f32.gmra.mrb[10].mxu0 %vm1161_vm0, %v969_v59  ;;  %v918_v59 = vsub.f32 %v62_v37, %v673_v31  ;;  %v375_v18 = vcombine.high %v359_v40, %v359_v40  ;;  %v401_v19 = vrot.slane %v385_v53, %v7416_v13  ;;  %v978_v20 = vadd.f32 %v914_v58, %v122_v57  ;;  %v130_v31 = vld [vmem:[%s11378_s3 + $0xe0] sm:$0xff]  ;;  %v79_v58 = vld [vmem:[%s11377_s1 + $0x148] sm:$0xff] }
  0x28   :  { %6553 = vmatprep.mubr.msk.f32.mxu0 %vm1161_vm0, %v970_v0  ;;  %v126_v0 = vld [vmem:[%s11378_s3 + $0xc0] sm:$0xff]  ;;  %v7696_v22 = vadd.f32 %v919_v60, %v127_v1  ;;  %v7698_v23 = vadd.f32 %v920_v61, %v128_v2  ;;  %v979_v24 = vadd.f32 %v915_v63, %v123_v5  ;;  %v922_v25 = vsub.f32 %v66_v9, %v689_v3  ;;  %v132_v1 = vld [vmem:[%s11378_s3 + $0xf0] sm:$0xff]  ;;  %v7778_v3 = vld [vmem:[%s11377_s1 + $0x158] sm:$0xff] }
  0x29   :  { %v373_v26 = vrot.slane %v345_v4, %v7416_v13  ;;  %v393_v27 = vcombine.high %v385_v53, %v385_v53  ;;  %v980_v28 = vadd.f32 %v916_v6, %v124_v14  ;;  %v7702_v29 = vadd.f32 %v917_v7, %v125_v15  ;;  %v78_v37 = vld [vmem:[%s11377_s1 + $0x140] sm:$0xff] }
  0x2a   :  { %v7704_v30 = vadd.f32 %v921_v8, %v129_v17  ;;  %v450_v32 = vrot.slane %v434_v10, %v7416_v13  ;;  %v697_v33 = vrot.slane %v375_v18, %v7420_v16  ;;  %v705_v35 = vrot.slane %v401_v19, %v7420_v16  ;;  %v70_v40 = vld [vmem:[%s11377_s1 + $0x100] sm:$0xff] }
  0x2b   :  { %6554 = vmatmul.mubr.msk.f32.gmra.mrb[12].mxu0 %vm1161_vm0, %v971_v11  ;;  %v976_v11 = vadd.f32 %v912_v49, %v120_v55  ;;  %v378_v36 = vcombine.high %v7612_v34, %v7612_v34  ;;  %v442_v38 = vcombine.high %v434_v10, %v434_v10  ;;  %v427_v34 = vcombine.high %v7651_v54, %v7651_v54  ;;  %v7741_v49 = vld [vmem:[%s11377_s1 + $0x150] sm:$0xff]  ;;  %v82_v9 = vld [vmem:[%s11377_s1 + $0x160] sm:$0xff] }
  0x2c   :  { %6556 = vmatprep.mubr.msk.f32.mxu0 %vm1161_vm0, %v972_v21  ;;  %v7694_v21 = vadd.f32 %v918_v59, %v126_v0  ;;  %v737_v42 = vrot.slane %v450_v32, %v7420_v16  ;;  %v472_v43 = vcombine.high %v450_v32, %v450_v32  ;;  %v7732_v45 = vadd.f32 %v922_v25, %v130_v31  ;;  %v86_v18 = vld [vmem:[%s11377_s1 + $0x180] sm:$0xff]  ;;  %v83_v25 = vld [vmem:[%s11377_s1 + $0x168] sm:$0xff] }
  0x2d   :  { %v693_v46 = vrot.slane %v373_v26, %v7420_v16  ;;  %v377_v47 = vcombine.high %v373_v26, %v373_v26  ;;  %v464_v52 = vrot.slane %v442_v38, %v7416_v13  ;;  %v441_v54 = vrot.slane %v427_v34, %v7416_v13  ;;  %v7817_v26 = vld [vmem:[%s11377_s1 + $0x170] sm:$0xff]  ;;  %v7836_v38 = vld [vmem:[%s11377_s1 + $0x178] sm:$0xff] }
  0x2e   :  { %v7747_v51 = vsub.f32 %v78_v37, %v737_v42  ;;  %v7751_v53 = vrot.slane %v472_v43, %v7420_v16  ;;  %v924_v55 = vsub.f32 %v68_v39, %v697_v33  ;;  %v926_v56 = vsub.f32 %v70_v40, %v705_v35 }
  0x2f   :  { %6557 = vmatmul.mubr.msk.f32.gmra.mrb[14].mxu0 %vm1161_vm0, %v973_v41  ;;  %v423_v41 = vcombine.high %v401_v19, %v401_v19  ;;  %v7756_v57 = vrot.slane %v378_v36, %v7416_v13  ;;  %v483_v59 = vrot.slane %v7730_v44, %v7416_v13  ;;  %v741_v61 = vrot.slane %v464_v52, %v7420_v16  ;;  %v131_v36 = vld [vmem:[%s11378_s3 + $0xe8] sm:$0xff] }
  0x30   :  { %6559 = vmatprep.mubr.msk.f32.mxu0 %vm1161_vm0, %v974_v48  ;;  %v7736_v48 = vrot.slane %v393_v27, %v7416_v13  ;;  %v474_v63 = vcombine.high %v464_v52, %v464_v52  ;;  %v923_v0 = vsub.f32 %v67_v50, %v693_v46  ;;  %v7773_v2 = vrot.slane %v377_v47, %v7420_v16  ;;  %v87_v46 = vld [vmem:[%s11377_s1 + $0x188] sm:$0xff]  ;;  %v7857_v47 = vld [vmem:[%s11377_s1 + $0x190] sm:$0xff] }
  0x31   :  { %v7764_v60 = vrot.slane %v423_v41, %v7420_v16  ;;  %v457_v4 = vrot.slane %v441_v54, %v7416_v13  ;;  %v443_v5 = vcombine.high %v441_v54, %v441_v54  ;;  %v7784_v7 = vsub.f32 %v79_v58, %v741_v61  ;;  %v71_v50 = vld [vmem:[%s11377_s1 + $0x108] sm:$0xff] }
  0x32   :  { %v709_v6 = vrot.slane %v7736_v48, %v7420_v16  ;;  %v7787_v8 = vrot.slane %v474_v63, %v7420_v16  ;;  %v499_v10 = vrot.slane %v483_v59, %v7416_v13  ;;  %v7804_v19 = vadd.f32 %v924_v55, %v132_v1  ;;  %v7886_v63 = vld [vmem:[%s11377_s1 + $0x198] sm:$0xff] }
  0x33   :  { %6560 = vmatmul.mubr.msk.f32.gmra.mrb[16].mxu0 %vm1161_vm0, %v975_v62  ;;  %v936_v62 = vsub.f32 %v7741_v49, %v7751_v53  ;;  %v753_v14 = vrot.slane %v457_v4, %v7420_v16  ;;  %v471_v15 = vrot.slane %v443_v5, %v7416_v13  ;;  %v473_v17 = vcombine.high %v457_v4, %v457_v4  ;;  %v147_v49 = vld [vmem:[%s11378_s3 + $0x168] sm:$0xff]  ;;  %v148_v53 = vld [vmem:[%s11378_s3 + $0x170] sm:$0xff] }
  0x34   :  { %6562 = vmatprep.mubr.msk.f32.mxu0 %vm1161_vm0, %v976_v11  ;;  %v134_v11 = vld [vmem:[%s11378_s3 + $0x100] sm:$0xff]  ;;  %v769_v27 = vrot.slane %v499_v10, %v7420_v16  ;;  %v521_v41 = vcombine.high %v499_v10, %v499_v10  ;;  %v7870_v52 = vrot.slane %v7756_v57, %v7416_v13  ;;  %v987_v58 = vadd.f32 %v923_v0, %v131_v36 }
  0x35   :  { %v7820_v31 = vsub.f32 %v82_v9, %v753_v14  ;;  %v757_v32 = vrot.slane %v471_v15, %v7420_v16  ;;  %v7824_v33 = vrot.slane %v473_v17, %v7420_v16  ;;  %v475_v35 = vcombine.high %v471_v15, %v471_v15 }
  0x36   :  { %v7831_v37 = vadd.f32 %v926_v56, %v134_v11  ;;  %v7838_v39 = vsub.f32 %v86_v18, %v769_v27  ;;  %v7874_v55 = vrot.slane %v521_v41, %v7420_v16  ;;  %v476_v1 = vcombine.high %v7730_v44, %v7730_v44  ;;  %v90_v27 = vld [vmem:[%s11377_s1 + $0x1a0] sm:$0xff] }
  0x37   :  { %6563 = vmatmul.mubr.msk.f32.gmra.mrb[18].mxu0 %vm1161_vm0, %v977_v12  ;;  %v425_v12 = vcombine.high %v7736_v48, %v7736_v48  ;;  %v7844_v42 = vsub.f32 %v83_v25, %v757_v32  ;;  %v940_v43 = vsub.f32 %v7817_v26, %v7824_v33  ;;  %v7849_v34 = vrot.slane %v475_v35, %v7420_v16  ;;  %v69_v48 = vld [vmem:[%s11377_s1 + $0xf8] sm:$0xff] }
  0x38   :  { %6565 = vmatprep.mubr.msk.f32.mxu0 %vm1161_vm0, %v978_v20  ;;  %v72_v20 = vld [vmem:[%s11377_s1 + $0x110] sm:$0xff]  ;;  %v944_v4 = vsub.f32 %v7857_v47, %v7874_v55  ;;  %v925_v9 = vsub.f32 %v69_v48, %v7773_v2  ;;  %v927_v10 = vsub.f32 %v71_v50, %v709_v6  ;;  %v490_v44 = vrot.slane %v476_v1, %v7416_v13  ;;  %v155_v47 = vld [vmem:[%s11378_s3 + $0x1a8] sm:$0xff] }
  0x39   :  { %v941_v61 = vsub.f32 %v7836_v38, %v7849_v34  ;;  %v7907_v14 = vrot.slane %v425_v12, %v7420_v16  ;;  %v721_v12 = vrot.slane %v7870_v52, %v7420_v16  ;;  %v154_v34 = vld [vmem:[%s11378_s3 + $0x1a0] sm:$0xff]  ;;  %v156_v55 = vld [vmem:[%s11378_s3 + $0x1b0] sm:$0xff] }
  0x3a   :  { %v506_v18 = vrot.slane %v490_v44, %v7416_v13 }
  0x3b   :  { %6566 = vmatmul.mubr.msk.f32.gmra.mrb[20].mxu0 %vm1161_vm0, %v979_v24  ;;  %v937_v24 = vsub.f32 %v7778_v3, %v7787_v8  ;;  %v1004_v3 = vadd.f32 %v940_v43, %v148_v53  ;;  %v149_v8 = vld [vmem:[%s11378_s3 + $0x178] sm:$0xff]  ;;  %v152_v43 = vld [vmem:[%s11378_s3 + $0x190] sm:$0xff]  ;;  %v3633_v53 = vld [vmem:[%s11380_s4 + $0xc0] sm:$0xff] }
  0x3c   :  { %6568 = vmatprep.mubr.msk.f32.mxu0 %vm1161_vm0, %v980_v28  ;;  %v491_v28 = vcombine.high %v483_v59, %v483_v59  ;;  %v136_v59 = vld [vmem:[%s11378_s3 + $0x110] sm:$0xff]  ;;  %v785_v35 = vrot.slane %v506_v18, %v7420_v16  ;;  %v1005_v26 = vadd.f32 %v941_v61, %v149_v8  ;;  %v1008_v38 = vadd.f32 %v944_v4, %v152_v43  ;;  %v3634_v8 = vld [vmem:[%s11380_s4 + $0xc8] sm:$0xff]  ;;  %v3640_v43 = vld [vmem:[%s11380_s4 + $0xf8] sm:$0xff] }
  0x3e   :  { %v513_v40 = vrot.slane %v491_v28, %v7416_v13 }
  0x3f   :  { %6569 = vmatmul.mubr.msk.f32.gmra.mrb[22].mxu0 %vm1161_vm0, %v7702_v29  ;;  %v928_v29 = vsub.f32 %v72_v20, %v7764_v60  ;;  %v394_v60 = vcombine.high %v7756_v57, %v7756_v57  ;;  %v492_v20 = vcombine.high %v490_v44, %v490_v44  ;;  %v95_v44 = vld [vmem:[%s11377_s1 + $0x1c8] sm:$0xff] }
  0x40   :  { %6571 = vmatprep.mubr.msk.f32.mxu0 %vm1161_vm0, %v7694_v21  ;;  %v173_v21 = vld [vmem:[%s11376_s0 + $0x38] sm:$0xff]  ;;  %v773_v54 = vrot.slane %v513_v40, %v7420_v16  ;;  %v523_v56 = vcombine.high %v513_v40, %v513_v40  ;;  %v522_v40 = vcombine.high %v506_v18, %v506_v18 }
  0x41   :  { %v532_v5 = vrot.slane %v173_v21, %v7416_v13  ;;  %v525_v11 = vcombine.high %v173_v21, %v173_v21  ;;  %v7922_v25 = vrot.slane %v394_v60, %v7416_v13  ;;  %v520_v36 = vrot.slane %v492_v20, %v7416_v13  ;;  %v7974_v18 = vld [vmem:[%s11377_s1 + $0x1b8] sm:$0xff] }
  0x42   :  { %v7892_v0 = vsub.f32 %v87_v46, %v773_v54  ;;  %v7897_v57 = vrot.slane %v523_v56, %v7420_v16  ;;  %v7947_v46 = vld [vmem:[%s11377_s1 + $0x1b0] sm:$0xff]  ;;  %v135_v56 = vld [vmem:[%s11378_s3 + $0x108] sm:$0xff]  ;;  %v7962_v1 = vrot.slane %v522_v40, %v7420_v16 }
  0x43   :  { %6572 = vmatmul.mubr.msk.f32.gmra.mrb[24].mxu0 %vm1161_vm0, %v7696_v22  ;;  %v7904_v22 = vadd.f32 %v928_v29, %v136_v59  ;;  %v548_v17 = vrot.slane %v532_v5, %v7416_v13  ;;  %v540_v2 = vcombine.high %v532_v5, %v532_v5  ;;  %v539_v6 = vrot.slane %v525_v11, %v7416_v13  ;;  %v7939_v29 = vld [vmem:[%s11377_s1 + $0x1d0] sm:$0xff] }
  0x44   :  { %6574 = vmatprep.mubr.msk.f32.mxu0 %vm1161_vm0, %v7698_v23  ;;  %v945_v15 = vsub.f32 %v7886_v63, %v7897_v57  ;;  %v94_v23 = vld [vmem:[%s11377_s1 + $0x1c0] sm:$0xff]  ;;  %v7958_v59 = vsub.f32 %v90_v27, %v785_v35  ;;  %v789_v60 = vrot.slane %v520_v36, %v7420_v16  ;;  %v524_v5 = vcombine.high %v520_v36, %v520_v36  ;;  %v157_v57 = vld [vmem:[%s11378_s3 + $0x1b8] sm:$0xff] }
  0x45   :  { %v801_v28 = vrot.slane %v548_v17, %v7420_v16  ;;  %v570_v32 = vcombine.high %v548_v17, %v548_v17  ;;  %v562_v41 = vrot.slane %v540_v2, %v7416_v13  ;;  %v555_v50 = vrot.slane %v539_v6, %v7416_v13  ;;  %v73_v17 = vld [vmem:[%s11377_s1 + $0x118] sm:$0xff] }
  0x46   :  { %v541_v54 = vcombine.high %v539_v6, %v539_v6  ;;  %v948_v6 = vsub.f32 %v7947_v46, %v7962_v1  ;;  %v7988_v27 = vrot.slane %v524_v5, %v7420_v16  ;;  %v929_v40 = vsub.f32 %v73_v17, %v7907_v14  ;;  %v99_v14 = vld [vmem:[%s11377_s1 + $0x1e8] sm:$0xff] }
  0x47   :  { %6575 = vmatmul.mubr.msk.f32.gmra.mrb[26].mxu0 %vm1161_vm0, %v7704_v30  ;;  %v133_v30 = vld [vmem:[%s11378_s3 + $0xf8] sm:$0xff]  ;;  %v7949_v21 = vsub.f32 %v94_v23, %v801_v28  ;;  %v7952_v48 = vrot.slane %v570_v32, %v7420_v16  ;;  %v805_v20 = vrot.slane %v562_v41, %v7420_v16  ;;  %v572_v2 = vcombine.high %v562_v41, %v562_v41 }
  0x48   :  { %6577 = vmatprep.mubr.msk.f32.mxu0 %vm1161_vm0, %v7732_v45  ;;  %v91_v45 = vld [vmem:[%s11377_s1 + $0x1a8] sm:$0xff]  ;;  %v989_v11 = vadd.f32 %v925_v9, %v133_v30  ;;  %v7993_v28 = vld [vmem:[%s11377_s1 + $0x1d8] sm:$0xff]  ;;  %v991_v32 = vadd.f32 %v927_v10, %v135_v56  ;;  %v817_v36 = vrot.slane %v555_v50, %v7420_v16  ;;  %v725_v41 = vrot.slane %v7922_v25, %v7420_v16 }
  0x49   :  { %v7983_v9 = vsub.f32 %v91_v45, %v789_v60  ;;  %v8001_v30 = vsub.f32 %v95_v44, %v805_v20  ;;  %v8004_v35 = vrot.slane %v572_v2, %v7420_v16  ;;  %v949_v45 = vsub.f32 %v7974_v18, %v7988_v27  ;;  %v3611_v18 = vld [vmem:[%s11380_s4 + $0x10] sm:$0xff] }
  0x4a   :  { %v569_v10 = vrot.slane %v541_v54, %v7416_v13  ;;  %v426_v56 = vcombine.high %v7922_v25, %v7922_v25  ;;  %v571_v44 = vcombine.high %v555_v50, %v555_v50  ;;  %v137_v13 = vld [vmem:[%s11378_s3 + $0x118] sm:$0xff]  ;;  %v75_v25 = vld [vmem:[%s11377_s1 + $0x128] sm:$0xff]  ;;  %v8036_v50 = vld [vmem:[%s11377_s1 + $0x1f0] sm:$0xff]  ;;  %v1012_v63 = vadd.f32 %v948_v6, %v156_v55 }
  0x4b   :  { %6578 = vmatmul.mubr.msk.f32.gmra.mrb[28].mxu0 %vm1161_vm0, %v987_v58  ;;  %v424_v58 = vcombine.high %v7870_v52, %v7870_v52  ;;  %v74_v52 = vld [vmem:[%s11377_s1 + $0x120] sm:$0xff]  ;;  %v1011_v4 = vadd.f32 %v7983_v9, %v155_v47  ;;  %v1013_v46 = vadd.f32 %v949_v45, %v157_v57  ;;  %v159_v6 = vld [vmem:[%s11378_s3 + $0x1c8] sm:$0xff]  ;;  %v11398_v27 = vsub.f32 %v7939_v29, %v7952_v48  ;;  %v3648_v55 = vld [vmem:[%s11380_s4 + $0x138] sm:$0xff] }
  0x4c   :  { %6580 = vmatprep.mubr.msk.f32.mxu0 %vm1161_vm0, %v7804_v19  ;;  %v98_v19 = vld [vmem:[%s11377_s1 + $0x1e0] sm:$0xff]  ;;  %v930_v54 = vsub.f32 %v74_v52, %v721_v12  ;;  %v821_v17 = vrot.slane %v569_v10, %v7420_v16  ;;  %v573_v20 = vcombine.high %v569_v10, %v569_v10  ;;  %v76_v12 = vld [vmem:[%s11377_s1 + $0x130] sm:$0xff]  ;;  %v8045_v2 = vrot.slane %v571_v44, %v7420_v16 }
  0x4d   :  { %v8018_v5 = vsub.f32 %v98_v19, %v817_v36  ;;  %v993_v36 = vadd.f32 %v929_v40, %v137_v13  ;;  %v931_v10 = vsub.f32 %v75_v25, %v725_v41  ;;  %v733_v60 = vrot.slane %v426_v56, %v7420_v16  ;;  %v141_v13 = vld [vmem:[%s11378_s3 + $0x138] sm:$0xff]  ;;  %v158_v9 = vld [vmem:[%s11378_s3 + $0x1c0] sm:$0xff] }
  0x4e   :  { %v8052_v19 = vsub.f32 %v99_v14, %v821_v17  ;;  %v8055_v52 = vrot.slane %v573_v20, %v7420_v16  ;;  %v956_v44 = vsub.f32 %v8036_v50, %v8045_v2  ;;  %v139_v14 = vld [vmem:[%s11378_s3 + $0x128] sm:$0xff]  ;;  %v1014_v1 = vadd.f32 %v7949_v21, %v158_v9  ;;  %v3619_v2 = vld [vmem:[%s11380_s4 + $0x50] sm:$0xff]  ;;  %v3649_v47 = vld [vmem:[%s11380_s4 + $0x140] sm:$0xff] }
  0x4f   :  { %6581 = vmatmul.mubr.msk.f32.gmra.mrb[30].mxu0 %vm1161_vm0, %v989_v11  ;;  %v729_v11 = vrot.slane %v424_v58, %v7420_v16  ;;  %v8050_v58 = vld [vmem:[%s11377_s1 + $0x1f8] sm:$0xff]  ;;  %v140_v16 = vld [vmem:[%s11378_s3 + $0x130] sm:$0xff]  ;;  %v1015_v21 = vadd.f32 %v8001_v30, %v159_v6  ;;  %v11399_v29 = vsub.f32 %v7993_v28, %v8004_v35  ;;  %v3614_v28 = vld [vmem:[%s11380_s4 + $0x28] sm:$0xff] }
  0x50   :  { %6583 = vmatprep.mubr.msk.f32.mxu0 %vm1161_vm0, %v7831_v37  ;;  %v138_v37 = vld [vmem:[%s11378_s3 + $0x120] sm:$0xff]  ;;  %v957_v40 = vsub.f32 %v8050_v58, %v8055_v52  ;;  %v3612_v30 = vld [vmem:[%s11380_s4 + $0x18] sm:$0xff]  ;;  %v3655_v9 = vld [vmem:[%s11380_s4 + $0x170] sm:$0xff] }
  0x51   :  { %v994_v23 = vadd.f32 %v930_v54, %v138_v37  ;;  %v932_v17 = vsub.f32 %v76_v12, %v729_v11  ;;  %v142_v54 = vld [vmem:[%s11378_s3 + $0x140] sm:$0xff]  ;;  %v3620_v52 = vld [vmem:[%s11380_s4 + $0x58] sm:$0xff] }
  0x52   :  { %v998_v11 = vadd.f32 %v7747_v51, %v142_v54  ;;  %v145_v51 = vld [vmem:[%s11378_s3 + $0x158] sm:$0xff]  ;;  %v146_v12 = vld [vmem:[%s11378_s3 + $0x160] sm:$0xff]  ;;  %v164_v54 = vld [vmem:[%s11378_s3 + $0x1f0] sm:$0xff] }
  0x53   :  { %6584 = vmatmul.mubr.msk.f32.gmra.mrb[32].mxu0 %vm1161_vm0, %v991_v32  ;;  %v77_v32 = vld [vmem:[%s11377_s1 + $0x138] sm:$0xff]  ;;  %v996_v56 = vadd.f32 %v932_v17, %v140_v16  ;;  %v160_v17 = vld [vmem:[%s11378_s3 + $0x1d0] sm:$0xff]  ;;  %v3613_v16 = vld [vmem:[%s11380_s4 + $0x20] sm:$0xff] }
  0x54   :  { %6586 = vmatprep.mubr.msk.f32.mxu0 %vm1161_vm0, %v7904_v22  ;;  %v995_v22 = vadd.f32 %v931_v10, %v139_v14  ;;  %v933_v41 = vsub.f32 %v77_v32, %v733_v60  ;;  %v144_v60 = vld [vmem:[%s11378_s3 + $0x150] sm:$0xff]  ;;  %v3610_v14 = vld [vmem:[%s11380_s4 + $0x8] sm:$0xff]  ;;  %v1016_v45 = vadd.f32 %v11398_v27, %v160_v17  ;;  %v161_v32 = vld [vmem:[%s11378_s3 + $0x1d8] sm:$0xff] }
  0x55   :  { %v1000_v37 = vadd.f32 %v936_v62, %v144_v60  ;;  %v1003_v62 = vadd.f32 %v7844_v42, %v147_v49  ;;  %v151_v42 = vld [vmem:[%s11378_s3 + $0x188] sm:$0xff]  ;;  %v1017_v48 = vadd.f32 %v11399_v29, %v161_v32  ;;  %v3621_v58 = vld [vmem:[%s11380_s4 + $0x60] sm:$0xff]  ;;  %v3656_v6 = vld [vmem:[%s11380_s4 + $0x178] sm:$0xff] }
  0x56   :  { %v997_v25 = vadd.f32 %v933_v41, %v141_v13  ;;  %v1007_v10 = vadd.f32 %v7892_v0, %v151_v42  ;;  %v1010_v0 = vadd.f32 %v7958_v59, %v154_v34  ;;  %v3609_v59 = vld [vmem:[%s11380_s4] sm:$0xff]  ;;  %v3615_v13 = vld [vmem:[%s11380_s4 + $0x30] sm:$0xff]  ;;  %v3630_v49 = vld [vmem:[%s11380_s4 + $0xa8] sm:$0xff] }
  0x57   :  { %6587 = vmatmul.mubr.msk.f32.gmra.mrb[34].mxu0 %vm1161_vm0, %v993_v36  ;;  %v1002_v36 = vadd.f32 %v7820_v31, %v146_v12  ;;  %v1803_v31 = vld [vmem:[%s11379_s7] sm:$0xf]  ;;  %v3644_v34 = vld [vmem:[%s11380_s4 + $0x118] sm:$0xff]  ;;  %v3658_v17 = vld [vmem:[%s11380_s4 + $0x188] sm:$0xff] }
  0x58   :  { %6589 = vmatprep.mubr.msk.f32.mxu0 %vm1161_vm0, %v994_v23  ;;  %v143_v23 = vld [vmem:[%s11378_s3 + $0x148] sm:$0xff]  ;;  %6631 = vmatprep.subr.msk.mxu1 %vm2004_vm1, %v1803_v31  ;;  %v3625_v60 = vld [vmem:[%s11380_s4 + $0x80] sm:$0xff] }
  0x59   :  { %v999_v20 = vadd.f32 %v7784_v7, %v143_v23  ;;  %v1001_v7 = vadd.f32 %v937_v24, %v145_v51  ;;  %v150_v24 = vld [vmem:[%s11378_s3 + $0x180] sm:$0xff]  ;;  %6632 = vmatpush3.msk.msra.mxu1 %vm2004_vm1, %v1803_v31  ;;  %v3622_v23 = vld [vmem:[%s11380_s4 + $0x68] sm:$0xff]  ;;  %v3636_v31 = vld [vmem:[%s11380_s4 + $0xd8] sm:$0xff] }
  0x5a   :  { %v1006_v33 = vadd.f32 %v7838_v39, %v150_v24  ;;  %v153_v39 = vld [vmem:[%s11378_s3 + $0x198] sm:$0xff]  ;;  %v3626_v51 = vld [vmem:[%s11380_s4 + $0x88] sm:$0xff]  ;;  %v3629_v12 = vld [vmem:[%s11380_s4 + $0xa0] sm:$0xff] }
  0x5b   :  { %6590 = vmatmul.mubr.msk.f32.gmra.mrb[36].mxu0 %vm1161_vm0, %v995_v22  ;;  %v1009_v61 = vadd.f32 %v945_v15, %v153_v39  ;;  %v11389_v15 = vmov 0   ;;  %v162_v22 = vld [vmem:[%s11378_s3 + $0x1e0] sm:$0xff] }
  0x5c   :  { %6592 = vmatprep.mubr.msk.f32.mxu0 %vm1161_vm0, %v996_v56  ;;  %6742 = vset.pattern.permute.xlu0 %v11389_v15  ;;  %v1018_v41 = vadd.f32 %v8018_v5, %v162_v22  ;;  %v163_v56 = vld [vmem:[%s11378_s3 + $0x1e8] sm:$0xff]  ;;  %v1020_v5 = vadd.f32 %v956_v44, %v164_v54  ;;  %v3637_v24 = vld [vmem:[%s11380_s4 + $0xe0] sm:$0xff]  ;;  %v3667_v54 = vld [vmem:[%s11380_s4 + $0x1d0] sm:$0xff] }
  0x5d   :  { %3675 = vperm.xlu0 %6742, %v3609_v59   ;;  %6743 = vset.pattern.permute.xlu1 %v11389_v15  ;;  %v1019_v35 = vadd.f32 %v8052_v19, %v163_v56  ;;  %v3616_v19 = vld [vmem:[%s11380_s4 + $0x38] sm:$0xff]  ;;  %v3618_v44 = vld [vmem:[%s11380_s4 + $0x48] sm:$0xff]  ;;  %v3641_v42 = vld [vmem:[%s11380_s4 + $0x100] sm:$0xff] }
  0x5e   :  { %3685 = vperm.xlu1 %6743, %v3611_v18   ;;  %v3645_v39 = vld [vmem:[%s11380_s4 + $0x120] sm:$0xff]  ;;  %v3652_v59 = vld [vmem:[%s11380_s4 + $0x158] sm:$0xff] }
  0x5f   :  { %6593 = vmatmul.mubr.msk.f32.gmra.mrb[38].mxu0 %vm1161_vm0, %v997_v25  ;;  %v165_v25 = vld [vmem:[%s11378_s3 + $0x1f8] sm:$0xff]  ;;  %v3653_v57 = vld [vmem:[%s11380_s4 + $0x160] sm:$0xff] }
  0x60   :  { %6595 = vmatprep.mubr.msk.f32.mxu0 %vm1161_vm0, %v998_v11  ;;  %v3617_v11 = vld [vmem:[%s11380_s4 + $0x40] sm:$0xff]  ;;  %v1021_v50 = vadd.f32 %v957_v40, %v165_v25  ;;  %v3623_v40 = vld [vmem:[%s11380_s4 + $0x70] sm:$0xff] }
  0x61   :  { %3680 = vperm.xlu0 %6742, %v3610_v14   ;;  %v3659_v14 = vld [vmem:[%s11380_s4 + $0x190] sm:$0xff]  ;;  %v3661_v18 = vld [vmem:[%s11380_s4 + $0x1a0] sm:$0xff] }
  0x62   :  { %3690 = vperm.xlu1 %6743, %v3612_v30   ;;  %v8393_v27 = vld [vmem:[%s11381_s6] ss:$0 sm:$0xff] }
  0x63   :  { %6596 = vmatmul.mubr.msk.f32.gmra.mrb[40].mxu0 %vm1161_vm0, %v999_v20  ;;  %v3624_v20 = vld [vmem:[%s11380_s4 + $0x78] sm:$0xff] }
  0x64   :  { %6598 = vmatprep.mubr.msk.f32.mxu0 %vm1161_vm0, %v1000_v37  ;;  %v3627_v37 = vld [vmem:[%s11380_s4 + $0x90] sm:$0xff] }
  0x65   :  { %3695 = vperm.xlu0 %6742, %v3613_v16   ;;  %v3662_v16 = vld [vmem:[%s11380_s4 + $0x1a8] sm:$0xff] }
  0x66   :  { %3700 = vperm.xlu1 %6743, %v3614_v28  }
  0x67   :  { %6599 = vmatmul.mubr.msk.f32.gmra.mrb[42].mxu0 %vm1161_vm0, %v1001_v7  ;;  %v3628_v7 = vld [vmem:[%s11380_s4 + $0x98] sm:$0xff] }
  0x68   :  { %6601 = vmatprep.mubr.msk.f32.mxu0 %vm1161_vm0, %v1002_v36  ;;  %v3631_v36 = vld [vmem:[%s11380_s4 + $0xb0] sm:$0xff] }
  0x69   :  { %3705 = vperm.xlu0 %6742, %v3615_v13  }
  0x6a   :  { %3710 = vperm.xlu1 %6743, %v3616_v19  }
  0x6b   :  { %6602 = vmatmul.mubr.msk.f32.gmra.mrb[44].mxu0 %vm1161_vm0, %v1003_v62  ;;  %v3632_v62 = vld [vmem:[%s11380_s4 + $0xb8] sm:$0xff] }
  0x6c   :  { %6604 = vmatprep.mubr.msk.f32.mxu0 %vm1161_vm0, %v1004_v3  ;;  %v3635_v3 = vld [vmem:[%s11380_s4 + $0xd0] sm:$0xff] }
  0x6d   :  { %3715 = vperm.xlu0 %6742, %v3617_v11   ;;  %v3666_v11 = vld [vmem:[%s11380_s4 + $0x1c8] sm:$0xff] }
  0x6e   :  { %3720 = vperm.xlu1 %6743, %v3618_v44   ;;  %v3669_v44 = vld [vmem:[%s11380_s4 + $0x1e0] sm:$0xff] }
  0x6f   :  { %6605 = vmatmul.mubr.msk.f32.gmra.mrb[46].mxu0 %vm1161_vm0, %v1005_v26  ;;  %v3639_v26 = vld [vmem:[%s11380_s4 + $0xf0] sm:$0xff] }
  0x70   :  { %6607 = vmatprep.mubr.msk.f32.mxu0 %vm1161_vm0, %v1006_v33  ;;  %v3638_v33 = vld [vmem:[%s11380_s4 + $0xe8] sm:$0xff] }
  0x71   :  { %3725 = vperm.xlu0 %6742, %v3619_v2  }
  0x72   :  { %3730 = vperm.xlu1 %6743, %v3620_v52  }
  0x73   :  { %6608 = vmatmul.mubr.msk.f32.gmra.mrb[48].mxu0 %vm1161_vm0, %v1007_v10  ;;  %v3643_v10 = vld [vmem:[%s11380_s4 + $0x110] sm:$0xff] }
  0x74   :  { %6610 = vmatprep.mubr.msk.f32.mxu0 %vm1161_vm0, %v1008_v38  ;;  %v3642_v38 = vld [vmem:[%s11380_s4 + $0x108] sm:$0xff] }
  0x75   :  { %3735 = vperm.xlu0 %6742, %v3621_v58  }
  0x76   :  { %3740 = vperm.xlu1 %6743, %v3622_v23   ;;  %v3668_v23 = vld [vmem:[%s11380_s4 + $0x1d8] sm:$0xff] }
  0x77   :  { %6611 = vmatmul.mubr.msk.f32.gmra.mrb[50].mxu0 %vm1161_vm0, %v1009_v61  ;;  %v3647_v61 = vld [vmem:[%s11380_s4 + $0x130] sm:$0xff] }
  0x78   :  { %6613 = vmatprep.mubr.msk.f32.mxu0 %vm1161_vm0, %v1010_v0  ;;  %v3646_v0 = vld [vmem:[%s11380_s4 + $0x128] sm:$0xff] }
  0x79   :  { %3745 = vperm.xlu0 %6742, %v3623_v40  }
  0x7a   :  { %3750 = vperm.xlu1 %6743, %v3624_v20  }
  0x7b   :  { %6614 = vmatmul.mubr.msk.f32.gmra.mrb[52].mxu0 %vm1161_vm0, %v1011_v4  ;;  %v3651_v4 = vld [vmem:[%s11380_s4 + $0x150] sm:$0xff] }
  0x7c   :  { %6616 = vmatprep.mubr.msk.f32.mxu0 %vm1161_vm0, %v1012_v63  ;;  %v3650_v63 = vld [vmem:[%s11380_s4 + $0x148] sm:$0xff] }
  0x7d   :  { %3755 = vperm.xlu0 %6742, %v3625_v60  }
  0x7e   :  { %3760 = vperm.xlu1 %6743, %v3626_v51   ;;  %v3671_v51 = vld [vmem:[%s11380_s4 + $0x1f0] sm:$0xff] }
  0x7f   :  { %6617 = vmatmul.mubr.msk.f32.gmra.mrb[54].mxu0 %vm1161_vm0, %v1013_v46  ;;  %v3654_v46 = vld [vmem:[%s11380_s4 + $0x168] sm:$0xff] }
  0x80   :  { %6619 = vmatprep.mubr.msk.f32.mxu0 %vm1161_vm0, %v1014_v1  ;;  %v3657_v1 = vld [vmem:[%s11380_s4 + $0x180] sm:$0xff] }
  0x81   :  { %3765 = vperm.xlu0 %6742, %v3627_v37  }
  0x82   :  { %3770 = vperm.xlu1 %6743, %v3628_v7  }
  0x83   :  { %6620 = vmatmul.mubr.msk.f32.gmra.mrb[56].mxu0 %vm1161_vm0, %v1015_v21  ;;  %v3660_v21 = vld [vmem:[%s11380_s4 + $0x198] sm:$0xff] }
  0x84   :  { %6622 = vmatprep.mubr.msk.f32.mxu0 %vm1161_vm0, %v1016_v45  ;;  %v3663_v45 = vld [vmem:[%s11380_s4 + $0x1b0] sm:$0xff] }
  0x85   :  { %3775 = vperm.xlu0 %6742, %v3629_v12  }
  0x86   :  { %3780 = vperm.xlu1 %6743, %v3630_v49   ;;  %v3670_v49 = vld [vmem:[%s11380_s4 + $0x1e8] sm:$0xff] }
  0x87   :  { %6623 = vmatmul.mubr.msk.f32.gmra.mrb[58].mxu0 %vm1161_vm0, %v1017_v48  ;;  %v3665_v48 = vld [vmem:[%s11380_s4 + $0x1c0] sm:$0xff] }
  0x88   :  { %6625 = vmatprep.mubr.msk.f32.mxu0 %vm1161_vm0, %v1018_v41  ;;  %v3664_v41 = vld [vmem:[%s11380_s4 + $0x1b8] sm:$0xff] }
  0x89   :  { %3785 = vperm.xlu0 %6742, %v3631_v36  }
  0x8a   :  { %3790 = vperm.xlu1 %6743, %v3632_v62  }
  0x8b   :  { %6626 = vmatmul.mubr.msk.f32.gmra.mrb[60].mxu0 %vm1161_vm0, %v1019_v35 }
  0x8c   :  { %6628 = vmatprep.mubr.msk.f32.mxu0 %vm1161_vm0, %v1020_v5 }
  0x8d   :  { %3795 = vperm.xlu0 %6742, %v3633_v53  }
  0x8e   :  { %3800 = vperm.xlu1 %6743, %v3634_v8  }
  0x8f   :  { %6629 = vmatmul.mubr.msk.f32.gmra.mrb[62].mxu0 %vm1161_vm0, %v1021_v50 }
  0x91   :  { %3805 = vperm.xlu0 %6742, %v3635_v3  }
  0x92   :  { %3810 = vperm.xlu1 %6743, %v3636_v31  }
  0x95   :  { %3815 = vperm.xlu0 %6742, %v3637_v24  }
  0x96   :  { %3820 = vperm.xlu1 %6743, %v3638_v33  }
  0x99   :  { %3825 = vperm.xlu0 %6742, %v3639_v26   ;;  %v3672_v26 = vld [vmem:[%s11380_s4 + $0x1f8] sm:$0xff] }
  0x9a   :  { %3830 = vperm.xlu1 %6743, %v3640_v43  }
  0x9d   :  { %3835 = vperm.xlu0 %6742, %v3641_v42  }
  0x9e   :  { %3840 = vperm.xlu1 %6743, %v3642_v38  }
  0xa1   :  { %3845 = vperm.xlu0 %6742, %v3643_v10  }
  0xa2   :  { %3850 = vperm.xlu1 %6743, %v3644_v34  }
  0xa5   :  { %3855 = vperm.xlu0 %6742, %v3645_v39  }
  0xa6   :  { %3860 = vperm.xlu1 %6743, %v3646_v0  }
  0xa9   :  { %3865 = vperm.xlu0 %6742, %v3647_v61  }
  0xaa   :  { %3870 = vperm.xlu1 %6743, %v3648_v55  }
  0xad   :  { %3875 = vperm.xlu0 %6742, %v3649_v47  }
  0xae   :  { %3880 = vperm.xlu1 %6743, %v3650_v63  }
  0xb1   :  { %3885 = vperm.xlu0 %6742, %v3651_v4  }
  0xb2   :  { %3890 = vperm.xlu1 %6743, %v3652_v59  }
  0xb5   :  { %3895 = vperm.xlu0 %6742, %v3653_v57  }
  0xb6   :  { %3900 = vperm.xlu1 %6743, %v3654_v46  }
  0xb9   :  { %3905 = vperm.xlu0 %6742, %v3655_v9  }
  0xba   :  { %3910 = vperm.xlu1 %6743, %v3656_v6  }
  0xbd   :  { %3915 = vperm.xlu0 %6742, %v3657_v1  }
  0xbe   :  { %3920 = vperm.xlu1 %6743, %v3658_v17  }
  0xc1   :  { %3925 = vperm.xlu0 %6742, %v3659_v14  }
  0xc2   :  { %3930 = vperm.xlu1 %6743, %v3660_v21  }
  0xc5   :  { %3935 = vperm.xlu0 %6742, %v3661_v18  }
  0xc6   :  { %3940 = vperm.xlu1 %6743, %v3662_v16  }
  0xc9   :  { %3945 = vperm.xlu0 %6742, %v3663_v45  }
  0xca   :  { %3950 = vperm.xlu1 %6743, %v3664_v41  }
  0xcd   :  { %3955 = vperm.xlu0 %6742, %v3665_v48  }
  0xce   :  { %3960 = vperm.xlu1 %6743, %v3666_v11  }
  0xd1   :  { %3965 = vperm.xlu0 %6742, %v3667_v54  }
  0xd2   :  { %3970 = vperm.xlu1 %6743, %v3668_v23  }
  0xd5   :  { %3975 = vperm.xlu0 %6742, %v3669_v44  }
  0xd6   :  { %3980 = vperm.xlu1 %6743, %v3670_v49  }
  0xd9   :  { %3985 = vperm.xlu0 %6742, %v3671_v51  }
  0xda   :  { %3990 = vperm.xlu1 %6743, %v3672_v26  }
  0xe6   :  { %v6537_v32 = vpop.f32.mrb[0].mxu0 }
  0xe7   :  { %v1426_v22 = vadd.f32 %v6537_v32, %v8393_v27  ;;  %v1420_v30 = vpop.f32.mrb[1].mxu0 }
  0xe8   :  { %v1421_v29 = vadd.f32 %v8393_v27, %v1420_v30 }
  0xe9   :  { %v1740_v28 = vmax.f32 %v1426_v22, 0.0 }
  0xea   :  { %v1739_v56 = vmax.f32 %v1421_v29, 0.0  ;;  %v6540_v13 = vpop.f32.mrb[2].mxu0 }
  0xeb   :  { %v1436_v35 = vadd.f32 %v6540_v13, %v8393_v27  ;;  %v1430_v5 = vpop.f32.mrb[3].mxu0 }
  0xec   :  { %v1431_v25 = vadd.f32 %v8393_v27, %v1430_v5  ;;  %6633 = vmatprep.mubr.msk.f32.mxu1 %vm1811_vm2, %v1739_v56 }
  0xed   :  { %v1742_v19 = vmax.f32 %v1436_v35, 0.0  ;;  %6634 = vmatmul.mubr.msk.f32.vlgmr.msra.gmra.mrb[0].mxu1 %vm1811_vm2, %v1740_v28 }
  0xee   :  { %v1741_v50 = vmax.f32 %v1431_v25, 0.0  ;;  %v6543_v2 = vpop.f32.mrb[4].mxu0 }
  0xef   :  { %v1446_v58 = vadd.f32 %v6543_v2, %v8393_v27  ;;  %v1440_v52 = vpop.f32.mrb[5].mxu0 }
  0xf0   :  { %v1441_v40 = vadd.f32 %v8393_v27, %v1440_v52  ;;  %6636 = vmatprep.mubr.msk.f32.mxu1 %vm1811_vm2, %v1741_v50 }
  0xf1   :  { %v1744_v60 = vmax.f32 %v1446_v58, 0.0  ;;  %6637 = vmatmul.mubr.msk.f32.gmra.mrb[2].mxu1 %vm1811_vm2, %v1742_v19 }
  0xf2   :  { %v1743_v20 = vmax.f32 %v1441_v40, 0.0  ;;  %v6546_v37 = vpop.f32.mrb[6].mxu0 }
  0xf3   :  { %v1456_v12 = vadd.f32 %v6546_v37, %v8393_v27  ;;  %v1450_v7 = vpop.f32.mrb[7].mxu0 }
  0xf4   :  { %v1451_v36 = vadd.f32 %v8393_v27, %v1450_v7  ;;  %6639 = vmatprep.mubr.msk.f32.mxu1 %vm1811_vm2, %v1743_v20 }
  0xf5   :  { %v1746_v53 = vmax.f32 %v1456_v12, 0.0  ;;  %6640 = vmatmul.mubr.msk.f32.gmra.mrb[4].mxu1 %vm1811_vm2, %v1744_v60 }
  0xf6   :  { %v1745_v62 = vmax.f32 %v1451_v36, 0.0  ;;  %v6549_v3 = vpop.f32.mrb[8].mxu0 }
  0xf7   :  { %v1466_v8 = vadd.f32 %v6549_v3, %v8393_v27  ;;  %v1460_v24 = vpop.f32.mrb[9].mxu0 }
  0xf8   :  { %v1461_v31 = vadd.f32 %v8393_v27, %v1460_v24  ;;  %6642 = vmatprep.mubr.msk.f32.mxu1 %vm1811_vm2, %v1745_v62 }
  0xf9   :  { %v1748_v33 = vmax.f32 %v1466_v8, 0.0  ;;  %6643 = vmatmul.mubr.msk.f32.gmra.mrb[6].mxu1 %vm1811_vm2, %v1746_v53 }
  0xfa   :  { %v1747_v42 = vmax.f32 %v1461_v31, 0.0  ;;  %v6552_v43 = vpop.f32.mrb[10].mxu0 }
  0xfb   :  { %v1476_v10 = vadd.f32 %v6552_v43, %v8393_v27  ;;  %v1470_v38 = vpop.f32.mrb[11].mxu0 }
  0xfc   :  { %v1471_v39 = vadd.f32 %v8393_v27, %v1470_v38  ;;  %6645 = vmatprep.mubr.msk.f32.mxu1 %vm1811_vm2, %v1747_v42 }
  0xfd   :  { %v1750_v34 = vmax.f32 %v1476_v10, 0.0  ;;  %6646 = vmatmul.mubr.msk.f32.gmra.mrb[8].mxu1 %vm1811_vm2, %v1748_v33 }
  0xfe   :  { %v1749_v61 = vmax.f32 %v1471_v39, 0.0  ;;  %v6555_v0 = vpop.f32.mrb[12].mxu0 }
  0xff   :  { %v1486_v47 = vadd.f32 %v6555_v0, %v8393_v27  ;;  %v1480_v55 = vpop.f32.mrb[13].mxu0 }
 0x100   :  { %v1481_v4 = vadd.f32 %v8393_v27, %v1480_v55  ;;  %6648 = vmatprep.mubr.msk.f32.mxu1 %vm1811_vm2, %v1749_v61 }
 0x101   :  { %v1752_v63 = vmax.f32 %v1486_v47, 0.0  ;;  %6649 = vmatmul.mubr.msk.f32.gmra.mrb[10].mxu1 %vm1811_vm2, %v1750_v34 }
 0x102   :  { %v1751_v57 = vmax.f32 %v1481_v4, 0.0  ;;  %v6558_v59 = vpop.f32.mrb[14].mxu0 }
 0x103   :  { %v1496_v9 = vadd.f32 %v6558_v59, %v8393_v27  ;;  %v1490_v46 = vpop.f32.mrb[15].mxu0 }
 0x104   :  { %v1491_v1 = vadd.f32 %v8393_v27, %v1490_v46  ;;  %6651 = vmatprep.mubr.msk.f32.mxu1 %vm1811_vm2, %v1751_v57 }
 0x105   :  { %v1754_v6 = vmax.f32 %v1496_v9, 0.0  ;;  %6652 = vmatmul.mubr.msk.f32.gmra.mrb[12].mxu1 %vm1811_vm2, %v1752_v63 }
 0x106   :  { %v1753_v14 = vmax.f32 %v1491_v1, 0.0  ;;  %v6561_v17 = vpop.f32.mrb[16].mxu0 }
 0x107   :  { %v1506_v18 = vadd.f32 %v6561_v17, %v8393_v27  ;;  %v1500_v21 = vpop.f32.mrb[17].mxu0 }
 0x108   :  { %v1501_v45 = vadd.f32 %v8393_v27, %v1500_v21  ;;  %6654 = vmatprep.mubr.msk.f32.mxu1 %vm1811_vm2, %v1753_v14 }
 0x109   :  { %v1756_v32 = vmax.f32 %v1506_v18, 0.0  ;;  %6655 = vmatmul.mubr.msk.f32.gmra.mrb[14].mxu1 %vm1811_vm2, %v1754_v6 }
 0x10a   :  { %v1755_v16 = vmax.f32 %v1501_v45, 0.0  ;;  %v6564_v22 = vpop.f32.mrb[18].mxu0 }
 0x10b   :  { %v1516_v30 = vadd.f32 %v6564_v22, %v8393_v27  ;;  %v1510_v29 = vpop.f32.mrb[19].mxu0 }
 0x10c   :  { %v1511_v48 = vadd.f32 %v8393_v27, %v1510_v29  ;;  %6657 = vmatprep.mubr.msk.f32.mxu1 %vm1811_vm2, %v1755_v16 }
 0x10d   :  { %v1758_v41 = vmax.f32 %v1516_v30, 0.0  ;;  %6658 = vmatmul.mubr.msk.f32.gmra.mrb[16].mxu1 %vm1811_vm2, %v1756_v32 }
 0x10e   :  { %v1757_v56 = vmax.f32 %v1511_v48, 0.0  ;;  %v6567_v13 = vpop.f32.mrb[20].mxu0 }
 0x10f   :  { %v1526_v54 = vadd.f32 %v6567_v13, %v8393_v27  ;;  %v1520_v28 = vpop.f32.mrb[21].mxu0 }
 0x110   :  { %v1521_v35 = vadd.f32 %v8393_v27, %v1520_v28  ;;  %6660 = vmatprep.mubr.msk.f32.mxu1 %vm1811_vm2, %v1757_v56 }
 0x111   :  { %v1760_v5 = vmax.f32 %v1526_v54, 0.0  ;;  %6661 = vmatmul.mubr.msk.f32.gmra.mrb[18].mxu1 %vm1811_vm2, %v1758_v41 }
 0x112   :  { %v1759_v25 = vmax.f32 %v1521_v35, 0.0  ;;  %v6570_v11 = vpop.f32.mrb[22].mxu0 }
 0x113   :  { %v1536_v19 = vadd.f32 %v6570_v11, %v8393_v27  ;;  %v1530_v50 = vpop.f32.mrb[23].mxu0 }
 0x114   :  { %v1531_v2 = vadd.f32 %v8393_v27, %v1530_v50  ;;  %6663 = vmatprep.mubr.msk.f32.mxu1 %vm1811_vm2, %v1759_v25 }
 0x115   :  { %v1762_v44 = vmax.f32 %v1536_v19, 0.0  ;;  %6664 = vmatmul.mubr.msk.f32.gmra.mrb[20].mxu1 %vm1811_vm2, %v1760_v5 }
 0x116   :  { %v1761_v58 = vmax.f32 %v1531_v2, 0.0  ;;  %v6573_v52 = vpop.f32.mrb[24].mxu0 }
 0x117   :  { %v1546_v40 = vadd.f32 %v6573_v52, %v8393_v27  ;;  %v1540_v23 = vpop.f32.mrb[25].mxu0 }
 0x118   :  { %v1541_v60 = vadd.f32 %v8393_v27, %v1540_v23  ;;  %6666 = vmatprep.mubr.msk.f32.mxu1 %vm1811_vm2, %v1761_v58 }
 0x119   :  { %v1764_v20 = vmax.f32 %v1546_v40, 0.0  ;;  %6667 = vmatmul.mubr.msk.f32.gmra.mrb[22].mxu1 %vm1811_vm2, %v1762_v44 }
 0x11a   :  { %v1763_v37 = vmax.f32 %v1541_v60, 0.0  ;;  %v6576_v51 = vpop.f32.mrb[26].mxu0 }
 0x11b   :  { %v1556_v12 = vadd.f32 %v6576_v51, %v8393_v27  ;;  %v1550_v7 = vpop.f32.mrb[27].mxu0 }
 0x11c   :  { %v1551_v36 = vadd.f32 %v8393_v27, %v1550_v7  ;;  %6669 = vmatprep.mubr.msk.f32.mxu1 %vm1811_vm2, %v1763_v37 }
 0x11d   :  { %v1766_v49 = vmax.f32 %v1556_v12, 0.0  ;;  %6670 = vmatmul.mubr.msk.f32.gmra.mrb[24].mxu1 %vm1811_vm2, %v1764_v20 }
 0x11e   :  { %v1765_v53 = vmax.f32 %v1551_v36, 0.0  ;;  %v6579_v62 = vpop.f32.mrb[28].mxu0 }
 0x11f   :  { %v1566_v3 = vadd.f32 %v6579_v62, %v8393_v27  ;;  %v1560_v8 = vpop.f32.mrb[29].mxu0 }
 0x120   :  { %v1561_v24 = vadd.f32 %v8393_v27, %v1560_v8  ;;  %6672 = vmatprep.mubr.msk.f32.mxu1 %vm1811_vm2, %v1765_v53 }
 0x121   :  { %v1768_v31 = vmax.f32 %v1566_v3, 0.0  ;;  %6673 = vmatmul.mubr.msk.f32.gmra.mrb[26].mxu1 %vm1811_vm2, %v1766_v49 }
 0x122   :  { %v1767_v26 = vmax.f32 %v1561_v24, 0.0  ;;  %v6582_v33 = vpop.f32.mrb[30].mxu0 }
 0x123   :  { %v1576_v42 = vadd.f32 %v6582_v33, %v8393_v27  ;;  %v1570_v43 = vpop.f32.mrb[31].mxu0 }
 0x124   :  { %v1571_v10 = vadd.f32 %v8393_v27, %v1570_v43  ;;  %6675 = vmatprep.mubr.msk.f32.mxu1 %vm1811_vm2, %v1767_v26 }
 0x125   :  { %v1770_v38 = vmax.f32 %v1576_v42, 0.0  ;;  %6676 = vmatmul.mubr.msk.f32.gmra.mrb[28].mxu1 %vm1811_vm2, %v1768_v31 }
 0x126   :  { %v1769_v39 = vmax.f32 %v1571_v10, 0.0  ;;  %v6585_v34 = vpop.f32.mrb[32].mxu0 }
 0x127   :  { %v1586_v61 = vadd.f32 %v6585_v34, %v8393_v27  ;;  %v1580_v0 = vpop.f32.mrb[33].mxu0 }
 0x128   :  { %v1581_v47 = vadd.f32 %v8393_v27, %v1580_v0  ;;  %6678 = vmatprep.mubr.msk.f32.mxu1 %vm1811_vm2, %v1769_v39 }
 0x129   :  { %v1772_v55 = vmax.f32 %v1586_v61, 0.0  ;;  %6679 = vmatmul.mubr.msk.f32.gmra.mrb[30].mxu1 %vm1811_vm2, %v1770_v38 }
 0x12a   :  { %v1771_v4 = vmax.f32 %v1581_v47, 0.0  ;;  %v6588_v63 = vpop.f32.mrb[34].mxu0 }
 0x12b   :  { %v1596_v57 = vadd.f32 %v6588_v63, %v8393_v27  ;;  %v1590_v59 = vpop.f32.mrb[35].mxu0 }
 0x12c   :  { %v1591_v9 = vadd.f32 %v8393_v27, %v1590_v59  ;;  %6681 = vmatprep.mubr.msk.f32.mxu1 %vm1811_vm2, %v1771_v4 }
 0x12d   :  { %v1774_v46 = vmax.f32 %v1596_v57, 0.0  ;;  %6682 = vmatmul.mubr.msk.f32.gmra.mrb[32].mxu1 %vm1811_vm2, %v1772_v55 }
 0x12e   :  { %v1773_v1 = vmax.f32 %v1591_v9, 0.0  ;;  %v6591_v6 = vpop.f32.mrb[36].mxu0 }
 0x12f   :  { %v1606_v14 = vadd.f32 %v6591_v6, %v8393_v27  ;;  %v1600_v17 = vpop.f32.mrb[37].mxu0 }
 0x130   :  { %v1601_v18 = vadd.f32 %v8393_v27, %v1600_v17  ;;  %6684 = vmatprep.mubr.msk.f32.mxu1 %vm1811_vm2, %v1773_v1 }
 0x131   :  { %v1776_v21 = vmax.f32 %v1606_v14, 0.0  ;;  %6685 = vmatmul.mubr.msk.f32.gmra.mrb[34].mxu1 %vm1811_vm2, %v1774_v46 }
 0x132   :  { %v1775_v45 = vmax.f32 %v1601_v18, 0.0  ;;  %v6594_v32 = vpop.f32.mrb[38].mxu0 }
 0x133   :  { %v1616_v16 = vadd.f32 %v6594_v32, %v8393_v27  ;;  %v1610_v22 = vpop.f32.mrb[39].mxu0 }
 0x134   :  { %v1611_v30 = vadd.f32 %v8393_v27, %v1610_v22  ;;  %6687 = vmatprep.mubr.msk.f32.mxu1 %vm1811_vm2, %v1775_v45 }
 0x135   :  { %v1778_v29 = vmax.f32 %v1616_v16, 0.0  ;;  %6688 = vmatmul.mubr.msk.f32.gmra.mrb[36].mxu1 %vm1811_vm2, %v1776_v21 }
 0x136   :  { %v1777_v48 = vmax.f32 %v1611_v30, 0.0  ;;  %v6597_v41 = vpop.f32.mrb[40].mxu0 }
 0x137   :  { %v1626_v56 = vadd.f32 %v6597_v41, %v8393_v27  ;;  %v1620_v13 = vpop.f32.mrb[41].mxu0 }
 0x138   :  { %v1621_v54 = vadd.f32 %v8393_v27, %v1620_v13  ;;  %6690 = vmatprep.mubr.msk.f32.mxu1 %vm1811_vm2, %v1777_v48 }
 0x139   :  { %v1780_v28 = vmax.f32 %v1626_v56, 0.0  ;;  %6691 = vmatmul.mubr.msk.f32.gmra.mrb[38].mxu1 %vm1811_vm2, %v1778_v29 }
 0x13a   :  { %v1779_v35 = vmax.f32 %v1621_v54, 0.0  ;;  %v6600_v5 = vpop.f32.mrb[42].mxu0 }
 0x13b   :  { %v1636_v25 = vadd.f32 %v6600_v5, %v8393_v27  ;;  %v1630_v11 = vpop.f32.mrb[43].mxu0 }
 0x13c   :  { %v1631_v19 = vadd.f32 %v8393_v27, %v1630_v11  ;;  %6693 = vmatprep.mubr.msk.f32.mxu1 %vm1811_vm2, %v1779_v35 }
 0x13d   :  { %v1782_v50 = vmax.f32 %v1636_v25, 0.0  ;;  %6694 = vmatmul.mubr.msk.f32.gmra.mrb[40].mxu1 %vm1811_vm2, %v1780_v28 }
 0x13e   :  { %v1781_v2 = vmax.f32 %v1631_v19, 0.0  ;;  %v6603_v44 = vpop.f32.mrb[44].mxu0 }
 0x13f   :  { %v1646_v58 = vadd.f32 %v6603_v44, %v8393_v27  ;;  %v1640_v52 = vpop.f32.mrb[45].mxu0 }
 0x140   :  { %v1641_v40 = vadd.f32 %v8393_v27, %v1640_v52  ;;  %6696 = vmatprep.mubr.msk.f32.mxu1 %vm1811_vm2, %v1781_v2 }
 0x141   :  { %v1784_v23 = vmax.f32 %v1646_v58, 0.0  ;;  %6697 = vmatmul.mubr.msk.f32.gmra.mrb[42].mxu1 %vm1811_vm2, %v1782_v50  ;;  %v11387_v50 = vmov 2  }
 0x142   :  { %v1783_v60 = vmax.f32 %v1641_v40, 0.0  ;;  %v6606_v20 = vpop.f32.mrb[46].mxu0  ;;  %6745 = vset.pattern.permute.xlu0 %v11387_v50 }
 0x143   :  { %v1656_v37 = vadd.f32 %v6606_v20, %v8393_v27  ;;  %v1650_v51 = vpop.f32.mrb[47].mxu0 }
 0x144   :  { %v1651_v12 = vadd.f32 %v8393_v27, %v1650_v51  ;;  %6699 = vmatprep.mubr.msk.f32.mxu1 %vm1811_vm2, %v1783_v60 }
 0x145   :  { %v1786_v7 = vmax.f32 %v1656_v37, 0.0  ;;  %6700 = vmatmul.mubr.msk.f32.gmra.mrb[44].mxu1 %vm1811_vm2, %v1784_v23 }
 0x146   :  { %v1785_v36 = vmax.f32 %v1651_v12, 0.0  ;;  %v6609_v49 = vpop.f32.mrb[48].mxu0 }
 0x147   :  { %v1666_v53 = vadd.f32 %v6609_v49, %v8393_v27  ;;  %v1660_v62 = vpop.f32.mrb[49].mxu0 }
 0x148   :  { %v1661_v3 = vadd.f32 %v8393_v27, %v1660_v62  ;;  %6702 = vmatprep.mubr.msk.f32.mxu1 %vm1811_vm2, %v1785_v36 }
 0x149   :  { %v1788_v8 = vmax.f32 %v1666_v53, 0.0  ;;  %6703 = vmatmul.mubr.msk.f32.gmra.mrb[46].mxu1 %vm1811_vm2, %v1786_v7  ;;  %v8586_v53 = vld [vmem:[%s11382_s8] ss:$0 sm:$0xff] }
 0x14a   :  { %v1787_v24 = vmax.f32 %v1661_v3, 0.0  ;;  %v6612_v31 = vpop.f32.mrb[50].mxu0 }
 0x14b   :  { %v1676_v26 = vadd.f32 %v6612_v31, %v8393_v27  ;;  %v1670_v33 = vpop.f32.mrb[51].mxu0 }
 0x14c   :  { %v1671_v42 = vadd.f32 %v8393_v27, %v1670_v33  ;;  %6705 = vmatprep.mubr.msk.f32.mxu1 %vm1811_vm2, %v1787_v24 }
 0x14d   :  { %v1790_v43 = vmax.f32 %v1676_v26, 0.0  ;;  %6706 = vmatmul.mubr.msk.f32.gmra.mrb[48].mxu1 %vm1811_vm2, %v1788_v8 }
 0x14e   :  { %v1789_v10 = vmax.f32 %v1671_v42, 0.0  ;;  %v6615_v38 = vpop.f32.mrb[52].mxu0 }
 0x14f   :  { %v1686_v39 = vadd.f32 %v6615_v38, %v8393_v27  ;;  %v1680_v34 = vpop.f32.mrb[53].mxu0 }
 0x150   :  { %v1681_v61 = vadd.f32 %v8393_v27, %v1680_v34  ;;  %6708 = vmatprep.mubr.msk.f32.mxu1 %vm1811_vm2, %v1789_v10 }
 0x151   :  { %v1792_v0 = vmax.f32 %v1686_v39, 0.0  ;;  %6709 = vmatmul.mubr.msk.f32.gmra.mrb[50].mxu1 %vm1811_vm2, %v1790_v43 }
 0x152   :  { %v1791_v47 = vmax.f32 %v1681_v61, 0.0  ;;  %v6618_v55 = vpop.f32.mrb[54].mxu0 }
 0x153   :  { %v1696_v4 = vadd.f32 %v6618_v55, %v8393_v27  ;;  %v1690_v63 = vpop.f32.mrb[55].mxu0 }
 0x154   :  { %v1691_v57 = vadd.f32 %v8393_v27, %v1690_v63  ;;  %6711 = vmatprep.mubr.msk.f32.mxu1 %vm1811_vm2, %v1791_v47 }
 0x155   :  { %v1794_v59 = vmax.f32 %v1696_v4, 0.0  ;;  %6712 = vmatmul.mubr.msk.f32.gmra.mrb[52].mxu1 %vm1811_vm2, %v1792_v0 }
 0x156   :  { %v1793_v9 = vmax.f32 %v1691_v57, 0.0  ;;  %v6621_v46 = vpop.f32.mrb[56].mxu0 }
 0x157   :  { %v1706_v1 = vadd.f32 %v6621_v46, %v8393_v27  ;;  %v1700_v6 = vpop.f32.mrb[57].mxu0 }
 0x158   :  { %v1701_v14 = vadd.f32 %v8393_v27, %v1700_v6  ;;  %6714 = vmatprep.mubr.msk.f32.mxu1 %vm1811_vm2, %v1793_v9 }
 0x159   :  { %v1796_v17 = vmax.f32 %v1706_v1, 0.0  ;;  %6715 = vmatmul.mubr.msk.f32.gmra.mrb[54].mxu1 %vm1811_vm2, %v1794_v59 }
 0x15a   :  { %v1795_v18 = vmax.f32 %v1701_v14, 0.0  ;;  %v6624_v21 = vpop.f32.mrb[58].mxu0 }
 0x15b   :  { %v1716_v45 = vadd.f32 %v6624_v21, %v8393_v27  ;;  %v1710_v32 = vpop.f32.mrb[59].mxu0 }
 0x15c   :  { %v1711_v16 = vadd.f32 %v8393_v27, %v1710_v32  ;;  %6717 = vmatprep.mubr.msk.f32.mxu1 %vm1811_vm2, %v1795_v18 }
 0x15d   :  { %v1798_v22 = vmax.f32 %v1716_v45, 0.0  ;;  %6718 = vmatmul.mubr.msk.f32.gmra.mrb[56].mxu1 %vm1811_vm2, %v1796_v17 }
 0x15e   :  { %v1797_v30 = vmax.f32 %v1711_v16, 0.0  ;;  %v6627_v29 = vpop.f32.mrb[60].mxu0 }
 0x15f   :  { %v1726_v48 = vadd.f32 %v6627_v29, %v8393_v27  ;;  %v1720_v41 = vpop.f32.mrb[61].mxu0 }
 0x160   :  { %v1721_v56 = vadd.f32 %v8393_v27, %v1720_v41  ;;  %6720 = vmatprep.mubr.msk.f32.mxu1 %vm1811_vm2, %v1797_v30 }
 0x161   :  { %v1800_v13 = vmax.f32 %v1726_v48, 0.0  ;;  %6721 = vmatmul.mubr.msk.f32.gmra.mrb[58].mxu1 %vm1811_vm2, %v1798_v22 }
 0x162   :  { %v1799_v54 = vmax.f32 %v1721_v56, 0.0  ;;  %v6630_v28 = vpop.f32.mrb[62].mxu0 }
 0x163   :  { %v1736_v35 = vadd.f32 %v6630_v28, %v8393_v27  ;;  %v1730_v5 = vpop.f32.mrb[63].mxu0 }
 0x164   :  { %v1731_v25 = vadd.f32 %v8393_v27, %v1730_v5  ;;  %6723 = vmatprep.mubr.msk.f32.mxu1 %vm1811_vm2, %v1799_v54 }
 0x165   :  { %v1802_v11 = vmax.f32 %v1736_v35, 0.0  ;;  %6724 = vmatmul.mubr.msk.f32.gmra.mrb[60].mxu1 %vm1811_vm2, %v1800_v13 }
 0x166   :  { %v1801_v19 = vmax.f32 %v1731_v25, 0.0 }
 0x168   :  { %6726 = vmatprep.mubr.msk.f32.mxu1 %vm1811_vm2, %v1801_v19 }
 0x169   :  { %6727 = vmatmul.mubr.msk.f32.gmra.mrb[62].mxu1 %vm1811_vm2, %v1802_v11 }
 0x1c0   :  { %v6635_v2 = vpop.f32.mrb[0].mxu1 }
 0x1c1   :  { %v2074_v44 = vpop.f32.mrb[1].mxu1  ;;  %v2080_v3 = vadd.f32 %v6635_v2, %v8586_v53 }
 0x1c2   :  { %v2075_v34 = vadd.f32 %v8586_v53, %v2074_v44 }
 0x1c3   :  { %v2400_v31 = vsel %vm1811_vm2, %v2080_v3, -inf }
 0x1c4   :  { %v8557_v58 = vpop.f32.mrb[2].mxu1  ;;  %v2401_v42 = vrot.slane %v2400_v31, 4  ;;  %v2393_v55 = vsel %vm1811_vm2, %v2075_v34, -inf }
 0x1c5   :  { %v8559_v52 = vpop.f32.mrb[3].mxu1  ;;  %v2394_v57 = vrot.slane %v2393_v55, 4 }
 0x1c6   :  { %v2402_v38 = vmax.f32 %v2400_v31, %v2401_v42 }
 0x1c7   :  { %v2395_v1 = vmax.f32 %v2393_v55, %v2394_v57 }
 0x1c8   :  { %v8561_v27 = vpop.f32.mrb[4].mxu1  ;;  %v2403_v0 = vrot.slane %v2402_v38, 2 }
 0x1c9   :  { %v8563_v40 = vpop.f32.mrb[5].mxu1  ;;  %v2396_v18 = vrot.slane %v2395_v1, 2 }
 0x1ca   :  { %v2404_v63 = vmax.f32 %v2402_v38, %v2403_v0 }
 0x1cb   :  { %v2397_v16 = vmax.f32 %v2395_v1, %v2396_v18 }
 0x1cc   :  { %v8565_v23 = vpop.f32.mrb[6].mxu1  ;;  %v2405_v46 = vrot.slane %v2404_v63, 1 }
 0x1cd   :  { %v8567_v60 = vpop.f32.mrb[7].mxu1  ;;  %v2398_v48 = vrot.slane %v2397_v16, 1 }
 0x1ce   :  { %v2406_v17 = vmax.f32 %v2404_v63, %v2405_v46 }
 0x1cf   :  { %v2399_v13 = vmax.f32 %v2397_v16, %v2398_v48 }
 0x1d0   :  { %v8569_v20 = vpop.f32.mrb[8].mxu1  ;;  %v2842_v32 = vsub.f32 %v2080_v3, %v2406_v17  ;;  %v2090_v3 = vadd.f32 %v8557_v58, %v8586_v53 }
 0x1d1   :  { %v8571_v37 = vpop.f32.mrb[9].mxu1  ;;  %v2841_v35 = vsub.f32 %v2075_v34, %v2399_v13 }
 0x1d2   :  { %v2907_v29 = vmul.f32 1.442695, %v2842_v32  ;;  %v2414_v0 = vsel %vm1811_vm2, %v2090_v3, -inf }
 0x1d3   :  { %v2905_v11 = vmul.f32 1.442695, %v2841_v35  ;;  %v2415_v63 = vrot.slane %v2414_v0, 4 }
 0x1d4   :  { %v8573_v51 = vpop.f32.mrb[10].mxu1  ;;  %7004 = vpow2.f32 %v2907_v29 }
 0x1d5   :  { %v8575_v12 = vpop.f32.mrb[11].mxu1  ;;  %7006 = vpow2.f32 %v2905_v11  ;;  %v2416_v1 = vmax.f32 %v2414_v0, %v2415_v63 }
 0x1d7   :  { %v2417_v58 = vrot.slane %v2416_v1, 2 }
 0x1d8   :  { %v8577_v7 = vpop.f32.mrb[12].mxu1 }
 0x1d9   :  { %v8579_v36 = vpop.f32.mrb[13].mxu1  ;;  %v2418_v48 = vmax.f32 %v2416_v1, %v2417_v58 }
 0x1db   :  { %v2419_v15 = vrot.slane %v2418_v48, 1 }
 0x1dc   :  { %v8581_v49 = vpop.f32.mrb[14].mxu1 }
 0x1dd   :  { %v8588_v62 = vpop.f32.mrb[15].mxu1  ;;  %v2420_v0 = vmax.f32 %v2418_v48, %v2419_v15 }
 0x1de   :  { %v7005_v2 = vpop.eup %7004 }
 0x1df   :  { %v3040_v31 = vsel %vm1811_vm2, %v7005_v2, 0.0  ;;  %v7007_v46 = vpop.eup %7006 }
 0x1e0   :  { %v8591_v8 = vpop.f32.mrb[16].mxu1  ;;  %v3041_v34 = vrot.slane %v3040_v31, 4  ;;  %v3033_v18 = vsel %vm1811_vm2, %v7007_v46, 0.0 }
 0x1e1   :  { %v8593_v24 = vpop.f32.mrb[17].mxu1  ;;  %v3034_v16 = vrot.slane %v3033_v18, 4 }
 0x1e2   :  { %v3042_v57 = vadd.f32 %v3041_v34, %v3040_v31  ;;  %v2085_v34 = vadd.f32 %v8586_v53, %v8559_v52  ;;  %v8672_v52 = vadd.f32 %v8561_v27, %v8586_v53 }
 0x1e3   :  { %v3035_v35 = vadd.f32 %v3034_v16, %v3033_v18 }
 0x1e4   :  { %v8596_v26 = vpop.f32.mrb[18].mxu1  ;;  %v3043_v17 = vrot.slane %v3042_v57, 2 }
 0x1e5   :  { %v8598_v33 = vpop.f32.mrb[19].mxu1  ;;  %v3036_v31 = vrot.slane %v3035_v35, 2 }
 0x1e6   :  { %v3044_v32 = vadd.f32 %v3043_v17, %v3042_v57  ;;  %v2407_v57 = vsel %vm1811_vm2, %v2085_v34, -inf  ;;  %v2844_v17 = vsub.f32 %v2090_v3, %v2420_v0  ;;  %v2428_v0 = vsel %vm1811_vm2, %v8672_v52, -inf }
 0x1e7   :  { %v3037_v63 = vadd.f32 %v3036_v31, %v3035_v35  ;;  %v8678_v35 = vpop.permute.xlu1 %3685 }
 0x1e8   :  { %v8600_v43 = vpop.f32.mrb[20].mxu1  ;;  %v3045_v13 = vrot.slane %v3044_v32, 1  ;;  %v2911_v58 = vmul.f32 1.442695, %v2844_v17  ;;  %v11421_v17 = vmov 0  }
 0x1e9   :  { %v8602_v10 = vpop.f32.mrb[21].mxu1  ;;  %v3038_v1 = vrot.slane %v3037_v63, 1 }
 0x1eb   :  { %v3039_v16 = vadd.f32 %v3038_v1, %v3037_v63  ;;  %v11391_v1 = vmov 1  }
 0x1ec   :  { %v8604_v39 = vpop.f32.mrb[22].mxu1 }
 0x1ed   :  { %v8607_v61 = vpop.f32.mrb[23].mxu1 }
 0x1f0   :  { %v8609_v47 = vpop.f32.mrb[24].mxu1 }
 0x1f1   :  { %v8612_v4 = vpop.f32.mrb[25].mxu1 }
 0x1f4   :  { %v8614_v59 = vpop.f32.mrb[26].mxu1 }
 0x1f5   :  { %v8616_v9 = vpop.f32.mrb[27].mxu1 }
 0x1f8   :  { %v8618_v6 = vpop.f32.mrb[28].mxu1 }
 0x1f9   :  { %v8620_v14 = vpop.f32.mrb[29].mxu1 }
 0x1fc   :  { %v8622_v21 = vpop.f32.mrb[30].mxu1 }
 0x1fd   :  { %v8624_v45 = vpop.f32.mrb[31].mxu1 }
 0x1fe   :  { %11400 = vst [vmem:[#allocation2_spill] sm:$0xff] %v8624_v45 }
 0x200   :  { %v8626_v22 = vpop.f32.mrb[32].mxu1 }
 0x201   :  { %11401 = vst [vmem:[#allocation3_spill] sm:$0xff] %v8626_v22  ;;  %v8628_v30 = vpop.f32.mrb[33].mxu1 }
 0x202   :  { %11402 = vst [vmem:[#allocation4_spill] sm:$0xff] %v8628_v30 }
 0x204   :  { %v8630_v41 = vpop.f32.mrb[34].mxu1 }
 0x205   :  { %11403 = vst [vmem:[#allocation5_spill] sm:$0xff] %v8630_v41  ;;  %v8632_v56 = vpop.f32.mrb[35].mxu1 }
 0x206   :  { %11404 = vst [vmem:[#allocation6_spill] sm:$0xff] %v8632_v56  ;;  %v11432_v56 = vmov 3  }
 0x208   :  { %v8634_v54 = vpop.f32.mrb[36].mxu1 }
 0x209   :  { %11405 = vst [vmem:[#allocation7_spill] sm:$0xff] %v8634_v54  ;;  %v8636_v28 = vpop.f32.mrb[37].mxu1 }
 0x20a   :  { %11406 = vst [vmem:[#allocation8_spill] sm:$0xff] %v8636_v28 }
 0x20c   :  { %v8638_v5 = vpop.f32.mrb[38].mxu1 }
 0x20d   :  { %11407 = vst [vmem:[#allocation9_spill] sm:$0xff] %v8638_v5  ;;  %v8640_v25 = vpop.f32.mrb[39].mxu1 }
 0x20e   :  { %11408 = vst [vmem:[#allocation10_spill] sm:$0xff] %v8640_v25 }
 0x210   :  { %v8642_v19 = vpop.f32.mrb[40].mxu1 }
 0x211   :  { %11409 = vst [vmem:[#allocation11_spill] sm:$0xff] %v8642_v19  ;;  %v8644_v44 = vpop.f32.mrb[41].mxu1 }
 0x212   :  { %11410 = vst [vmem:[#allocation12_spill] sm:$0xff] %v8644_v44 }
 0x214   :  { %v8649_v42 = vpop.f32.mrb[42].mxu1 }
 0x215   :  { %11411 = vst [vmem:[#allocation13_spill] sm:$0xff] %v8649_v42  ;;  %v8651_v38 = vpop.f32.mrb[43].mxu1 }
 0x216   :  { %11412 = vst [vmem:[#allocation14_spill] sm:$0xff] %v8651_v38  ;;  %v3676_v38 = vpop.permute.xlu0 %3675 }
 0x218   :  { %v8654_v55 = vpop.f32.mrb[44].mxu1 }
 0x219   :  { %11413 = vst [vmem:[#allocation15_spill] sm:$0xff] %v8654_v55  ;;  %v8657_v29 = vpop.f32.mrb[45].mxu1  ;;  %v3046_v55 = vadd.f32 %v3045_v13, %v3044_v32 }
 0x21a   :  { %11414 = vst [vmem:[#allocation16_spill] sm:$0xff] %v8657_v29  ;;  %v2408_v29 = vrot.slane %v2407_v57, 4 }
 0x21b   :  { %7008 = vrcp.f32 %v3046_v55  ;;  %v3681_v55 = vpop.permute.xlu0 %3680 }
 0x21c   :  { %v8659_v11 = vpop.f32.mrb[46].mxu1  ;;  %v2409_v18 = vmax.f32 %v2407_v57, %v2408_v29  ;;  %7010 = vpow2.f32 %v2911_v58  ;;  %v8684_v57 = vpop.permute.xlu1 %3690 }
 0x21d   :  { %11415 = vst [vmem:[#allocation17_spill] sm:$0xff] %v8659_v11  ;;  %v8661_v50 = vpop.f32.mrb[47].mxu1  ;;  %7012 = vrcp.f32 %v3039_v16 }
 0x21e   :  { %11416 = vst [vmem:[#allocation18_spill] sm:$0xff] %v8661_v50  ;;  %v2410_v32 = vrot.slane %v2409_v18, 2 }
 0x220   :  { %v8666_v50 = vpop.f32.mrb[48].mxu1  ;;  %v2411_v48 = vmax.f32 %v2409_v18, %v2410_v32 }
 0x221   :  { %11417 = vst [vmem:[#allocation19_spill] sm:$0xff] %v8666_v50  ;;  %v8668_v13 = vpop.f32.mrb[49].mxu1 }
 0x222   :  { %11418 = vst [vmem:[#allocation20_spill] sm:$0xff] %v8668_v13  ;;  %v2412_v63 = vrot.slane %v2411_v48, 1 }
 0x224   :  { %v8674_v3 = vpop.f32.mrb[50].mxu1  ;;  %v2413_v18 = vmax.f32 %v2411_v48, %v2412_v63  ;;  %v11422_v63 = vmov 1  }
 0x225   :  { %v7009_v11 = vpop.eup %7008  ;;  %11419 = vst [vmem:[#allocation21_spill] sm:$0xff] %v8674_v3  ;;  %v8676_v29 = vpop.f32.mrb[51].mxu1 }
 0x226   :  { %v3484_v15 = vmul.f32 %v7009_v11, %v7005_v2  ;;  %11420 = vst [vmem:[#allocation22_spill] sm:$0xff] %v8676_v29  ;;  %v8682_v2 = vpop.eup %7010  ;;  %v2429_v11 = vrot.slane %v2428_v0, 4  ;;  %v8690_v29 = vpop.permute.xlu1 %3700 }
 0x227   :  { %v7013_v27 = vpop.eup %7012  ;;  %v3054_v58 = vsel %vm1811_vm2, %v8682_v2, 0.0 }
 0x228   :  { %v3994_v31 = vmul.f32 %v3681_v55, %v3484_v15  ;;  %v2430_v16 = vmax.f32 %v2428_v0, %v2429_v11  ;;  %v3482_v32 = vmul.f32 %v7013_v27, %v7007_v46  ;;  %v3055_v15 = vrot.slane %v3054_v58, 4  ;;  %v8702_v0 = vpop.f32.mrb[52].mxu1 }
 0x229   :  { %v2843_v55 = vsub.f32 %v2085_v34, %v2413_v18  ;;  %11423 = vst [vmem:[#allocation23_spill] sm:$0xff] %v8702_v0  ;;  %v8711_v18 = vpop.permute.xlu0 %3695 }
 0x22a   :  { %4638 = vperm.xlu0 %6745, %v3994_v31   ;;  %4064 = vperm.xlu1 %6743, %v3994_v31   ;;  %v2431_v3 = vrot.slane %v2430_v16, 2  ;;  %v3993_v13 = vmul.f32 %v3676_v38, %v3482_v32  ;;  %v3056_v50 = vadd.f32 %v3055_v15, %v3054_v58  ;;  %v8696_v19 = vpop.permute.xlu1 %3710  ;;  %v11393_v38 = vmov 3  }
 0x22b   :  { %v2909_v42 = vmul.f32 1.442695, %v2843_v55  ;;  %v11426_v32 = vmov 2  }
 0x22c   :  { %v2432_v44 = vmax.f32 %v2430_v16, %v2431_v3  ;;  %v3057_v48 = vrot.slane %v3056_v50, 2 }
 0x22d   :  { %7014 = vpow2.f32 %v2909_v42 }
 0x22e   :  { %6747 = vset.pattern.permute.xlu0 %v11421_v17  ;;  %6744 = vset.pattern.permute.xlu1 %v11391_v1  ;;  %v8694_v1 = vadd.f32 %v8586_v53, %v8563_v40  ;;  %v2433_v46 = vrot.slane %v2432_v44, 1  ;;  %v3058_v3 = vadd.f32 %v3057_v48, %v3056_v50  ;;  %v8704_v40 = vpop.f32.mrb[53].mxu1  ;;  %v8707_v11 = vpop.permute.xlu1 %3720 }
 0x22f   :  { %4382 = vperm.xlu1 %6744, %v3994_v31   ;;  %4059 = vperm.xlu0 %6747, %v3993_v13   ;;  %11424 = vst [vmem:[#allocation24_spill] sm:$0xff] %v8704_v40  ;;  %v8709_v58 = vpop.f32.mrb[54].mxu1 }
 0x230   :  { %v2421_v34 = vsel %vm1811_vm2, %v8694_v1, -inf  ;;  %v2434_v27 = vmax.f32 %v2432_v44, %v2433_v46  ;;  %11425 = vst [vmem:[#allocation25_spill] sm:$0xff] %v8709_v58  ;;  %v3059_v16 = vrot.slane %v3058_v3, 1  ;;  %v8714_v15 = vpop.f32.mrb[55].mxu1  ;;  %v8727_v58 = vpop.permute.xlu0 %3705 }
 0x231   :  { %v2422_v42 = vrot.slane %v2421_v34, 4  ;;  %11427 = vst [vmem:[#allocation26_spill] sm:$0xff] %v8714_v15  ;;  %v8720_v44 = vpop.f32.mrb[56].mxu1 }
 0x232   :  { %v2846_v50 = vsub.f32 %v8672_v52, %v2434_v27  ;;  %11428 = vst [vmem:[#allocation27_spill] sm:$0xff] %v8720_v44  ;;  %v8722_v48 = vpop.permute.xlu1 %3730  ;;  %v3060_v46 = vadd.f32 %v3059_v16, %v3058_v3 }
 0x233   :  { %6748 = vset.pattern.permute.xlu0 %v11422_v63  ;;  %6746 = vset.pattern.permute.xlu1 %v11393_v38 }
 0x234   :  { %4378 = vperm.xlu0 %6748, %v3993_v13   ;;  %4894 = vperm.xlu1 %6746, %v3994_v31   ;;  %v2423_v31 = vmax.f32 %v2421_v34, %v2422_v42  ;;  %v2915_v52 = vmul.f32 1.442695, %v2846_v50  ;;  %7016 = vrcp.f32 %v3060_v46  ;;  %v8733_v15 = vpop.permute.xlu0 %3715  ;;  %v8741_v50 = vadd.f32 %v8565_v23, %v8586_v53 }
 0x236   :  { %v2424_v34 = vrot.slane %v2423_v31, 2  ;;  %v8731_v42 = vpop.permute.xlu1 %3740  ;;  %7018 = vpow2.f32 %v2915_v52 }
 0x237   :  { %v8718_v55 = vpop.eup %7014 }
 0x238   :  { %6750 = vset.pattern.permute.xlu0 %v11393_v38  ;;  %6749 = vset.pattern.permute.xlu1 %v11426_v32  ;;  %v8724_v38 = vpop.f32.mrb[57].mxu1  ;;  %v2425_v44 = vmax.f32 %v2423_v31, %v2424_v34  ;;  %v8737_v25 = vpop.permute.xlu0 %3725  ;;  %v2442_v34 = vsel %vm1811_vm2, %v8741_v50, -inf }
 0x239   :  { %4890 = vperm.xlu0 %6750, %v3993_v13   ;;  %4634 = vperm.xlu1 %6749, %v3993_v13   ;;  %11429 = vst [vmem:[#allocation28_spill] sm:$0xff] %v8724_v38  ;;  %v3047_v13 = vsel %vm1811_vm2, %v8718_v55, 0.0  ;;  %v2443_v54 = vrot.slane %v2442_v34, 4 }
 0x23a   :  { %v3048_v27 = vrot.slane %v3047_v13, 4  ;;  %v2426_v16 = vrot.slane %v2425_v44, 1  ;;  %v8735_v38 = vpop.permute.xlu1 %3750 }
 0x23c   :  { %v3049_v3 = vadd.f32 %v3048_v27, %v3047_v13  ;;  %v2427_v5 = vmax.f32 %v2425_v44, %v2426_v16  ;;  %v8754_v16 = vpop.permute.xlu0 %3735 }
 0x23d   :  { %6752 = vset.pattern.permute.xlu0 %v11422_v63  ;;  %6751 = vset.pattern.permute.xlu1 %v11421_v17 }
 0x23e   :  { %v3050_v40 = vrot.slane %v3049_v3, 2  ;;  %v7017_v0 = vpop.eup %7016  ;;  %v8746_v52 = vpop.permute.xlu1 %3760  ;;  %v2845_v13 = vsub.f32 %v8694_v1, %v2427_v5  ;;  %v2444_v1 = vmax.f32 %v2442_v34, %v2443_v54 }
 0x23f   :  { %v3488_v31 = vmul.f32 %v7017_v0, %v8682_v2 }
 0x240   :  { %v8743_v46 = vpop.eup %7018  ;;  %v3051_v28 = vadd.f32 %v3050_v40, %v3049_v3  ;;  %v8756_v40 = vpop.f32.mrb[58].mxu1  ;;  %v2913_v0 = vmul.f32 1.442695, %v2845_v13  ;;  %v2445_v13 = vrot.slane %v2444_v1, 2 }
 0x241   :  { %v3068_v27 = vsel %vm1811_vm2, %v8743_v46, 0.0  ;;  %v3996_v44 = vmul.f32 %v8684_v57, %v3488_v31  ;;  %11430 = vst [vmem:[#allocation29_spill] sm:$0xff] %v8756_v40  ;;  %v8762_v41 = vpop.f32.mrb[59].mxu1  ;;  %v8764_v57 = vpop.permute.xlu0 %3745 }
 0x242   :  { %v3052_v23 = vrot.slane %v3051_v28, 1  ;;  %v3069_v2 = vrot.slane %v3068_v27, 4  ;;  %v8758_v3 = vpop.permute.xlu1 %3770  ;;  %11433 = vst [vmem:[#allocation31_spill] sm:$0xff] %v8762_v41  ;;  %7020 = vpow2.f32 %v2913_v0  ;;  %v8766_v30 = vpop.f32.mrb[60].mxu1 }
 0x243   :  { %4390 = vperm.xlu0 %6752, %v3996_v44   ;;  %4074 = vperm.xlu1 %6751, %v3996_v44   ;;  %11431 = vst [vmem:[#allocation30_spill] sm:$0xff] %v8758_v3  ;;  %11434 = vst [vmem:[#allocation32_spill] sm:$0xff] %v8766_v30  ;;  %v8772_v54 = vpop.f32.mrb[61].mxu1 }
 0x244   :  { %v3053_v5 = vadd.f32 %v3052_v23, %v3051_v28  ;;  %v3070_v31 = vadd.f32 %v3069_v2, %v3068_v27  ;;  %11436 = vst [vmem:[#allocation34_spill] sm:$0xff] %v8772_v54  ;;  %v2446_v23 = vmax.f32 %v2444_v1, %v2445_v13  ;;  %v8780_v0 = vpop.f32.mrb[62].mxu1  ;;  %v8788_v54 = vadd.f32 %v8586_v53, %v8567_v60 }
 0x245   :  { %v8774_v34 = vpop.permute.xlu0 %3755  ;;  %11439 = vst [vmem:[#allocation37_spill] sm:$0xff] %v8780_v0 }
 0x246   :  { %7022 = vrcp.f32 %v3053_v5  ;;  %v8768_v40 = vpop.permute.xlu1 %3780  ;;  %v3071_v28 = vrot.slane %v3070_v31, 2  ;;  %11437 = vst [vmem:[#allocation35_spill] sm:$0xff] %v8774_v34  ;;  %v2447_v5 = vrot.slane %v2446_v23, 1  ;;  %v2435_v0 = vsel %vm1811_vm2, %v8788_v54, -inf }
 0x247   :  { %6754 = vset.pattern.permute.xlu0 %v11432_v56  ;;  %6753 = vset.pattern.permute.xlu1 %v11426_v32  ;;  %11435 = vst [vmem:[#allocation33_spill] sm:$0xff] %v8768_v40  ;;  %v2436_v60 = vrot.slane %v2435_v0, 4 }
 0x248   :  { %4902 = vperm.xlu0 %6754, %v3996_v44   ;;  %4646 = vperm.xlu1 %6753, %v3996_v44   ;;  %v3072_v27 = vadd.f32 %v3071_v28, %v3070_v31  ;;  %v2448_v1 = vmax.f32 %v2446_v23, %v2447_v5  ;;  %v8799_v23 = vpop.f32.mrb[63].mxu1 }
 0x249   :  { %v8782_v30 = vpop.permute.xlu0 %3765  ;;  %11443 = vst [vmem:[#allocation41_spill] sm:$0xff] %v8799_v23 }
 0x24a   :  { %v8778_v44 = vpop.permute.xlu1 %3790  ;;  %11440 = vst [vmem:[#allocation38_spill] sm:$0xff] %v8782_v30  ;;  %v3073_v41 = vrot.slane %v3072_v27, 1  ;;  %v2848_v34 = vsub.f32 %v8741_v50, %v2448_v1 }
 0x24b   :  { %11438 = vst [vmem:[#allocation36_spill] sm:$0xff] %v8778_v44 }
 0x24c   :  { %6755 = vset.pattern.permute.xlu0 %v11421_v17  ;;  %6756 = vset.pattern.permute.xlu1 %v11422_v63  ;;  %v8776_v2 = vpop.eup %7020  ;;  %v3074_v13 = vadd.f32 %v3073_v41, %v3072_v27  ;;  %v8803_v41 = vadd.f32 %v8569_v20, %v8586_v53 }
 0x24d   :  { %v3061_v22 = vsel %vm1811_vm2, %v8776_v2, 0.0  ;;  %v8795_v30 = vpop.permute.xlu0 %3775 }
 0x24e   :  { %v8790_v31 = vpop.permute.xlu1 %3800  ;;  %v3062_v28 = vrot.slane %v3061_v22, 4  ;;  %11442 = vst [vmem:[#allocation40_spill] sm:$0xff] %v8795_v30  ;;  %7024 = vrcp.f32 %v3074_v13 }
 0x24f   :  { %11441 = vst [vmem:[#allocation39_spill] sm:$0xff] %v8790_v31 }
 0x250   :  { %v7023_v40 = vpop.eup %7022  ;;  %v3063_v45 = vadd.f32 %v3062_v28, %v3061_v22  ;;  %v2456_v22 = vsel %vm1811_vm2, %v8803_v41, -inf }
 0x251   :  { %v3486_v44 = vmul.f32 %v7023_v40, %v8718_v55  ;;  %v2919_v40 = vmul.f32 1.442695, %v2848_v34  ;;  %v8807_v27 = vpop.permute.xlu0 %3785  ;;  %v2457_v1 = vrot.slane %v2456_v22, 4 }
 0x252   :  { %v8805_v55 = vpop.permute.xlu1 %3810  ;;  %11445 = vst [vmem:[#allocation43_spill] sm:$0xff] %v8807_v27  ;;  %v3064_v5 = vrot.slane %v3063_v45, 2 }
 0x253   :  { %v3995_v3 = vmul.f32 %v8678_v35, %v3486_v44  ;;  %11444 = vst [vmem:[#allocation42_spill] sm:$0xff] %v8805_v55  ;;  %v2437_v35 = vmax.f32 %v2435_v0, %v2436_v60  ;;  %7026 = vpow2.f32 %v2919_v40  ;;  %v8820_v0 = vadd.f32 %v8586_v53, %v8571_v37 }
 0x254   :  { %v3065_v20 = vadd.f32 %v3064_v5, %v3063_v45  ;;  %v2458_v23 = vmax.f32 %v2456_v22, %v2457_v1 }
 0x255   :  { %4386 = vperm.xlu1 %6756, %v3995_v3   ;;  %4069 = vperm.xlu0 %6755, %v3995_v3   ;;  %v2438_v44 = vrot.slane %v2437_v35, 2  ;;  %v8816_v13 = vpop.permute.xlu0 %3795  ;;  %v2449_v45 = vsel %vm1811_vm2, %v8820_v0, -inf }
 0x256   :  { %v8813_v50 = vpop.permute.xlu1 %3820  ;;  %11447 = vst [vmem:[#allocation45_spill] sm:$0xff] %v8816_v13  ;;  %v3066_v28 = vrot.slane %v3065_v20, 1  ;;  %v2459_v37 = vrot.slane %v2458_v23, 2 }
 0x257   :  { %11446 = vst [vmem:[#allocation44_spill] sm:$0xff] %v8813_v50  ;;  %v2439_v60 = vmax.f32 %v2437_v35, %v2438_v44  ;;  %v2450_v35 = vrot.slane %v2449_v45, 4 }
 0x258   :  { %v7025_v34 = vpop.eup %7024  ;;  %v2460_v1 = vmax.f32 %v2458_v23, %v2459_v37 }
 0x259   :  { %6757 = vset.pattern.permute.xlu1 %v11426_v32  ;;  %6760 = vset.pattern.permute.xlu0 %v11422_v63  ;;  %v3492_v40 = vmul.f32 %v7025_v34, %v8743_v46  ;;  %v8829_v50 = vpop.permute.xlu0 %3805  ;;  %v2440_v13 = vrot.slane %v2439_v60, 1  ;;  %v8842_v34 = vadd.f32 %v8573_v51, %v8586_v53 }
 0x25a   :  { %4642 = vperm.xlu1 %6757, %v3995_v3   ;;  %v8823_v55 = vpop.permute.xlu1 %3830  ;;  %11449 = vst [vmem:[#allocation47_spill] sm:$0xff] %v8829_v50 }
 0x25b   :  { %11448 = vst [vmem:[#allocation46_spill] sm:$0xff] %v8823_v55  ;;  %v3998_v5 = vmul.f32 %v8690_v29, %v3492_v40  ;;  %v2441_v44 = vmax.f32 %v2439_v60, %v2440_v13  ;;  %v2470_v13 = vsel %vm1811_vm2, %v8842_v34, -inf }
 0x25d   :  { %v8831_v31 = vpop.eup %7026  ;;  %4398 = vperm.xlu0 %6760, %v3998_v5   ;;  %v8838_v29 = vpop.permute.xlu0 %3815  ;;  %v2847_v40 = vsub.f32 %v8788_v54, %v2441_v44 }
 0x25e   :  { %6758 = vset.pattern.permute.xlu1 %v11432_v56  ;;  %v8833_v46 = vpop.permute.xlu1 %3840  ;;  %v3082_v22 = vsel %vm1811_vm2, %v8831_v31, 0.0  ;;  %11451 = vst [vmem:[#allocation49_spill] sm:$0xff] %v8838_v29  ;;  %v8859_v29 = vadd.f32 %v8586_v53, %v8575_v12 }
 0x25f   :  { %4898 = vperm.xlu1 %6758, %v3995_v3   ;;  %v3067_v3 = vadd.f32 %v3066_v28, %v3065_v20  ;;  %11450 = vst [vmem:[#allocation48_spill] sm:$0xff] %v8833_v46  ;;  %v2451_v20 = vmax.f32 %v2449_v45, %v2450_v35  ;;  %v3083_v28 = vrot.slane %v3082_v22, 4  ;;  %v2917_v45 = vmul.f32 1.442695, %v2847_v40 }
 0x260   :  { %v2471_v35 = vrot.slane %v2470_v13, 4 }
 0x261   :  { %7028 = vrcp.f32 %v3067_v3  ;;  %6762 = vset.pattern.permute.xlu0 %v11432_v56  ;;  %v2461_v3 = vrot.slane %v2460_v1, 1  ;;  %v2452_v23 = vrot.slane %v2451_v20, 2  ;;  %v3084_v60 = vadd.f32 %v3083_v28, %v3082_v22  ;;  %v8852_v51 = vpop.permute.xlu0 %3825 }
 0x262   :  { %4910 = vperm.xlu0 %6762, %v3998_v5   ;;  %v8846_v46 = vpop.permute.xlu1 %3850  ;;  %11453 = vst [vmem:[#allocation51_spill] sm:$0xff] %v8852_v51  ;;  %7030 = vpow2.f32 %v2917_v45  ;;  %v2472_v22 = vmax.f32 %v2470_v13, %v2471_v35 }
 0x263   :  { %6759 = vset.pattern.permute.xlu1 %v11421_v17  ;;  %11452 = vst [vmem:[#allocation50_spill] sm:$0xff] %v8846_v46  ;;  %v2462_v37 = vmax.f32 %v2460_v1, %v2461_v3  ;;  %v2453_v55 = vmax.f32 %v2451_v20, %v2452_v23  ;;  %v3085_v54 = vrot.slane %v3084_v60, 2  ;;  %v2463_v23 = vsel %vm1811_vm2, %v8859_v29, -inf }
 0x264   :  { %4084 = vperm.xlu1 %6759, %v3998_v5   ;;  %v2473_v45 = vrot.slane %v2472_v22, 2  ;;  %v2464_v13 = vrot.slane %v2463_v23, 4 }
 0x265   :  { %v2850_v46 = vsub.f32 %v8803_v41, %v2462_v37  ;;  %v8862_v50 = vpop.permute.xlu0 %3835  ;;  %v2454_v40 = vrot.slane %v2453_v55, 1  ;;  %v3086_v1 = vadd.f32 %v3085_v54, %v3084_v60  ;;  %v8878_v60 = vadd.f32 %v8577_v7, %v8586_v53 }
 0x266   :  { %6763 = vset.pattern.permute.xlu0 %v11421_v17  ;;  %v8854_v44 = vpop.permute.xlu1 %3860  ;;  %11455 = vst [vmem:[#allocation53_spill] sm:$0xff] %v8862_v50 }
 0x267   :  { %11454 = vst [vmem:[#allocation52_spill] sm:$0xff] %v8854_v44  ;;  %v2923_v20 = vmul.f32 1.442695, %v2850_v46  ;;  %v2455_v12 = vmax.f32 %v2453_v55, %v2454_v40  ;;  %v3087_v37 = vrot.slane %v3086_v1, 1 }
 0x268   :  { %6761 = vset.pattern.permute.xlu1 %v11426_v32 }
 0x269   :  { %4654 = vperm.xlu1 %6761, %v3998_v5   ;;  %v8869_v35 = vpop.permute.xlu0 %3845  ;;  %7032 = vpow2.f32 %v2923_v20  ;;  %v2849_v46 = vsub.f32 %v8820_v0, %v2455_v12  ;;  %v3088_v55 = vadd.f32 %v3087_v37, %v3086_v1  ;;  %v2484_v0 = vsel %vm1811_vm2, %v8878_v60, -inf }
 0x26a   :  { %v8867_v41 = vpop.permute.xlu1 %3870  ;;  %11457 = vst [vmem:[#allocation55_spill] sm:$0xff] %v8869_v35 }
 0x26b   :  { %v7029_v5 = vpop.eup %7028  ;;  %11456 = vst [vmem:[#allocation54_spill] sm:$0xff] %v8867_v41  ;;  %v2921_v20 = vmul.f32 1.442695, %v2849_v46  ;;  %7034 = vrcp.f32 %v3088_v55 }
 0x26c   :  { %v3490_v28 = vmul.f32 %v7029_v5, %v8776_v2  ;;  %v2474_v2 = vmax.f32 %v2472_v22, %v2473_v45  ;;  %v2465_v5 = vmax.f32 %v2463_v23, %v2464_v13  ;;  %v2485_v23 = vrot.slane %v2484_v0, 4 }
 0x26d   :  { %6764 = vset.pattern.permute.xlu1 %v11422_v63  ;;  %v8884_v40 = vpop.permute.xlu0 %3855  ;;  %7036 = vpow2.f32 %v2921_v20 }
 0x26e   :  { %v3997_v3 = vmul.f32 %v8711_v18, %v3490_v28  ;;  %v8873_v18 = vpop.eup %7030  ;;  %v8880_v54 = vpop.permute.xlu1 %3880  ;;  %v2475_v28 = vrot.slane %v2474_v2, 1  ;;  %11459 = vst [vmem:[#allocation57_spill] sm:$0xff] %v8884_v40  ;;  %v2466_v7 = vrot.slane %v2465_v5, 2 }
 0x26f   :  { %11458 = vst [vmem:[#allocation56_spill] sm:$0xff] %v8880_v54  ;;  %v3075_v22 = vsel %vm1811_vm2, %v8873_v18, 0.0  ;;  %v8898_v54 = vadd.f32 %v8586_v53, %v8579_v36 }
 0x270   :  { %4079 = vperm.xlu0 %6763, %v3997_v3   ;;  %4394 = vperm.xlu1 %6764, %v3997_v3   ;;  %v3076_v1 = vrot.slane %v3075_v22, 4  ;;  %v2467_v37 = vmax.f32 %v2465_v5, %v2466_v7 }
 0x271   :  { %v8894_v13 = vpop.permute.xlu0 %3865  ;;  %v2477_v5 = vsel %vm1811_vm2, %v8898_v54, -inf }
 0x272   :  { %v8892_v12 = vpop.permute.xlu1 %3890  ;;  %11461 = vst [vmem:[#allocation59_spill] sm:$0xff] %v8894_v13  ;;  %v3077_v46 = vadd.f32 %v3076_v1, %v3075_v22  ;;  %v2478_v13 = vrot.slane %v2477_v5, 4 }
 0x273   :  { %v8890_v45 = vpop.eup %7032  ;;  %11460 = vst [vmem:[#allocation58_spill] sm:$0xff] %v8892_v12 }
 0x274   :  { %6765 = vset.pattern.permute.xlu0 %v11426_v32  ;;  %6766 = vset.pattern.permute.xlu1 %v11432_v56  ;;  %v3096_v55 = vsel %vm1811_vm2, %v8890_v45, 0.0  ;;  %v3078_v40 = vrot.slane %v3077_v46, 2 }
 0x275   :  { %4650 = vperm.xlu0 %6765, %v3997_v3   ;;  %4906 = vperm.xlu1 %6766, %v3997_v3   ;;  %v2476_v3 = vmax.f32 %v2474_v2, %v2475_v28  ;;  %v2486_v2 = vmax.f32 %v2484_v0, %v2485_v23  ;;  %v2468_v28 = vrot.slane %v2467_v37, 1  ;;  %v3097_v44 = vrot.slane %v3096_v55, 4  ;;  %v7035_v7 = vpop.eup %7034  ;;  %v8907_v12 = vpop.permute.xlu0 %3875 }
 0x276   :  { %v8903_v20 = vpop.permute.xlu1 %3900  ;;  %11463 = vst [vmem:[#allocation61_spill] sm:$0xff] %v8907_v12  ;;  %v3079_v50 = vadd.f32 %v3078_v40, %v3077_v46  ;;  %v3496_v0 = vmul.f32 %v7035_v7, %v8831_v31  ;;  %v8914_v23 = vadd.f32 %v8581_v49, %v8586_v53 }
 0x277   :  { %v2852_v41 = vsub.f32 %v8842_v34, %v2476_v3  ;;  %11462 = vst [vmem:[#allocation60_spill] sm:$0xff] %v8903_v20  ;;  %v2487_v1 = vrot.slane %v2486_v2, 2  ;;  %v2469_v36 = vmax.f32 %v2467_v37, %v2468_v28  ;;  %v8909_v35 = vpop.eup %7036  ;;  %v3098_v34 = vadd.f32 %v3097_v44, %v3096_v55 }
 0x278   :  { %v2479_v28 = vmax.f32 %v2477_v5, %v2478_v13  ;;  %v4000_v12 = vmul.f32 %v8696_v19, %v3496_v0  ;;  %v3080_v44 = vrot.slane %v3079_v50, 1  ;;  %v2498_v55 = vsel %vm1811_vm2, %v8914_v23, -inf }
 0x279   :  { %6768 = vset.pattern.permute.xlu0 %v11422_v63  ;;  %6767 = vset.pattern.permute.xlu1 %v11421_v17  ;;  %v2927_v22 = vmul.f32 1.442695, %v2852_v41  ;;  %v2488_v3 = vmax.f32 %v2486_v2, %v2487_v1  ;;  %v3089_v41 = vsel %vm1811_vm2, %v8909_v35, 0.0  ;;  %v2851_v37 = vsub.f32 %v8859_v29, %v2469_v36  ;;  %v8922_v40 = vpop.permute.xlu0 %3885 }
 0x27a   :  { %v8916_v20 = vpop.permute.xlu1 %3910  ;;  %11465 = vst [vmem:[#allocation63_spill] sm:$0xff] %v8922_v40  ;;  %v3099_v31 = vrot.slane %v3098_v34, 2  ;;  %4406 = vperm.xlu0 %6768, %v4000_v12   ;;  %4094 = vperm.xlu1 %6767, %v4000_v12   ;;  %v3090_v49 = vrot.slane %v3089_v41, 4  ;;  %v2480_v7 = vrot.slane %v2479_v28, 2 }
 0x27b   :  { %7038 = vpow2.f32 %v2927_v22  ;;  %11464 = vst [vmem:[#allocation62_spill] sm:$0xff] %v8916_v20  ;;  %v2489_v46 = vrot.slane %v2488_v3, 1  ;;  %v2925_v2 = vmul.f32 1.442695, %v2851_v37  ;;  %v3081_v22 = vadd.f32 %v3080_v44, %v3079_v50 }
 0x27c   :  { %v3100_v1 = vadd.f32 %v3099_v31, %v3098_v34  ;;  %v2499_v20 = vrot.slane %v2498_v55, 4  ;;  %v3091_v5 = vadd.f32 %v3090_v49, %v3089_v41  ;;  %v2481_v0 = vmax.f32 %v2479_v28, %v2480_v7 }
 0x27d   :  { %v2490_v13 = vmax.f32 %v2488_v3, %v2489_v46  ;;  %v8930_v19 = vpop.permute.xlu0 %3895  ;;  %7040 = vpow2.f32 %v2925_v2  ;;  %v8936_v50 = vadd.f32 %v8586_v53, %v8588_v62 }
 0x27e   :  { %v8926_v29 = vpop.permute.xlu1 %3920  ;;  %6770 = vset.pattern.permute.xlu0 %v11432_v56  ;;  %6769 = vset.pattern.permute.xlu1 %v11426_v32  ;;  %11467 = vst [vmem:[#allocation65_spill] sm:$0xff] %v8930_v19  ;;  %7042 = vrcp.f32 %v3081_v22  ;;  %v3101_v34 = vrot.slane %v3100_v1, 1  ;;  %v2500_v3 = vmax.f32 %v2498_v55, %v2499_v20  ;;  %v3092_v44 = vrot.slane %v3091_v5, 2 }
 0x27f   :  { %11466 = vst [vmem:[#allocation64_spill] sm:$0xff] %v8926_v29  ;;  %4918 = vperm.xlu0 %6770, %v4000_v12   ;;  %4662 = vperm.xlu1 %6769, %v4000_v12   ;;  %v2854_v37 = vsub.f32 %v8878_v60, %v2490_v13  ;;  %v2482_v12 = vrot.slane %v2481_v0, 1  ;;  %v2491_v62 = vsel %vm1811_vm2, %v8936_v50, -inf  ;;  %v8955_v19 = vadd.f32 %v8591_v8, %v8586_v53 }
 0x280   :  { %v3102_v28 = vadd.f32 %v3101_v34, %v3100_v1  ;;  %v2501_v20 = vrot.slane %v2500_v3, 2  ;;  %v3093_v49 = vadd.f32 %v3092_v44, %v3091_v5  ;;  %v2492_v2 = vrot.slane %v2491_v62, 4 }
 0x281   :  { %v8947_v46 = vpop.permute.xlu0 %3905  ;;  %v2931_v60 = vmul.f32 1.442695, %v2854_v37  ;;  %v2483_v7 = vmax.f32 %v2481_v0, %v2482_v12 }
 0x282   :  { %v8941_v41 = vpop.permute.xlu1 %3930  ;;  %11469 = vst [vmem:[#allocation67_spill] sm:$0xff] %v8947_v46  ;;  %7044 = vrcp.f32 %v3102_v28  ;;  %v2502_v22 = vmax.f32 %v2500_v3, %v2501_v20  ;;  %v3094_v34 = vrot.slane %v3093_v49, 1  ;;  %v2493_v37 = vmax.f32 %v2491_v62, %v2492_v2 }
 0x283   :  { %11468 = vst [vmem:[#allocation66_spill] sm:$0xff] %v8941_v41  ;;  %6771 = vset.pattern.permute.xlu0 %v11421_v17  ;;  %6772 = vset.pattern.permute.xlu1 %v11422_v63  ;;  %7046 = vpow2.f32 %v2931_v60  ;;  %v2853_v5 = vsub.f32 %v8898_v54, %v2483_v7 }
 0x284   :  { %v2503_v3 = vrot.slane %v2502_v22, 1  ;;  %v3095_v28 = vadd.f32 %v3094_v34, %v3093_v49  ;;  %v2494_v8 = vrot.slane %v2493_v37, 2  ;;  %v8974_v49 = vadd.f32 %v8586_v53, %v8593_v24 }
 0x285   :  { %v8932_v36 = vpop.eup %7038  ;;  %v8957_v46 = vpop.permute.xlu0 %3915  ;;  %v2929_v60 = vmul.f32 1.442695, %v2853_v5 }
 0x286   :  { %v3110_v31 = vsel %vm1811_vm2, %v8932_v36, 0.0  ;;  %v8949_v13 = vpop.permute.xlu1 %3940  ;;  %11471 = vst [vmem:[#allocation69_spill] sm:$0xff] %v8957_v46  ;;  %v2504_v62 = vmax.f32 %v2502_v22, %v2503_v3  ;;  %7048 = vrcp.f32 %v3095_v28  ;;  %v2495_v40 = vmax.f32 %v2493_v37, %v2494_v8 }
 0x287   :  { %v3111_v55 = vrot.slane %v3110_v31, 4  ;;  %11470 = vst [vmem:[#allocation68_spill] sm:$0xff] %v8949_v13  ;;  %v8951_v41 = vpop.eup %7040  ;;  %7050 = vpow2.f32 %v2929_v60 }
 0x288   :  { %v7043_v1 = vpop.eup %7042  ;;  %v3103_v0 = vsel %vm1811_vm2, %v8951_v41, 0.0  ;;  %v2496_v37 = vrot.slane %v2495_v40, 1 }
 0x289   :  { %v3112_v29 = vadd.f32 %v3111_v55, %v3110_v31  ;;  %v2512_v31 = vsel %vm1811_vm2, %v8955_v19, -inf  ;;  %v3494_v12 = vmul.f32 %v7043_v1, %v8873_v18  ;;  %v3104_v55 = vrot.slane %v3103_v0, 4  ;;  %v8967_v13 = vpop.permute.xlu0 %3925 }
 0x28a   :  { %v8965_v20 = vpop.permute.xlu1 %3950  ;;  %11473 = vst [vmem:[#allocation71_spill] sm:$0xff] %v8967_v13  ;;  %v2513_v54 = vrot.slane %v2512_v31, 4  ;;  %v2856_v1 = vsub.f32 %v8914_v23, %v2504_v62  ;;  %v2505_v23 = vsel %vm1811_vm2, %v8974_v49, -inf  ;;  %v2497_v28 = vmax.f32 %v2495_v40, %v2496_v37 }
 0x28b   :  { %v3113_v44 = vrot.slane %v3112_v29, 2  ;;  %11472 = vst [vmem:[#allocation70_spill] sm:$0xff] %v8965_v20  ;;  %v3999_v2 = vmul.f32 %v8727_v58, %v3494_v12  ;;  %v3105_v18 = vadd.f32 %v3104_v55, %v3103_v0  ;;  %v2506_v8 = vrot.slane %v2505_v23, 4 }
 0x28c   :  { %v7045_v46 = vpop.eup %7044  ;;  %v2514_v22 = vmax.f32 %v2512_v31, %v2513_v54  ;;  %v2935_v3 = vmul.f32 1.442695, %v2856_v1  ;;  %v8990_v55 = vadd.f32 %v8596_v26, %v8586_v53  ;;  %v9001_v40 = vadd.f32 %v8586_v53, %v8598_v33 }
 0x28d   :  { %v3114_v7 = vadd.f32 %v3113_v44, %v3112_v29  ;;  %4089 = vperm.xlu0 %6771, %v3999_v2   ;;  %4402 = vperm.xlu1 %6772, %v3999_v2   ;;  %v8970_v51 = vpop.eup %7046  ;;  %v8981_v5 = vpop.permute.xlu0 %3935  ;;  %v3500_v0 = vmul.f32 %v7045_v46, %v8890_v45  ;;  %v3106_v24 = vrot.slane %v3105_v18, 2 }
 0x28e   :  { %v8977_v34 = vpop.permute.xlu1 %3960  ;;  %v3124_v29 = vsel %vm1811_vm2, %v8970_v51, 0.0  ;;  %11475 = vst [vmem:[#allocation73_spill] sm:$0xff] %v8981_v5  ;;  %v2515_v44 = vrot.slane %v2514_v22, 2  ;;  %7052 = vpow2.f32 %v2935_v3  ;;  %v2526_v1 = vsel %vm1811_vm2, %v8990_v55, -inf }
 0x28f   :  { %11474 = vst [vmem:[#allocation72_spill] sm:$0xff] %v8977_v34  ;;  %v3115_v58 = vrot.slane %v3114_v7, 1  ;;  %v3125_v12 = vrot.slane %v3124_v29, 4  ;;  %v4002_v45 = vmul.f32 %v8707_v11, %v3500_v0  ;;  %v3107_v46 = vadd.f32 %v3106_v24, %v3105_v18 }
 0x290   :  { %v7049_v62 = vpop.eup %7048  ;;  %v2516_v54 = vmax.f32 %v2514_v22, %v2515_v44  ;;  %v2507_v18 = vmax.f32 %v2505_v23, %v2506_v8  ;;  %v9010_v22 = vadd.f32 %v8600_v43, %v8586_v53  ;;  %v2519_v0 = vsel %vm1811_vm2, %v9001_v40, -inf  ;;  %v9024_v53 = vld [vmem:[%s11382_s8] ss:$0 sm:$0xff] }
 0x291   :  { %6773 = vset.pattern.permute.xlu0 %v11426_v32  ;;  %6774 = vset.pattern.permute.xlu1 %v11432_v56  ;;  %v3116_v31 = vadd.f32 %v3115_v58, %v3114_v7  ;;  %v9003_v26 = vpop.eup %7050  ;;  %v3126_v11 = vadd.f32 %v3125_v12, %v3124_v29  ;;  %v2855_v7 = vsub.f32 %v8936_v50, %v2497_v28  ;;  %v3108_v58 = vrot.slane %v3107_v46, 1 }
 0x292   :  { %4658 = vperm.xlu0 %6773, %v3999_v2   ;;  %4914 = vperm.xlu1 %6774, %v3999_v2   ;;  %v8992_v60 = vpop.permute.xlu1 %3970  ;;  %v8997_v2 = vpop.permute.xlu0 %3945  ;;  %v3117_v33 = vsel %vm1811_vm2, %v9003_v26, 0.0  ;;  %v2517_v37 = vrot.slane %v2516_v54, 1  ;;  %v3498_v50 = vmul.f32 %v7049_v62, %v8909_v35  ;;  %v2527_v23 = vrot.slane %v2526_v1, 4 }
 0x293   :  { %11476 = vst [vmem:[#allocation74_spill] sm:$0xff] %v8992_v60  ;;  %11477 = vst [vmem:[#allocation75_spill] sm:$0xff] %v8997_v2  ;;  %7054 = vrcp.f32 %v3116_v31  ;;  %v3127_v29 = vrot.slane %v3126_v11, 2  ;;  %v9028_v43 = vadd.f32 %v9024_v53, %v8602_v10  ;;  %v2933_v3 = vmul.f32 1.442695, %v2855_v7 }
 0x294   :  { %v2508_v44 = vrot.slane %v2507_v18, 2  ;;  %v2540_v35 = vsel %vm1811_vm2, %v9010_v22, -inf  ;;  %v3109_v12 = vadd.f32 %v3108_v58, %v3107_v46  ;;  %v3118_v28 = vrot.slane %v3117_v33, 4 }
 0x295   :  { %v2520_v8 = vrot.slane %v2519_v0, 4  ;;  %v2518_v62 = vmax.f32 %v2516_v54, %v2517_v37  ;;  %v3128_v60 = vadd.f32 %v3127_v29, %v3126_v11  ;;  %v2528_v34 = vmax.f32 %v2526_v1, %v2527_v23 }
 0x296   :  { %6776 = vset.pattern.permute.xlu0 %v11422_v63  ;;  %6775 = vset.pattern.permute.xlu1 %v11421_v17  ;;  %v9016_v24 = vpop.permute.xlu1 %3980  ;;  %v9030_v31 = vpop.permute.xlu0 %3955  ;;  %v2541_v2 = vrot.slane %v2540_v35, 4  ;;  %v2533_v10 = vsel %vm1811_vm2, %v9028_v43, -inf  ;;  %7056 = vpow2.f32 %v2933_v3  ;;  %v2509_v7 = vmax.f32 %v2507_v18, %v2508_v44 }
 0x297   :  { %4414 = vperm.xlu0 %6776, %v4002_v45   ;;  %4104 = vperm.xlu1 %6775, %v4002_v45   ;;  %11478 = vst [vmem:[#allocation76_spill] sm:$0xff] %v9016_v24  ;;  %11479 = vst [vmem:[#allocation77_spill] sm:$0xff] %v9030_v31  ;;  %v4001_v24 = vmul.f32 %v8733_v15, %v3498_v50  ;;  %7058 = vrcp.f32 %v3109_v12  ;;  %v3119_v15 = vadd.f32 %v3118_v28, %v3117_v33 }
 0x298   :  { %v2521_v11 = vmax.f32 %v2519_v0, %v2520_v8  ;;  %v2858_v1 = vsub.f32 %v8955_v19, %v2518_v62  ;;  %v2534_v58 = vrot.slane %v2533_v10, 4  ;;  %v3129_v50 = vrot.slane %v3128_v60, 1 }
 0x299   :  { %v2529_v23 = vrot.slane %v2528_v34, 2  ;;  %v2542_v3 = vmax.f32 %v2540_v35, %v2541_v2  ;;  %v2510_v18 = vrot.slane %v2509_v7, 1  ;;  %v3120_v0 = vrot.slane %v3119_v15, 2 }
 0x29a   :  { %v9041_v46 = vpop.permute.xlu1 %3990  ;;  %v9044_v37 = vpop.permute.xlu0 %3965  ;;  %v2522_v19 = vrot.slane %v2521_v11, 2  ;;  %v2939_v28 = vmul.f32 1.442695, %v2858_v1  ;;  %v2535_v8 = vmax.f32 %v2533_v10, %v2534_v58  ;;  %v3130_v62 = vadd.f32 %v3129_v50, %v3128_v60 }
 0x29b   :  { %6778 = vset.pattern.permute.xlu0 %v11432_v56  ;;  %6777 = vset.pattern.permute.xlu1 %v11426_v32  ;;  %11480 = vst [vmem:[#allocation78_spill] sm:$0xff] %v9041_v46  ;;  %11481 = vst [vmem:[#allocation79_spill] sm:$0xff] %v9044_v37  ;;  %v2530_v46 = vmax.f32 %v2528_v34, %v2529_v23  ;;  %v2543_v37 = vrot.slane %v2542_v3, 2  ;;  %v2511_v2 = vmax.f32 %v2509_v7, %v2510_v18 }
 0x29c   :  { %4926 = vperm.xlu0 %6778, %v4002_v45   ;;  %4670 = vperm.xlu1 %6777, %v4002_v45   ;;  %v9039_v45 = vpop.eup %7052  ;;  %7060 = vpow2.f32 %v2939_v28  ;;  %v2536_v1 = vrot.slane %v2535_v8, 2  ;;  %v9065_v58 = vadd.f32 %v9024_v53, %v8604_v39 }
 0x29d   :  { %v7055_v54 = vpop.eup %7054  ;;  %v3138_v29 = vsel %vm1811_vm2, %v9039_v45, 0.0  ;;  %7062 = vrcp.f32 %v3130_v62  ;;  %v2531_v10 = vrot.slane %v2530_v46, 1  ;;  %v2544_v7 = vmax.f32 %v2542_v3, %v2543_v37 }
 0x29e   :  { %v3504_v44 = vmul.f32 %v7055_v54, %v8932_v36  ;;  %v3139_v12 = vrot.slane %v3138_v29, 4  ;;  %v9053_v35 = vpop.permute.xlu0 %3975  ;;  %v3121_v36 = vadd.f32 %v3120_v0, %v3119_v15  ;;  %v2523_v54 = vmax.f32 %v2521_v11, %v2522_v19 }
 0x29f   :  { %11482 = vst [vmem:[#allocation80_spill] sm:$0xff] %v9053_v35  ;;  %v2537_v23 = vmax.f32 %v2535_v8, %v2536_v1  ;;  %v2545_v37 = vrot.slane %v2544_v7, 1  ;;  %v2554_v28 = vsel %vm1811_vm2, %v9065_v58, -inf  ;;  %v9167_v35 = vadd.f32 %v9024_v53, %v8616_v9 }
 0x2a0   :  { %6779 = vset.pattern.permute.xlu0 %v11421_v17  ;;  %6780 = vset.pattern.permute.xlu1 %v11422_v63  ;;  %v4004_v31 = vmul.f32 %v8722_v48, %v3504_v44  ;;  %v9058_v20 = vpop.eup %7056  ;;  %v2857_v48 = vsub.f32 %v8974_v49, %v2511_v2  ;;  %v3122_v15 = vrot.slane %v3121_v36, 1  ;;  %v2524_v11 = vrot.slane %v2523_v54, 1 }
 0x2a1   :  { %4099 = vperm.xlu0 %6779, %v4001_v24   ;;  %4410 = vperm.xlu1 %6780, %v4001_v24   ;;  %v7059_v60 = vpop.eup %7058  ;;  %v2532_v49 = vmax.f32 %v2530_v46, %v2531_v10  ;;  %v2538_v62 = vrot.slane %v2537_v23, 1  ;;  %v2546_v1 = vmax.f32 %v2544_v7, %v2545_v37 }
 0x2a2   :  { %v9069_v18 = vpop.permute.xlu0 %3985  ;;  %v3502_v44 = vmul.f32 %v7059_v60, %v8951_v41  ;;  %v2937_v3 = vmul.f32 1.442695, %v2857_v48  ;;  %v3123_v0 = vadd.f32 %v3122_v15, %v3121_v36  ;;  %v2555_v36 = vrot.slane %v2554_v28, 4 }
 0x2a3   :  { %11483 = vst [vmem:[#allocation81_spill] sm:$0xff] %v9069_v18  ;;  %v2860_v46 = vsub.f32 %v8990_v55, %v2532_v49  ;;  %v2539_v10 = vmax.f32 %v2537_v23, %v2538_v62  ;;  %v2862_v15 = vsub.f32 %v9010_v22, %v2546_v1 }
 0x2a4   :  { %v4003_v2 = vmul.f32 %v8737_v25, %v3502_v44  ;;  %7064 = vpow2.f32 %v2937_v3 }
 0x2a5   :  { %6781 = vset.pattern.permute.xlu0 %v11426_v32  ;;  %6782 = vset.pattern.permute.xlu1 %v11432_v56  ;;  %7066 = vrcp.f32 %v3123_v0  ;;  %v2943_v7 = vmul.f32 1.442695, %v2860_v46  ;;  %v2861_v22 = vsub.f32 %v9028_v43, %v2539_v10  ;;  %v2947_v3 = vmul.f32 1.442695, %v2862_v15 }
 0x2a6   :  { %4666 = vperm.xlu0 %6781, %v4001_v24   ;;  %4922 = vperm.xlu1 %6782, %v4001_v24   ;;  %v3140_v24 = vadd.f32 %v3139_v12, %v3138_v29  ;;  %v3131_v29 = vsel %vm1811_vm2, %v9058_v20, 0.0  ;;  %v2525_v12 = vmax.f32 %v2523_v54, %v2524_v11  ;;  %v2556_v11 = vmax.f32 %v2554_v28, %v2555_v36 }
 0x2a7   :  { %v3132_v19 = vrot.slane %v3131_v29, 4  ;;  %7068 = vpow2.f32 %v2943_v7  ;;  %v2945_v62 = vmul.f32 1.442695, %v2861_v22 }
 0x2a8   :  { %v3141_v50 = vrot.slane %v3140_v24, 2  ;;  %v2859_v25 = vsub.f32 %v9001_v40, %v2525_v12 }
 0x2a9   :  { %v9051_v33 = vpop.permute.xlu1 %4064  ;;  %v9079_v41 = vpop.permute.xlu0 %4638 }
 0x2aa   :  { %6784 = vset.pattern.permute.xlu0 %v11422_v63  ;;  %6783 = vset.pattern.permute.xlu1 %v11421_v17  ;;  %v3142_v8 = vadd.f32 %v3141_v50, %v3140_v24  ;;  %v3133_v24 = vadd.f32 %v3132_v19, %v3131_v29  ;;  %v9094_v50 = vadd.f32 %v9024_v53, %v8607_v61  ;;  %v2941_v44 = vmul.f32 1.442695, %v2859_v25 }
 0x2ab   :  { %4422 = vperm.xlu0 %6784, %v4004_v31   ;;  %4114 = vperm.xlu1 %6783, %v4004_v31   ;;  %v2557_v61 = vrot.slane %v2556_v11, 2  ;;  %v9123_v25 = vadd.f32 %v9024_v53, %v8612_v4 }
 0x2ac   :  { %v3143_v60 = vrot.slane %v3142_v8, 1  ;;  %v3134_v23 = vrot.slane %v3133_v24, 2  ;;  %v2547_v0 = vsel %vm1811_vm2, %v9094_v50, -inf  ;;  %7070 = vpow2.f32 %v2941_v44 }
 0x2ad   :  { %v2558_v46 = vmax.f32 %v2556_v11, %v2557_v61 }
 0x2ae   :  { %v9060_v34 = vpop.permute.xlu1 %4382  ;;  %v9099_v40 = vpop.permute.xlu0 %4059  ;;  %v3144_v49 = vadd.f32 %v3143_v60, %v3142_v8  ;;  %v3135_v28 = vadd.f32 %v3134_v23, %v3133_v24 }
 0x2af   :  { %6786 = vset.pattern.permute.xlu0 %v11432_v56  ;;  %6785 = vset.pattern.permute.xlu1 %v11426_v32  ;;  %v2559_v15 = vrot.slane %v2558_v46, 1 }
 0x2b0   :  { %4934 = vperm.xlu0 %6786, %v4004_v31   ;;  %4678 = vperm.xlu1 %6785, %v4004_v31   ;;  %v9084_v31 = vpop.eup %7060  ;;  %7072 = vrcp.f32 %v3144_v49  ;;  %v3136_v36 = vrot.slane %v3135_v28, 1  ;;  %v2561_v49 = vsel %vm1811_vm2, %v9123_v25, -inf }
 0x2b1   :  { %v7063_v54 = vpop.eup %7062  ;;  %v3152_v55 = vsel %vm1811_vm2, %v9084_v31, 0.0  ;;  %7074 = vpow2.f32 %v2947_v3 }
 0x2b2   :  { %v3508_v29 = vmul.f32 %v7063_v54, %v8970_v51  ;;  %v3153_v37 = vrot.slane %v3152_v55, 4  ;;  %v9106_v51 = vadd.f32 %v9024_v53, %v8609_v47  ;;  %v9113_v43 = vpop.eup %7064  ;;  %7076 = vpow2.f32 %v2945_v62 }
 0x2b3   :  { %v9074_v39 = vpop.permute.xlu1 %4894  ;;  %v7067_v47 = vpop.eup %7066  ;;  %v3145_v54 = vsel %vm1811_vm2, %v9113_v43, 0.0  ;;  %v3137_v23 = vadd.f32 %v3136_v36, %v3135_v28  ;;  %v9145_v28 = vadd.f32 %v9024_v53, %v8614_v59 }
 0x2b4   :  { %6787 = vset.pattern.permute.xlu0 %v11421_v17  ;;  %6788 = vset.pattern.permute.xlu1 %v11422_v63  ;;  %v4006_v19 = vmul.f32 %v8731_v42, %v3508_v29  ;;  %v3154_v8 = vadd.f32 %v3153_v37, %v3152_v55  ;;  %v2548_v42 = vrot.slane %v2547_v0, 4  ;;  %v2568_v1 = vsel %vm1811_vm2, %v9106_v51, -inf  ;;  %v9132_v29 = vpop.eup %7068 }
 0x2b5   :  { %4109 = vperm.xlu0 %6787, %v4003_v2   ;;  %4418 = vperm.xlu1 %6788, %v4003_v2   ;;  %v3506_v60 = vmul.f32 %v7067_v47, %v9003_v26  ;;  %v2569_v7 = vrot.slane %v2568_v1, 4  ;;  %v3146_v4 = vrot.slane %v3145_v54, 4  ;;  %7078 = vrcp.f32 %v3137_v23 }
 0x2b6   :  { %v3155_v24 = vrot.slane %v3154_v8, 2  ;;  %v2549_v55 = vmax.f32 %v2547_v0, %v2548_v42  ;;  %v9137_v37 = vpop.eup %7070  ;;  %v3166_v0 = vsel %vm1811_vm2, %v9132_v29, 0.0  ;;  %v2562_v47 = vrot.slane %v2561_v49, 4 }
 0x2b7   :  { %v4005_v26 = vmul.f32 %v8754_v16, %v3506_v60  ;;  %11484 = vst [vmem:[#allocation82_spill] sm:$0xff] %v9137_v37  ;;  %v2570_v3 = vmax.f32 %v2568_v1, %v2569_v7  ;;  %v3147_v62 = vadd.f32 %v3146_v4, %v3145_v54  ;;  %v3167_v36 = vrot.slane %v3166_v0, 4 }
 0x2b8   :  { %v9087_v48 = vpop.permute.xlu1 %4634  ;;  %v3156_v44 = vadd.f32 %v3155_v24, %v3154_v8  ;;  %v2550_v22 = vrot.slane %v2549_v55, 2  ;;  %v2582_v54 = vsel %vm1811_vm2, %v9145_v28, -inf  ;;  %v2563_v18 = vmax.f32 %v2561_v49, %v2562_v47 }
 0x2b9   :  { %6789 = vset.pattern.permute.xlu0 %v11426_v32  ;;  %6790 = vset.pattern.permute.xlu1 %v11432_v56  ;;  %v2571_v60 = vrot.slane %v2570_v3, 2  ;;  %v3148_v4 = vrot.slane %v3147_v62, 2 }
 0x2ba   :  { %4674 = vperm.xlu0 %6789, %v4003_v2   ;;  %4930 = vperm.xlu1 %6790, %v4003_v2   ;;  %v9115_v2 = vpop.permute.xlu0 %4378  ;;  %v7073_v61 = vpop.eup %7072  ;;  %v3157_v42 = vrot.slane %v3156_v44, 1  ;;  %v2551_v24 = vmax.f32 %v2549_v55, %v2550_v22  ;;  %v2564_v47 = vrot.slane %v2563_v18, 2 }
 0x2bb   :  { %v9149_v8 = vpop.eup %7074  ;;  %v3512_v23 = vmul.f32 %v7073_v61, %v9039_v45  ;;  %v2583_v45 = vrot.slane %v2582_v54, 4  ;;  %v2572_v30 = vmax.f32 %v2570_v3, %v2571_v60 }
 0x2bc   :  { %11485 = vst [vmem:[#allocation83_spill] sm:$0xff] %v9149_v8  ;;  %v9155_v59 = vpop.eup %7076  ;;  %v3180_v7 = vsel %vm1811_vm2, %v9149_v8, 0.0  ;;  %v3158_v55 = vadd.f32 %v3157_v42, %v3156_v44  ;;  %v2552_v27 = vrot.slane %v2551_v24, 1  ;;  %v3149_v44 = vadd.f32 %v3148_v4, %v3147_v62 }
 0x2bd   :  { %11486 = vst [vmem:[#allocation84_spill] sm:$0xff] %v9155_v59  ;;  %v3181_v5 = vrot.slane %v3180_v7, 4  ;;  %v3173_v13 = vsel %vm1811_vm2, %v9155_v59, 0.0  ;;  %v4008_v49 = vmul.f32 %v8735_v38, %v3512_v23  ;;  %v2575_v42 = vsel %vm1811_vm2, %v9167_v35, -inf }
 0x2be   :  { %6792 = vset.pattern.permute.xlu0 %v11422_v63  ;;  %6791 = vset.pattern.permute.xlu1 %v11421_v17  ;;  %v9130_v11 = vpop.permute.xlu0 %4890  ;;  %7080 = vrcp.f32 %v3158_v55  ;;  %v2584_v38 = vmax.f32 %v2582_v54, %v2583_v45  ;;  %v2573_v62 = vrot.slane %v2572_v30, 1  ;;  %v3150_v4 = vrot.slane %v3149_v44, 1 }
 0x2bf   :  { %4430 = vperm.xlu0 %6792, %v4006_v19   ;;  %4124 = vperm.xlu1 %6791, %v4006_v19   ;;  %v3182_v60 = vadd.f32 %v3181_v5, %v3180_v7  ;;  %v2565_v59 = vmax.f32 %v2563_v18, %v2564_v47  ;;  %v2576_v8 = vrot.slane %v2575_v42, 4 }
 0x2c0   :  { %v2585_v7 = vrot.slane %v2584_v38, 2  ;;  %v2574_v54 = vmax.f32 %v2572_v30, %v2573_v62 }
 0x2c1   :  { %v2566_v45 = vrot.slane %v2565_v59, 1 }
 0x2c2   :  { %v9109_v12 = vpop.permute.xlu1 %4074  ;;  %v9151_v1 = vpop.permute.xlu0 %4390 }
 0x2c3   :  { %6794 = vset.pattern.permute.xlu0 %v11432_v56  ;;  %6793 = vset.pattern.permute.xlu1 %v11426_v32 }
 0x2c4   :  { %4942 = vperm.xlu0 %6794, %v4006_v19   ;;  %4686 = vperm.xlu1 %6793, %v4006_v19   ;;  %v2560_v19 = vmax.f32 %v2558_v46, %v2559_v15  ;;  %v3159_v46 = vsel %vm1811_vm2, %v9137_v37, 0.0 }
 0x2c5   :  { %v3160_v22 = vrot.slane %v3159_v46, 4 }
 0x2c6   :  { %v2864_v15 = vsub.f32 %v9065_v58, %v2560_v19  ;;  %v3168_v19 = vadd.f32 %v3167_v36, %v3166_v0  ;;  %v3174_v0 = vrot.slane %v3173_v13, 4  ;;  %v7079_v36 = vpop.eup %7078 }
 0x2c7   :  { %v9128_v10 = vpop.permute.xlu1 %4646  ;;  %v3161_v9 = vadd.f32 %v3160_v22, %v3159_v46  ;;  %v9184_v46 = vadd.f32 %v9024_v53, %v8618_v6  ;;  %v3510_v55 = vmul.f32 %v7079_v36, %v9058_v20  ;;  %v3151_v6 = vadd.f32 %v3150_v4, %v3149_v44 }
 0x2c8   :  { %6795 = vset.pattern.permute.xlu0 %v11421_v17  ;;  %6796 = vset.pattern.permute.xlu1 %v11422_v63  ;;  %v2951_v61 = vmul.f32 1.442695, %v2864_v15  ;;  %v3169_v3 = vrot.slane %v3168_v19, 2  ;;  %v2553_v15 = vmax.f32 %v2551_v24, %v2552_v27  ;;  %v3175_v37 = vadd.f32 %v3174_v0, %v3173_v13  ;;  %v7081_v44 = vpop.eup %7080 }
 0x2c9   :  { %4119 = vperm.xlu0 %6795, %v4005_v26   ;;  %4426 = vperm.xlu1 %6796, %v4005_v26   ;;  %v3162_v22 = vrot.slane %v3161_v9, 2  ;;  %v3183_v24 = vrot.slane %v3182_v60, 2  ;;  %v2596_v13 = vsel %vm1811_vm2, %v9184_v46, -inf  ;;  %v4007_v0 = vmul.f32 %v8764_v57, %v3510_v55 }
 0x2ca   :  { %7082 = vpow2.f32 %v2951_v61  ;;  %v3170_v27 = vadd.f32 %v3169_v3, %v3168_v19  ;;  %v2863_v18 = vsub.f32 %v9094_v50, %v2553_v15  ;;  %v2577_v61 = vmax.f32 %v2575_v42, %v2576_v8 }
 0x2cb   :  { %v3163_v47 = vadd.f32 %v3162_v22, %v3161_v9  ;;  %v3176_v20 = vrot.slane %v3175_v37, 2  ;;  %v3184_v3 = vadd.f32 %v3183_v24, %v3182_v60  ;;  %v2866_v50 = vsub.f32 %v9106_v51, %v2574_v54 }
 0x2cc   :  { %v3171_v19 = vrot.slane %v3170_v27, 1  ;;  %v2949_v30 = vmul.f32 1.442695, %v2863_v18  ;;  %v2597_v8 = vrot.slane %v2596_v13, 4  ;;  %7084 = vrcp.f32 %v3151_v6 }
 0x2cd   :  { %6797 = vset.pattern.permute.xlu0 %v11426_v32  ;;  %6798 = vset.pattern.permute.xlu1 %v11432_v56  ;;  %v2567_v57 = vmax.f32 %v2565_v59, %v2566_v45  ;;  %v2578_v9 = vrot.slane %v2577_v61, 2  ;;  %v3164_v60 = vrot.slane %v3163_v47, 1  ;;  %v3185_v62 = vrot.slane %v3184_v3, 1 }
 0x2ce   :  { %4682 = vperm.xlu0 %6797, %v4005_v26   ;;  %4938 = vperm.xlu1 %6798, %v4005_v26   ;;  %v9174_v26 = vpop.permute.xlu0 %4902  ;;  %v3172_v15 = vadd.f32 %v3171_v19, %v3170_v27  ;;  %7086 = vpow2.f32 %v2949_v30  ;;  %v2955_v22 = vmul.f32 1.442695, %v2866_v50  ;;  %v2598_v55 = vmax.f32 %v2596_v13, %v2597_v8 }
 0x2cf   :  { %11487 = vst [vmem:[#allocation85_spill] sm:$0xff] %v9174_v26  ;;  %v2586_v26 = vmax.f32 %v2584_v38, %v2585_v7  ;;  %v3177_v38 = vadd.f32 %v3176_v20, %v3175_v37  ;;  %v3516_v51 = vmul.f32 %v7081_v44, %v9084_v31  ;;  %v2865_v7 = vsub.f32 %v9123_v25, %v2567_v57 }
 0x2d0   :  { %v2579_v37 = vmax.f32 %v2577_v61, %v2578_v9  ;;  %v9214_v27 = vadd.f32 %v9024_v53, %v8620_v14  ;;  %v3165_v18 = vadd.f32 %v3164_v60, %v3163_v47  ;;  %v3186_v31 = vadd.f32 %v3185_v62, %v3184_v3  ;;  %v7261_v60 = vld [vmem:[%s11378_s3] sm:$0xff] }
 0x2d1   :  { %v2587_v4 = vrot.slane %v2586_v26, 1  ;;  %v3178_v54 = vrot.slane %v3177_v38, 1  ;;  %7088 = vrcp.f32 %v3172_v15  ;;  %v2599_v20 = vrot.slane %v2598_v55, 2 }
 0x2d2   :  { %6800 = vset.pattern.permute.xlu0 %v11422_v63  ;;  %6799 = vset.pattern.permute.xlu1 %v11421_v17  ;;  %v4010_v19 = vmul.f32 %v8746_v52, %v3516_v51  ;;  %7090 = vpow2.f32 %v2955_v22  ;;  %v2953_v25 = vmul.f32 1.442695, %v2865_v7  ;;  %v2580_v61 = vrot.slane %v2579_v37, 1  ;;  %v1022_v52 = vld [vmem:[%s11383_s2] sm:$0xff] }
 0x2d3   :  { %4438 = vperm.xlu0 %6800, %v4008_v49   ;;  %4134 = vperm.xlu1 %6799, %v4008_v49   ;;  %v2588_v45 = vmax.f32 %v2586_v26, %v2587_v4  ;;  %v2589_v14 = vsel %vm1811_vm2, %v9214_v27, -inf  ;;  %7092 = vrcp.f32 %v3165_v18  ;;  %v3179_v47 = vadd.f32 %v3178_v54, %v3177_v38  ;;  %v7262_v18 = vld [vmem:[%s11378_s3 + $0x8] sm:$0xff] }
 0x2d4   :  { %v9147_v16 = vpop.permute.xlu1 %4386  ;;  %v9189_v5 = vpop.permute.xlu0 %4069  ;;  %7094 = vrcp.f32 %v3186_v31  ;;  %v2600_v50 = vmax.f32 %v2598_v55, %v2599_v20  ;;  %v2590_v8 = vrot.slane %v2589_v14, 4  ;;  %v9227_v57 = vmax.f32 %v2579_v37, %v2580_v61  ;;  %v11489_v20 = vld [vmem:[#allocation35_spill] sm:$0xff] }
 0x2d5   :  { %v9202_v42 = vpop.eup %7082  ;;  %v2868_v3 = vsub.f32 %v9145_v28, %v2588_v45  ;;  %7096 = vpow2.f32 %v2953_v25  ;;  %v9234_v38 = vadd.f32 %v7261_v60, %v1022_v52  ;;  %v1023_v28 = vld [vmem:[%s11383_s2 + $0x8] sm:$0xff]  ;;  %v9244_v4 = vadd.f32 %v9024_v53, %v8622_v21 }
 0x2d6   :  { %v3194_v59 = vsel %vm1811_vm2, %v9202_v42, 0.0  ;;  %7098 = vrcp.f32 %v3179_v47  ;;  %v5147_v22 = vsel %vm5145_vm3, %v9051_v33, %v9060_v34  ;;  %v2601_v51 = vrot.slane %v2600_v50, 1  ;;  %v11488_v33 = vld [vmem:[#allocation2_spill] sm:$0xff] }
 0x2d7   :  { %6802 = vset.pattern.permute.xlu0 %v11432_v56  ;;  %6801 = vset.pattern.permute.xlu1 %v11426_v32  ;;  %v3195_v13 = vrot.slane %v3194_v59, 4  ;;  %v2959_v62 = vmul.f32 1.442695, %v2868_v3  ;;  %v2867_v37 = vsub.f32 %v9167_v35, %v9227_v57  ;;  %v9260_v34 = vadd.f32 %v9024_v53, %v11488_v33 }
 0x2d8   :  { %4950 = vperm.xlu0 %6802, %v4008_v49   ;;  %4694 = vperm.xlu1 %6801, %v4008_v49   ;;  %v1087_v54 = vadd.f32 %v7262_v18, %v1023_v28  ;;  %v5212_v45 = vsel %vm5210_vm4, %v5147_v22, %v9079_v41  ;;  %v5148_v35 = vsel %vm5145_vm3, %v9189_v5, %v9147_v16  ;;  %v2610_v5 = vsel %vm1811_vm2, %v9244_v4, -inf }
 0x2d9   :  { %v9169_v58 = vpop.permute.xlu1 %4642  ;;  %v3196_v30 = vadd.f32 %v3195_v13, %v3194_v59  ;;  %v9249_v59 = vmax.f32 %v2589_v14, %v2590_v8  ;;  %v5146_v13 = vsel %vm5145_vm3, %v9099_v40, %v9115_v2  ;;  %7100 = vpow2.f32 %v2959_v62  ;;  %v7263_v40 = vld [vmem:[%s11378_s3 + $0x10] sm:$0xff] }
 0x2da   :  { %v5277_v14 = vsel %vm5275_vm5, %v5212_v45, %v9074_v39  ;;  %v5213_v41 = vsel %vm5210_vm4, %v5148_v35, %v9169_v58  ;;  %v5211_v39 = vsel %vm5210_vm4, %v5146_v13, %v9087_v48  ;;  %v9301_v57 = vmax.f32 %v2600_v50, %v2601_v51 }
 0x2db   :  { %v3197_v55 = vrot.slane %v3196_v30, 2  ;;  %v5149_v48 = vsel %vm5145_vm3, %v9109_v12, %v9151_v1  ;;  %v5341_v60 = vmul.f32 %v5277_v14, %v1087_v54  ;;  %v7264_v1 = vld [vmem:[%s11378_s3 + $0x20] sm:$0xff]  ;;  %v9324_v51 = vmul.f32 1.442695, %v2867_v37  ;;  %v11490_v37 = vld [vmem:[#allocation85_spill] sm:$0xff] }
 0x2dc   :  { %6803 = vset.pattern.permute.xlu0 %v11421_v17  ;;  %6804 = vset.pattern.permute.xlu1 %v11422_v63  ;;  %v9200_v49 = vpop.permute.xlu0 %4398  ;;  %v2611_v54 = vrot.slane %v2610_v5, 4  ;;  %v2603_v45 = vsel %vm1811_vm2, %v9260_v34, -inf }
 0x2dd   :  { %4129 = vperm.xlu0 %6803, %v4007_v0   ;;  %4434 = vperm.xlu1 %6804, %v4007_v0   ;;  %v9299_v3 = vadd.f32 %v3197_v55, %v3196_v30  ;;  %v5214_v30 = vsel %vm5210_vm4, %v5149_v48, %v9128_v10  ;;  %v7265_v10 = vld [vmem:[%s11378_s3 + $0x18] sm:$0xff]  ;;  %v5411_v14 = vsel %vm1161_vm0, %v5341_v60, 0.0  ;;  %v2870_v60 = vsub.f32 %v9184_v46, %v9301_v57 }
 0x2de   :  { %v9180_v23 = vpop.permute.xlu1 %4898  ;;  %v5279_v13 = vsel %vm5275_vm5, %v5214_v30, %v11490_v37  ;;  %v2612_v48 = vmax.f32 %v2610_v5, %v2611_v54  ;;  %v11492_v54 = vld [vmem:[#allocation82_spill] sm:$0xff]  ;;  %7102 = vpow2.f32 %v9324_v51 }
 0x2df   :  { %v5278_v58 = vsel %vm5275_vm5, %v5213_v41, %v9180_v23  ;;  %v1025_v23 = vld [vmem:[%s11383_s2 + $0x18] sm:$0xff] }
 0x2e1   :  { %6805 = vset.pattern.permute.xlu0 %v11426_v32  ;;  %6806 = vset.pattern.permute.xlu1 %v11432_v56  ;;  %v9216_v6 = vpop.permute.xlu0 %4910 }
 0x2e2   :  { %4690 = vperm.xlu0 %6805, %v4007_v0   ;;  %4946 = vperm.xlu1 %6806, %v4007_v0   ;;  %v7085_v0 = vpop.eup %7084 }
 0x2e3   :  { %v9195_v36 = vpop.permute.xlu1 %4084  ;;  %v9229_v9 = vpop.eup %7086  ;;  %v3514_v15 = vmul.f32 %v7085_v0, %v9113_v43  ;;  %v1024_v43 = vld [vmem:[%s11383_s2 + $0x10] sm:$0xff]  ;;  %v1026_v0 = vld [vmem:[%s11383_s2 + $0x20] sm:$0xff] }
 0x2e4   :  { %v3187_v21 = vsel %vm1811_vm2, %v9229_v9, 0.0  ;;  %v7089_v31 = vpop.eup %7088  ;;  %v1088_v2 = vadd.f32 %v7263_v40, %v1024_v43  ;;  %v1090_v62 = vadd.f32 %v7264_v1, %v1026_v0  ;;  %v1089_v43 = vadd.f32 %v7265_v10, %v1025_v23 }
 0x2e5   :  { %v9274_v61 = vpop.eup %7090  ;;  %v3188_v8 = vrot.slane %v3187_v21, 4  ;;  %v5151_v35 = vsel %vm5145_vm3, %v9195_v36, %v9200_v49  ;;  %v1029_v36 = vld [vmem:[%s11383_s2 + $0x38] sm:$0xff]  ;;  %v3199_v0 = vrot.slane %v9299_v3, 1 }
 0x2e6   :  { %6808 = vset.pattern.permute.xlu0 %v11422_v63  ;;  %6807 = vset.pattern.permute.xlu1 %v11421_v17  ;;  %v9285_v16 = vpop.eup %7092  ;;  %v5342_v12 = vmul.f32 %v5278_v58, %v1088_v2 }
 0x2e7   :  { %4446 = vperm.xlu0 %6808, %v4010_v19   ;;  %4144 = vperm.xlu1 %6807, %v4010_v19   ;;  %v9297_v52 = vpop.eup %7094  ;;  %v3518_v37 = vmul.f32 %v9285_v16, %v11492_v54 }
 0x2e8   :  { %v9207_v24 = vpop.permute.xlu1 %4654  ;;  %v9314_v50 = vpop.eup %7096  ;;  %v5418_v41 = vsel %vm1161_vm0, %v5342_v12, 0.0  ;;  %v5412_v12 = vrot.slane %v5411_v14, 4 }
 0x2e9   :  { %v9322_v55 = vpop.eup %7098  ;;  %v3201_v10 = vsel %vm1811_vm2, %v9314_v50, 0.0 }
 0x2eb   :  { %6810 = vset.pattern.permute.xlu0 %v11432_v56  ;;  %6809 = vset.pattern.permute.xlu1 %v11426_v32 }
 0x2ec   :  { %4958 = vperm.xlu0 %6810, %v4010_v19   ;;  %4702 = vperm.xlu1 %6809, %v4010_v19   ;;  %v4009_v19 = vmul.f32 %v11489_v20, %v3514_v15  ;;  %v5276_v15 = vsel %vm5275_vm5, %v5211_v39, %v9130_v11  ;;  %v3520_v11 = vmul.f32 %v7089_v31, %v9132_v29  ;;  %v1027_v29 = vld [vmem:[%s11383_s2 + $0x28] sm:$0xff] }
 0x2ed   :  { %v3189_v31 = vadd.f32 %v3188_v8, %v3187_v21  ;;  %v11491_v21 = vld [vmem:[#allocation30_spill] sm:$0xff] }
 0x2ee   :  { %v4012_v39 = vmul.f32 %v11491_v21, %v3520_v11  ;;  %v2613_v11 = vrot.slane %v2612_v48, 2 }
 0x2ef   :  { %v4395_v26 = vpop.permute.xlu1 %4394  ;;  %v4080_v44 = vpop.permute.xlu0 %4079 }
 0x2f0   :  { %6811 = vset.pattern.permute.xlu0 %v11421_v17  ;;  %6812 = vset.pattern.permute.xlu1 %v11422_v63  ;;  %v5150_v47 = vsel %vm5145_vm3, %v4080_v44, %v4395_v26  ;;  %v3208_v26 = vsel %vm1811_vm2, %v9274_v61, 0.0  ;;  %v2592_v44 = vrot.slane %v9249_v59, 2 }
 0x2f1   :  { %4139 = vperm.xlu0 %6811, %v4009_v19   ;;  %4442 = vperm.xlu1 %6812, %v4009_v19   ;;  %v3209_v20 = vrot.slane %v3208_v26, 4 }
 0x2f2   :  { %v2593_v8 = vmax.f32 %v9249_v59, %v2592_v44  ;;  %v7267_v59 = vld [vmem:[%s11378_s3 + $0x38] sm:$0xff]  ;;  %v2604_v44 = vrot.slane %v2603_v45, 4 }
 0x2f3   :  { %v1093_v5 = vadd.f32 %v7267_v59, %v1029_v36  ;;  %v3202_v36 = vrot.slane %v3201_v10, 4 }
 0x2f4   :  { %v4907_v7 = vpop.permute.xlu1 %4906  ;;  %v4651_v25 = vpop.permute.xlu0 %4650 }
 0x2f5   :  { %v5215_v22 = vsel %vm5210_vm4, %v5150_v47, %v4651_v25  ;;  %6813 = vset.pattern.permute.xlu0 %v11426_v32  ;;  %6814 = vset.pattern.permute.xlu1 %v11432_v56  ;;  %v5216_v25 = vsel %vm5210_vm4, %v5151_v35, %v9207_v24  ;;  %v9357_v47 = vpop.eup %7100 }
 0x2f6   :  { %v5280_v18 = vsel %vm5275_vm5, %v5215_v22, %v4907_v7  ;;  %4698 = vperm.xlu0 %6813, %v4009_v19   ;;  %4954 = vperm.xlu1 %6814, %v4009_v19   ;;  %v5340_v7 = vmul.f32 %v5276_v15, %v9234_v38  ;;  %v5343_v19 = vmul.f32 %v5279_v13, %v1089_v43  ;;  %v7266_v38 = vld [vmem:[%s11378_s3 + $0x28] sm:$0xff]  ;;  %v2594_v43 = vrot.slane %v2593_v8, 1 }
 0x2f7   :  { %v5344_v40 = vmul.f32 %v5280_v18, %v1090_v62  ;;  %v1091_v24 = vadd.f32 %v7266_v38, %v1027_v29  ;;  %v5281_v23 = vsel %vm5275_vm5, %v5216_v25, %v9216_v6  ;;  %v3190_v62 = vrot.slane %v3189_v31, 2  ;;  %v11493_v38 = vld [vmem:[#allocation38_spill] sm:$0xff] }
 0x2f8   :  { %v5404_v30 = vsel %vm1161_vm0, %v5340_v7, 0.0  ;;  %v3210_v22 = vadd.f32 %v3209_v20, %v3208_v26  ;;  %v5425_v46 = vsel %vm1161_vm0, %v5343_v19, 0.0  ;;  %v3200_v26 = vadd.f32 %v3199_v0, %v9299_v3 }
 0x2f9   :  { %v4095_v28 = vpop.permute.xlu1 %4094  ;;  %v4407_v33 = vpop.permute.xlu0 %4406  ;;  %v5432_v6 = vsel %vm1161_vm0, %v5344_v40, 0.0  ;;  %v5345_v57 = vmul.f32 %v5281_v23, %v1091_v24  ;;  %v2963_v29 = vmul.f32 1.442695, %v2870_v60  ;;  %v5413_v20 = vadd.f32 %v5412_v12, %v5411_v14 }
 0x2fa   :  { %v5153_v2 = vsel %vm5145_vm3, %v4095_v28, %v4407_v33  ;;  %6816 = vset.pattern.permute.xlu0 %v11422_v63  ;;  %6815 = vset.pattern.permute.xlu1 %v11421_v17  ;;  %v5419_v28 = vrot.slane %v5418_v41, 4  ;;  %v5405_v33 = vrot.slane %v5404_v30, 4  ;;  %v5433_v13 = vrot.slane %v5432_v6, 4 }
 0x2fb   :  { %4454 = vperm.xlu0 %6816, %v4012_v39   ;;  %4154 = vperm.xlu1 %6815, %v4012_v39   ;;  %v5426_v7 = vrot.slane %v5425_v46, 4  ;;  %v3191_v25 = vadd.f32 %v3190_v62, %v3189_v31  ;;  %v3211_v40 = vrot.slane %v3210_v22, 2  ;;  %v2614_v19 = vmax.f32 %v2612_v48, %v2613_v11 }
 0x2fc   :  { %v5420_v18 = vadd.f32 %v5419_v28, %v5418_v41  ;;  %v5439_v41 = vsel %vm1161_vm0, %v5345_v57, 0.0  ;;  %v5406_v16 = vadd.f32 %v5405_v33, %v5404_v30  ;;  %v4011_v24 = vmul.f32 %v11493_v38, %v3518_v37  ;;  %v11495_v57 = vld [vmem:[#allocation3_spill] sm:$0xff] }
 0x2fd   :  { %v5414_v14 = vrot.slane %v5413_v20, 2  ;;  %v5427_v0 = vadd.f32 %v5426_v7, %v5425_v46  ;;  %7104 = vrcp.f32 %v3200_v26  ;;  %v3212_v31 = vadd.f32 %v3211_v40, %v3210_v22  ;;  %v11494_v22 = vld [vmem:[#allocation83_spill] sm:$0xff] }
 0x2fe   :  { %v4663_v49 = vpop.permute.xlu1 %4662  ;;  %v4919_v15 = vpop.permute.xlu0 %4918  ;;  %v5421_v21 = vrot.slane %v5420_v18, 2  ;;  %v3203_v48 = vadd.f32 %v3202_v36, %v3201_v10  ;;  %7106 = vpow2.f32 %v2963_v29  ;;  %v5407_v23 = vrot.slane %v5406_v16, 2 }
 0x2ff   :  { %v5218_v58 = vsel %vm5210_vm4, %v5153_v2, %v4663_v49  ;;  %6818 = vset.pattern.permute.xlu0 %v11432_v56  ;;  %6817 = vset.pattern.permute.xlu1 %v11426_v32  ;;  %v2605_v2 = vmax.f32 %v2603_v45, %v2604_v44  ;;  %v2595_v49 = vmax.f32 %v2593_v8, %v2594_v43  ;;  %v3192_v45 = vrot.slane %v3191_v25, 1 }
 0x300   :  { %v5283_v1 = vsel %vm5275_vm5, %v5218_v58, %v4919_v15  ;;  %4966 = vperm.xlu0 %6818, %v4012_v39   ;;  %4710 = vperm.xlu1 %6817, %v4012_v39   ;;  %v5434_v58 = vadd.f32 %v5433_v13, %v5432_v6  ;;  %v5440_v39 = vrot.slane %v5439_v41, 4  ;;  %v2615_v51 = vrot.slane %v2614_v19, 1 }
 0x301   :  { %v5347_v35 = vmul.f32 %v5283_v1, %v1093_v5  ;;  %v2606_v8 = vrot.slane %v2605_v2, 2  ;;  %v2869_v30 = vsub.f32 %v9214_v27, %v2595_v49  ;;  %v5422_v28 = vadd.f32 %v5421_v21, %v5420_v18 }
 0x302   :  { %v5435_v15 = vrot.slane %v5434_v58, 2  ;;  %v3222_v59 = vsel %vm1811_vm2, %v9357_v47, 0.0  ;;  %v5415_v5 = vadd.f32 %v5414_v14, %v5413_v20  ;;  %v5428_v44 = vrot.slane %v5427_v0, 2 }
 0x303   :  { %v5453_v3 = vsel %vm1161_vm0, %v5347_v35, 0.0  ;;  %v5441_v12 = vadd.f32 %v5440_v39, %v5439_v41  ;;  %v3193_v6 = vadd.f32 %v3192_v45, %v3191_v25  ;;  %v3213_v1 = vrot.slane %v3212_v31, 1  ;;  %v9404_v41 = vpop.eup %7102 }
 0x304   :  { %6819 = vset.pattern.permute.xlu0 %v11421_v17  ;;  %6820 = vset.pattern.permute.xlu1 %v11422_v63  ;;  %v5454_v60 = vrot.slane %v5453_v3, 4  ;;  %v2607_v62 = vmax.f32 %v2605_v2, %v2606_v8  ;;  %v3524_v46 = vmul.f32 %v9297_v52, %v11494_v22  ;;  %v3204_v27 = vrot.slane %v3203_v48, 2  ;;  %v1028_v2 = vld [vmem:[%s11383_s2 + $0x30] sm:$0xff] }
 0x305   :  { %4149 = vperm.xlu0 %6819, %v4011_v24   ;;  %4450 = vperm.xlu1 %6820, %v4011_v24   ;;  %v9396_v10 = vadd.f32 %v9024_v53, %v11495_v57  ;;  %v5408_v43 = vadd.f32 %v5407_v23, %v5406_v16  ;;  %v3223_v33 = vrot.slane %v3222_v59, 4  ;;  %v2961_v18 = vmul.f32 1.442695, %v2869_v30  ;;  %v11496_v53 = vld [vmem:[#allocation33_spill] sm:$0xff]  ;;  %v9432_v30 = vld [vmem:[%s11384_s9] ss:$0 sm:$0xff] }
 0x306   :  { %v5455_v11 = vadd.f32 %v5454_v60, %v5453_v3  ;;  %v5423_v54 = vrot.slane %v5422_v28, 1  ;;  %v5436_v37 = vadd.f32 %v5435_v15, %v5434_v58  ;;  %v2616_v13 = vmax.f32 %v2614_v19, %v2615_v51 }
 0x307   :  { %v5416_v35 = vrot.slane %v5415_v5, 1  ;;  %v5429_v26 = vadd.f32 %v5428_v44, %v5427_v0  ;;  %v5442_v29 = vrot.slane %v5441_v12, 2  ;;  %7108 = vrcp.f32 %v3193_v6  ;;  %v9414_v21 = vpop.eup %7104 }
 0x308   :  { %v9398_v7 = vadd.f32 %v3213_v1, %v3212_v31  ;;  %v2608_v25 = vrot.slane %v2607_v62, 1  ;;  %v4014_v40 = vmul.f32 %v11496_v53, %v3524_v46  ;;  %v9406_v36 = vadd.f32 %v3204_v27, %v3203_v48  ;;  %v9419_v14 = vpop.eup %7106  ;;  %v7268_v31 = vld [vmem:[%s11378_s3 + $0x30] sm:$0xff] }
 0x309   :  { %6821 = vset.pattern.permute.xlu0 %v11426_v32  ;;  %6822 = vset.pattern.permute.xlu1 %v11432_v56  ;;  %v9410_v49 = vsel %vm1811_vm2, %v9396_v10, -inf  ;;  %v5409_v19 = vrot.slane %v5408_v43, 1  ;;  %v5456_v16 = vrot.slane %v5455_v11, 2  ;;  %v9416_v38 = vadd.f32 %v3223_v33, %v3222_v59 }
 0x30a   :  { %4706 = vperm.xlu0 %6821, %v4011_v24   ;;  %4962 = vperm.xlu1 %6822, %v4011_v24   ;;  %v5424_v24 = vadd.f32 %v5423_v54, %v5422_v28  ;;  %v5437_v58 = vrot.slane %v5436_v37, 1  ;;  %v5417_v0 = vadd.f32 %v5416_v35, %v5415_v5  ;;  %v5430_v39 = vrot.slane %v5429_v26, 1  ;;  %v11497_v5 = vld [vmem:[#allocation84_spill] sm:$0xff]  ;;  %v9454_v54 = vld [vmem:[%s11382_s8] ss:$0 sm:$0xff] }
 0x30b   :  { %v5443_v45 = vadd.f32 %v5442_v29, %v5441_v12  ;;  %v1092_v8 = vadd.f32 %v7268_v31, %v1028_v2  ;;  %v3215_v48 = vsel %vm1811_vm2, %v9404_v41, 0.0  ;;  %7110 = vpow2.f32 %v2961_v18  ;;  %v9449_v18 = vld [vmem:[%s11385_s10] ss:$0 sm:$0xff] }
 0x30c   :  { %v4090_v52 = vpop.permute.xlu0 %4089  ;;  %v4403_v20 = vpop.permute.xlu1 %4402  ;;  %v2872_v23 = vsub.f32 %v9244_v4, %v2616_v13  ;;  %v9427_v60 = vmax.f32 %v2607_v62, %v2608_v25  ;;  %v5410_v15 = vadd.f32 %v5409_v19, %v5408_v43  ;;  %v5457_v59 = vadd.f32 %v5456_v16, %v5455_v11 }
 0x30d   :  { %v5152_v3 = vsel %vm5145_vm3, %v4090_v52, %v4403_v20  ;;  %v3522_v44 = vmul.f32 %v9322_v55, %v11497_v5  ;;  %v2625_v6 = vrot.slane %v9410_v49, 4  ;;  %v5861_v4 = vmul.f32 %v9432_v30, %v5424_v24 }
 0x30e   :  { %6824 = vset.pattern.permute.xlu0 %v11422_v63  ;;  %6823 = vset.pattern.permute.xlu1 %v11421_v17  ;;  %v5438_v1 = vadd.f32 %v5437_v58, %v5436_v37  ;;  %v5860_v22 = vmul.f32 %v9432_v30, %v5417_v0  ;;  %v5431_v46 = vadd.f32 %v5430_v39, %v5429_v26  ;;  %v5444_v27 = vrot.slane %v5443_v45, 1  ;;  %v11498_v37 = vld [vmem:[#allocation4_spill] sm:$0xff] }
 0x30f   :  { %4462 = vperm.xlu0 %6824, %v4014_v40   ;;  %4164 = vperm.xlu1 %6823, %v4014_v40   ;;  %v3206_v55 = vrot.slane %v9406_v36, 1  ;;  %v3216_v43 = vrot.slane %v3215_v48, 4  ;;  %v2967_v11 = vmul.f32 1.442695, %v2872_v23  ;;  %v2871_v33 = vsub.f32 %v9260_v34, %v9427_v60 }
 0x310   :  { %v9458_v13 = vadd.f32 %v9454_v54, %v11498_v37  ;;  %v5859_v35 = vmul.f32 %v9432_v30, %v5410_v15  ;;  %v5458_v26 = vrot.slane %v5457_v59, 1  ;;  %v5932_v25 = vadd.f32 %v9449_v18, %v5861_v4 }
 0x311   :  { %v4659_v51 = vpop.permute.xlu0 %4658  ;;  %v4915_v28 = vpop.permute.xlu1 %4914  ;;  %v5863_v53 = vmul.f32 %v9432_v30, %v5438_v1  ;;  %7112 = vrcp.f32 %v9398_v7  ;;  %v5931_v16 = vadd.f32 %v9449_v18, %v5860_v22  ;;  %v5862_v24 = vmul.f32 %v9432_v30, %v5431_v46  ;;  %v11500_v22 = vld [vmem:[#allocation5_spill] sm:$0xff] }
 0x312   :  { %v5217_v12 = vsel %vm5210_vm4, %v5152_v3, %v4659_v51  ;;  %v9466_v20 = vpop.eup %7108  ;;  %v5445_v58 = vadd.f32 %v5444_v27, %v5443_v45  ;;  %v9477_v3 = vadd.f32 %v3206_v55, %v9406_v36  ;;  %v3225_v0 = vrot.slane %v9416_v38, 2 }
 0x313   :  { %6826 = vset.pattern.permute.xlu0 %v11432_v56  ;;  %v5282_v62 = vsel %vm5275_vm5, %v5217_v12, %v4915_v28  ;;  %6825 = vset.pattern.permute.xlu1 %v11426_v32  ;;  %v2626_v39 = vmax.f32 %v9410_v49, %v2625_v6  ;;  %v9481_v7 = vadd.f32 %v3216_v43, %v3215_v48  ;;  %7114 = vpow2.f32 %v2967_v11 }
 0x314   :  { %4974 = vperm.xlu0 %6826, %v4014_v40   ;;  %v5346_v57 = vmul.f32 %v5282_v62, %v1092_v8  ;;  %4718 = vperm.xlu1 %6825, %v4014_v40   ;;  %v11499_v40 = vld [vmem:[#allocation40_spill] sm:$0xff]  ;;  %v5930_v8 = vadd.f32 %v9449_v18, %v5859_v35  ;;  %v5459_v45 = vadd.f32 %v5458_v26, %v5457_v59  ;;  %v2617_v60 = vsel %vm1811_vm2, %v9458_v13, -inf }
 0x315   :  { %v4013_v2 = vmul.f32 %v11499_v40, %v3522_v44  ;;  %v9484_v23 = vpop.eup %7110  ;;  %v5996_v36 = vmax.f32 %v5932_v25, 0.0  ;;  %v5934_v51 = vadd.f32 %v9449_v18, %v5863_v53  ;;  %v9495_v48 = vsel %vm1811_vm2, %v9419_v14, 0.0  ;;  %v11502_v40 = vld [vmem:[#allocation36_spill] sm:$0xff] }
 0x316   :  { %v9461_v29 = vpop.permute.xlu0 %4414  ;;  %v5446_v34 = vsel %vm1161_vm0, %v5346_v57, 0.0  ;;  %v9464_v52 = vpop.permute.xlu1 %4104  ;;  %v5995_v5 = vmax.f32 %v5931_v16, 0.0  ;;  %v5933_v59 = vadd.f32 %v9449_v18, %v5862_v24  ;;  %v5864_v44 = vmul.f32 %v9432_v30, %v5445_v58 }
 0x317   :  { %v5447_v19 = vrot.slane %v5446_v34, 4  ;;  %v2965_v12 = vmul.f32 1.442695, %v2871_v33  ;;  %v2627_v6 = vrot.slane %v2626_v39, 2  ;;  %v3528_v1 = vmul.f32 %v9414_v21, %v9202_v42 }
 0x318   :  { %6827 = vset.pattern.permute.xlu0 %v11421_v17  ;;  %6828 = vset.pattern.permute.xlu1 %v11422_v63  ;;  %v2618_v62 = vrot.slane %v2617_v60, 4  ;;  %v9505_v46 = vadd.f32 %v9454_v54, %v11500_v22  ;;  %v5994_v27 = vmax.f32 %v5930_v8, 0.0  ;;  %v5866_v57 = vmul.f32 %v9432_v30, %v5459_v45 }
 0x319   :  { %4159 = vperm.xlu0 %6827, %v4013_v2   ;;  %v5448_v31 = vadd.f32 %v5447_v19, %v5446_v34  ;;  %4458 = vperm.xlu1 %6828, %v4013_v2   ;;  %v6125_v55 = vrot.slane %v5996_v36, 6  ;;  %v5998_v43 = vmax.f32 %v5934_v51, 0.0  ;;  %v6122_v33 = vrot.slane %v5995_v5, 7  ;;  %v11501_v34 = vld [vmem:[#allocation6_spill] sm:$0xff] }
 0x31a   :  { %v5997_v37 = vmax.f32 %v5933_v59, 0.0  ;;  %v5935_v42 = vadd.f32 %v9449_v18, %v5864_v44  ;;  %v3237_v26 = vrot.slane %v9495_v48, 4  ;;  %v9516_v25 = vadd.f32 %v9454_v54, %v11501_v34 }
 0x31b   :  { %v5449_v28 = vrot.slane %v5448_v31, 2  ;;  %v9489_v15 = vpop.permute.xlu0 %4926  ;;  %v9491_v49 = vpop.permute.xlu1 %4670  ;;  %v2619_v16 = vmax.f32 %v2617_v60, %v2618_v62  ;;  %v2638_v24 = vsel %vm1811_vm2, %v9505_v46, -inf  ;;  %v6124_v58 = vsel %vm6123_vm6, %v6122_v33, %v5994_v27 }
 0x31c   :  { %v9519_v19 = vpop.eup %7112  ;;  %v6127_v8 = vsel %vm6126_vm7, %v6125_v55, %v6124_v58  ;;  %v6131_v45 = vrot.slane %v5998_v43, 4  ;;  %v2628_v51 = vmax.f32 %v2626_v39, %v2627_v6  ;;  %v5999_v5 = vmax.f32 %v5935_v42, 0.0 }
 0x31d   :  { %v5450_v4 = vadd.f32 %v5449_v28, %v5448_v31  ;;  %6829 = vset.pattern.permute.xlu0 %v11426_v32  ;;  %6830 = vset.pattern.permute.xlu1 %v11432_v56  ;;  %v5937_v31 = vadd.f32 %v9449_v18, %v5866_v57  ;;  %v9529_v60 = vpop.eup %7114  ;;  %v6128_v28 = vrot.slane %v5997_v37, 5  ;;  %v3229_v59 = vsel %vm1811_vm2, %v9484_v23, 0.0 }
 0x31e   :  { %4714 = vperm.xlu0 %6829, %v4013_v2   ;;  %4970 = vperm.xlu1 %6830, %v4013_v2   ;;  %v4016_v2 = vmul.f32 %v11502_v40, %v3528_v1  ;;  %7116 = vpow2.f32 %v2965_v12  ;;  %v2639_v44 = vrot.slane %v2638_v24, 4  ;;  %v2620_v22 = vrot.slane %v2619_v16, 2 }
 0x31f   :  { %v5451_v11 = vrot.slane %v5450_v4, 1  ;;  %v2631_v27 = vsel %vm1811_vm2, %v9516_v25, -inf  ;;  %v6130_v39 = vsel %vm6129_vm8, %v6128_v28, %v6127_v8  ;;  %v6001_v6 = vmax.f32 %v5937_v31, 0.0 }
 0x320   :  { %v9509_v21 = vpop.permute.xlu0 %4099  ;;  %v9511_v35 = vpop.permute.xlu1 %4410  ;;  %v6133_v57 = vsel %vm6132_vm9, %v6131_v45, %v6130_v39  ;;  %v3526_v12 = vmul.f32 %v9466_v20, %v9229_v9  ;;  %v3238_v43 = vadd.f32 %v3237_v26, %v9495_v48  ;;  %v6134_v33 = vrot.slane %v5999_v5, 3 }
 0x321   :  { %v5452_v53 = vadd.f32 %v5451_v11, %v5450_v4  ;;  %v2629_v11 = vrot.slane %v2628_v51, 1  ;;  %v2640_v37 = vmax.f32 %v2638_v24, %v2639_v44  ;;  %v2632_v42 = vrot.slane %v2631_v27, 4 }
 0x322   :  { %6832 = vset.pattern.permute.xlu0 %v11422_v63  ;;  %6831 = vset.pattern.permute.xlu1 %v11421_v17  ;;  %v2621_v40 = vmax.f32 %v2619_v16, %v2620_v22  ;;  %v6140_v58 = vrot.slane %v6001_v6, 1  ;;  %v6136_v31 = vsel %vm6135_vm10, %v6134_v33, %v6133_v57  ;;  %v3218_v20 = vrot.slane %v9481_v7, 2 }
 0x323   :  { %v5865_v36 = vmul.f32 %v9432_v30, %v5452_v53  ;;  %4470 = vperm.xlu0 %6832, %v4016_v2   ;;  %4174 = vperm.xlu1 %6831, %v4016_v2   ;;  %v3230_v53 = vrot.slane %v3229_v59, 4  ;;  %v3250_v48 = vsel %vm1811_vm2, %v9529_v60, 0.0  ;;  %v3226_v16 = vadd.f32 %v3225_v0, %v9416_v38 }
 0x324   :  { %v3239_v45 = vrot.slane %v3238_v43, 2  ;;  %v2641_v5 = vrot.slane %v2640_v37, 2  ;;  %v2633_v44 = vmax.f32 %v2631_v27, %v2632_v42  ;;  %7118 = vrcp.f32 %v9477_v3 }
 0x325   :  { %v5936_v4 = vadd.f32 %v9449_v18, %v5865_v36  ;;  %v9534_v1 = vpop.permute.xlu0 %4666  ;;  %v9536_v62 = vpop.permute.xlu1 %4922  ;;  %v2630_v36 = vmax.f32 %v2628_v51, %v2629_v11  ;;  %v3231_v38 = vadd.f32 %v3230_v53, %v3229_v59  ;;  %v3251_v0 = vrot.slane %v3250_v48, 4 }
 0x326   :  { %v2622_v51 = vrot.slane %v2621_v40, 1  ;;  %v3219_v27 = vadd.f32 %v3218_v20, %v9481_v7  ;;  %v2642_v33 = vmax.f32 %v2640_v37, %v2641_v5  ;;  %v2634_v42 = vrot.slane %v2633_v44, 2 }
 0x327   :  { %v6000_v55 = vmax.f32 %v5936_v4, 0.0  ;;  %6834 = vset.pattern.permute.xlu0 %v11432_v56  ;;  %6833 = vset.pattern.permute.xlu1 %v11426_v32  ;;  %v11504_v4 = vld [vmem:[#allocation7_spill] sm:$0xff]  ;;  %v2874_v11 = vsub.f32 %v9396_v10, %v2630_v36  ;;  %v3532_v59 = vmul.f32 %v9519_v19, %v9274_v61  ;;  %v3232_v7 = vrot.slane %v3231_v38, 2 }
 0x328   :  { %4982 = vperm.xlu0 %6834, %v4016_v2   ;;  %4726 = vperm.xlu1 %6833, %v4016_v2   ;;  %v11503_v2 = vld [vmem:[#allocation43_spill] sm:$0xff]  ;;  %v9565_v22 = vadd.f32 %v9454_v54, %v11504_v4  ;;  %v9572_v39 = vpop.eup %7116  ;;  %v3220_v10 = vrot.slane %v3219_v27, 1  ;;  %v2635_v36 = vmax.f32 %v2633_v44, %v2634_v42  ;;  %v11506_v42 = vld [vmem:[#allocation8_spill] sm:$0xff] }
 0x329   :  { %v6137_v34 = vrot.slane %v6000_v55, 2  ;;  %v4015_v24 = vmul.f32 %v11503_v2, %v3526_v12  ;;  %v3227_v55 = vrot.slane %v3226_v16, 1  ;;  %v3240_v12 = vadd.f32 %v3239_v45, %v3238_v43  ;;  %v11505_v61 = vld [vmem:[#allocation39_spill] sm:$0xff] }
 0x32a   :  { %v9548_v8 = vpop.permute.xlu0 %4422  ;;  %v9550_v9 = vpop.permute.xlu1 %4114  ;;  %v2652_v3 = vsel %vm1811_vm2, %v9565_v22, -inf  ;;  %v3243_v53 = vsel %vm1811_vm2, %v9572_v39, 0.0  ;;  %v2623_v43 = vmax.f32 %v2621_v40, %v2622_v51  ;;  %v2643_v45 = vrot.slane %v2642_v33, 1 }
 0x32b   :  { %v6139_v26 = vsel %vm6138_vm11, %v6137_v34, %v6136_v31  ;;  %v3252_v34 = vadd.f32 %v3251_v0, %v3250_v48  ;;  %v3228_v37 = vadd.f32 %v3227_v55, %v3226_v16  ;;  %v2653_v31 = vrot.slane %v2652_v3, 4 }
 0x32c   :  { %v6142_v28 = vsel %vm6141_vm12, %v6140_v58, %v6139_v26  ;;  %6835 = vset.pattern.permute.xlu0 %v11421_v17  ;;  %6836 = vset.pattern.permute.xlu1 %v11422_v63  ;;  %v3241_v58 = vrot.slane %v3240_v12, 1  ;;  %v3244_v2 = vrot.slane %v3243_v53, 4  ;;  %v4018_v19 = vmul.f32 %v11505_v61, %v3532_v59  ;;  %v7270_v61 = vld [vmem:[%s11378_s3 + $0x50] sm:$0xff] }
 0x32d   :  { %6249 = vst.msk [vmem:[%s11386_s11] sm:$0xff] %vm1161_vm0, %v6142_v28  ;;  %4169 = vperm.xlu0 %6835, %v4015_v24   ;;  %4466 = vperm.xlu1 %6836, %v4015_v24   ;;  %v3233_v28 = vadd.f32 %v3232_v7, %v3231_v38  ;;  %v3253_v5 = vrot.slane %v3252_v34, 2  ;;  %v2971_v48 = vmul.f32 1.442695, %v2874_v11  ;;  %v2873_v4 = vsub.f32 %v9458_v13, %v2623_v43 }
 0x32e   :  { %v3221_v40 = vadd.f32 %v3220_v10, %v3219_v27  ;;  %7120 = vrcp.f32 %v3228_v37  ;;  %v3242_v16 = vadd.f32 %v3241_v58, %v3240_v12  ;;  %v2654_v0 = vmax.f32 %v2652_v3, %v2653_v31  ;;  %v1032_v3 = vld [vmem:[%s11383_s2 + $0x50] sm:$0xff] }
 0x32f   :  { %v9575_v6 = vpop.permute.xlu0 %4934  ;;  %v9577_v57 = vpop.permute.xlu1 %4678  ;;  %v3245_v51 = vadd.f32 %v3244_v2, %v3243_v53  ;;  %v2644_v44 = vmax.f32 %v2642_v33, %v2643_v45  ;;  %v2636_v55 = vrot.slane %v2635_v36, 1  ;;  %v9594_v38 = vadd.f32 %v9454_v54, %v11506_v42  ;;  %v11507_v45 = vld [vmem:[#allocation45_spill] sm:$0xff] }
 0x330   :  { %v3234_v59 = vrot.slane %v3233_v28, 1  ;;  %v3254_v7 = vadd.f32 %v3253_v5, %v3252_v34  ;;  %7122 = vpow2.f32 %v2971_v48  ;;  %v2969_v43 = vmul.f32 1.442695, %v2873_v4  ;;  %v1030_v48 = vld [vmem:[%s11383_s2 + $0x40] sm:$0xff]  ;;  %v1033_v42 = vld [vmem:[%s11383_s2 + $0x58] sm:$0xff] }
 0x331   :  { %6837 = vset.pattern.permute.xlu0 %v11426_v32  ;;  %6838 = vset.pattern.permute.xlu1 %v11432_v56  ;;  %7124 = vrcp.f32 %v3221_v40  ;;  %v2655_v12 = vrot.slane %v2654_v0, 2  ;;  %v3246_v34 = vrot.slane %v3245_v51, 2  ;;  %v2876_v53 = vsub.f32 %v9505_v46, %v2644_v44  ;;  %v11508_v44 = vld [vmem:[#allocation9_spill] sm:$0xff] }
 0x332   :  { %4722 = vperm.xlu0 %6837, %v4015_v24   ;;  %4978 = vperm.xlu1 %6838, %v4015_v24   ;;  %v7119_v24 = vpop.eup %7118  ;;  %7126 = vrcp.f32 %v3242_v16  ;;  %v9604_v10 = vmax.f32 %v2635_v36, %v2636_v55  ;;  %v3235_v37 = vadd.f32 %v3234_v59, %v3233_v28  ;;  %v3255_v58 = vrot.slane %v3254_v7, 1 }
 0x333   :  { %v3530_v27 = vmul.f32 %v7119_v24, %v9314_v50  ;;  %v2645_v50 = vsel %vm1811_vm2, %v9594_v38, -inf  ;;  %7128 = vpow2.f32 %v2969_v43  ;;  %v5155_v31 = vsel %vm5145_vm3, %v9464_v52, %v9461_v29 }
 0x334   :  { %v4110_v20 = vpop.permute.xlu0 %4109  ;;  %v4419_v26 = vpop.permute.xlu1 %4418  ;;  %v5220_v46 = vsel %vm5210_vm4, %v5155_v31, %v9491_v49  ;;  %v2656_v5 = vmax.f32 %v2654_v0, %v2655_v12  ;;  %v2646_v29 = vrot.slane %v2645_v50, 4  ;;  %v5154_v52 = vsel %vm5145_vm3, %v9509_v21, %v9511_v35  ;;  %v7271_v21 = vld [vmem:[%s11378_s3 + $0x48] sm:$0xff] }
 0x335   :  { %v5156_v33 = vsel %vm5145_vm3, %v4110_v20, %v4419_v26  ;;  %v1031_v20 = vld [vmem:[%s11383_s2 + $0x48] sm:$0xff]  ;;  %v4017_v36 = vmul.f32 %v11507_v45, %v3530_v27  ;;  %v9630_v4 = vadd.f32 %v3246_v34, %v3245_v51  ;;  %v2975_v40 = vmul.f32 1.442695, %v2876_v53 }
 0x336   :  { %6840 = vset.pattern.permute.xlu0 %v11422_v63  ;;  %6839 = vset.pattern.permute.xlu1 %v11421_v17  ;;  %v2875_v24 = vsub.f32 %v9516_v25, %v9604_v10  ;;  %v1095_v35 = vadd.f32 %v7271_v21, %v1031_v20  ;;  %v3256_v0 = vadd.f32 %v3255_v58, %v3254_v7  ;;  %7130 = vrcp.f32 %v3235_v37  ;;  %v1035_v20 = vld [vmem:[%s11383_s2 + $0x68] sm:$0xff] }
 0x337   :  { %4478 = vperm.xlu0 %6840, %v4018_v19   ;;  %4184 = vperm.xlu1 %6839, %v4018_v19   ;;  %v9639_v55 = vadd.f32 %v9454_v54, %v11508_v44  ;;  %v5285_v51 = vsel %vm5275_vm5, %v5220_v46, %v9489_v15  ;;  %v5157_v25 = vsel %vm5145_vm3, %v9550_v9, %v9548_v8  ;;  %v2657_v8 = vrot.slane %v2656_v5, 1  ;;  %v7274_v21 = vld [vmem:[%s11378_s3 + $0x68] sm:$0xff] }
 0x338   :  { %v7121_v16 = vpop.eup %7120  ;;  %v5219_v59 = vsel %vm5210_vm4, %v5154_v52, %v9534_v1  ;;  %v5222_v7 = vsel %vm5210_vm4, %v5157_v25, %v9577_v57  ;;  %v2647_v9 = vmax.f32 %v2645_v50, %v2646_v29  ;;  %v5349_v1 = vmul.f32 %v5285_v51, %v1095_v35  ;;  %v7273_v57 = vld [vmem:[%s11378_s3 + $0x58] sm:$0xff] }
 0x339   :  { %v4675_v11 = vpop.permute.xlu0 %4674  ;;  %v4931_v13 = vpop.permute.xlu1 %4930  ;;  %v5284_v34 = vsel %vm5275_vm5, %v5219_v59, %v9536_v62  ;;  %v1097_v10 = vadd.f32 %v7273_v57, %v1033_v42  ;;  %v3536_v50 = vmul.f32 %v7121_v16, %v9357_v47  ;;  %v3248_v31 = vrot.slane %v9630_v4, 1  ;;  %v7275_v59 = vld [vmem:[%s11378_s3 + $0x60] sm:$0xff] }
 0x33a   :  { %v5221_v28 = vsel %vm5210_vm4, %v5156_v33, %v4675_v11  ;;  %v7272_v11 = vld [vmem:[%s11378_s3 + $0x40] sm:$0xff]  ;;  %v9656_v12 = vpop.eup %7122  ;;  %7132 = vpow2.f32 %v2975_v40  ;;  %v5287_v62 = vsel %vm5275_vm5, %v5222_v7, %v9575_v6  ;;  %v2658_v6 = vmax.f32 %v2656_v5, %v2657_v8 }
 0x33b   :  { %6842 = vset.pattern.permute.xlu0 %v11432_v56  ;;  %6841 = vset.pattern.permute.xlu1 %v11426_v32  ;;  %v5286_v49 = vsel %vm5275_vm5, %v5221_v28, %v4931_v13  ;;  %v1094_v13 = vadd.f32 %v7272_v11, %v1030_v48  ;;  %v11509_v33 = vld [vmem:[#allocation10_spill] sm:$0xff]  ;;  %v9664_v53 = vpop.eup %7124  ;;  %v3264_v47 = vsel %vm1811_vm2, %v9656_v12, 0.0  ;;  %v2973_v28 = vmul.f32 1.442695, %v2875_v24 }
 0x33c   :  { %4990 = vperm.xlu0 %6842, %v4018_v19   ;;  %4734 = vperm.xlu1 %6841, %v4018_v19   ;;  %v1096_v19 = vadd.f32 %v7270_v61, %v1032_v3  ;;  %v9660_v3 = vadd.f32 %v9454_v54, %v11509_v33  ;;  %v9672_v58 = vpop.eup %7126  ;;  %v2648_v29 = vrot.slane %v2647_v9, 2  ;;  %v5351_v48 = vmul.f32 %v5287_v62, %v1097_v10  ;;  %v1034_v5 = vld [vmem:[%s11383_s2 + $0x60] sm:$0xff] }
 0x33d   :  { %v5348_v46 = vmul.f32 %v5284_v34, %v1094_v13  ;;  %v1099_v35 = vadd.f32 %v7274_v21, %v1035_v20  ;;  %7134 = vrcp.f32 %v3256_v0  ;;  %v3265_v24 = vrot.slane %v3264_v47, 4  ;;  %v11512_v21 = vld [vmem:[#allocation47_spill] sm:$0xff] }
 0x33e   :  { %v4431_v26 = vpop.permute.xlu0 %4430  ;;  %v4125_v2 = vpop.permute.xlu1 %4124  ;;  %v5350_v15 = vmul.f32 %v5286_v49, %v1096_v19  ;;  %v11510_v49 = vld [vmem:[#allocation42_spill] sm:$0xff]  ;;  %v3249_v51 = vadd.f32 %v3248_v31, %v9630_v4  ;;  %7136 = vpow2.f32 %v2973_v28  ;;  %v2659_v0 = vsel %vm1811_vm2, %v9660_v3, -inf  ;;  %v11511_v28 = vld [vmem:[#allocation11_spill] sm:$0xff] }
 0x33f   :  { %v5159_v37 = vsel %vm5145_vm3, %v4125_v2, %v4431_v26  ;;  %v9685_v19 = vpop.eup %7128  ;;  %v2666_v26 = vsel %vm1811_vm2, %v9639_v55, -inf  ;;  %v4020_v40 = vmul.f32 %v11510_v49, %v3536_v50  ;;  %v5460_v42 = vsel %vm1161_vm0, %v5348_v46, 0.0 }
 0x340   :  { %6843 = vset.pattern.permute.xlu0 %v11421_v17  ;;  %6844 = vset.pattern.permute.xlu1 %v11422_v63  ;;  %v5474_v45 = vsel %vm1161_vm0, %v5350_v15, 0.0  ;;  %v2667_v25 = vrot.slane %v2666_v26, 4  ;;  %v1098_v7 = vadd.f32 %v7275_v59, %v1034_v5  ;;  %v2878_v15 = vsub.f32 %v9565_v22, %v2658_v6  ;;  %v9711_v50 = vpop.eup %7130  ;;  %v1037_v5 = vld [vmem:[%s11383_s2 + $0x78] sm:$0xff] }
 0x341   :  { %4179 = vperm.xlu0 %6843, %v4017_v36   ;;  %4474 = vperm.xlu1 %6844, %v4017_v36   ;;  %v5475_v16 = vrot.slane %v5474_v45, 4  ;;  %v2649_v4 = vmax.f32 %v2647_v9, %v2648_v29  ;;  %v3266_v34 = vadd.f32 %v3265_v24, %v3264_v47  ;;  %v2660_v62 = vrot.slane %v2659_v0, 4 }
 0x342   :  { %v2668_v31 = vmax.f32 %v2666_v26, %v2667_v25  ;;  %v3534_v22 = vmul.f32 %v9664_v53, %v9404_v41  ;;  %7138 = vrcp.f32 %v3249_v51  ;;  %v9722_v6 = vadd.f32 %v9454_v54, %v11511_v28 }
 0x343   :  { %v4943_v43 = vpop.permute.xlu0 %4942  ;;  %v4687_v27 = vpop.permute.xlu1 %4686  ;;  %v5476_v57 = vadd.f32 %v5475_v16, %v5474_v45  ;;  %v2979_v45 = vmul.f32 1.442695, %v2878_v15  ;;  %v3267_v53 = vrot.slane %v3266_v34, 2  ;;  %v2661_v49 = vmax.f32 %v2659_v0, %v2660_v62 }
 0x344   :  { %v5224_v61 = vsel %vm5210_vm4, %v5159_v37, %v4687_v27  ;;  %v9718_v37 = vpop.eup %7132  ;;  %v3257_v16 = vsel %vm1811_vm2, %v9685_v19, 0.0  ;;  %v3540_v28 = vmul.f32 %v9672_v58, %v9419_v14  ;;  %v11514_v14 = vld [vmem:[#allocation13_spill] sm:$0xff] }
 0x345   :  { %6845 = vset.pattern.permute.xlu0 %v11426_v32  ;;  %6846 = vset.pattern.permute.xlu1 %v11432_v56  ;;  %v5289_v44 = vsel %vm5275_vm5, %v5224_v61, %v4943_v43  ;;  %v5481_v43 = vsel %vm1161_vm0, %v5351_v48, 0.0  ;;  %v2650_v61 = vrot.slane %v2649_v4, 1  ;;  %v5477_v26 = vrot.slane %v5476_v57, 2 }
 0x346   :  { %4730 = vperm.xlu0 %6845, %v4017_v36   ;;  %4986 = vperm.xlu1 %6846, %v4017_v36   ;;  %v5467_v36 = vsel %vm1161_vm0, %v5349_v1, 0.0  ;;  %v5353_v27 = vmul.f32 %v5289_v44, %v1099_v35  ;;  %v5461_v1 = vrot.slane %v5460_v42, 4  ;;  %v5482_v47 = vrot.slane %v5481_v43, 4 }
 0x347   :  { %v5468_v13 = vrot.slane %v5467_v36, 4  ;;  %v4019_v35 = vmul.f32 %v11512_v21, %v3534_v22  ;;  %v9730_v24 = vpop.eup %7134  ;;  %7140 = vpow2.f32 %v2979_v45  ;;  %v9771_v58 = vadd.f32 %v9454_v54, %v11514_v14 }
 0x348   :  { %v4120_v2 = vpop.permute.xlu0 %4119  ;;  %v4427_v52 = vpop.permute.xlu1 %4426  ;;  %v5495_v41 = vsel %vm1161_vm0, %v5353_v27, 0.0  ;;  %v5462_v29 = vadd.f32 %v5461_v1, %v5460_v42  ;;  %v5483_v51 = vadd.f32 %v5482_v47, %v5481_v43  ;;  %v9736_v42 = vmax.f32 %v2649_v4, %v2650_v61  ;;  %v7276_v4 = vld [vmem:[%s11378_s3 + $0x78] sm:$0xff] }
 0x349   :  { %v5158_v11 = vsel %vm5145_vm3, %v4120_v2, %v4427_v52  ;;  %v5469_v20 = vadd.f32 %v5468_v13, %v5467_v36  ;;  %v2669_v36 = vrot.slane %v2668_v31, 2  ;;  %v5496_v25 = vrot.slane %v5495_v41, 4  ;;  %v9742_v59 = vpop.eup %7136 }
 0x34a   :  { %6848 = vset.pattern.permute.xlu0 %v11422_v63  ;;  %6847 = vset.pattern.permute.xlu1 %v11421_v17  ;;  %v5463_v15 = vrot.slane %v5462_v29, 2  ;;  %v5478_v43 = vadd.f32 %v5477_v26, %v5476_v57  ;;  %v1101_v27 = vadd.f32 %v7276_v4, %v1037_v5  ;;  %v5484_v47 = vrot.slane %v5483_v51, 2 }
 0x34b   :  { %4486 = vperm.xlu0 %6848, %v4020_v40   ;;  %4194 = vperm.xlu1 %6847, %v4020_v40   ;;  %v5470_v44 = vrot.slane %v5469_v20, 2  ;;  %v9753_v61 = vmax.f32 %v2668_v31, %v2669_v36  ;;  %v2662_v57 = vrot.slane %v2661_v49, 2 }
 0x34c   :  { %v5479_v26 = vrot.slane %v5478_v43, 1  ;;  %v5485_v21 = vadd.f32 %v5484_v47, %v5483_v51 }
 0x34d   :  { %v4683_v8 = vpop.permute.xlu0 %4682  ;;  %v4939_v33 = vpop.permute.xlu1 %4938 }
 0x34e   :  { %v5223_v10 = vsel %vm5210_vm4, %v5158_v11, %v4683_v8  ;;  %v11513_v11 = vld [vmem:[#allocation12_spill] sm:$0xff]  ;;  %v3268_v8 = vadd.f32 %v3267_v53, %v3266_v34  ;;  %v9760_v53 = vpop.eup %7138  ;;  %v5480_v4 = vadd.f32 %v5479_v26, %v5478_v43 }
 0x34f   :  { %6850 = vset.pattern.permute.xlu0 %v11432_v56  ;;  %v5288_v9 = vsel %vm5275_vm5, %v5223_v10, %v4939_v33  ;;  %6849 = vset.pattern.permute.xlu1 %v11426_v32  ;;  %v9740_v0 = vadd.f32 %v9454_v54, %v11513_v11  ;;  %v3258_v33 = vrot.slane %v3257_v16, 4  ;;  %v2671_v54 = vrot.slane %v9753_v61, 1  ;;  %v7277_v43 = vld [vmem:[%s11378_s3 + $0x70] sm:$0xff] }
 0x350   :  { %4998 = vperm.xlu0 %6850, %v4020_v40   ;;  %v5352_v46 = vmul.f32 %v5288_v9, %v1098_v7  ;;  %4742 = vperm.xlu1 %6849, %v4020_v40   ;;  %v9746_v7 = vsel %vm1811_vm2, %v9722_v6, -inf  ;;  %v5471_v9 = vadd.f32 %v5470_v44, %v5469_v20  ;;  %v2877_v20 = vsub.f32 %v9594_v38, %v9736_v42 }
 0x351   :  { %v3269_v44 = vrot.slane %v3268_v8, 1 }
 0x352   :  { %v4439_v2 = vpop.permute.xlu0 %4438  ;;  %v5488_v52 = vsel %vm1161_vm0, %v5352_v46, 0.0  ;;  %v4135_v48 = vpop.permute.xlu1 %4134  ;;  %v5497_v46 = vadd.f32 %v5496_v25, %v5495_v41  ;;  %v5464_v41 = vadd.f32 %v5463_v15, %v5462_v29  ;;  %v5472_v36 = vrot.slane %v5471_v9, 1  ;;  %v11515_v25 = vld [vmem:[#allocation44_spill] sm:$0xff] }
 0x353   :  { %v5489_v40 = vrot.slane %v5488_v52, 4  ;;  %v5161_v62 = vsel %vm5145_vm3, %v4135_v48, %v4439_v2  ;;  %v2681_v2 = vrot.slane %v9746_v7, 4  ;;  %v4022_v42 = vmul.f32 %v11515_v25, %v3540_v28  ;;  %v1036_v15 = vld [vmem:[%s11383_s2 + $0x70] sm:$0xff] }
 0x354   :  { %6851 = vset.pattern.permute.xlu0 %v11421_v17  ;;  %6852 = vset.pattern.permute.xlu1 %v11422_v63  ;;  %v5465_v51 = vrot.slane %v5464_v41, 1  ;;  %v1100_v47 = vadd.f32 %v7277_v43, %v1036_v15 }
 0x355   :  { %4189 = vperm.xlu0 %6851, %v4019_v35   ;;  %v5490_v13 = vadd.f32 %v5489_v40, %v5488_v52  ;;  %4482 = vperm.xlu1 %6852, %v4019_v35   ;;  %v9767_v52 = vsel %vm1811_vm2, %v9740_v0, -inf  ;;  %v5498_v40 = vrot.slane %v5497_v46, 2  ;;  %v2682_v28 = vmax.f32 %v9746_v7, %v2681_v2 }
 0x356   :  { %v5466_v14 = vadd.f32 %v5465_v51, %v5464_v41 }
 0x357   :  { %v5491_v1 = vrot.slane %v5490_v13, 2  ;;  %v4951_v10 = vpop.permute.xlu0 %4950  ;;  %v4695_v22 = vpop.permute.xlu1 %4694 }
 0x358   :  { %v5226_v45 = vsel %vm5210_vm4, %v5161_v62, %v4695_v22  ;;  %v5473_v62 = vadd.f32 %v5472_v36, %v5471_v9  ;;  %v5499_v22 = vadd.f32 %v5498_v40, %v5497_v46  ;;  %v3538_v9 = vmul.f32 %v9711_v50, %v9484_v23 }
 0x359   :  { %6853 = vset.pattern.permute.xlu0 %v11426_v32  ;;  %v5291_v34 = vsel %vm5275_vm5, %v5226_v45, %v4951_v10  ;;  %6854 = vset.pattern.permute.xlu1 %v11432_v56  ;;  %v5492_v48 = vadd.f32 %v5491_v1, %v5490_v13  ;;  %v9781_v13 = vmax.f32 %v2661_v49, %v2662_v57  ;;  %v5486_v49 = vrot.slane %v5485_v21, 1 }
 0x35a   :  { %4738 = vperm.xlu0 %6853, %v4019_v35   ;;  %v5355_v31 = vmul.f32 %v5291_v34, %v1101_v27  ;;  %4994 = vperm.xlu1 %6854, %v4019_v35   ;;  %v9774_v35 = vadd.f32 %v3258_v33, %v3257_v16  ;;  %v9785_v27 = vpop.eup %7140  ;;  %v3278_v16 = vsel %vm1811_vm2, %v9718_v37, 0.0  ;;  %v3270_v45 = vadd.f32 %v3269_v44, %v3268_v8 }
 0x35b   :  { %v5493_v33 = vrot.slane %v5492_v48, 1  ;;  %v2977_v57 = vmul.f32 1.442695, %v2877_v20  ;;  %v2674_v36 = vrot.slane %v9767_v52, 4  ;;  %v5868_v7 = vmul.f32 %v9432_v30, %v5473_v62 }
 0x35c   :  { %v4130_v38 = vpop.permute.xlu0 %4129  ;;  %v5509_v29 = vsel %vm1161_vm0, %v5355_v31, 0.0  ;;  %v4435_v5 = vpop.permute.xlu1 %4434  ;;  %v5487_v20 = vadd.f32 %v5486_v49, %v5485_v21  ;;  %v5500_v41 = vrot.slane %v5499_v22, 1  ;;  %v3260_v23 = vrot.slane %v9774_v35, 2 }
 0x35d   :  { %v5510_v11 = vrot.slane %v5509_v29, 4  ;;  %v5160_v10 = vsel %vm5145_vm3, %v4130_v38, %v4435_v5  ;;  %v5494_v40 = vadd.f32 %v5493_v33, %v5492_v48  ;;  %v3279_v50 = vrot.slane %v3278_v16, 4  ;;  %v11516_v33 = vld [vmem:[#allocation49_spill] sm:$0xff] }
 0x35e   :  { %6856 = vset.pattern.permute.xlu0 %v11422_v63  ;;  %6855 = vset.pattern.permute.xlu1 %v11421_v17  ;;  %v3271_v48 = vsel %vm1811_vm2, %v9742_v59, 0.0  ;;  %v2672_v5 = vmax.f32 %v9753_v61, %v2671_v54  ;;  %v2664_v44 = vrot.slane %v9781_v13, 1  ;;  %v5867_v25 = vmul.f32 %v9432_v30, %v5466_v14 }
 0x35f   :  { %4494 = vperm.xlu0 %6856, %v4022_v42   ;;  %v5511_v1 = vadd.f32 %v5510_v11, %v5509_v29  ;;  %4204 = vperm.xlu1 %6855, %v4022_v42   ;;  %v5869_v29 = vmul.f32 %v9432_v30, %v5480_v4  ;;  %v5871_v4 = vmul.f32 %v9432_v30, %v5494_v40  ;;  %v2683_v62 = vrot.slane %v2682_v28, 2 }
 0x360   :  { %v5939_v61 = vadd.f32 %v9449_v18, %v5868_v7  ;;  %v5870_v54 = vmul.f32 %v9432_v30, %v5487_v20  ;;  %v5501_v49 = vadd.f32 %v5500_v41, %v5499_v22  ;;  %v9822_v43 = vadd.f32 %v3260_v23, %v9774_v35 }
 0x361   :  { %v5512_v34 = vrot.slane %v5511_v1, 2  ;;  %v4691_v26 = vpop.permute.xlu0 %4690  ;;  %v4947_v31 = vpop.permute.xlu1 %4946  ;;  %7142 = vpow2.f32 %v2977_v57  ;;  %v5938_v14 = vadd.f32 %v9449_v18, %v5867_v25  ;;  %v2665_v22 = vmax.f32 %v9781_v13, %v2664_v44 }
 0x362   :  { %v5225_v46 = vsel %vm5210_vm4, %v5160_v10, %v4691_v26  ;;  %v3272_v26 = vrot.slane %v3271_v48, 4  ;;  %v2684_v57 = vmax.f32 %v2682_v28, %v2683_v62  ;;  %v5941_v7 = vadd.f32 %v9449_v18, %v5870_v54 }
 0x363   :  { %v5513_v38 = vadd.f32 %v5512_v34, %v5511_v1  ;;  %6858 = vset.pattern.permute.xlu0 %v11432_v56  ;;  %v5290_v8 = vsel %vm5275_vm5, %v5225_v46, %v4947_v31  ;;  %6857 = vset.pattern.permute.xlu1 %v11426_v32  ;;  %v4021_v1 = vmul.f32 %v11516_v33, %v3538_v9  ;;  %7144 = vrcp.f32 %v3270_v45 }
 0x364   :  { %5006 = vperm.xlu0 %6858, %v4022_v42   ;;  %v5354_v2 = vmul.f32 %v5290_v8, %v1100_v47  ;;  %4750 = vperm.xlu1 %6857, %v4022_v42   ;;  %v5940_v42 = vadd.f32 %v9449_v18, %v5869_v29  ;;  %v9824_v47 = vadd.f32 %v3279_v50, %v3278_v16  ;;  %v6003_v8 = vmax.f32 %v5939_v61, 0.0 }
 0x365   :  { %v5514_v11 = vrot.slane %v5513_v38, 1  ;;  %v2880_v31 = vsub.f32 %v9639_v55, %v2672_v5  ;;  %v5942_v46 = vadd.f32 %v9449_v18, %v5871_v4  ;;  %v5872_v20 = vmul.f32 %v9432_v30, %v5501_v49  ;;  %v11517_v4 = vld [vmem:[#allocation46_spill] sm:$0xff] }
 0x366   :  { %v9809_v15 = vpop.permute.xlu0 %4446  ;;  %v5502_v21 = vsel %vm1161_vm0, %v5354_v2, 0.0  ;;  %v9812_v51 = vpop.permute.xlu1 %4144  ;;  %v6004_v9 = vmax.f32 %v5940_v42, 0.0  ;;  %v2675_v55 = vmax.f32 %v9767_v52, %v2674_v36  ;;  %v3544_v13 = vmul.f32 %v9730_v24, %v9529_v60 }
 0x367   :  { %v5503_v10 = vrot.slane %v5502_v21, 4  ;;  %v5515_v29 = vadd.f32 %v5514_v11, %v5513_v38  ;;  %v3262_v41 = vrot.slane %v9822_v43, 1  ;;  %v3281_v28 = vrot.slane %v9824_v47, 2 }
 0x368   :  { %6859 = vset.pattern.permute.xlu0 %v11421_v17  ;;  %6860 = vset.pattern.permute.xlu1 %v11422_v63  ;;  %v6002_v2 = vmax.f32 %v5938_v14, 0.0  ;;  %v9844_v45 = vadd.f32 %v3272_v26, %v3271_v48  ;;  %v6145_v52 = vrot.slane %v6004_v9, 6  ;;  %v6006_v36 = vmax.f32 %v5942_v46, 0.0 }
 0x369   :  { %4199 = vperm.xlu0 %6859, %v4021_v1   ;;  %v5504_v34 = vadd.f32 %v5503_v10, %v5502_v21  ;;  %4490 = vperm.xlu1 %6860, %v4021_v1   ;;  %v5874_v23 = vmul.f32 %v9432_v30, %v5515_v29  ;;  %v2685_v5 = vrot.slane %v2684_v57, 1  ;;  %v6143_v44 = vrot.slane %v6003_v8, 7 }
 0x36a   :  { %v6005_v25 = vmax.f32 %v5941_v7, 0.0  ;;  %v5943_v60 = vadd.f32 %v9449_v18, %v5872_v20  ;;  %v3292_v21 = vsel %vm1811_vm2, %v9785_v27, 0.0  ;;  %v2983_v30 = vmul.f32 1.442695, %v2880_v31 }
 0x36b   :  { %v5505_v40 = vrot.slane %v5504_v34, 2  ;;  %v9830_v35 = vpop.permute.xlu0 %4958  ;;  %v9832_v16 = vpop.permute.xlu1 %4702  ;;  %v4024_v48 = vmul.f32 %v11517_v4, %v3544_v13  ;;  %v2879_v33 = vsub.f32 %v9660_v3, %v2665_v22  ;;  %v6144_v10 = vsel %vm6123_vm6, %v6143_v44, %v6002_v2  ;;  %v9867_v3 = vld [vmem:[%s11384_s9] ss:$0 sm:$0xff] }
 0x36c   :  { %v5945_v62 = vadd.f32 %v9449_v18, %v5874_v23  ;;  %v9861_v61 = vpop.eup %7142  ;;  %v2676_v54 = vrot.slane %v2675_v55, 2  ;;  %v6146_v49 = vsel %vm6126_vm7, %v6145_v52, %v6144_v10  ;;  %v3293_v31 = vrot.slane %v3292_v21, 4 }
 0x36d   :  { %v5506_v38 = vadd.f32 %v5505_v40, %v5504_v34  ;;  %6861 = vset.pattern.permute.xlu0 %v11426_v32  ;;  %6862 = vset.pattern.permute.xlu1 %v11432_v56  ;;  %v6149_v34 = vrot.slane %v6006_v36, 4  ;;  %v2686_v14 = vmax.f32 %v2684_v57, %v2685_v5  ;;  %v6147_v29 = vrot.slane %v6005_v25, 5  ;;  %v7145_v57 = vpop.eup %7144  ;;  %v11518_v5 = vld [vmem:[#allocation14_spill] sm:$0xff] }
 0x36e   :  { %4746 = vperm.xlu0 %6861, %v4021_v1   ;;  %5002 = vperm.xlu1 %6862, %v4021_v1   ;;  %v2694_v1 = vsel %vm1811_vm2, %v9771_v58, -inf  ;;  %v6007_v22 = vmax.f32 %v5943_v60, 0.0  ;;  %v3263_v9 = vadd.f32 %v3262_v41, %v9822_v43  ;;  %7146 = vpow2.f32 %v2983_v30 }
 0x36f   :  { %v5507_v50 = vrot.slane %v5506_v38, 1  ;;  %v2695_v46 = vrot.slane %v2694_v1, 4  ;;  %v3285_v20 = vsel %vm1811_vm2, %v9861_v61, 0.0  ;;  %v6148_v13 = vsel %vm6129_vm8, %v6147_v29, %v6146_v49 }
 0x370   :  { %v9847_v24 = vpop.permute.xlu0 %4139  ;;  %v9849_v11 = vpop.permute.xlu1 %4442  ;;  %v6009_v2 = vmax.f32 %v5945_v62, 0.0  ;;  %v2677_v23 = vmax.f32 %v2675_v55, %v2676_v54  ;;  %v6150_v52 = vsel %vm6132_vm9, %v6149_v34, %v6148_v13  ;;  %v3294_v41 = vadd.f32 %v3293_v31, %v3292_v21  ;;  %v11520_v62 = vld [vmem:[#allocation51_spill] sm:$0xff] }
 0x371   :  { %v5508_v42 = vadd.f32 %v5507_v50, %v5506_v38  ;;  %v2981_v38 = vmul.f32 1.442695, %v2879_v33  ;;  %v2882_v36 = vsub.f32 %v9722_v6, %v2686_v14  ;;  %v9888_v50 = vld [vmem:[%s11382_s8] ss:$0 sm:$0xff]  ;;  %v6151_v44 = vrot.slane %v6007_v22, 3 }
 0x372   :  { %6864 = vset.pattern.permute.xlu0 %v11422_v63  ;;  %6863 = vset.pattern.permute.xlu1 %v11421_v17  ;;  %v9892_v55 = vadd.f32 %v9888_v50, %v11518_v5  ;;  %v3286_v25 = vrot.slane %v3285_v20, 4  ;;  %v2696_v60 = vmax.f32 %v2694_v1, %v2695_v46  ;;  %v3274_v6 = vrot.slane %v9844_v45, 2 }
 0x373   :  { %v5873_v26 = vmul.f32 %v9867_v3, %v5508_v42  ;;  %4502 = vperm.xlu0 %6864, %v4024_v48   ;;  %4214 = vperm.xlu1 %6863, %v4024_v48   ;;  %7148 = vpow2.f32 %v2981_v38  ;;  %v6155_v30 = vrot.slane %v6009_v2, 1  ;;  %v6152_v42 = vsel %vm6135_vm10, %v6151_v44, %v6150_v52 }
 0x374   :  { %v2678_v10 = vrot.slane %v2677_v23, 1  ;;  %v3282_v54 = vadd.f32 %v3281_v28, %v9824_v47  ;;  %v3295_v49 = vrot.slane %v3294_v41, 2  ;;  %v2987_v34 = vmul.f32 1.442695, %v2882_v36 }
 0x375   :  { %v5944_v40 = vadd.f32 %v9449_v18, %v5873_v26  ;;  %v9872_v8 = vpop.permute.xlu0 %4698  ;;  %v9874_v7 = vpop.permute.xlu1 %4954  ;;  %v3542_v18 = vmul.f32 %v9760_v53, %v9572_v39  ;;  %v11519_v39 = vld [vmem:[#allocation15_spill] sm:$0xff]  ;;  %v3287_v31 = vadd.f32 %v3286_v25, %v3285_v20  ;;  %v2697_v14 = vrot.slane %v2696_v60, 2 }
 0x376   :  { %v9896_v53 = vadd.f32 %v9888_v50, %v11519_v39  ;;  %v2687_v29 = vsel %vm1811_vm2, %v9892_v55, -inf  ;;  %7150 = vrcp.f32 %v3263_v9  ;;  %v3275_v47 = vadd.f32 %v3274_v6, %v9844_v45 }
 0x377   :  { %v6008_v43 = vmax.f32 %v5944_v40, 0.0  ;;  %6866 = vset.pattern.permute.xlu0 %v11432_v56  ;;  %6865 = vset.pattern.permute.xlu1 %v11426_v32  ;;  %v4023_v1 = vmul.f32 %v11520_v62, %v3542_v18  ;;  %v2679_v46 = vmax.f32 %v2677_v23, %v2678_v10  ;;  %v3283_v38 = vrot.slane %v3282_v54, 1 }
 0x378   :  { %5014 = vperm.xlu0 %6866, %v4024_v48   ;;  %4758 = vperm.xlu1 %6865, %v4024_v48   ;;  %v2708_v22 = vsel %vm1811_vm2, %v9896_v53, -inf  ;;  %v9921_v28 = vpop.eup %7146  ;;  %v3296_v13 = vadd.f32 %v3295_v49, %v3294_v41  ;;  %v2688_v2 = vrot.slane %v2687_v29, 4  ;;  %7152 = vpow2.f32 %v2987_v34 }
 0x379   :  { %v6153_v21 = vrot.slane %v6008_v43, 2  ;;  %v2709_v52 = vrot.slane %v2708_v22, 4  ;;  %v3288_v43 = vrot.slane %v3287_v31, 2  ;;  %v2698_v18 = vmax.f32 %v2696_v60, %v2697_v14 }
 0x37a   :  { %v9900_v4 = vpop.permute.xlu0 %4454  ;;  %v9902_v33 = vpop.permute.xlu1 %4154  ;;  %v3548_v9 = vmul.f32 %v7145_v57, %v9656_v12  ;;  %v3276_v45 = vrot.slane %v3275_v47, 1  ;;  %v3306_v23 = vsel %vm1811_vm2, %v9921_v28, 0.0  ;;  %v2881_v36 = vsub.f32 %v9740_v0, %v2679_v46  ;;  %v11521_v57 = vld [vmem:[#allocation48_spill] sm:$0xff] }
 0x37b   :  { %v6154_v48 = vsel %vm6138_vm11, %v6153_v21, %v6152_v42  ;;  %v3284_v5 = vadd.f32 %v3283_v38, %v3282_v54  ;;  %v3297_v44 = vrot.slane %v3296_v13, 1  ;;  %v2689_v25 = vmax.f32 %v2687_v29, %v2688_v2 }
 0x37c   :  { %v6156_v26 = vsel %vm6141_vm12, %v6155_v30, %v6154_v48  ;;  %6867 = vset.pattern.permute.xlu0 %v11421_v17  ;;  %6868 = vset.pattern.permute.xlu1 %v11422_v63  ;;  %v2710_v60 = vmax.f32 %v2708_v22, %v2709_v52  ;;  %v3289_v6 = vadd.f32 %v3288_v43, %v3287_v31  ;;  %v2699_v12 = vrot.slane %v2698_v18, 1  ;;  %v11522_v48 = vld [vmem:[#allocation16_spill] sm:$0xff] }
 0x37d   :  { %6250 = vst.msk [vmem:[%s11386_s11 + $0x8] sm:$0xff] %vm1161_vm0, %v6156_v26  ;;  %4209 = vperm.xlu0 %6867, %v4023_v1   ;;  %4498 = vperm.xlu1 %6868, %v4023_v1   ;;  %v9933_v41 = vpop.eup %7148  ;;  %v4026_v30 = vmul.f32 %v11521_v57, %v3548_v9  ;;  %v3277_v42 = vadd.f32 %v3276_v45, %v3275_v47  ;;  %v3307_v10 = vrot.slane %v3306_v23, 4  ;;  %7154 = vrcp.f32 %v3284_v5  ;;  %v1040_v9 = vld [vmem:[%s11383_s2 + $0x90] sm:$0xff]  ;;  %v11523_v5 = vld [vmem:[#allocation17_spill] sm:$0xff] }
 0x37e   :  { %v9938_v62 = vadd.f32 %v9888_v50, %v11522_v48  ;;  %v3299_v0 = vsel %vm1811_vm2, %v9933_v41, 0.0  ;;  %v3298_v49 = vadd.f32 %v3297_v44, %v3296_v13  ;;  %v2690_v34 = vrot.slane %v2689_v25, 2  ;;  %v11524_v57 = vld [vmem:[#allocation53_spill] sm:$0xff] }
 0x37f   :  { %v9923_v40 = vpop.permute.xlu0 %4966  ;;  %v9925_v20 = vpop.permute.xlu1 %4710  ;;  %v2711_v26 = vrot.slane %v2710_v60, 2  ;;  %v3290_v31 = vrot.slane %v3289_v6, 1  ;;  %v2700_v14 = vmax.f32 %v2698_v18, %v2699_v12  ;;  %7156 = vrcp.f32 %v3277_v42  ;;  %v7280_v42 = vld [vmem:[%s11378_s3 + $0x90] sm:$0xff] }
 0x380   :  { %v7151_v54 = vpop.eup %7150  ;;  %v3308_v47 = vadd.f32 %v3307_v10, %v3306_v23  ;;  %v3300_v46 = vrot.slane %v3299_v0, 4  ;;  %v2701_v38 = vsel %vm1811_vm2, %v9938_v62, -inf  ;;  %v2691_v13 = vmax.f32 %v2689_v25, %v2690_v34  ;;  %v7281_v34 = vld [vmem:[%s11378_s3 + $0x88] sm:$0xff] }
 0x381   :  { %6869 = vset.pattern.permute.xlu0 %v11426_v32  ;;  %6870 = vset.pattern.permute.xlu1 %v11432_v56  ;;  %v3546_v52 = vmul.f32 %v7151_v54, %v9685_v19  ;;  %v2712_v43 = vmax.f32 %v2710_v60, %v2711_v26  ;;  %v3291_v45 = vadd.f32 %v3290_v31, %v3289_v6 }
 0x382   :  { %4754 = vperm.xlu0 %6869, %v4023_v1   ;;  %5010 = vperm.xlu1 %6870, %v4023_v1   ;;  %v2985_v1 = vmul.f32 1.442695, %v2881_v36  ;;  %v9946_v2 = vpop.eup %7152  ;;  %v2884_v23 = vsub.f32 %v9771_v58, %v2700_v14  ;;  %v2702_v36 = vrot.slane %v2701_v38, 4  ;;  %v9958_v19 = vadd.f32 %v9888_v50, %v11523_v5 }
 0x383   :  { %v3309_v44 = vrot.slane %v3308_v47, 2  ;;  %v9960_v12 = vadd.f32 %v3300_v46, %v3299_v0  ;;  %v3320_v25 = vsel %vm1811_vm2, %v9946_v2, 0.0  ;;  %v5163_v60 = vsel %vm5145_vm3, %v9812_v51, %v9809_v15  ;;  %v7282_v46 = vld [vmem:[%s11378_s3 + $0x80] sm:$0xff] }
 0x384   :  { %v4150_v39 = vpop.permute.xlu0 %4149  ;;  %v4451_v21 = vpop.permute.xlu1 %4450  ;;  %7158 = vpow2.f32 %v2985_v1  ;;  %v5228_v6 = vsel %vm5210_vm4, %v5163_v60, %v9832_v16  ;;  %v1104_v10 = vadd.f32 %v7280_v42, %v1040_v9  ;;  %v2692_v0 = vrot.slane %v2691_v13, 1  ;;  %v1038_v1 = vld [vmem:[%s11383_s2 + $0x80] sm:$0xff] }
 0x385   :  { %7160 = vrcp.f32 %v3298_v49  ;;  %v5164_v18 = vsel %vm5145_vm3, %v4150_v39, %v4451_v21  ;;  %v1039_v39 = vld [vmem:[%s11383_s2 + $0x88] sm:$0xff]  ;;  %v2713_v15 = vrot.slane %v2712_v43, 1  ;;  %v5162_v51 = vsel %vm5145_vm3, %v9847_v24, %v9849_v11 }
 0x386   :  { %6872 = vset.pattern.permute.xlu0 %v11422_v63  ;;  %6871 = vset.pattern.permute.xlu1 %v11421_v17  ;;  %7162 = vrcp.f32 %v3291_v45  ;;  %v2991_v54 = vmul.f32 1.442695, %v2884_v23  ;;  %v2703_v49 = vmax.f32 %v2701_v38, %v2702_v36  ;;  %v1103_v26 = vadd.f32 %v7281_v34, %v1039_v39 }
 0x387   :  { %4510 = vperm.xlu0 %6872, %v4026_v30   ;;  %4224 = vperm.xlu1 %6871, %v4026_v30   ;;  %v7155_v24 = vpop.eup %7154  ;;  %v3310_v11 = vadd.f32 %v3309_v44, %v3308_v47  ;;  %v3321_v31 = vrot.slane %v3320_v25, 4  ;;  %v5293_v14 = vsel %vm5275_vm5, %v5228_v6, %v9830_v35  ;;  %v1102_v38 = vadd.f32 %v7282_v46, %v1038_v1  ;;  %v11525_v1 = vld [vmem:[#allocation50_spill] sm:$0xff] }
 0x388   :  { %v5227_v47 = vsel %vm5210_vm4, %v5162_v51, %v9872_v8  ;;  %v10007_v23 = vmax.f32 %v2712_v43, %v2713_v15  ;;  %7164 = vpow2.f32 %v2991_v54  ;;  %v5357_v8 = vmul.f32 %v5293_v14, %v1103_v26  ;;  %v7284_v54 = vld [vmem:[%s11378_s3 + $0xa8] sm:$0xff] }
 0x389   :  { %v4707_v29 = vpop.permute.xlu0 %4706  ;;  %v4963_v22 = vpop.permute.xlu1 %4962  ;;  %v5292_v36 = vsel %vm5275_vm5, %v5227_v47, %v9874_v7  ;;  %v3552_v60 = vmul.f32 %v7155_v24, %v9718_v37  ;;  %v3311_v43 = vrot.slane %v3310_v11, 1  ;;  %v2704_v39 = vrot.slane %v2703_v49, 2 }
 0x38a   :  { %v5229_v48 = vsel %vm5210_vm4, %v5164_v18, %v4707_v29  ;;  %v5165_v29 = vsel %vm5145_vm3, %v9902_v33, %v9900_v4  ;;  %v10004_v45 = vpop.eup %7156  ;;  %v3302_v4 = vrot.slane %v9960_v12, 2  ;;  %v2693_v33 = vmax.f32 %v2691_v13, %v2692_v0 }
 0x38b   :  { %6874 = vset.pattern.permute.xlu0 %v11432_v56  ;;  %6873 = vset.pattern.permute.xlu1 %v11426_v32  ;;  %v5294_v16 = vsel %vm5275_vm5, %v5229_v48, %v4963_v22  ;;  %v1041_v22 = vld [vmem:[%s11383_s2 + $0x98] sm:$0xff]  ;;  %v3322_v42 = vadd.f32 %v3321_v31, %v3320_v25  ;;  %v2705_v34 = vmax.f32 %v2703_v49, %v2704_v39 }
 0x38c   :  { %5022 = vperm.xlu0 %6874, %v4026_v30   ;;  %4766 = vperm.xlu1 %6873, %v4026_v30   ;;  %v4025_v30 = vmul.f32 %v11524_v57, %v3546_v52  ;;  %v5230_v52 = vsel %vm5210_vm4, %v5165_v29, %v9925_v20  ;;  %v5358_v35 = vmul.f32 %v5294_v16, %v1104_v10  ;;  %v7283_v20 = vld [vmem:[%s11378_s3 + $0x98] sm:$0xff]  ;;  %v1043_v57 = vld [vmem:[%s11383_s2 + $0xa8] sm:$0xff] }
 0x38d   :  { %v1105_v44 = vadd.f32 %v7283_v20, %v1041_v22  ;;  %v5295_v7 = vsel %vm5275_vm5, %v5230_v52, %v9923_v40  ;;  %v5356_v10 = vmul.f32 %v5292_v36, %v1102_v38  ;;  %v3303_v0 = vadd.f32 %v3302_v4, %v9960_v12  ;;  %v7285_v52 = vld [vmem:[%s11378_s3 + $0xa0] sm:$0xff] }
 0x38e   :  { %v4463_v58 = vpop.permute.xlu0 %4462  ;;  %v4165_v21 = vpop.permute.xlu1 %4164  ;;  %v5530_v37 = vsel %vm1161_vm0, %v5358_v35, 0.0  ;;  %v2883_v15 = vsub.f32 %v9892_v55, %v2693_v33  ;;  %v2886_v40 = vsub.f32 %v9896_v53, %v10007_v23  ;;  %v4028_v16 = vmul.f32 %v11525_v1, %v3552_v60  ;;  %v1042_v55 = vld [vmem:[%s11383_s2 + $0xa0] sm:$0xff] }
 0x38f   :  { %v10011_v5 = vpop.eup %7158  ;;  %v5167_v6 = vsel %vm5145_vm3, %v4165_v21, %v4463_v58  ;;  %v2722_v58 = vsel %vm1811_vm2, %v9958_v19, -inf  ;;  %v5359_v25 = vmul.f32 %v5295_v7, %v1105_v44  ;;  %v1107_v12 = vadd.f32 %v7284_v54, %v1043_v57 }
 0x390   :  { %6875 = vset.pattern.permute.xlu0 %v11421_v17  ;;  %6876 = vset.pattern.permute.xlu1 %v11422_v63  ;;  %v10019_v13 = vpop.eup %7160  ;;  %v3313_v53 = vsel %vm1811_vm2, %v10011_v5, 0.0  ;;  %v5531_v26 = vrot.slane %v5530_v37, 4  ;;  %v3323_v14 = vrot.slane %v3322_v42, 2  ;;  %v2723_v29 = vrot.slane %v2722_v58, 4 }
 0x391   :  { %4219 = vperm.xlu0 %6875, %v4025_v30   ;;  %4506 = vperm.xlu1 %6876, %v4025_v30   ;;  %v10048_v31 = vpop.eup %7162  ;;  %v5516_v22 = vsel %vm1161_vm0, %v5356_v10, 0.0  ;;  %v3312_v38 = vadd.f32 %v3311_v43, %v3310_v11  ;;  %v3304_v47 = vrot.slane %v3303_v0, 1  ;;  %v1106_v35 = vadd.f32 %v7285_v52, %v1042_v55  ;;  %v11527_v55 = vld [vmem:[#allocation55_spill] sm:$0xff] }
 0x392   :  { %v5537_v4 = vsel %vm1161_vm0, %v5359_v25, 0.0  ;;  %v5517_v20 = vrot.slane %v5516_v22, 4  ;;  %v5532_v44 = vadd.f32 %v5531_v26, %v5530_v37  ;;  %v10057_v11 = vpop.eup %7164  ;;  %v3324_v43 = vadd.f32 %v3323_v14, %v3322_v42 }
 0x393   :  { %v4975_v18 = vpop.permute.xlu0 %4974  ;;  %v4719_v9 = vpop.permute.xlu1 %4718  ;;  %v2995_v39 = vmul.f32 1.442695, %v2886_v40  ;;  %v3550_v7 = vmul.f32 %v10004_v45, %v9742_v59  ;;  %7166 = vrcp.f32 %v3312_v38  ;;  %v5538_v10 = vrot.slane %v5537_v4, 4 }
 0x394   :  { %v5232_v48 = vsel %vm5210_vm4, %v5167_v6, %v4719_v9  ;;  %v2989_v9 = vmul.f32 1.442695, %v2883_v15  ;;  %v5533_v25 = vrot.slane %v5532_v44, 2  ;;  %v3325_v54 = vrot.slane %v3324_v43, 1 }
 0x395   :  { %6877 = vset.pattern.permute.xlu0 %v11426_v32  ;;  %6878 = vset.pattern.permute.xlu1 %v11432_v56  ;;  %v5297_v24 = vsel %vm5275_vm5, %v5232_v48, %v4975_v18  ;;  %v3314_v18 = vrot.slane %v3313_v53, 4  ;;  %v3305_v48 = vadd.f32 %v3304_v47, %v3303_v0  ;;  %v4027_v26 = vmul.f32 %v11527_v55, %v3550_v7  ;;  %v1045_v0 = vld [vmem:[%s11383_s2 + $0xb8] sm:$0xff] }
 0x396   :  { %4762 = vperm.xlu0 %6877, %v4025_v30   ;;  %5018 = vperm.xlu1 %6878, %v4025_v30   ;;  %v5523_v30 = vsel %vm1161_vm0, %v5357_v8, 0.0  ;;  %v5361_v33 = vmul.f32 %v5297_v24, %v1107_v12  ;;  %v2706_v8 = vrot.slane %v2705_v34, 1  ;;  %v11526_v12 = vld [vmem:[#allocation18_spill] sm:$0xff]  ;;  %7168 = vpow2.f32 %v2989_v9  ;;  %v7286_v47 = vld [vmem:[%s11378_s3 + $0xb8] sm:$0xff] }
 0x397   :  { %v5524_v49 = vrot.slane %v5523_v30, 4  ;;  %v3315_v15 = vadd.f32 %v3314_v18, %v3313_v53  ;;  %v5539_v53 = vadd.f32 %v5538_v10, %v5537_v4  ;;  %7170 = vrcp.f32 %v3305_v48  ;;  %v11528_v48 = vld [vmem:[#allocation19_spill] sm:$0xff] }
 0x398   :  { %v4160_v21 = vpop.permute.xlu0 %4159  ;;  %v4459_v51 = vpop.permute.xlu1 %4458  ;;  %v5551_v42 = vsel %vm1161_vm0, %v5361_v33, 0.0  ;;  %v2707_v40 = vmax.f32 %v2705_v34, %v2706_v8  ;;  %v5534_v38 = vadd.f32 %v5533_v25, %v5532_v44  ;;  %v10080_v52 = vadd.f32 %v3325_v54, %v3324_v43 }
 0x399   :  { %v5166_v46 = vsel %vm5145_vm3, %v4160_v21, %v4459_v51  ;;  %v5525_v57 = vadd.f32 %v5524_v49, %v5523_v30  ;;  %v2724_v21 = vmax.f32 %v2722_v58, %v2723_v29  ;;  %v5518_v51 = vadd.f32 %v5517_v20, %v5516_v22 }
 0x39a   :  { %6880 = vset.pattern.permute.xlu0 %v11422_v63  ;;  %6879 = vset.pattern.permute.xlu1 %v11421_v17  ;;  %v10068_v30 = vadd.f32 %v9888_v50, %v11526_v12  ;;  %v5552_v34 = vrot.slane %v5551_v42, 4  ;;  %v3316_v24 = vrot.slane %v3315_v15, 2  ;;  %v2885_v22 = vsub.f32 %v9938_v62, %v2707_v40 }
 0x39b   :  { %4518 = vperm.xlu0 %6880, %v4028_v16   ;;  %4234 = vperm.xlu1 %6879, %v4028_v16   ;;  %v5526_v58 = vrot.slane %v5525_v57, 2  ;;  %v2725_v14 = vrot.slane %v2724_v21, 2  ;;  %v1109_v49 = vadd.f32 %v7286_v47, %v1045_v0  ;;  %7172 = vpow2.f32 %v2995_v39 }
 0x39c   :  { %v5553_v62 = vadd.f32 %v5552_v34, %v5551_v42  ;;  %v3556_v44 = vmul.f32 %v10019_v13, %v9785_v27  ;;  %v10093_v39 = vmul.f32 1.442695, %v2885_v22  ;;  %v3334_v0 = vsel %vm1811_vm2, %v10057_v11, 0.0 }
 0x39d   :  { %v4715_v23 = vpop.permute.xlu0 %4714  ;;  %v4971_v36 = vpop.permute.xlu1 %4970  ;;  %v2726_v20 = vmax.f32 %v2724_v21, %v2725_v14  ;;  %v10097_v21 = vadd.f32 %v9888_v50, %v11528_v48  ;;  %7174 = vrcp.f32 %v10080_v52 }
 0x39e   :  { %v5231_v60 = vsel %vm5210_vm4, %v5166_v46, %v4715_v23  ;;  %v5519_v46 = vrot.slane %v5518_v51, 2  ;;  %v5527_v23 = vadd.f32 %v5526_v58, %v5525_v57  ;;  %v10091_v43 = vpop.eup %7166  ;;  %v5535_v57 = vrot.slane %v5534_v38, 1 }
 0x39f   :  { %6882 = vset.pattern.permute.xlu0 %v11432_v56  ;;  %v5296_v6 = vsel %vm5275_vm5, %v5231_v60, %v4971_v36  ;;  %6881 = vset.pattern.permute.xlu1 %v11426_v32  ;;  %v5540_v36 = vrot.slane %v5539_v53, 2  ;;  %v5554_v40 = vrot.slane %v5553_v62, 2  ;;  %7176 = vpow2.f32 %v10093_v39 }
 0x3a0   :  { %5030 = vperm.xlu0 %6882, %v4028_v16   ;;  %v5360_v37 = vmul.f32 %v5296_v6, %v1106_v35  ;;  %4774 = vperm.xlu1 %6881, %v4028_v16   ;;  %v2715_v35 = vsel %vm1811_vm2, %v10068_v30, -inf  ;;  %v5520_v6 = vadd.f32 %v5519_v46, %v5518_v51  ;;  %v5528_v13 = vrot.slane %v5527_v23, 1 }
 0x3a1   :  { %v2716_v7 = vrot.slane %v2715_v35, 4  ;;  %v5541_v42 = vadd.f32 %v5540_v36, %v5539_v53  ;;  %v2727_v51 = vrot.slane %v2726_v20, 1  ;;  %v5536_v34 = vadd.f32 %v5535_v57, %v5534_v38  ;;  %v7287_v38 = vld [vmem:[%s11378_s3 + $0xb0] sm:$0xff] }
 0x3a2   :  { %v4471_v1 = vpop.permute.xlu0 %4470  ;;  %v5544_v59 = vsel %vm1161_vm0, %v5360_v37, 0.0  ;;  %v4175_v45 = vpop.permute.xlu1 %4174  ;;  %v3317_v37 = vadd.f32 %v3316_v24, %v3315_v15  ;;  %v11530_v15 = vld [vmem:[#allocation52_spill] sm:$0xff]  ;;  %v5521_v53 = vrot.slane %v5520_v6, 1  ;;  %v5529_v47 = vadd.f32 %v5528_v13, %v5527_v23 }
 0x3a3   :  { %v5545_v16 = vrot.slane %v5544_v59, 4  ;;  %v5169_v4 = vsel %vm5145_vm3, %v4175_v45, %v4471_v1  ;;  %v11529_v45 = vld [vmem:[#allocation20_spill] sm:$0xff]  ;;  %v4030_v12 = vmul.f32 %v11530_v15, %v3556_v44  ;;  %v10112_v58 = vmax.f32 %v2715_v35, %v2716_v7 }
 0x3a4   :  { %6883 = vset.pattern.permute.xlu0 %v11421_v17  ;;  %6884 = vset.pattern.permute.xlu1 %v11422_v63  ;;  %v10102_v54 = vadd.f32 %v9888_v50, %v11529_v45  ;;  %v3318_v14 = vrot.slane %v3317_v37, 1  ;;  %v5877_v7 = vmul.f32 %v9867_v3, %v5536_v34  ;;  %v3554_v23 = vmul.f32 %v10048_v31, %v9861_v61 }
 0x3a5   :  { %4229 = vperm.xlu0 %6883, %v4027_v26   ;;  %v5546_v29 = vadd.f32 %v5545_v16, %v5544_v59  ;;  %4514 = vperm.xlu1 %6884, %v4027_v26   ;;  %v10108_v16 = vpop.eup %7168 }
 0x3a6   :  { %v10116_v24 = vpop.eup %7170  ;;  %v10137_v31 = vadd.f32 %v3318_v14, %v3317_v37  ;;  %v10153_v37 = vld [vmem:[%s11385_s10] ss:$0 sm:$0xff] }
 0x3a7   :  { %v5547_v18 = vrot.slane %v5546_v29, 2  ;;  %v4983_v9 = vpop.permute.xlu0 %4982  ;;  %v4727_v33 = vpop.permute.xlu1 %4726 }
 0x3a8   :  { %v5234_v8 = vsel %vm5210_vm4, %v5169_v4, %v4727_v33  ;;  %v10122_v4 = vmax.f32 %v2726_v20, %v2727_v51  ;;  %v2736_v33 = vsel %vm1811_vm2, %v10097_v21, -inf  ;;  %v10130_v57 = vpop.eup %7172 }
 0x3a9   :  { %6885 = vset.pattern.permute.xlu0 %v11426_v32  ;;  %v5299_v60 = vsel %vm5275_vm5, %v5234_v8, %v4983_v9  ;;  %6886 = vset.pattern.permute.xlu1 %v11432_v56  ;;  %v5548_v27 = vadd.f32 %v5547_v18, %v5546_v29  ;;  %v5555_v18 = vadd.f32 %v5554_v40, %v5553_v62  ;;  %v3335_v9 = vrot.slane %v3334_v0, 4 }
 0x3aa   :  { %4770 = vperm.xlu0 %6885, %v4027_v26   ;;  %v5363_v10 = vmul.f32 %v5299_v60, %v1109_v49  ;;  %5026 = vperm.xlu1 %6886, %v4027_v26   ;;  %v1044_v26 = vld [vmem:[%s11383_s2 + $0xb0] sm:$0xff]  ;;  %v5542_v49 = vrot.slane %v5541_v42, 1  ;;  %v5522_v60 = vadd.f32 %v5521_v53, %v5520_v6  ;;  %v5876_v6 = vmul.f32 %v9867_v3, %v5529_v47  ;;  %v11532_v47 = vld [vmem:[#allocation21_spill] sm:$0xff] }
 0x3ab   :  { %v5549_v29 = vrot.slane %v5548_v27, 1  ;;  %v1108_v35 = vadd.f32 %v7287_v38, %v1044_v26  ;;  %v5556_v40 = vrot.slane %v5555_v18, 1  ;;  %v2737_v52 = vrot.slane %v2736_v33, 4  ;;  %v11531_v26 = vld [vmem:[#allocation57_spill] sm:$0xff] }
 0x3ac   :  { %v4170_v25 = vpop.permute.xlu0 %4169  ;;  %v5565_v1 = vsel %vm1161_vm0, %v5363_v10, 0.0  ;;  %v4467_v59 = vpop.permute.xlu1 %4466  ;;  %v5543_v13 = vadd.f32 %v5542_v49, %v5541_v42  ;;  %v5947_v14 = vadd.f32 %v10153_v37, %v5876_v6  ;;  %v10167_v49 = vadd.f32 %v9888_v50, %v11532_v47 }
 0x3ad   :  { %v5566_v55 = vrot.slane %v5565_v1, 4  ;;  %v5168_v46 = vsel %vm5145_vm3, %v4170_v25, %v4467_v59  ;;  %v5550_v20 = vadd.f32 %v5549_v29, %v5548_v27  ;;  %v2718_v25 = vrot.slane %v10112_v58, 2 }
 0x3ae   :  { %6888 = vset.pattern.permute.xlu0 %v11422_v63  ;;  %6887 = vset.pattern.permute.xlu1 %v11421_v17  ;;  %v2729_v27 = vsel %vm1811_vm2, %v10102_v54, -inf  ;;  %v5875_v59 = vmul.f32 %v9867_v3, %v5522_v60  ;;  %v5878_v29 = vmul.f32 %v9867_v3, %v5543_v13  ;;  %v3560_v6 = vmul.f32 %v10091_v43, %v9921_v28 }
 0x3af   :  { %4526 = vperm.xlu0 %6888, %v4030_v12   ;;  %v5567_v22 = vadd.f32 %v5566_v55, %v5565_v1  ;;  %4244 = vperm.xlu1 %6887, %v4030_v12   ;;  %v10142_v1 = vadd.f32 %v3335_v9, %v3334_v0  ;;  %v5879_v55 = vmul.f32 %v9867_v3, %v5550_v20  ;;  %v2730_v34 = vrot.slane %v2729_v27, 4 }
 0x3b0   :  { %v4029_v0 = vmul.f32 %v11531_v26, %v3554_v23  ;;  %v2738_v9 = vmax.f32 %v2736_v33, %v2737_v52  ;;  %v6011_v23 = vmax.f32 %v5947_v14, 0.0  ;;  %v10179_v33 = vpop.eup %7174  ;;  %v3327_v20 = vsel %vm1811_vm2, %v10108_v16, 0.0 }
 0x3b1   :  { %v5568_v36 = vrot.slane %v5567_v22, 2  ;;  %v4723_v8 = vpop.permute.xlu0 %4722  ;;  %v4979_v44 = vpop.permute.xlu1 %4978  ;;  %v5950_v39 = vadd.f32 %v10153_v37, %v5879_v55  ;;  %v3328_v43 = vrot.slane %v3327_v20, 4 }
 0x3b2   :  { %v5233_v62 = vsel %vm5210_vm4, %v5168_v46, %v4723_v8  ;;  %v2888_v46 = vsub.f32 %v9958_v19, %v10122_v4  ;;  %v3337_v8 = vrot.slane %v10142_v1, 2  ;;  %v2739_v52 = vrot.slane %v2738_v9, 2 }
 0x3b3   :  { %v5569_v10 = vadd.f32 %v5568_v36, %v5567_v22  ;;  %6890 = vset.pattern.permute.xlu0 %v11432_v56  ;;  %v5298_v48 = vsel %vm5275_vm5, %v5233_v62, %v4979_v44  ;;  %6889 = vset.pattern.permute.xlu1 %v11426_v32  ;;  %v5557_v22 = vadd.f32 %v5556_v40, %v5555_v18 }
 0x3b4   :  { %5038 = vperm.xlu0 %6890, %v4030_v12   ;;  %v5362_v61 = vmul.f32 %v5298_v48, %v1108_v35  ;;  %4782 = vperm.xlu1 %6889, %v4030_v12   ;;  %v5948_v12 = vadd.f32 %v10153_v37, %v5877_v7  ;;  %v2719_v35 = vmax.f32 %v10112_v58, %v2718_v25  ;;  %v2999_v13 = vmul.f32 1.442695, %v2888_v46 }
 0x3b5   :  { %v5570_v51 = vrot.slane %v5569_v10, 1  ;;  %v5946_v18 = vadd.f32 %v10153_v37, %v5875_v59  ;;  %v2731_v7 = vmax.f32 %v2729_v27, %v2730_v34  ;;  %v5949_v62 = vadd.f32 %v10153_v37, %v5878_v29  ;;  %v11533_v29 = vld [vmem:[#allocation54_spill] sm:$0xff] }
 0x3b6   :  { %v10145_v45 = vpop.permute.xlu0 %4478  ;;  %v5558_v42 = vsel %vm1161_vm0, %v5362_v61, 0.0  ;;  %v10148_v15 = vpop.permute.xlu1 %4184  ;;  %v6012_v44 = vmax.f32 %v5948_v12, 0.0  ;;  %v5880_v58 = vmul.f32 %v9867_v3, %v5557_v22  ;;  %v2720_v40 = vrot.slane %v2719_v35, 1 }
 0x3b7   :  { %v5559_v53 = vrot.slane %v5558_v42, 4  ;;  %v5571_v36 = vadd.f32 %v5570_v51, %v5569_v10  ;;  %v2750_v10 = vsel %vm1811_vm2, %v10167_v49, -inf  ;;  %v6010_v61 = vmax.f32 %v5946_v18, 0.0 }
 0x3b8   :  { %6891 = vset.pattern.permute.xlu0 %v11421_v17  ;;  %6892 = vset.pattern.permute.xlu1 %v11422_v63  ;;  %v6159_v27 = vrot.slane %v6012_v44, 6  ;;  %v6014_v59 = vmax.f32 %v5950_v39, 0.0  ;;  %v6157_v12 = vrot.slane %v6011_v23, 7  ;;  %v6013_v55 = vmax.f32 %v5949_v62, 0.0 }
 0x3b9   :  { %4239 = vperm.xlu0 %6891, %v4029_v0   ;;  %v5560_v38 = vadd.f32 %v5559_v53, %v5558_v42  ;;  %4522 = vperm.xlu1 %6892, %v4029_v0   ;;  %v5882_v25 = vmul.f32 %v9867_v3, %v5571_v36  ;;  %v2751_v42 = vrot.slane %v2750_v10, 4  ;;  %v5951_v26 = vadd.f32 %v10153_v37, %v5880_v58 }
 0x3ba   :  { %v3348_v34 = vsel %vm1811_vm2, %v10130_v57, 0.0  ;;  %7178 = vpow2.f32 %v2999_v13  ;;  %v2732_v22 = vrot.slane %v2731_v7, 2  ;;  %v6158_v46 = vsel %vm6123_vm6, %v6157_v12, %v6010_v61  ;;  %v11534_v13 = vld [vmem:[#allocation22_spill] sm:$0xff] }
 0x3bb   :  { %v5561_v60 = vrot.slane %v5560_v38, 2  ;;  %v10173_v19 = vpop.permute.xlu0 %4990  ;;  %v10175_v4 = vpop.permute.xlu1 %4734  ;;  %v5953_v47 = vadd.f32 %v10153_v37, %v5882_v25  ;;  %v2721_v18 = vmax.f32 %v2719_v35, %v2720_v40  ;;  %v6160_v36 = vsel %vm6126_vm7, %v6159_v27, %v6158_v46  ;;  %v11535_v46 = vld [vmem:[#allocation59_spill] sm:$0xff] }
 0x3bc   :  { %v6163_v44 = vrot.slane %v6014_v59, 4  ;;  %v2752_v23 = vmax.f32 %v2750_v10, %v2751_v42  ;;  %v6161_v62 = vrot.slane %v6013_v55, 5  ;;  %v6015_v58 = vmax.f32 %v5951_v26, 0.0 }
 0x3bd   :  { %v5562_v48 = vadd.f32 %v5561_v60, %v5560_v38  ;;  %6893 = vset.pattern.permute.xlu0 %v11426_v32  ;;  %6894 = vset.pattern.permute.xlu1 %v11432_v56  ;;  %v10202_v38 = vpop.eup %7176  ;;  %v3349_v60 = vrot.slane %v3348_v34, 4  ;;  %v10209_v61 = vadd.f32 %v9888_v50, %v11534_v13  ;;  %v6017_v59 = vmax.f32 %v5953_v47, 0.0 }
 0x3be   :  { %4778 = vperm.xlu0 %6893, %v4029_v0   ;;  %5034 = vperm.xlu1 %6894, %v4029_v0   ;;  %v4032_v0 = vmul.f32 %v11533_v29, %v3560_v6  ;;  %v2740_v6 = vmax.f32 %v2738_v9, %v2739_v52  ;;  %v3341_v27 = vsel %vm1811_vm2, %v10202_v38, 0.0  ;;  %v6162_v10 = vsel %vm6129_vm8, %v6161_v62, %v6160_v36 }
 0x3bf   :  { %v5563_v51 = vrot.slane %v5562_v48, 1  ;;  %v3350_v52 = vadd.f32 %v3349_v60, %v3348_v34  ;;  %v2753_v42 = vrot.slane %v2752_v23, 2  ;;  %v6165_v12 = vrot.slane %v6015_v58, 3 }
 0x3c0   :  { %v10191_v53 = vpop.permute.xlu0 %4179  ;;  %v10193_v28 = vpop.permute.xlu1 %4474  ;;  %7180 = vrcp.f32 %v10137_v31  ;;  %v2741_v55 = vrot.slane %v2740_v6, 1  ;;  %v6169_v29 = vrot.slane %v6017_v59, 1 }
 0x3c1   :  { %v5564_v14 = vadd.f32 %v5563_v51, %v5562_v48  ;;  %v3338_v48 = vadd.f32 %v3337_v8, %v10142_v1  ;;  %v2733_v51 = vmax.f32 %v2731_v7, %v2732_v22  ;;  %v6164_v1 = vsel %vm6132_vm9, %v6163_v44, %v6162_v10 }
 0x3c2   :  { %6896 = vset.pattern.permute.xlu0 %v11422_v63  ;;  %6895 = vset.pattern.permute.xlu1 %v11421_v17  ;;  %v3558_v8 = vmul.f32 %v10116_v24, %v9933_v41  ;;  %v3342_v7 = vrot.slane %v3341_v27, 4  ;;  %v6166_v41 = vsel %vm6135_vm10, %v6165_v12, %v6164_v1  ;;  %v2754_v44 = vmax.f32 %v2752_v23, %v2753_v42 }
 0x3c3   :  { %v5881_v39 = vmul.f32 %v9867_v3, %v5564_v14  ;;  %4534 = vperm.xlu0 %6896, %v4032_v0   ;;  %4254 = vperm.xlu1 %6895, %v4032_v0   ;;  %v3329_v3 = vadd.f32 %v3328_v43, %v3327_v20  ;;  %v2887_v20 = vsub.f32 %v10068_v30, %v2721_v18  ;;  %v2743_v14 = vsel %vm1811_vm2, %v10209_v61, -inf }
 0x3c4   :  { %v3339_v30 = vrot.slane %v3338_v48, 1  ;;  %v2734_v22 = vrot.slane %v2733_v51, 1  ;;  %v4031_v31 = vmul.f32 %v11535_v46, %v3558_v8  ;;  %v10235_v47 = vpop.eup %7178  ;;  %v3351_v18 = vrot.slane %v3350_v52, 2  ;;  %v11538_v46 = vld [vmem:[#allocation24_spill] sm:$0xff] }
 0x3c5   :  { %v5952_v35 = vadd.f32 %v10153_v37, %v5881_v39  ;;  %v10212_v40 = vpop.permute.xlu0 %4730  ;;  %v10214_v25 = vpop.permute.xlu1 %4986  ;;  %v3330_v43 = vrot.slane %v3329_v3, 2  ;;  %v2997_v36 = vmul.f32 1.442695, %v2887_v20  ;;  %v3343_v60 = vadd.f32 %v3342_v7, %v3341_v27 }
 0x3c6   :  { %v2742_v62 = vmax.f32 %v2740_v6, %v2741_v55  ;;  %v2744_v58 = vrot.slane %v2743_v14, 4  ;;  %v2735_v10 = vmax.f32 %v2733_v51, %v2734_v22  ;;  %v3352_v1 = vadd.f32 %v3351_v18, %v3350_v52 }
 0x3c7   :  { %v6016_v9 = vmax.f32 %v5952_v35, 0.0  ;;  %6898 = vset.pattern.permute.xlu0 %v11432_v56  ;;  %6897 = vset.pattern.permute.xlu1 %v11426_v32  ;;  %v3331_v13 = vadd.f32 %v3330_v43, %v3329_v3  ;;  %v3340_v35 = vadd.f32 %v3339_v30, %v3338_v48  ;;  %v3362_v27 = vsel %vm1811_vm2, %v10235_v47, 0.0 }
 0x3c8   :  { %5046 = vperm.xlu0 %6898, %v4032_v0   ;;  %4790 = vperm.xlu1 %6897, %v4032_v0   ;;  %7182 = vpow2.f32 %v2997_v36  ;;  %v2755_v6 = vrot.slane %v2754_v44, 1  ;;  %v2890_v8 = vsub.f32 %v10097_v21, %v2742_v62  ;;  %v2745_v20 = vmax.f32 %v2743_v14, %v2744_v58 }
 0x3c9   :  { %v6167_v26 = vrot.slane %v6016_v9, 2  ;;  %v3344_v9 = vrot.slane %v3343_v60, 2  ;;  %v3564_v48 = vmul.f32 %v10179_v33, %v9946_v2  ;;  %v3332_v3 = vrot.slane %v3331_v13, 1  ;;  %v11537_v33 = vld [vmem:[#allocation23_spill] sm:$0xff] }
 0x3ca   :  { %v10229_v24 = vpop.permute.xlu0 %4486  ;;  %v10231_v34 = vpop.permute.xlu1 %4194  ;;  %7184 = vrcp.f32 %v3340_v35  ;;  %v3363_v52 = vrot.slane %v3362_v27, 4  ;;  %v2889_v42 = vsub.f32 %v10102_v54, %v2735_v10  ;;  %v3353_v12 = vrot.slane %v3352_v1, 1  ;;  %v11540_v10 = vld [vmem:[#allocation61_spill] sm:$0xff] }
 0x3cb   :  { %v6168_v0 = vsel %vm6138_vm11, %v6167_v26, %v6166_v41  ;;  %v7181_v51 = vpop.eup %7180  ;;  %v2756_v7 = vmax.f32 %v2754_v44, %v2755_v6  ;;  %v3345_v26 = vadd.f32 %v3344_v9, %v3343_v60  ;;  %v3003_v43 = vmul.f32 1.442695, %v2890_v8 }
 0x3cc   :  { %v6170_v39 = vsel %vm6141_vm12, %v6169_v29, %v6168_v0  ;;  %6899 = vset.pattern.permute.xlu0 %v11421_v17  ;;  %6900 = vset.pattern.permute.xlu1 %v11422_v63  ;;  %v2746_v14 = vrot.slane %v2745_v20, 2  ;;  %v11536_v29 = vld [vmem:[#allocation56_spill] sm:$0xff]  ;;  %v3333_v2 = vadd.f32 %v3332_v3, %v3331_v13  ;;  %v10261_v30 = vadd.f32 %v9888_v50, %v11537_v33  ;;  %v11539_v13 = vld [vmem:[#allocation25_spill] sm:$0xff] }
 0x3cd   :  { %6251 = vst.msk [vmem:[%s11386_s11 + $0x10] sm:$0xff] %vm1161_vm0, %v6170_v39  ;;  %4249 = vperm.xlu0 %6899, %v4031_v31   ;;  %4530 = vperm.xlu1 %6900, %v4031_v31   ;;  %v10257_v41 = vmul.f32 %v11536_v29, %v3564_v48  ;;  %v3562_v22 = vmul.f32 %v7181_v51, %v10011_v5  ;;  %v3001_v0 = vmul.f32 1.442695, %v2889_v42  ;;  %v3346_v44 = vrot.slane %v3345_v26, 1  ;;  %v10297_v51 = vld [vmem:[%s11382_s8] ss:$0 sm:$0xff] }
 0x3ce   :  { %v3364_v54 = vadd.f32 %v3363_v52, %v3362_v27  ;;  %v3354_v18 = vadd.f32 %v3353_v12, %v3352_v1  ;;  %v2892_v36 = vsub.f32 %v10167_v49, %v2756_v7  ;;  %7186 = vpow2.f32 %v3003_v43  ;;  %v11541_v52 = vld [vmem:[#allocation26_spill] sm:$0xff]  ;;  %v7290_v33 = vld [vmem:[%s11378_s3 + $0xd0] sm:$0xff] }
 0x3cf   :  { %v10244_v23 = vpop.permute.xlu0 %4998  ;;  %v10246_v59 = vpop.permute.xlu1 %4742  ;;  %v2747_v39 = vmax.f32 %v2745_v20, %v2746_v14  ;;  %7188 = vrcp.f32 %v3333_v2  ;;  %v2764_v58 = vsel %vm1811_vm2, %v10261_v30, -inf  ;;  %v10279_v35 = vadd.f32 %v9888_v50, %v11539_v13 }
 0x3d0   :  { %v10282_v27 = vmul.f32 %v11540_v10, %v3562_v22  ;;  %v3365_v1 = vrot.slane %v3364_v54, 2  ;;  %7190 = vpow2.f32 %v3001_v0  ;;  %v3007_v6 = vmul.f32 1.442695, %v2892_v36 }
 0x3d1   :  { %6901 = vset.pattern.permute.xlu0 %v11426_v32  ;;  %6902 = vset.pattern.permute.xlu1 %v11432_v56  ;;  %7192 = vrcp.f32 %v3354_v18  ;;  %v3347_v20 = vadd.f32 %v3346_v44, %v3345_v26  ;;  %v2748_v48 = vrot.slane %v2747_v39, 1  ;;  %v2765_v3 = vrot.slane %v2764_v58, 4  ;;  %v1047_v26 = vld [vmem:[%s11383_s2 + $0xc8] sm:$0xff] }
 0x3d2   :  { %4786 = vperm.xlu0 %6901, %v4031_v31   ;;  %5042 = vperm.xlu1 %6902, %v4031_v31   ;;  %v10268_v31 = vadd.f32 %v9888_v50, %v11538_v46  ;;  %v10273_v62 = vpop.eup %7182  ;;  %v1048_v50 = vld [vmem:[%s11383_s2 + $0xd0] sm:$0xff]  ;;  %v10301_v42 = vadd.f32 %v10297_v51, %v11541_v52  ;;  %v10315_v29 = vadd.f32 %v3365_v1, %v3364_v54  ;;  %7194 = vpow2.f32 %v3007_v6 }
 0x3d3   :  { %v3355_v12 = vsel %vm1811_vm2, %v10273_v62, 0.0  ;;  %v1112_v22 = vadd.f32 %v7290_v33, %v1048_v50  ;;  %v10333_v18 = vmax.f32 %v2747_v39, %v2748_v48  ;;  %v10335_v36 = vmax.f32 %v2764_v58, %v2765_v3  ;;  %v11543_v48 = vld [vmem:[#allocation58_spill] sm:$0xff] }
 0x3d4   :  { %v4190_v55 = vpop.permute.xlu0 %4189  ;;  %v4483_v21 = vpop.permute.xlu1 %4482  ;;  %v2757_v49 = vsel %vm1811_vm2, %v10268_v31, -inf  ;;  %v3356_v46 = vrot.slane %v3355_v12, 4  ;;  %v5173_v39 = vsel %vm5145_vm3, %v10231_v34, %v10229_v24  ;;  %v10364_v6 = vsel %vm1811_vm2, %v10301_v42, -inf }
 0x3d5   :  { %v5172_v9 = vsel %vm5145_vm3, %v4190_v55, %v4483_v21  ;;  %v7185_v8 = vpop.eup %7184  ;;  %v2758_v7 = vrot.slane %v2757_v49, 4  ;;  %v10307_v55 = vsel %vm1811_vm2, %v10279_v35, -inf  ;;  %v5171_v21 = vsel %vm5145_vm3, %v10148_v15, %v10145_v45  ;;  %v1046_v15 = vld [vmem:[%s11383_s2 + $0xc0] sm:$0xff] }
 0x3d6   :  { %6904 = vset.pattern.permute.xlu0 %v11422_v63  ;;  %6903 = vset.pattern.permute.xlu1 %v11421_v17  ;;  %v5236_v2 = vsel %vm5210_vm4, %v5171_v21, %v10175_v4  ;;  %v5170_v45 = vsel %vm5145_vm3, %v10191_v53, %v10193_v28  ;;  %v3568_v54 = vmul.f32 %v7185_v8, %v10057_v11  ;;  %v7291_v53 = vld [vmem:[%s11378_s3 + $0xc8] sm:$0xff]  ;;  %v2779_v11 = vrot.slane %v10307_v55, 4  ;;  %v7293_v21 = vld [vmem:[%s11378_s3 + $0xd8] sm:$0xff] }
 0x3d7   :  { %4542 = vperm.xlu0 %6904, %v10257_v41   ;;  %4264 = vperm.xlu1 %6903, %v10257_v41   ;;  %v1111_v28 = vadd.f32 %v7291_v53, %v1047_v26  ;;  %v10342_v44 = vmax.f32 %v2757_v49, %v2758_v7  ;;  %v5235_v10 = vsel %vm5210_vm4, %v5170_v45, %v10212_v40  ;;  %7196 = vrcp.f32 %v3347_v20 }
 0x3d8   :  { %v10353_v58 = vpop.eup %7186  ;;  %v5300_v8 = vsel %vm5275_vm5, %v5235_v10, %v10214_v25  ;;  %v10373_v40 = vmul.f32 %v11543_v48, %v3568_v54  ;;  %v3357_v52 = vadd.f32 %v3356_v46, %v3355_v12  ;;  %v2891_v25 = vsub.f32 %v10209_v61, %v10333_v18 }
 0x3d9   :  { %v4739_v60 = vpop.permute.xlu0 %4738  ;;  %v4995_v5 = vpop.permute.xlu1 %4994 }
 0x3da   :  { %v5237_v0 = vsel %vm5210_vm4, %v5172_v9, %v4739_v60  ;;  %v5301_v60 = vsel %vm5275_vm5, %v5236_v2, %v10173_v19  ;;  %v5238_v19 = vsel %vm5210_vm4, %v5173_v39, %v10246_v59  ;;  %v7189_v34 = vpop.eup %7188  ;;  %v11542_v9 = vld [vmem:[#allocation27_spill] sm:$0xff]  ;;  %v3367_v59 = vrot.slane %v10315_v29, 1  ;;  %v1050_v39 = vld [vmem:[%s11383_s2 + $0xe0] sm:$0xff] }
 0x3db   :  { %6907 = vset.pattern.permute.xlu0 %v11421_v17  ;;  %6905 = vset.pattern.permute.xlu1 %v11426_v32  ;;  %v5302_v4 = vsel %vm5275_vm5, %v5237_v0, %v4995_v5  ;;  %v1049_v5 = vld [vmem:[%s11383_s2 + $0xd8] sm:$0xff]  ;;  %v10368_v50 = vadd.f32 %v10297_v51, %v11542_v9  ;;  %v10375_v3 = vpop.eup %7190  ;;  %v5365_v7 = vmul.f32 %v5301_v60, %v1111_v28  ;;  %v2767_v0 = vrot.slane %v10335_v36, 2  ;;  %v7294_v28 = vld [vmem:[%s11378_s3 + $0xe8] sm:$0xff] }
 0x3dc   :  { %4259 = vperm.xlu0 %6907, %v10282_v27   ;;  %4798 = vperm.xlu1 %6905, %v10257_v41   ;;  %v5366_v1 = vmul.f32 %v5302_v4, %v1112_v22  ;;  %v1113_v26 = vadd.f32 %v7293_v21, %v1049_v5  ;;  %v10383_v2 = vpop.eup %7192  ;;  %v5303_v33 = vsel %vm5275_vm5, %v5238_v19, %v10244_v23  ;;  %v1051_v22 = vld [vmem:[%s11383_s2 + $0xe8] sm:$0xff]  ;;  %v3376_v23 = vsel %vm1811_vm2, %v10353_v58, 0.0 }
 0x3dd   :  { %v3368_v46 = vadd.f32 %v3367_v59, %v10315_v29  ;;  %v5579_v18 = vsel %vm1161_vm0, %v5365_v7, 0.0  ;;  %v1115_v60 = vadd.f32 %v7294_v28, %v1051_v22  ;;  %v10411_v5 = vpop.eup %7194  ;;  %v3005_v10 = vmul.f32 1.442695, %v2891_v25 }
 0x3de   :  { %v4495_v43 = vpop.permute.xlu0 %4494  ;;  %v4205_v14 = vpop.permute.xlu1 %4204  ;;  %v5586_v20 = vsel %vm1161_vm0, %v5366_v1, 0.0  ;;  %v5367_v53 = vmul.f32 %v5303_v33, %v1113_v26  ;;  %v2768_v9 = vmax.f32 %v10335_v36, %v2767_v0  ;;  %v11544_v33 = vld [vmem:[#allocation63_spill] sm:$0xff] }
 0x3df   :  { %v5175_v12 = vsel %vm5145_vm3, %v4205_v14, %v4495_v43  ;;  %v2780_v43 = vmax.f32 %v10307_v55, %v2779_v11  ;;  %v2772_v14 = vrot.slane %v10364_v6, 4  ;;  %v3358_v55 = vrot.slane %v3357_v52, 2 }
 0x3e0   :  { %6909 = vset.pattern.permute.xlu0 %v11426_v32  ;;  %6906 = vset.pattern.permute.xlu1 %v11432_v56  ;;  %v5587_v11 = vrot.slane %v5586_v20, 4  ;;  %v5593_v59 = vsel %vm1161_vm0, %v5367_v53, 0.0  ;;  %7198 = vrcp.f32 %v3368_v46 }
 0x3e1   :  { %4794 = vperm.xlu0 %6909, %v10282_v27   ;;  %5054 = vperm.xlu1 %6906, %v10257_v41   ;;  %v7292_v41 = vld [vmem:[%s11378_s3 + $0xc0] sm:$0xff]  ;;  %v2781_v48 = vrot.slane %v2780_v43, 2  ;;  %v3359_v22 = vadd.f32 %v3358_v55, %v3357_v52  ;;  %7200 = vpow2.f32 %v3005_v10  ;;  %v2769_v52 = vrot.slane %v2768_v9, 1 }
 0x3e2   :  { %v1110_v13 = vadd.f32 %v7292_v41, %v1046_v15  ;;  %v2760_v15 = vrot.slane %v10342_v44, 2  ;;  %v3566_v41 = vmul.f32 %v7189_v34, %v10108_v16  ;;  %v7295_v16 = vld [vmem:[%s11378_s3 + $0xe0] sm:$0xff]  ;;  %v5588_v25 = vadd.f32 %v5587_v11, %v5586_v20 }
 0x3e3   :  { %v5007_v49 = vpop.permute.xlu0 %5006  ;;  %v4751_v24 = vpop.permute.xlu1 %4750  ;;  %v1114_v34 = vadd.f32 %v7295_v16, %v1050_v39  ;;  %v2782_v53 = vmax.f32 %v2780_v43, %v2781_v48  ;;  %v3360_v46 = vrot.slane %v3359_v22, 1  ;;  %v10448_v10 = vmax.f32 %v10364_v6, %v2772_v14 }
 0x3e4   :  { %v5364_v45 = vmul.f32 %v5300_v8, %v1110_v13  ;;  %v5240_v61 = vsel %vm5210_vm4, %v5175_v12, %v4751_v24  ;;  %v3377_v13 = vrot.slane %v3376_v23, 4  ;;  %v3369_v24 = vsel %vm1811_vm2, %v10375_v3, 0.0 }
 0x3e5   :  { %6912 = vset.pattern.permute.xlu0 %v11422_v63  ;;  %6908 = vset.pattern.permute.xlu1 %v11422_v63  ;;  %v5305_v29 = vsel %vm5275_vm5, %v5240_v61, %v5007_v49  ;;  %v5580_v49 = vrot.slane %v5579_v18, 4  ;;  %v2761_v8 = vmax.f32 %v10342_v44, %v2760_v15  ;;  %v10430_v12 = vmul.f32 %v11544_v33, %v3566_v41  ;;  %v10436_v61 = vpop.eup %7196 }
 0x3e6   :  { %4550 = vperm.xlu0 %6912, %v10373_v40   ;;  %4538 = vperm.xlu1 %6908, %v10282_v27   ;;  %v5572_v19 = vsel %vm1161_vm0, %v5364_v45, 0.0  ;;  %v5369_v7 = vmul.f32 %v5305_v29, %v1115_v60  ;;  %v3378_v0 = vadd.f32 %v3377_v13, %v3376_v23  ;;  %v3370_v45 = vrot.slane %v3369_v24, 4  ;;  %v1053_v13 = vld [vmem:[%s11383_s2 + $0xf8] sm:$0xff] }
 0x3e7   :  { %v5581_v15 = vadd.f32 %v5580_v49, %v5579_v18  ;;  %v2762_v23 = vrot.slane %v2761_v8, 1  ;;  %v5589_v60 = vrot.slane %v5588_v25, 2  ;;  %v2770_v49 = vmax.f32 %v2768_v9, %v2769_v52 }
 0x3e8   :  { %v4200_v4 = vpop.permute.xlu0 %4199  ;;  %v4491_v54 = vpop.permute.xlu1 %4490  ;;  %v3379_v18 = vrot.slane %v3378_v0, 2  ;;  %v3371_v29 = vadd.f32 %v3370_v45, %v3369_v24  ;;  %v3390_v24 = vsel %vm1811_vm2, %v10411_v5, 0.0  ;;  %v2783_v6 = vrot.slane %v2782_v53, 1 }
 0x3e9   :  { %v5174_v1 = vsel %vm5145_vm3, %v4200_v4, %v4491_v54  ;;  %v5594_v4 = vrot.slane %v5593_v59, 4  ;;  %v5607_v54 = vsel %vm1161_vm0, %v5369_v7, 0.0  ;;  %v5582_v43 = vrot.slane %v5581_v15, 2 }
 0x3ea   :  { %6914 = vset.pattern.permute.xlu0 %v11432_v56  ;;  %6910 = vset.pattern.permute.xlu1 %v11432_v56  ;;  %v10454_v16 = vmax.f32 %v2761_v8, %v2762_v23  ;;  %v5590_v48 = vadd.f32 %v5589_v60, %v5588_v25  ;;  %v3572_v25 = vmul.f32 %v10383_v2, %v10130_v57 }
 0x3eb   :  { %5062 = vperm.xlu0 %6914, %v10373_v40   ;;  %5050 = vperm.xlu1 %6910, %v10282_v27   ;;  %v5573_v27 = vrot.slane %v5572_v19, 4  ;;  %v2894_v52 = vsub.f32 %v10261_v30, %v2770_v49  ;;  %v10477_v2 = vmax.f32 %v2782_v53, %v2783_v6 }
 0x3ec   :  { %v5591_v23 = vrot.slane %v5590_v48, 1  ;;  %v2893_v57 = vsub.f32 %v10268_v31, %v10454_v16  ;;  %v1052_v31 = vld [vmem:[%s11383_s2 + $0xf0] sm:$0xff] }
 0x3ed   :  { %v4747_v21 = vpop.permute.xlu0 %4746  ;;  %v5003_v26 = vpop.permute.xlu1 %5002  ;;  %v5574_v28 = vadd.f32 %v5573_v27, %v5572_v19  ;;  %v5595_v19 = vadd.f32 %v5594_v4, %v5593_v59  ;;  %v7296_v59 = vld [vmem:[%s11378_s3 + $0xf8] sm:$0xff]  ;;  %v3372_v4 = vrot.slane %v3371_v29, 2 }
 0x3ee   :  { %v5239_v36 = vsel %vm5210_vm4, %v5174_v1, %v4747_v21  ;;  %v5608_v1 = vrot.slane %v5607_v54, 4  ;;  %v1117_v7 = vadd.f32 %v7296_v59, %v1053_v13  ;;  %v3361_v21 = vadd.f32 %v3360_v46, %v3359_v22 }
 0x3ef   :  { %6915 = vset.pattern.permute.xlu0 %v11421_v17  ;;  %v5304_v44 = vsel %vm5275_vm5, %v5239_v36, %v5003_v26  ;;  %6911 = vset.pattern.permute.xlu1 %v11421_v17  ;;  %v5575_v14 = vrot.slane %v5574_v28, 2  ;;  %v3380_v26 = vadd.f32 %v3379_v18, %v3378_v0  ;;  %v5583_v36 = vadd.f32 %v5582_v43, %v5581_v15  ;;  %v10468_v0 = vpop.eup %7198 }
 0x3f0   :  { %4269 = vperm.xlu0 %6915, %v10430_v12   ;;  %v5368_v20 = vmul.f32 %v5304_v44, %v1114_v34  ;;  %4274 = vperm.xlu1 %6911, %v10373_v40   ;;  %v5596_v45 = vrot.slane %v5595_v19, 2  ;;  %v5609_v44 = vadd.f32 %v5608_v1, %v5607_v54  ;;  %v10473_v60 = vpop.eup %7200  ;;  %7202 = vrcp.f32 %v3361_v21 }
 0x3f1   :  { %v5576_v15 = vadd.f32 %v5575_v14, %v5574_v28  ;;  %v3381_v13 = vrot.slane %v3380_v26, 1  ;;  %v10485_v53 = vadd.f32 %v3372_v4, %v3371_v29  ;;  %v7297_v29 = vld [vmem:[%s11378_s3 + $0xf0] sm:$0xff] }
 0x3f2   :  { %v4503_v39 = vpop.permute.xlu0 %4502  ;;  %v5600_v55 = vsel %vm1161_vm0, %v5368_v20, 0.0  ;;  %v4215_v11 = vpop.permute.xlu1 %4214  ;;  %v3391_v20 = vrot.slane %v3390_v24, 4  ;;  %v5597_v46 = vadd.f32 %v5596_v45, %v5595_v19  ;;  %v5610_v30 = vrot.slane %v5609_v44, 2 }
 0x3f3   :  { %v5601_v41 = vrot.slane %v5600_v55, 4  ;;  %v5177_v9 = vsel %vm5145_vm3, %v4215_v11, %v4503_v39  ;;  %v2774_v39 = vrot.slane %v10448_v10, 2  ;;  %v5584_v11 = vrot.slane %v5583_v36, 1 }
 0x3f4   :  { %6917 = vset.pattern.permute.xlu0 %v11426_v32  ;;  %6913 = vset.pattern.permute.xlu1 %v11426_v32  ;;  %v10487_v49 = vadd.f32 %v3391_v20, %v3390_v24  ;;  %v5577_v16 = vrot.slane %v5576_v15, 1  ;;  %v5592_v19 = vadd.f32 %v5591_v23, %v5590_v48  ;;  %v5598_v21 = vrot.slane %v5597_v46, 1 }
 0x3f5   :  { %4802 = vperm.xlu0 %6917, %v10430_v12   ;;  %v5602_v34 = vadd.f32 %v5601_v41, %v5600_v55  ;;  %4806 = vperm.xlu1 %6913, %v10373_v40   ;;  %v1116_v24 = vadd.f32 %v7297_v29, %v1052_v31  ;;  %v3382_v48 = vadd.f32 %v3381_v13, %v3380_v26 }
 0x3f6   :  { %v5578_v4 = vadd.f32 %v5577_v16, %v5576_v15  ;;  %v3570_v20 = vmul.f32 %v10436_v61, %v10202_v38  ;;  %v5599_v15 = vadd.f32 %v5598_v21, %v5597_v46  ;;  %v3374_v38 = vrot.slane %v10485_v53, 1 }
 0x3f7   :  { %v5603_v27 = vrot.slane %v5602_v34, 2  ;;  %v5015_v33 = vpop.permute.xlu0 %5014  ;;  %v4759_v8 = vpop.permute.xlu1 %4758  ;;  %v3393_v61 = vrot.slane %v10487_v49, 2 }
 0x3f8   :  { %v5242_v40 = vsel %vm5210_vm4, %v5177_v9, %v4759_v8  ;;  %v2775_v9 = vmax.f32 %v10448_v10, %v2774_v39  ;;  %v11546_v39 = vld [vmem:[#allocation28_spill] sm:$0xff]  ;;  %v10533_v21 = vadd.f32 %v3374_v38, %v10485_v53 }
 0x3f9   :  { %6918 = vset.pattern.permute.xlu0 %v11432_v56  ;;  %v5307_v22 = vsel %vm5275_vm5, %v5242_v40, %v5015_v33  ;;  %6916 = vset.pattern.permute.xlu1 %v11422_v63  ;;  %v5604_v55 = vadd.f32 %v5603_v27, %v5602_v34  ;;  %v3011_v34 = vmul.f32 1.442695, %v2894_v52  ;;  %v5611_v27 = vadd.f32 %v5610_v30, %v5609_v44 }
 0x3fa   :  { %5058 = vperm.xlu0 %6918, %v10430_v12   ;;  %v5371_v54 = vmul.f32 %v5307_v22, %v1117_v7  ;;  %4546 = vperm.xlu1 %6916, %v10430_v12   ;;  %v11545_v12 = vld [vmem:[#allocation60_spill] sm:$0xff]  ;;  %v5585_v7 = vadd.f32 %v5584_v11, %v5583_v36  ;;  %v2896_v33 = vsub.f32 %v10279_v35, %v10477_v2  ;;  %v10501_v36 = vld [vmem:[%s11384_s9] ss:$0 sm:$0xff]  ;;  %v2792_v2 = vsel %vm1811_vm2, %v10368_v50, -inf }
 0x3fb   :  { %v4038_v43 = vmul.f32 %v11545_v12, %v3572_v25  ;;  %v5605_v6 = vrot.slane %v5604_v55, 1  ;;  %v5885_v44 = vmul.f32 %v10501_v36, %v5592_v19  ;;  %v3009_v25 = vmul.f32 1.442695, %v2893_v57 }
 0x3fc   :  { %v4210_v28 = vpop.permute.xlu0 %4209  ;;  %v5621_v18 = vsel %vm1161_vm0, %v5371_v54, 0.0  ;;  %v4499_v41 = vpop.permute.xlu1 %4498  ;;  %v5884_v52 = vmul.f32 %v10501_v36, %v5585_v7  ;;  %v5612_v23 = vrot.slane %v5611_v27, 1  ;;  %v2776_v57 = vrot.slane %v2775_v9, 1 }
 0x3fd   :  { %v5622_v1 = vrot.slane %v5621_v18, 4  ;;  %v5176_v59 = vsel %vm5145_vm3, %v4210_v28, %v4499_v41  ;;  %v5606_v35 = vadd.f32 %v5605_v6, %v5604_v55  ;;  %v10517_v55 = vadd.f32 %v10297_v51, %v11546_v39  ;;  %v7203_v41 = vpop.eup %7202  ;;  %v11549_v39 = vld [vmem:[#allocation31_spill] sm:$0xff] }
 0x3fe   :  { %6920 = vset.pattern.permute.xlu0 %v11422_v63  ;;  %6919 = vset.pattern.permute.xlu1 %v11421_v17  ;;  %v5883_v11 = vmul.f32 %v10501_v36, %v5578_v4  ;;  %v5956_v13 = vadd.f32 %v10153_v37, %v5885_v44  ;;  %7204 = vpow2.f32 %v3011_v34  ;;  %v5955_v16 = vadd.f32 %v10153_v37, %v5884_v52 }
 0x3ff   :  { %4558 = vperm.xlu0 %6920, %v4038_v43   ;;  %v5623_v14 = vadd.f32 %v5622_v1, %v5621_v18  ;;  %4284 = vperm.xlu1 %6919, %v4038_v43   ;;  %v5887_v12 = vmul.f32 %v10501_v36, %v5606_v35  ;;  %v5886_v19 = vmul.f32 %v10501_v36, %v5599_v15  ;;  %7206 = vrcp.f32 %v3382_v48 }
 0x400   :  { %v5613_v6 = vadd.f32 %v5612_v23, %v5611_v27  ;;  %v2785_v34 = vsel %vm1811_vm2, %v10517_v55, -inf  ;;  %v5954_v29 = vadd.f32 %v10153_v37, %v5883_v11  ;;  %v2777_v27 = vmax.f32 %v2775_v9, %v2776_v57 }
 0x401   :  { %v5624_v8 = vrot.slane %v5623_v14, 2  ;;  %v4755_v45 = vpop.permute.xlu0 %4754  ;;  %v5011_v40 = vpop.permute.xlu1 %5010  ;;  %7208 = vpow2.f32 %v3009_v25  ;;  %v6019_v4 = vmax.f32 %v5955_v16, 0.0  ;;  %v5957_v53 = vadd.f32 %v10153_v37, %v5886_v19 }
 0x402   :  { %v5241_v26 = vsel %vm5210_vm4, %v5176_v59, %v4755_v45  ;;  %v2793_v59 = vrot.slane %v2792_v2, 4  ;;  %v5958_v45 = vadd.f32 %v10153_v37, %v5887_v12  ;;  %v5888_v44 = vmul.f32 %v10501_v36, %v5613_v6 }
 0x403   :  { %v5625_v22 = vadd.f32 %v5624_v8, %v5623_v14  ;;  %6922 = vset.pattern.permute.xlu0 %v11432_v56  ;;  %v5306_v10 = vsel %vm5275_vm5, %v5241_v26, %v5011_v40  ;;  %6921 = vset.pattern.permute.xlu1 %v11426_v32  ;;  %v3015_v14 = vmul.f32 1.442695, %v2896_v33  ;;  %v6020_v8 = vmax.f32 %v5956_v13, 0.0  ;;  %v11548_v26 = vld [vmem:[#allocation29_spill] sm:$0xff] }
 0x404   :  { %5070 = vperm.xlu0 %6922, %v4038_v43   ;;  %v5370_v54 = vmul.f32 %v5306_v10, %v1116_v24  ;;  %4814 = vperm.xlu1 %6921, %v4038_v43   ;;  %v11547_v43 = vld [vmem:[#allocation65_spill] sm:$0xff]  ;;  %v10547_v35 = vadd.f32 %v10297_v51, %v11548_v26  ;;  %v3383_v25 = vsel %vm1811_vm2, %v10473_v60, 0.0  ;;  %v2794_v10 = vmax.f32 %v2792_v2, %v2793_v59 }
 0x405   :  { %v5626_v30 = vrot.slane %v5625_v22, 1  ;;  %v4037_v1 = vmul.f32 %v11547_v43, %v3570_v20  ;;  %v2786_v20 = vrot.slane %v2785_v34, 4  ;;  %v6018_v52 = vmax.f32 %v5954_v29, 0.0  ;;  %v11550_v43 = vld [vmem:[#allocation62_spill] sm:$0xff] }
 0x406   :  { %v10520_v46 = vpop.permute.xlu0 %4510  ;;  %v5614_v28 = vsel %vm1161_vm0, %v5370_v54, 0.0  ;;  %v10523_v18 = vpop.permute.xlu1 %4224  ;;  %v2895_v23 = vsub.f32 %v10301_v42, %v2777_v27  ;;  %v6173_v54 = vrot.slane %v6020_v8, 6  ;;  %v6022_v38 = vmax.f32 %v5958_v45, 0.0 }
 0x407   :  { %v5615_v31 = vrot.slane %v5614_v28, 4  ;;  %v5627_v24 = vadd.f32 %v5626_v30, %v5625_v22  ;;  %v3576_v22 = vmul.f32 %v10468_v0, %v10235_v47  ;;  %v10559_v11 = vadd.f32 %v10297_v51, %v11549_v39 }
 0x408   :  { %6923 = vset.pattern.permute.xlu0 %v11421_v17  ;;  %6924 = vset.pattern.permute.xlu1 %v11422_v63  ;;  %v6171_v47 = vrot.slane %v6019_v4, 7  ;;  %v6021_v0 = vmax.f32 %v5957_v53, 0.0  ;;  %v5959_v30 = vadd.f32 %v10153_v37, %v5888_v44  ;;  %v2787_v13 = vmax.f32 %v2785_v34, %v2786_v20 }
 0x409   :  { %4279 = vperm.xlu0 %6923, %v4037_v1   ;;  %v5616_v7 = vadd.f32 %v5615_v31, %v5614_v28  ;;  %4554 = vperm.xlu1 %6924, %v4037_v1   ;;  %v5890_v15 = vmul.f32 %v10501_v36, %v5627_v24  ;;  %v2806_v12 = vsel %vm1811_vm2, %v10547_v35, -inf  ;;  %v10571_v31 = vpop.eup %7204  ;;  %7210 = vpow2.f32 %v3015_v14 }
 0x40a   :  { %v6172_v16 = vsel %vm6123_vm6, %v6171_v47, %v6018_v52  ;;  %v3574_v6 = vmul.f32 %v7203_v41, %v10273_v62  ;;  %v7207_v59 = vpop.eup %7206  ;;  %v6177_v29 = vrot.slane %v6022_v38, 4  ;;  %v3384_v14 = vrot.slane %v3383_v25, 4  ;;  %v11551_v52 = vld [vmem:[#allocation67_spill] sm:$0xff] }
 0x40b   :  { %v5617_v40 = vrot.slane %v5616_v7, 2  ;;  %v10539_v48 = vpop.permute.xlu0 %5022  ;;  %v10541_v33 = vpop.permute.xlu1 %4766  ;;  %v5961_v19 = vadd.f32 %v10153_v37, %v5890_v15  ;;  %v6174_v34 = vsel %vm6126_vm7, %v6173_v54, %v6172_v16  ;;  %v2807_v27 = vrot.slane %v2806_v12, 4 }
 0x40c   :  { %v6175_v8 = vrot.slane %v6021_v0, 5  ;;  %v6023_v45 = vmax.f32 %v5959_v30, 0.0  ;;  %v3394_v62 = vadd.f32 %v3393_v61, %v10487_v49  ;;  %v3013_v41 = vmul.f32 1.442695, %v2895_v23  ;;  %v10590_v20 = vpop.eup %7208 }
 0x40d   :  { %v5618_v9 = vadd.f32 %v5617_v40, %v5616_v7  ;;  %6925 = vset.pattern.permute.xlu0 %v11426_v32  ;;  %6926 = vset.pattern.permute.xlu1 %v11432_v56  ;;  %v2795_v7 = vrot.slane %v2794_v10, 2  ;;  %v2788_v40 = vrot.slane %v2787_v13, 2  ;;  %v2799_v26 = vsel %vm1811_vm2, %v10559_v11, -inf }
 0x40e   :  { %4810 = vperm.xlu0 %6925, %v4037_v1   ;;  %5066 = vperm.xlu1 %6926, %v4037_v1   ;;  %v10569_v1 = vmul.f32 %v11550_v43, %v3576_v22  ;;  %v6025_v22 = vmax.f32 %v5961_v19, 0.0  ;;  %v4039_v15 = vmul.f32 %v11551_v52, %v3574_v6  ;;  %v3404_v49 = vsel %vm1811_vm2, %v10571_v31, 0.0 }
 0x40f   :  { %v5619_v57 = vrot.slane %v5618_v9, 1  ;;  %v2796_v61 = vmax.f32 %v2794_v10, %v2795_v7  ;;  %7212 = vrcp.f32 %v10533_v21  ;;  %v3385_v54 = vadd.f32 %v3384_v14, %v3383_v25 }
 0x410   :  { %v10562_v28 = vpop.permute.xlu0 %4219  ;;  %v10564_v2 = vpop.permute.xlu1 %4506  ;;  %v2808_v38 = vmax.f32 %v2806_v12, %v2807_v27  ;;  %v3395_v39 = vrot.slane %v3394_v62, 1  ;;  %v2789_v47 = vmax.f32 %v2787_v13, %v2788_v40  ;;  %v2800_v0 = vrot.slane %v2799_v26, 4 }
 0x411   :  { %v5620_v42 = vadd.f32 %v5619_v57, %v5618_v9  ;;  %v6176_v9 = vsel %vm6129_vm8, %v6175_v8, %v6174_v34  ;;  %v6179_v57 = vrot.slane %v6023_v45, 3  ;;  %v3405_v10 = vrot.slane %v3404_v49, 4 }
 0x412   :  { %6928 = vset.pattern.permute.xlu0 %v11422_v63  ;;  %6927 = vset.pattern.permute.xlu1 %v11421_v17  ;;  %v6183_v16 = vrot.slane %v6025_v22, 1  ;;  %v3397_v25 = vsel %vm1811_vm2, %v10590_v20, 0.0  ;;  %7214 = vpow2.f32 %v3013_v41  ;;  %v2797_v12 = vrot.slane %v2796_v61, 1 }
 0x413   :  { %v5889_v24 = vmul.f32 %v10501_v36, %v5620_v42  ;;  %4566 = vperm.xlu0 %6928, %v10569_v1   ;;  %4294 = vperm.xlu1 %6927, %v10569_v1   ;;  %v11552_v42 = vld [vmem:[#allocation32_spill] sm:$0xff]  ;;  %v10615_v7 = vpop.eup %7210  ;;  %v3386_v34 = vrot.slane %v3385_v54, 2  ;;  %v3580_v14 = vmul.f32 %v7207_v59, %v10353_v58  ;;  %v2790_v27 = vrot.slane %v2789_v47, 1 }
 0x414   :  { %v10605_v43 = vadd.f32 %v10297_v51, %v11552_v42  ;;  %v2801_v8 = vmax.f32 %v2799_v26, %v2800_v0  ;;  %v3406_v45 = vadd.f32 %v3405_v10, %v3404_v49  ;;  %v3398_v41 = vrot.slane %v3397_v25, 4 }
 0x415   :  { %v5960_v4 = vadd.f32 %v10153_v37, %v5889_v24  ;;  %v10586_v53 = vpop.permute.xlu0 %4762  ;;  %v10588_v44 = vpop.permute.xlu1 %5018  ;;  %v6178_v37 = vsel %vm6132_vm9, %v6177_v29, %v6176_v9  ;;  %v2809_v29 = vrot.slane %v2808_v38, 2  ;;  %v3418_v58 = vsel %vm1811_vm2, %v10615_v7, 0.0 }
 0x416   :  { %v6180_v19 = vsel %vm6135_vm10, %v6179_v57, %v6178_v37  ;;  %v2820_v40 = vsel %vm1811_vm2, %v10605_v43, -inf  ;;  %v2798_v59 = vmax.f32 %v2796_v61, %v2797_v12  ;;  %v3387_v22 = vadd.f32 %v3386_v34, %v3385_v54  ;;  %v11553_v37 = vld [vmem:[#allocation64_spill] sm:$0xff] }
 0x417   :  { %v6024_v23 = vmax.f32 %v5960_v4, 0.0  ;;  %6930 = vset.pattern.permute.xlu0 %v11421_v17  ;;  %6929 = vset.pattern.permute.xlu1 %v11426_v32  ;;  %v3396_v4 = vadd.f32 %v3395_v39, %v3394_v62  ;;  %v2810_v52 = vmax.f32 %v2808_v38, %v2809_v29  ;;  %v2791_v57 = vmax.f32 %v2789_v47, %v2790_v27 }
 0x418   :  { %4289 = vperm.xlu0 %6930, %v4039_v15   ;;  %4822 = vperm.xlu1 %6929, %v10569_v1   ;;  %v2802_v0 = vrot.slane %v2801_v8, 2  ;;  %v2821_v49 = vrot.slane %v2820_v40, 4  ;;  %v3407_v39 = vrot.slane %v3406_v45, 2  ;;  %v3419_v10 = vrot.slane %v3418_v58, 4 }
 0x419   :  { %v6181_v30 = vrot.slane %v6024_v23, 2  ;;  %v4042_v23 = vmul.f32 %v11553_v37, %v3580_v14  ;;  %v7213_v62 = vpop.eup %7212  ;;  %7216 = vrcp.f32 %v3396_v4  ;;  %v2898_v61 = vsub.f32 %v10368_v50, %v2798_v59 }
 0x41a   :  { %v10608_v6 = vpop.permute.xlu0 %4518  ;;  %v10610_v21 = vpop.permute.xlu1 %4234  ;;  %v3388_v54 = vrot.slane %v3387_v22, 1  ;;  %v2811_v38 = vrot.slane %v2810_v52, 1  ;;  %v2803_v12 = vmax.f32 %v2801_v8, %v2802_v0  ;;  %v3408_v34 = vadd.f32 %v3407_v39, %v3406_v45  ;;  %v11554_v45 = vld [vmem:[#allocation34_spill] sm:$0xff] }
 0x41b   :  { %v6182_v13 = vsel %vm6138_vm11, %v6181_v30, %v6180_v19  ;;  %v3399_v30 = vadd.f32 %v3398_v41, %v3397_v25  ;;  %v2897_v19 = vsub.f32 %v10517_v55, %v2791_v57  ;;  %v3019_v50 = vmul.f32 1.442695, %v2898_v61  ;;  %v11555_v57 = vld [vmem:[#allocation69_spill] sm:$0xff] }
 0x41c   :  { %v6184_v24 = vsel %vm6141_vm12, %v6183_v16, %v6182_v13  ;;  %6932 = vset.pattern.permute.xlu0 %v11426_v32  ;;  %6931 = vset.pattern.permute.xlu1 %v11422_v63  ;;  %v10637_v47 = vpop.eup %7214  ;;  %v2822_v13 = vmax.f32 %v2820_v40, %v2821_v49  ;;  %v3389_v25 = vadd.f32 %v3388_v54, %v3387_v22  ;;  %v2804_v8 = vrot.slane %v2803_v12, 1 }
 0x41d   :  { %6252 = vst.msk [vmem:[%s11386_s11 + $0x18] sm:$0xff] %vm1161_vm0, %v6184_v24  ;;  %4818 = vperm.xlu0 %6932, %v4039_v15   ;;  %4562 = vperm.xlu1 %6931, %v4039_v15   ;;  %v3400_v29 = vrot.slane %v3399_v30, 2  ;;  %v3420_v24 = vadd.f32 %v3419_v10, %v3418_v58  ;;  %v3411_v14 = vsel %vm1811_vm2, %v10637_v47, 0.0  ;;  %v2812_v27 = vmax.f32 %v2810_v52, %v2811_v38 }
 0x41e   :  { %v3017_v55 = vmul.f32 1.442695, %v2897_v19  ;;  %v2823_v41 = vrot.slane %v2822_v13, 2  ;;  %v10647_v40 = vadd.f32 %v10297_v51, %v11554_v45  ;;  %v3412_v22 = vrot.slane %v3411_v14, 4 }
 0x41f   :  { %v10629_v9 = vpop.permute.xlu0 %5030  ;;  %v10631_v26 = vpop.permute.xlu1 %4774  ;;  %v3401_v59 = vadd.f32 %v3400_v29, %v3399_v30  ;;  %v3421_v37 = vrot.slane %v3420_v24, 2  ;;  %7218 = vpow2.f32 %v3019_v50  ;;  %v2900_v52 = vsub.f32 %v10547_v35, %v2812_v27 }
 0x420   :  { %7220 = vrcp.f32 %v3389_v25  ;;  %v2805_v30 = vmax.f32 %v2803_v12, %v2804_v8  ;;  %v2824_v10 = vmax.f32 %v2822_v13, %v2823_v41  ;;  %v2813_v61 = vsel %vm1811_vm2, %v10647_v40, -inf  ;;  %v7299_v13 = vld [vmem:[%s11378_s3 + $0x110] sm:$0xff]  ;;  %v1057_v8 = vld [vmem:[%s11383_s2 + $0x118] sm:$0xff]  ;;  %v7301_v41 = vld [vmem:[%s11378_s3 + $0x100] sm:$0xff] }
 0x421   :  { %6935 = vset.pattern.permute.xlu0 %v11422_v63  ;;  %6933 = vset.pattern.permute.xlu1 %v11432_v56  ;;  %7222 = vpow2.f32 %v3017_v55  ;;  %v3402_v38 = vrot.slane %v3401_v59, 1  ;;  %v3422_v19 = vadd.f32 %v3421_v37, %v3420_v24  ;;  %v5179_v35 = vsel %vm5145_vm3, %v10523_v18, %v10520_v46  ;;  %v1054_v18 = vld [vmem:[%s11383_s2 + $0x100] sm:$0xff] }
 0x422   :  { %4574 = vperm.xlu0 %6935, %v4042_v23   ;;  %5074 = vperm.xlu1 %6933, %v4039_v15   ;;  %v3578_v15 = vmul.f32 %v7213_v62, %v10375_v3  ;;  %v3409_v3 = vrot.slane %v3408_v34, 1  ;;  %v1056_v62 = vld [vmem:[%s11383_s2 + $0x110] sm:$0xff]  ;;  %v3413_v29 = vadd.f32 %v3412_v22, %v3411_v14  ;;  %v5244_v12 = vsel %vm5210_vm4, %v5179_v35, %v10541_v33  ;;  %v1059_v35 = vld [vmem:[%s11383_s2 + $0x128] sm:$0xff] }
 0x423   :  { %v7217_v39 = vpop.eup %7216  ;;  %v5178_v46 = vsel %vm5145_vm3, %v10562_v28, %v10564_v2  ;;  %v2899_v25 = vsub.f32 %v10559_v11, %v2805_v30  ;;  %v2825_v14 = vrot.slane %v2824_v10, 1  ;;  %v2814_v27 = vrot.slane %v2813_v61, 4  ;;  %v7300_v28 = vld [vmem:[%s11378_s3 + $0x108] sm:$0xff] }
 0x424   :  { %v4230_v42 = vpop.permute.xlu0 %4229  ;;  %v4515_v16 = vpop.permute.xlu1 %4514  ;;  %v10650_v0 = vmul.f32 %v11555_v57, %v3578_v15  ;;  %v3410_v54 = vadd.f32 %v3409_v3, %v3408_v34  ;;  %v1120_v34 = vadd.f32 %v7299_v13, %v1056_v62  ;;  %v3023_v15 = vmul.f32 1.442695, %v2900_v52  ;;  %v11556_v57 = vld [vmem:[#allocation66_spill] sm:$0xff] }
 0x425   :  { %v5180_v49 = vsel %vm5145_vm3, %v4230_v42, %v4515_v16  ;;  %v1055_v42 = vld [vmem:[%s11383_s2 + $0x108] sm:$0xff]  ;;  %v3584_v50 = vmul.f32 %v7217_v39, %v10411_v5  ;;  %v3403_v55 = vadd.f32 %v3402_v38, %v3401_v59  ;;  %v5309_v5 = vsel %vm5275_vm5, %v5244_v12, %v10539_v48 }
 0x426   :  { %6937 = vset.pattern.permute.xlu0 %v11432_v56  ;;  %6934 = vset.pattern.permute.xlu1 %v11421_v17  ;;  %v1119_v2 = vadd.f32 %v7300_v28, %v1055_v42  ;;  %7224 = vrcp.f32 %v3410_v54  ;;  %v5181_v11 = vsel %vm5145_vm3, %v10610_v21, %v10608_v6  ;;  %v1118_v45 = vadd.f32 %v7301_v41, %v1054_v18 }
 0x427   :  { %5086 = vperm.xlu0 %6937, %v4042_v23   ;;  %4304 = vperm.xlu1 %6934, %v4042_v23   ;;  %v3423_v37 = vrot.slane %v3422_v19, 1  ;;  %v3414_v6 = vrot.slane %v3413_v29, 2  ;;  %v10708_v22 = vmul.f32 %v11556_v57, %v3584_v50  ;;  %7226 = vpow2.f32 %v3023_v15  ;;  %v1058_v50 = vld [vmem:[%s11383_s2 + $0x120] sm:$0xff] }
 0x428   :  { %v5373_v62 = vmul.f32 %v5309_v5, %v1119_v2  ;;  %v3021_v30 = vmul.f32 1.442695, %v2899_v25  ;;  %v2826_v12 = vmax.f32 %v2824_v10, %v2825_v14  ;;  %7228 = vrcp.f32 %v3403_v55  ;;  %v7303_v10 = vld [vmem:[%s11378_s3 + $0x128] sm:$0xff] }
 0x429   :  { %v4771_v4 = vpop.permute.xlu0 %4770  ;;  %v5027_v58 = vpop.permute.xlu1 %5026 }
 0x42a   :  { %v5245_v24 = vsel %vm5210_vm4, %v5180_v49, %v4771_v4  ;;  %v5243_v4 = vsel %vm5210_vm4, %v5178_v46, %v10586_v53  ;;  %v10710_v52 = vpop.eup %7218  ;;  %v2815_v49 = vmax.f32 %v2813_v61, %v2814_v27  ;;  %v7302_v53 = vld [vmem:[%s11378_s3 + $0x118] sm:$0xff]  ;;  %v5635_v18 = vsel %vm1161_vm0, %v5373_v62, 0.0 }
 0x42b   :  { %6938 = vset.pattern.permute.xlu0 %v11421_v17  ;;  %6936 = vset.pattern.permute.xlu1 %v11426_v32  ;;  %v5310_v33 = vsel %vm5275_vm5, %v5245_v24, %v5027_v58  ;;  %v5246_v58 = vsel %vm5210_vm4, %v5181_v11, %v10631_v26  ;;  %v5308_v21 = vsel %vm5275_vm5, %v5243_v4, %v10588_v44  ;;  %v7221_v39 = vpop.eup %7220  ;;  %v11557_v44 = vld [vmem:[#allocation37_spill] sm:$0xff]  ;;  %7230 = vpow2.f32 %v3021_v30 }
 0x42c   :  { %4299 = vperm.xlu0 %6938, %v10650_v0   ;;  %4830 = vperm.xlu1 %6936, %v4042_v23   ;;  %v5374_v48 = vmul.f32 %v5310_v33, %v1120_v34  ;;  %v1121_v26 = vadd.f32 %v7302_v53, %v1057_v8  ;;  %v10719_v54 = vadd.f32 %v10297_v51, %v11557_v44  ;;  %v10729_v42 = vpop.eup %7222  ;;  %v2816_v46 = vrot.slane %v2815_v49, 2 }
 0x42d   :  { %v5311_v38 = vsel %vm5275_vm5, %v5246_v58, %v10629_v9  ;;  %v5372_v13 = vmul.f32 %v5308_v21, %v1118_v45  ;;  %v3424_v9 = vadd.f32 %v3423_v37, %v3422_v19  ;;  %v3415_v24 = vadd.f32 %v3414_v6, %v3413_v29  ;;  %v11558_v21 = vld [vmem:[#allocation71_spill] sm:$0xff] }
 0x42e   :  { %v4527_v16 = vpop.permute.xlu0 %4526  ;;  %v4245_v23 = vpop.permute.xlu1 %4244  ;;  %v5642_v51 = vsel %vm1161_vm0, %v5374_v48, 0.0  ;;  %v1123_v33 = vadd.f32 %v7303_v10, %v1059_v35  ;;  %v2834_v19 = vsel %vm1811_vm2, %v10719_v54, -inf  ;;  %v3582_v14 = vmul.f32 %v7221_v39, %v10473_v60  ;;  %v7304_v60 = vld [vmem:[%s11378_s3 + $0x120] sm:$0xff] }
 0x42f   :  { %v5183_v61 = vsel %vm5145_vm3, %v4245_v23, %v4527_v16  ;;  %v3432_v16 = vsel %vm1811_vm2, %v10710_v52, 0.0  ;;  %v5643_v29 = vrot.slane %v5642_v51, 4  ;;  %v5628_v28 = vsel %vm1161_vm0, %v5372_v13, 0.0 }
 0x430   :  { %6940 = vset.pattern.permute.xlu0 %v11426_v32  ;;  %6939 = vset.pattern.permute.xlu1 %v11422_v63  ;;  %v3433_v27 = vrot.slane %v3432_v16, 4  ;;  %v7225_v55 = vpop.eup %7224  ;;  %v3416_v5 = vrot.slane %v3415_v24, 1  ;;  %v2902_v11 = vsub.f32 %v10605_v43, %v2826_v12  ;;  %v5636_v8 = vrot.slane %v5635_v18, 4 }
 0x431   :  { %4826 = vperm.xlu0 %6940, %v10650_v0   ;;  %4570 = vperm.xlu1 %6939, %v10650_v0   ;;  %v1122_v41 = vadd.f32 %v7304_v60, %v1058_v50  ;;  %v2817_v45 = vmax.f32 %v2815_v49, %v2816_v46  ;;  %v2835_v4 = vrot.slane %v2834_v19, 4  ;;  %v5629_v37 = vrot.slane %v5628_v28, 4  ;;  %v10761_v62 = vpop.eup %7226  ;;  %v7305_v49 = vld [vmem:[%s11382_s8] ss:$0 sm:$0xff]  ;;  %v1061_v50 = vld [vmem:[%s11383_s2 + $0x138] sm:$0xff] }
 0x432   :  { %v5644_v6 = vadd.f32 %v5643_v29, %v5642_v51  ;;  %v10758_v57 = vmul.f32 %v11558_v21, %v3582_v14  ;;  %7232 = vrcp.f32 %v3424_v9  ;;  %v3434_v53 = vadd.f32 %v3433_v27, %v3432_v16  ;;  %v7229_v9 = vpop.eup %7228 }
 0x433   :  { %v5039_v3 = vpop.permute.xlu0 %5038  ;;  %v4783_v59 = vpop.permute.xlu1 %4782  ;;  %v3027_v44 = vmul.f32 1.442695, %v2902_v11  ;;  %v3417_v12 = vadd.f32 %v3416_v5, %v3415_v24  ;;  %v2818_v13 = vrot.slane %v2817_v45, 1  ;;  %v2836_v51 = vmax.f32 %v2834_v19, %v2835_v4 }
 0x434   :  { %v5248_v34 = vsel %vm5210_vm4, %v5183_v61, %v4783_v59  ;;  %v3425_v16 = vsel %vm1811_vm2, %v10729_v42, 0.0  ;;  %v3435_v10 = vrot.slane %v3434_v53, 2  ;;  %v3588_v24 = vmul.f32 %v7225_v55, %v10571_v31 }
 0x435   :  { %6943 = vset.pattern.permute.xlu0 %v11422_v63  ;;  %6941 = vset.pattern.permute.xlu1 %v11432_v56  ;;  %v5313_v25 = vsel %vm5275_vm5, %v5248_v34, %v5039_v3  ;;  %7234 = vpow2.f32 %v3027_v44  ;;  %v10786_v14 = vpop.eup %7230  ;;  %v3426_v27 = vrot.slane %v3425_v16, 4 }
 0x436   :  { %4582 = vperm.xlu0 %6943, %v10708_v22   ;;  %5082 = vperm.xlu1 %6941, %v10650_v0   ;;  %v5375_v0 = vmul.f32 %v5311_v38, %v1121_v26  ;;  %v5377_v48 = vmul.f32 %v5313_v25, %v1123_v33  ;;  %v11559_v26 = vld [vmem:[#allocation41_spill] sm:$0xff]  ;;  %v5637_v38 = vadd.f32 %v5636_v8, %v5635_v18  ;;  %7236 = vrcp.f32 %v3417_v12 }
 0x437   :  { %v10767_v39 = vadd.f32 %v7305_v49, %v11559_v26  ;;  %v7306_v8 = vld [vmem:[%s11378_s3 + $0x138] sm:$0xff]  ;;  %v3427_v26 = vadd.f32 %v3426_v27, %v3425_v16  ;;  %v3446_v12 = vsel %vm1811_vm2, %v10761_v62, 0.0 }
 0x438   :  { %v4240_v23 = vpop.permute.xlu0 %4239  ;;  %v4523_v15 = vpop.permute.xlu1 %4522  ;;  %v5649_v58 = vsel %vm1161_vm0, %v5375_v0, 0.0  ;;  %v5663_v34 = vsel %vm1161_vm0, %v5377_v48, 0.0  ;;  %v5638_v19 = vrot.slane %v5637_v38, 2  ;;  %v1125_v60 = vadd.f32 %v7306_v8, %v1061_v50  ;;  %v11560_v48 = vld [vmem:[#allocation68_spill] sm:$0xff] }
 0x439   :  { %v5182_v2 = vsel %vm5145_vm3, %v4240_v23, %v4523_v15  ;;  %v5650_v61 = vrot.slane %v5649_v58, 4  ;;  %v5630_v23 = vadd.f32 %v5629_v37, %v5628_v28  ;;  %v5645_v15 = vrot.slane %v5644_v6, 2 }
 0x43a   :  { %6945 = vset.pattern.permute.xlu0 %v11432_v56  ;;  %6942 = vset.pattern.permute.xlu1 %v11421_v17  ;;  %v2827_v33 = vsel %vm1811_vm2, %v10767_v39, -inf  ;;  %v5664_v25 = vrot.slane %v5663_v34, 4  ;;  %v10788_v28 = vmax.f32 %v2817_v45, %v2818_v13  ;;  %v10796_v45 = vmul.f32 %v11560_v48, %v3588_v24 }
 0x43b   :  { %5094 = vperm.xlu0 %6945, %v10708_v22   ;;  %4314 = vperm.xlu1 %6942, %v10708_v22   ;;  %v5651_v29 = vadd.f32 %v5650_v61, %v5649_v58  ;;  %v2828_v55 = vrot.slane %v2827_v33, 4  ;;  %v5631_v5 = vrot.slane %v5630_v23, 2  ;;  %v5646_v11 = vadd.f32 %v5645_v15, %v5644_v6 }
 0x43c   :  { %v5639_v37 = vadd.f32 %v5638_v19, %v5637_v38  ;;  %v10800_v6 = vpop.eup %7232  ;;  %v2901_v44 = vsub.f32 %v10647_v40, %v10788_v28  ;;  %v3439_v50 = vsel %vm1811_vm2, %v10786_v14, 0.0 }
 0x43d   :  { %v4779_v3 = vpop.permute.xlu0 %4778  ;;  %v5035_v59 = vpop.permute.xlu1 %5034  ;;  %v5652_v21 = vrot.slane %v5651_v29, 2  ;;  %v5632_v38 = vadd.f32 %v5631_v5, %v5630_v23  ;;  %v5647_v61 = vrot.slane %v5646_v11, 1 }
 0x43e   :  { %v5247_v43 = vsel %vm5210_vm4, %v5182_v2, %v4779_v3  ;;  %v2837_v2 = vrot.slane %v2836_v51, 2 }
 0x43f   :  { %6946 = vset.pattern.permute.xlu0 %v11421_v17  ;;  %v5312_v30 = vsel %vm5275_vm5, %v5247_v43, %v5035_v59  ;;  %6944 = vset.pattern.permute.xlu1 %v11426_v32  ;;  %v5665_v43 = vadd.f32 %v5664_v25, %v5663_v34  ;;  %v2829_v34 = vmax.f32 %v2827_v33, %v2828_v55  ;;  %v3447_v33 = vrot.slane %v3446_v12, 4 }
 0x440   :  { %4309 = vperm.xlu0 %6946, %v10758_v57   ;;  %v5376_v35 = vmul.f32 %v5312_v30, %v1122_v41  ;;  %4838 = vperm.xlu1 %6944, %v10708_v22   ;;  %v3436_v41 = vadd.f32 %v3435_v10, %v3434_v53  ;;  %v3586_v53 = vmul.f32 %v7229_v9, %v10590_v20  ;;  %v5640_v9 = vrot.slane %v5639_v37, 1  ;;  %v11561_v10 = vld [vmem:[#allocation73_spill] sm:$0xff] }
 0x441   :  { %v2838_v13 = vmax.f32 %v2836_v51, %v2837_v2  ;;  %v5653_v16 = vadd.f32 %v5652_v21, %v5651_v29  ;;  %v5666_v15 = vrot.slane %v5665_v43, 2  ;;  %v10819_v51 = vpop.eup %7234  ;;  %v5633_v19 = vrot.slane %v5632_v38, 1 }
 0x442   :  { %v4535_v46 = vpop.permute.xlu0 %4534  ;;  %v5656_v18 = vsel %vm1161_vm0, %v5376_v35, 0.0  ;;  %v4255_v0 = vpop.permute.xlu1 %4254  ;;  %v3437_v23 = vrot.slane %v3436_v41, 1  ;;  %v5648_v29 = vadd.f32 %v5647_v61, %v5646_v11  ;;  %v7307_v11 = vld [vmem:[%s11378_s3 + $0x130] sm:$0xff]  ;;  %v3448_v21 = vadd.f32 %v3447_v33, %v3446_v12 }
 0x443   :  { %v5657_v22 = vrot.slane %v5656_v18, 4  ;;  %v5185_v3 = vsel %vm5145_vm3, %v4255_v0, %v4535_v46  ;;  %v3428_v0 = vrot.slane %v3427_v26, 2  ;;  %v2839_v25 = vrot.slane %v2838_v13, 1 }
 0x444   :  { %6948 = vset.pattern.permute.xlu0 %v11426_v32  ;;  %6947 = vset.pattern.permute.xlu1 %v11422_v63  ;;  %v5654_v55 = vrot.slane %v5653_v16, 1  ;;  %v5667_v5 = vadd.f32 %v5666_v15, %v5665_v43  ;;  %v3025_v61 = vmul.f32 1.442695, %v2901_v44 }
 0x445   :  { %4834 = vperm.xlu0 %6948, %v10758_v57   ;;  %v5658_v31 = vadd.f32 %v5657_v22, %v5656_v18  ;;  %4578 = vperm.xlu1 %6947, %v10758_v57   ;;  %v10814_v22 = vmul.f32 %v11561_v10, %v3586_v53  ;;  %v5893_v53 = vmul.f32 %v10501_v36, %v5648_v29 }
 0x446   :  { %v5668_v15 = vrot.slane %v5667_v5, 1  ;;  %v10839_v44 = vmax.f32 %v2838_v13, %v2839_v25  ;;  %7238 = vpow2.f32 %v3025_v61 }
 0x447   :  { %v5659_v4 = vrot.slane %v5658_v31, 2  ;;  %v5047_v58 = vpop.permute.xlu0 %5046  ;;  %v4791_v59 = vpop.permute.xlu1 %4790 }
 0x448   :  { %v5250_v49 = vsel %vm5210_vm4, %v5185_v3, %v4791_v59  ;;  %v5669_v25 = vadd.f32 %v5668_v15, %v5667_v5 }
 0x449   :  { %6951 = vset.pattern.permute.xlu0 %v11422_v63  ;;  %v5315_v30 = vsel %vm5275_vm5, %v5250_v49, %v5047_v58  ;;  %6949 = vset.pattern.permute.xlu1 %v11432_v56  ;;  %v5660_v20 = vadd.f32 %v5659_v4, %v5658_v31  ;;  %v5641_v31 = vadd.f32 %v5640_v9, %v5639_v37  ;;  %v2830_v58 = vrot.slane %v2829_v34, 2  ;;  %v7237_v37 = vpop.eup %7236 }
 0x44a   :  { %4590 = vperm.xlu0 %6951, %v10796_v45   ;;  %v5379_v35 = vmul.f32 %v5315_v30, %v1125_v60  ;;  %5090 = vperm.xlu1 %6949, %v10758_v57   ;;  %v1060_v57 = vld [vmem:[%s11383_s2 + $0x130] sm:$0xff]  ;;  %v3438_v60 = vadd.f32 %v3437_v23, %v3436_v41  ;;  %v3429_v4 = vadd.f32 %v3428_v0, %v3427_v26 }
 0x44b   :  { %v5661_v27 = vrot.slane %v5660_v20, 1  ;;  %v1124_v8 = vadd.f32 %v7307_v11, %v1060_v57  ;;  %v5634_v49 = vadd.f32 %v5633_v19, %v5632_v38  ;;  %v5892_v41 = vmul.f32 %v10501_v36, %v5641_v31 }
 0x44c   :  { %v4250_v46 = vpop.permute.xlu0 %4249  ;;  %v5677_v18 = vsel %vm1161_vm0, %v5379_v35, 0.0  ;;  %v4531_v40 = vpop.permute.xlu1 %4530  ;;  %v5655_v26 = vadd.f32 %v5654_v55, %v5653_v16  ;;  %v3430_v12 = vrot.slane %v3429_v4, 1  ;;  %v3592_v16 = vmul.f32 %v10800_v6, %v10615_v7 }
 0x44d   :  { %v5678_v24 = vrot.slane %v5677_v18, 4  ;;  %v5184_v2 = vsel %vm5145_vm3, %v4250_v46, %v4531_v40  ;;  %v5662_v43 = vadd.f32 %v5661_v27, %v5660_v20  ;;  %v3440_v46 = vrot.slane %v3439_v50, 4 }
 0x44e   :  { %6954 = vset.pattern.permute.xlu0 %v11421_v17  ;;  %6950 = vset.pattern.permute.xlu1 %v11421_v17  ;;  %v10841_v20 = vmax.f32 %v2829_v34, %v2830_v58  ;;  %v5894_v29 = vmul.f32 %v10501_v36, %v5655_v26  ;;  %7240 = vrcp.f32 %v3438_v60  ;;  %v3449_v7 = vrot.slane %v3448_v21, 2 }
 0x44f   :  { %4319 = vperm.xlu0 %6954, %v10814_v22   ;;  %v5679_v28 = vadd.f32 %v5678_v24, %v5677_v18  ;;  %4324 = vperm.xlu1 %6950, %v10796_v45   ;;  %v5891_v18 = vmul.f32 %v10501_v36, %v5634_v49  ;;  %v10850_v24 = vld [vmem:[%s11385_s10] ss:$0 sm:$0xff]  ;;  %v5895_v34 = vmul.f32 %v10501_v36, %v5662_v43 }
 0x450   :  { %v5964_v13 = vadd.f32 %v10850_v24, %v5893_v53  ;;  %v5963_v19 = vadd.f32 %v10850_v24, %v5892_v41  ;;  %v10859_v6 = vadd.f32 %v3440_v46, %v3439_v50  ;;  %v11562_v50 = vld [vmem:[#allocation70_spill] sm:$0xff]  ;;  %v3450_v53 = vadd.f32 %v3449_v7, %v3448_v21  ;;  %v7309_v21 = vld [vmem:[%s11378_s3 + $0x148] sm:$0xff] }
 0x451   :  { %v5680_v48 = vrot.slane %v5679_v28, 2  ;;  %v4787_v3 = vpop.permute.xlu0 %4786  ;;  %v5043_v59 = vpop.permute.xlu1 %5042  ;;  %v5962_v31 = vadd.f32 %v10850_v24, %v5891_v18  ;;  %v5966_v11 = vadd.f32 %v10850_v24, %v5895_v34  ;;  %v10870_v58 = vmul.f32 %v11562_v50, %v3592_v16 }
 0x452   :  { %v5249_v30 = vsel %vm5210_vm4, %v5184_v2, %v4787_v3  ;;  %v2904_v2 = vsub.f32 %v10719_v54, %v10839_v44  ;;  %v6028_v5 = vmax.f32 %v5964_v13, 0.0  ;;  %v5965_v3 = vadd.f32 %v10850_v24, %v5894_v29  ;;  %v10898_v13 = vpop.eup %7238 }
 0x453   :  { %v5681_v35 = vadd.f32 %v5680_v48, %v5679_v28  ;;  %6956 = vset.pattern.permute.xlu0 %v11426_v32  ;;  %v5314_v9 = vsel %vm5275_vm5, %v5249_v30, %v5043_v59  ;;  %6952 = vset.pattern.permute.xlu1 %v11426_v32  ;;  %v3431_v28 = vadd.f32 %v3430_v12, %v3429_v4  ;;  %v6027_v4 = vmax.f32 %v5963_v19, 0.0 }
 0x454   :  { %4842 = vperm.xlu0 %6956, %v10814_v22   ;;  %v5378_v38 = vmul.f32 %v5314_v9, %v1124_v8  ;;  %4846 = vperm.xlu1 %6952, %v10796_v45   ;;  %v5896_v59 = vmul.f32 %v10501_v36, %v5669_v25  ;;  %v10880_v30 = vsel %vm1811_vm2, %v10819_v51, 0.0  ;;  %v3590_v43 = vmul.f32 %v7237_v37, %v10637_v47 }
 0x455   :  { %v5682_v40 = vrot.slane %v5681_v35, 1  ;;  %v6026_v9 = vmax.f32 %v5962_v31, 0.0  ;;  %7242 = vrcp.f32 %v3431_v28  ;;  %v6187_v15 = vrot.slane %v6028_v5, 6 }
 0x456   :  { %v4543_v23 = vpop.permute.xlu0 %4542  ;;  %v5670_v0 = vsel %vm1161_vm0, %v5378_v38, 0.0  ;;  %v4265_v10 = vpop.permute.xlu1 %4264  ;;  %v6030_v38 = vmax.f32 %v5966_v11, 0.0  ;;  %v3442_v37 = vrot.slane %v10859_v6, 2  ;;  %v6185_v12 = vrot.slane %v6027_v4, 7 }
 0x457   :  { %v5671_v57 = vrot.slane %v5670_v0, 4  ;;  %v5187_v33 = vsel %vm5145_vm3, %v4265_v10, %v4543_v23  ;;  %v5683_v55 = vadd.f32 %v5682_v40, %v5681_v35  ;;  %v2832_v35 = vrot.slane %v10841_v20, 1 }
 0x458   :  { %6957 = vset.pattern.permute.xlu0 %v11432_v56  ;;  %6953 = vset.pattern.permute.xlu1 %v11432_v56  ;;  %v6029_v46 = vmax.f32 %v5965_v3, 0.0  ;;  %v5967_v18 = vadd.f32 %v10850_v24, %v5896_v59  ;;  %v3451_v23 = vrot.slane %v3450_v53, 1  ;;  %v6186_v34 = vsel %vm6123_vm6, %v6185_v12, %v6026_v9  ;;  %v7241_v19 = vpop.eup %7240  ;;  %v1062_v59 = vld [vmem:[%s11383_s2 + $0x140] sm:$0xff] }
 0x459   :  { %5098 = vperm.xlu0 %6957, %v10814_v22   ;;  %v5672_v27 = vadd.f32 %v5671_v57, %v5670_v0  ;;  %5102 = vperm.xlu1 %6953, %v10796_v45   ;;  %v1063_v45 = vld [vmem:[%s11383_s2 + $0x148] sm:$0xff]  ;;  %v5898_v41 = vmul.f32 %v10501_v36, %v5683_v55  ;;  %v3461_v29 = vrot.slane %v10880_v30, 4  ;;  %v6188_v25 = vsel %vm6126_vm7, %v6187_v15, %v6186_v34 }
 0x45a   :  { %v1127_v26 = vadd.f32 %v7309_v21, %v1063_v45  ;;  %v6191_v7 = vrot.slane %v6030_v38, 4  ;;  %v2833_v31 = vmax.f32 %v10841_v20, %v2832_v35  ;;  %v6189_v55 = vrot.slane %v6029_v46, 5 }
 0x45b   :  { %v5673_v8 = vrot.slane %v5672_v27, 2  ;;  %v10867_v60 = vpop.permute.xlu0 %4259  ;;  %v4799_v48 = vpop.permute.xlu1 %4798  ;;  %v5969_v57 = vadd.f32 %v10850_v24, %v5898_v41  ;;  %v6031_v5 = vmax.f32 %v5967_v18, 0.0  ;;  %v3443_v50 = vadd.f32 %v3442_v37, %v10859_v6 }
 0x45c   :  { %v5252_v49 = vsel %vm5210_vm4, %v5187_v33, %v4799_v48  ;;  %v3596_v20 = vmul.f32 %v7241_v19, %v10710_v52  ;;  %v3031_v41 = vmul.f32 1.442695, %v2904_v2  ;;  %v7311_v52 = vld [vmem:[%s11378_s3 + $0x140] sm:$0xff]  ;;  %v2903_v15 = vsub.f32 %v10767_v39, %v2833_v31  ;;  %v11565_v31 = vld [vmem:[#allocation77_spill] sm:$0xff] }
 0x45d   :  { %v5674_v61 = vadd.f32 %v5673_v8, %v5672_v27  ;;  %6959 = vset.pattern.permute.xlu0 %v11422_v63  ;;  %6955 = vset.pattern.permute.xlu1 %v11422_v63  ;;  %v10909_v27 = vld [vmem:[%s11384_s9] ss:$0 sm:$0xff]  ;;  %v3452_v8 = vadd.f32 %v3451_v23, %v3450_v53  ;;  %v6193_v21 = vrot.slane %v6031_v5, 3  ;;  %v3444_v37 = vrot.slane %v3443_v50, 1 }
 0x45e   :  { %4598 = vperm.xlu0 %6959, %v10870_v58   ;;  %4586 = vperm.xlu1 %6955, %v10814_v22   ;;  %v11563_v22 = vld [vmem:[#allocation75_spill] sm:$0xff]  ;;  %v3462_v54 = vadd.f32 %v3461_v29, %v10880_v30 }
 0x45f   :  { %v5675_v47 = vrot.slane %v5674_v61, 1  ;;  %v10895_v16 = vmul.f32 %v11563_v22, %v3590_v43  ;;  %7244 = vrcp.f32 %v3452_v8 }
 0x460   :  { %v4795_v36 = vpop.permute.xlu0 %4794  ;;  %v5055_v40 = vpop.permute.xlu1 %5054  ;;  %7246 = vpow2.f32 %v3031_v41  ;;  %v1064_v41 = vld [vmem:[%s11383_s2 + $0x150] sm:$0xff] }
 0x461   :  { %v5676_v0 = vadd.f32 %v5675_v47, %v5674_v61  ;;  %v5317_v10 = vsel %vm5275_vm5, %v5252_v49, %v5055_v40  ;;  %v6190_v49 = vsel %vm6129_vm8, %v6189_v55, %v6188_v25  ;;  %v6033_v61 = vmax.f32 %v5969_v57, 0.0  ;;  %v11564_v40 = vld [vmem:[#allocation72_spill] sm:$0xff] }
 0x462   :  { %6961 = vset.pattern.permute.xlu0 %v11421_v17  ;;  %v5381_v33 = vmul.f32 %v5317_v10, %v1127_v26  ;;  %6958 = vset.pattern.permute.xlu1 %v11421_v17  ;;  %v6192_v53 = vsel %vm6132_vm9, %v6191_v7, %v6190_v49  ;;  %v7243_v26 = vpop.eup %7242  ;;  %v10942_v23 = vmul.f32 %v11564_v40, %v3596_v20  ;;  %v3029_v10 = vmul.f32 1.442695, %v2903_v15 }
 0x463   :  { %v5897_v28 = vmul.f32 %v10909_v27, %v5676_v0  ;;  %4329 = vperm.xlu0 %6961, %v10895_v16   ;;  %4334 = vperm.xlu1 %6958, %v10870_v58   ;;  %v6197_v44 = vrot.slane %v6033_v61, 1  ;;  %v6194_v2 = vsel %vm6135_vm10, %v6193_v21, %v6192_v53  ;;  %v3594_v22 = vmul.f32 %v7243_v26, %v10729_v42 }
 0x464   :  { %v5691_v11 = vsel %vm1161_vm0, %v5381_v33, 0.0  ;;  %v3453_v57 = vsel %vm1811_vm2, %v10898_v13, 0.0  ;;  %v3445_v33 = vadd.f32 %v3444_v37, %v3443_v50  ;;  %7248 = vpow2.f32 %v3029_v10 }
 0x465   :  { %v5968_v48 = vadd.f32 %v10850_v24, %v5897_v28  ;;  %v4551_v45 = vpop.permute.xlu0 %4550  ;;  %v5692_v4 = vrot.slane %v5691_v11, 4  ;;  %v4539_v3 = vpop.permute.xlu1 %4538  ;;  %v3463_v28 = vrot.slane %v3462_v54, 2  ;;  %v10959_v55 = vmul.f32 %v11565_v31, %v3594_v22 }
 0x466   :  { %v5186_v43 = vsel %vm5145_vm3, %v10867_v60, %v4539_v3  ;;  %v1126_v60 = vadd.f32 %v7311_v52, %v1062_v59  ;;  %v3454_v8 = vrot.slane %v3453_v57, 4  ;;  %7250 = vrcp.f32 %v3445_v33  ;;  %v7312_v3 = vld [vmem:[%s11378_s3 + $0x158] sm:$0xff] }
 0x467   :  { %v6032_v6 = vmax.f32 %v5968_v48, 0.0  ;;  %6963 = vset.pattern.permute.xlu0 %v11426_v32  ;;  %v5693_v35 = vadd.f32 %v5692_v4, %v5691_v11  ;;  %6960 = vset.pattern.permute.xlu1 %v11426_v32  ;;  %v5251_v9 = vsel %vm5210_vm4, %v5186_v43, %v4795_v36  ;;  %v1065_v11 = vld [vmem:[%s11383_s2 + $0x158] sm:$0xff]  ;;  %v3464_v49 = vadd.f32 %v3463_v28, %v3462_v54  ;;  %v7313_v54 = vld [vmem:[%s11378_s3 + $0x150] sm:$0xff] }
 0x468   :  { %4850 = vperm.xlu0 %6963, %v10895_v16   ;;  %4854 = vperm.xlu1 %6960, %v10870_v58   ;;  %v1129_v59 = vadd.f32 %v7312_v3, %v1065_v11  ;;  %v3455_v43 = vadd.f32 %v3454_v8, %v3453_v57 }
 0x469   :  { %v6195_v38 = vrot.slane %v6032_v6, 2  ;;  %v5694_v47 = vrot.slane %v5693_v35, 2  ;;  %v7245_v50 = vpop.eup %7244  ;;  %v3465_v15 = vrot.slane %v3464_v49, 1 }
 0x46a   :  { %v5063_v12 = vpop.permute.xlu0 %5062  ;;  %v5051_v46 = vpop.permute.xlu1 %5050 }
 0x46b   :  { %v6196_v18 = vsel %vm6138_vm11, %v6195_v38, %v6194_v2  ;;  %v5695_v36 = vadd.f32 %v5694_v47, %v5693_v35  ;;  %v5316_v0 = vsel %vm5275_vm5, %v5251_v9, %v5051_v46  ;;  %v3600_v35 = vmul.f32 %v7245_v50, %v10761_v62  ;;  %v10981_v21 = vpop.eup %7246  ;;  %v11566_v46 = vld [vmem:[#allocation74_spill] sm:$0xff] }
 0x46c   :  { %v6198_v39 = vsel %vm6141_vm12, %v6197_v44, %v6196_v18  ;;  %6965 = vset.pattern.permute.xlu0 %v11422_v63  ;;  %v5380_v30 = vmul.f32 %v5316_v0, %v1126_v60  ;;  %6962 = vset.pattern.permute.xlu1 %v11422_v63  ;;  %v3456_v62 = vrot.slane %v3455_v43, 2  ;;  %v1128_v44 = vadd.f32 %v7313_v54, %v1064_v41 }
 0x46d   :  { %6253 = vst.msk [vmem:[%s11386_s11 + $0x20] sm:$0xff] %vm1161_vm0, %v6198_v39  ;;  %v5696_v34 = vrot.slane %v5695_v36, 1  ;;  %4606 = vperm.xlu0 %6965, %v10942_v23   ;;  %4594 = vperm.xlu1 %6962, %v10895_v16   ;;  %v10993_v18 = vmul.f32 %v11566_v46, %v3600_v35 }
 0x46e   :  { %v5684_v42 = vsel %vm1161_vm0, %v5380_v30, 0.0  ;;  %v10996_v0 = vpop.eup %7248 }
 0x46f   :  { %v5697_v19 = vadd.f32 %v5696_v34, %v5695_v36  ;;  %v4270_v29 = vpop.permute.xlu0 %4269  ;;  %v5685_v25 = vrot.slane %v5684_v42, 4  ;;  %v4275_v7 = vpop.permute.xlu1 %4274 }
 0x470   :  { %v5189_v5 = vsel %vm5145_vm3, %v4275_v7, %v4551_v45  ;;  %v7251_v57 = vpop.eup %7250  ;;  %v3467_v7 = vsel %vm1811_vm2, %v10996_v0, 0.0 }
 0x471   :  { %6968 = vset.pattern.permute.xlu0 %v11421_v17  ;;  %v5686_v48 = vadd.f32 %v5685_v25, %v5684_v42  ;;  %6964 = vset.pattern.permute.xlu1 %v11421_v17  ;;  %v5900_v4 = vmul.f32 %v10909_v27, %v5697_v19  ;;  %v3466_v42 = vadd.f32 %v3465_v15, %v3464_v49 }
 0x472   :  { %4339 = vperm.xlu0 %6968, %v10959_v55   ;;  %4344 = vperm.xlu1 %6964, %v10942_v23   ;;  %v3457_v25 = vadd.f32 %v3456_v62, %v3455_v43  ;;  %v3598_v3 = vmul.f32 %v7251_v57, %v10786_v14 }
 0x473   :  { %v5687_v45 = vrot.slane %v5686_v48, 2  ;;  %v5971_v52 = vadd.f32 %v10850_v24, %v5900_v4  ;;  %7252 = vrcp.f32 %v3466_v42 }
 0x474   :  { %v4803_v61 = vpop.permute.xlu0 %4802  ;;  %v4807_v20 = vpop.permute.xlu1 %4806  ;;  %v3458_v14 = vrot.slane %v3457_v25, 1 }
 0x475   :  { %v5688_v53 = vadd.f32 %v5687_v45, %v5686_v48  ;;  %v5254_v6 = vsel %vm5210_vm4, %v5189_v5, %v4807_v20  ;;  %v6035_v39 = vmax.f32 %v5971_v52, 0.0 }
 0x476   :  { %6970 = vset.pattern.permute.xlu0 %v11426_v32  ;;  %v5319_v9 = vsel %vm5275_vm5, %v5254_v6, %v5063_v12  ;;  %6966 = vset.pattern.permute.xlu1 %v11426_v32  ;;  %v3474_v12 = vsel %vm1811_vm2, %v10981_v21, 0.0 }
 0x477   :  { %v5689_v60 = vrot.slane %v5688_v53, 1  ;;  %4858 = vperm.xlu0 %6970, %v10959_v55   ;;  %v5383_v26 = vmul.f32 %v5319_v9, %v1129_v59  ;;  %4862 = vperm.xlu1 %6966, %v10942_v23   ;;  %v3475_v33 = vrot.slane %v3474_v12, 4  ;;  %v6199_v11 = vrot.slane %v6035_v39, 7 }
 0x479   :  { %v5690_v38 = vadd.f32 %v5689_v60, %v5688_v53  ;;  %v5059_v47 = vpop.permute.xlu0 %5058  ;;  %v5705_v37 = vsel %vm1161_vm0, %v5383_v26, 0.0  ;;  %v4547_v2 = vpop.permute.xlu1 %4546  ;;  %v3476_v59 = vadd.f32 %v3475_v33, %v3474_v12  ;;  %v7314_v53 = vld [vmem:[%s11378_s3 + $0x168] sm:$0xff] }
 0x47a   :  { %v5706_v36 = vrot.slane %v5705_v37, 4  ;;  %v5188_v40 = vsel %vm5145_vm3, %v4270_v29, %v4547_v2  ;;  %v11567_v60 = vld [vmem:[#allocation79_spill] sm:$0xff]  ;;  %v3459_v2 = vadd.f32 %v3458_v14, %v3457_v25 }
 0x47b   :  { %v5899_v22 = vmul.f32 %v10909_v27, %v5690_v38  ;;  %6973 = vset.pattern.permute.xlu0 %v11422_v63  ;;  %v5253_v30 = vsel %vm5210_vm4, %v5188_v40, %v4803_v61  ;;  %6967 = vset.pattern.permute.xlu1 %v11432_v56  ;;  %v3468_v61 = vrot.slane %v3467_v7, 4  ;;  %v11025_v26 = vmul.f32 %v11567_v60, %v3598_v3 }
 0x47c   :  { %4614 = vperm.xlu0 %6973, %v10993_v18   ;;  %v5707_v10 = vadd.f32 %v5706_v36, %v5705_v37  ;;  %v5318_v34 = vsel %vm5275_vm5, %v5253_v30, %v5059_v47  ;;  %5118 = vperm.xlu1 %6967, %v10942_v23   ;;  %v1067_v23 = vld [vmem:[%s11383_s2 + $0x168] sm:$0xff]  ;;  %v3477_v62 = vrot.slane %v3476_v59, 2  ;;  %7254 = vrcp.f32 %v3459_v2 }
 0x47d   :  { %v5970_v19 = vadd.f32 %v10850_v24, %v5899_v22  ;;  %v5382_v29 = vmul.f32 %v5318_v34, %v1128_v44  ;;  %v1131_v6 = vadd.f32 %v7314_v53, %v1067_v23  ;;  %v3469_v47 = vadd.f32 %v3468_v61, %v3467_v7 }
 0x47e   :  { %v5708_v28 = vrot.slane %v5707_v10, 2  ;;  %v4559_v31 = vpop.permute.xlu0 %4558  ;;  %v4285_v5 = vpop.permute.xlu1 %4284  ;;  %v3478_v39 = vadd.f32 %v3477_v62, %v3476_v59 }
 0x47f   :  { %v6034_v8 = vmax.f32 %v5970_v19, 0.0  ;;  %v5698_v48 = vsel %vm1161_vm0, %v5382_v29, 0.0  ;;  %v5191_v50 = vsel %vm5145_vm3, %v4285_v5, %v4559_v31  ;;  %v3470_v34 = vrot.slane %v3469_v47, 2  ;;  %v7315_v29 = vld [vmem:[%s11378_s3 + $0x160] sm:$0xff] }
 0x480   :  { %v5709_v4 = vadd.f32 %v5708_v28, %v5707_v10  ;;  %6975 = vset.pattern.permute.xlu0 %v11432_v56  ;;  %v5699_v45 = vrot.slane %v5698_v48, 4  ;;  %6969 = vset.pattern.permute.xlu1 %v11422_v63  ;;  %v1066_v10 = vld [vmem:[%s11383_s2 + $0x160] sm:$0xff]  ;;  %v3479_v7 = vrot.slane %v3478_v39, 1 }
 0x481   :  { %v11017_v49 = vsel %vm6123_vm6, %v6199_v11, %v6034_v8  ;;  %5126 = vperm.xlu0 %6975, %v10993_v18   ;;  %4602 = vperm.xlu1 %6969, %v10959_v55   ;;  %v1130_v25 = vadd.f32 %v7315_v29, %v1066_v10  ;;  %v3471_v11 = vadd.f32 %v3470_v34, %v3469_v47  ;;  %v11569_v10 = vld [vmem:[#allocation80_spill] sm:$0xff] }
 0x482   :  { %v5710_v20 = vrot.slane %v5709_v4, 1  ;;  %v5700_v43 = vadd.f32 %v5699_v45, %v5698_v48  ;;  %v3480_v61 = vadd.f32 %v3479_v7, %v3478_v39 }
 0x483   :  { %v5071_v35 = vpop.permute.xlu0 %5070  ;;  %v4815_v9 = vpop.permute.xlu1 %4814 }
 0x484   :  { %v5711_v41 = vadd.f32 %v5710_v20, %v5709_v4  ;;  %v5701_v52 = vrot.slane %v5700_v43, 2  ;;  %v5256_v15 = vsel %vm5210_vm4, %v5191_v50, %v4815_v9  ;;  %v3472_v20 = vrot.slane %v3471_v11, 1 }
 0x485   :  { %6976 = vset.pattern.permute.xlu0 %v11421_v17  ;;  %v5321_v38 = vsel %vm5275_vm5, %v5256_v15, %v5071_v35  ;;  %6971 = vset.pattern.permute.xlu1 %v11432_v56  ;;  %7256 = vrcp.f32 %v3480_v61 }
 0x486   :  { %v5702_v37 = vadd.f32 %v5701_v52, %v5700_v43  ;;  %4349 = vperm.xlu0 %6976, %v11025_v26   ;;  %v5385_v54 = vmul.f32 %v5321_v38, %v1131_v6  ;;  %5114 = vperm.xlu1 %6971, %v10959_v55   ;;  %v5902_v44 = vmul.f32 %v10909_v27, %v5711_v41  ;;  %v7253_v55 = vpop.eup %7252 }
 0x487   :  { %v3604_v4 = vmul.f32 %v7253_v55, %v10819_v51  ;;  %v11568_v51 = vld [vmem:[#allocation76_spill] sm:$0xff]  ;;  %v7255_v38 = vpop.eup %7254 }
 0x488   :  { %v5703_v12 = vrot.slane %v5702_v37, 1  ;;  %v4280_v46 = vpop.permute.xlu0 %4279  ;;  %v5719_v36 = vsel %vm1161_vm0, %v5385_v54, 0.0  ;;  %v4555_v40 = vpop.permute.xlu1 %4554  ;;  %v5973_v42 = vadd.f32 %v10850_v24, %v5902_v44 }
 0x489   :  { %v5720_v22 = vrot.slane %v5719_v36, 4  ;;  %v5190_v30 = vsel %vm5145_vm3, %v4280_v46, %v4555_v40  ;;  %v4054_v41 = vmul.f32 %v11568_v51, %v3604_v4 }
 0x48a   :  { %v5704_v57 = vadd.f32 %v5703_v12, %v5702_v37  ;;  %6978 = vset.pattern.permute.xlu0 %v11426_v32  ;;  %6972 = vset.pattern.permute.xlu1 %v11421_v17  ;;  %v6037_v50 = vmax.f32 %v5973_v42, 0.0  ;;  %v3473_v37 = vadd.f32 %v3472_v20, %v3471_v11 }
 0x48b   :  { %4866 = vperm.xlu0 %6978, %v11025_v26   ;;  %v5721_v33 = vadd.f32 %v5720_v22, %v5719_v36  ;;  %4354 = vperm.xlu1 %6972, %v10993_v18   ;;  %v1068_v22 = vld [vmem:[%s11383_s2 + $0x170] sm:$0xff] }
 0x48c   :  { %v5901_v19 = vmul.f32 %v10909_v27, %v5704_v57  ;;  %v6203_v9 = vrot.slane %v6037_v50, 5  ;;  %7258 = vrcp.f32 %v3473_v37 }
 0x48d   :  { %v5722_v28 = vrot.slane %v5721_v33, 2  ;;  %v4811_v31 = vpop.permute.xlu0 %4810  ;;  %v5067_v5 = vpop.permute.xlu1 %5066 }
 0x48e   :  { %v5972_v8 = vadd.f32 %v10850_v24, %v5901_v19  ;;  %v5255_v48 = vsel %vm5210_vm4, %v5190_v30, %v4811_v31 }
 0x48f   :  { %v5723_v23 = vadd.f32 %v5722_v28, %v5721_v33  ;;  %6979 = vset.pattern.permute.xlu0 %v11432_v56  ;;  %v5320_v45 = vsel %vm5275_vm5, %v5255_v48, %v5067_v5  ;;  %6974 = vset.pattern.permute.xlu1 %v11426_v32  ;;  %v7316_v33 = vld [vmem:[%s11378_s3 + $0x170] sm:$0xff]  ;;  %v7257_v29 = vpop.eup %7256 }
 0x490   :  { %v6036_v3 = vmax.f32 %v5972_v8, 0.0  ;;  %5122 = vperm.xlu0 %6979, %v11025_v26   ;;  %v5384_v59 = vmul.f32 %v5320_v45, %v1130_v25  ;;  %4870 = vperm.xlu1 %6974, %v10993_v18   ;;  %v1132_v19 = vadd.f32 %v7316_v33, %v1068_v22  ;;  %v3608_v8 = vmul.f32 %v7257_v29, %v10981_v21 }
 0x491   :  { %v5724_v53 = vrot.slane %v5723_v23, 1 }
 0x492   :  { %v6201_v43 = vrot.slane %v6036_v3, 6  ;;  %v4567_v6 = vpop.permute.xlu0 %4566  ;;  %v5712_v14 = vsel %vm1161_vm0, %v5384_v59, 0.0  ;;  %v4295_v35 = vpop.permute.xlu1 %4294 }
 0x493   :  { %v5713_v52 = vrot.slane %v5712_v14, 4  ;;  %v5193_v60 = vsel %vm5145_vm3, %v4295_v35, %v4567_v6  ;;  %v5725_v47 = vadd.f32 %v5724_v53, %v5723_v23  ;;  %v1071_v6 = vld [vmem:[%s11383_s2 + $0x188] sm:$0xff] }
 0x494   :  { %6981 = vset.pattern.permute.xlu0 %v11422_v63  ;;  %v6202_v15 = vsel %vm6126_vm7, %v6201_v43, %v11017_v49  ;;  %6977 = vset.pattern.permute.xlu1 %v11422_v63  ;;  %v3602_v49 = vmul.f32 %v7255_v38, %v10898_v13  ;;  %v11570_v43 = vld [vmem:[#allocation78_spill] sm:$0xff] }
 0x495   :  { %4622 = vperm.xlu0 %6981, %v4054_v41   ;;  %v5714_v18 = vadd.f32 %v5713_v52, %v5712_v14  ;;  %v6204_v62 = vsel %vm6129_vm8, %v6203_v9, %v6202_v15  ;;  %4610 = vperm.xlu1 %6977, %v11025_v26   ;;  %v5904_v36 = vmul.f32 %v10909_v27, %v5725_v47 }
 0x496   :  { %v4053_v34 = vmul.f32 %v11569_v10, %v3602_v49  ;;  %v7259_v50 = vpop.eup %7258  ;;  %v11093_v53 = vmul.f32 %v11570_v43, %v3608_v8 }
 0x497   :  { %v5715_v54 = vrot.slane %v5714_v18, 2  ;;  %v4290_v44 = vpop.permute.xlu0 %4289  ;;  %v4823_v2 = vpop.permute.xlu1 %4822  ;;  %v5975_v13 = vadd.f32 %v10850_v24, %v5904_v36  ;;  %v3606_v9 = vmul.f32 %v7259_v50, %v10996_v0  ;;  %v1070_v36 = vld [vmem:[%s11383_s2 + $0x180] sm:$0xff] }
 0x498   :  { %v11066_v12 = vsel %vm5210_vm4, %v5193_v60, %v4823_v2 }
 0x499   :  { %v5716_v46 = vadd.f32 %v5715_v54, %v5714_v18  ;;  %6983 = vset.pattern.permute.xlu0 %v11432_v56  ;;  %6980 = vset.pattern.permute.xlu1 %v11421_v17  ;;  %v6039_v31 = vmax.f32 %v5975_v13, 0.0 }
 0x49a   :  { %5134 = vperm.xlu0 %6983, %v4054_v41   ;;  %4364 = vperm.xlu1 %6980, %v4054_v41  }
 0x49b   :  { %v5717_v26 = vrot.slane %v5716_v46, 1  ;;  %v6207_v45 = vrot.slane %v6039_v31, 3 }
 0x49c   :  { %v4819_v40 = vpop.permute.xlu0 %4818  ;;  %v4563_v39 = vpop.permute.xlu1 %4562 }
 0x49d   :  { %v5718_v30 = vadd.f32 %v5717_v26, %v5716_v46  ;;  %v5192_v57 = vsel %vm5145_vm3, %v4290_v44, %v4563_v39 }
 0x49e   :  { %6984 = vset.pattern.permute.xlu0 %v11421_v17  ;;  %6982 = vset.pattern.permute.xlu1 %v11426_v32  ;;  %v5257_v55 = vsel %vm5210_vm4, %v5192_v57, %v4819_v40 }
 0x49f   :  { %v5903_v42 = vmul.f32 %v10909_v27, %v5718_v30  ;;  %4359 = vperm.xlu0 %6984, %v4053_v34   ;;  %4878 = vperm.xlu1 %6982, %v4054_v41   ;;  %v7317_v41 = vld [vmem:[%s11378_s3 + $0x188] sm:$0xff]  ;;  %v7318_v30 = vld [vmem:[%s11378_s3 + $0x180] sm:$0xff] }
 0x4a0   :  { %v1135_v52 = vadd.f32 %v7317_v41, %v1071_v6  ;;  %v1134_v10 = vadd.f32 %v7318_v30, %v1070_v36 }
 0x4a1   :  { %v5974_v25 = vadd.f32 %v10850_v24, %v5903_v42  ;;  %v4575_v7 = vpop.permute.xlu0 %4574  ;;  %v5075_v28 = vpop.permute.xlu1 %5074 }
 0x4a2   :  { %v5322_v5 = vsel %vm5275_vm5, %v5257_v55, %v5075_v28 }
 0x4a3   :  { %v6038_v11 = vmax.f32 %v5974_v25, 0.0  ;;  %6986 = vset.pattern.permute.xlu0 %v11426_v32  ;;  %v5386_v48 = vmul.f32 %v5322_v5, %v1132_v19  ;;  %6985 = vset.pattern.permute.xlu1 %v11422_v63 }
 0x4a4   :  { %4874 = vperm.xlu0 %6986, %v4053_v34   ;;  %4618 = vperm.xlu1 %6985, %v4053_v34  }
 0x4a5   :  { %v6205_v23 = vrot.slane %v6038_v11, 4  ;;  %v5726_v4 = vsel %vm1161_vm0, %v5386_v48, 0.0 }
 0x4a6   :  { %v5087_v3 = vpop.permute.xlu0 %5086  ;;  %v5727_v59 = vrot.slane %v5726_v4, 4  ;;  %v4305_v61 = vpop.permute.xlu1 %4304 }
 0x4a7   :  { %v6206_v20 = vsel %vm6132_vm9, %v6205_v23, %v6204_v62  ;;  %v5195_v21 = vsel %vm5145_vm3, %v4305_v61, %v4575_v7  ;;  %v11571_v62 = vld [vmem:[#allocation81_spill] sm:$0xff] }
 0x4a8   :  { %6989 = vset.pattern.permute.xlu0 %v11422_v63  ;;  %v5728_v14 = vadd.f32 %v5727_v59, %v5726_v4  ;;  %v6208_v35 = vsel %vm6135_vm10, %v6207_v45, %v6206_v20  ;;  %6987 = vset.pattern.permute.xlu1 %v11432_v56  ;;  %v4055_v38 = vmul.f32 %v11571_v62, %v3606_v9  ;;  %v7319_v4 = vld [vmem:[%s11378_s3 + $0x198] sm:$0xff] }
 0x4a9   :  { %4630 = vperm.xlu0 %6989, %v11093_v53   ;;  %5130 = vperm.xlu1 %6987, %v4053_v34  }
 0x4aa   :  { %v5729_v51 = vrot.slane %v5728_v14, 2 }
 0x4ab   :  { %v4300_v60 = vpop.permute.xlu0 %4299  ;;  %v4831_v15 = vpop.permute.xlu1 %4830 }
 0x4ac   :  { %v5730_v18 = vadd.f32 %v5729_v51, %v5728_v14  ;;  %v5260_v47 = vsel %vm5210_vm4, %v5195_v21, %v4831_v15  ;;  %v1072_v51 = vld [vmem:[%s11383_s2 + $0x190] sm:$0xff] }
 0x4ad   :  { %6991 = vset.pattern.permute.xlu0 %v11421_v17  ;;  %v5325_v0 = vsel %vm5275_vm5, %v5260_v47, %v5087_v3  ;;  %6988 = vset.pattern.permute.xlu1 %v11421_v17 }
 0x4ae   :  { %v5731_v37 = vrot.slane %v5730_v18, 1  ;;  %4369 = vperm.xlu0 %6991, %v4055_v38   ;;  %v5389_v54 = vmul.f32 %v5325_v0, %v1135_v52  ;;  %4374 = vperm.xlu1 %6988, %v11093_v53  }
 0x4b0   :  { %v5732_v44 = vadd.f32 %v5731_v37, %v5730_v18  ;;  %v4827_v2 = vpop.permute.xlu0 %4826  ;;  %v5747_v46 = vsel %vm1161_vm0, %v5389_v54, 0.0  ;;  %v4571_v49 = vpop.permute.xlu1 %4570  ;;  %v7320_v18 = vld [vmem:[%s11378_s3 + $0x190] sm:$0xff] }
 0x4b1   :  { %v5748_v26 = vrot.slane %v5747_v46, 4  ;;  %v5194_v40 = vsel %vm5145_vm3, %v4300_v60, %v4571_v49  ;;  %v1136_v62 = vadd.f32 %v7320_v18, %v1072_v51 }
 0x4b2   :  { %v5905_v39 = vmul.f32 %v10909_v27, %v5732_v44  ;;  %6993 = vset.pattern.permute.xlu0 %v11426_v32  ;;  %6990 = vset.pattern.permute.xlu1 %v11426_v32  ;;  %v5259_v17 = vsel %vm5210_vm4, %v5194_v40, %v4827_v2 }
 0x4b3   :  { %4882 = vperm.xlu0 %6993, %v4055_v38   ;;  %v5749_v22 = vadd.f32 %v5748_v26, %v5747_v46  ;;  %4886 = vperm.xlu1 %6990, %v11093_v53  }
 0x4b4   :  { %v5976_v34 = vadd.f32 %v10850_v24, %v5905_v39 }
 0x4b5   :  { %v5750_v57 = vrot.slane %v5749_v22, 2  ;;  %v4583_v13 = vpop.permute.xlu0 %4582  ;;  %v5083_v55 = vpop.permute.xlu1 %5082 }
 0x4b6   :  { %v6040_v42 = vmax.f32 %v5976_v34, 0.0  ;;  %v5324_v33 = vsel %vm5275_vm5, %v5259_v17, %v5083_v55 }
 0x4b7   :  { %v5751_v32 = vadd.f32 %v5750_v57, %v5749_v22  ;;  %6994 = vset.pattern.permute.xlu0 %v11432_v56  ;;  %v5388_v19 = vmul.f32 %v5324_v33, %v1134_v10  ;;  %6992 = vset.pattern.permute.xlu1 %v11422_v63  ;;  %v1073_v63 = vld [vmem:[%s11383_s2 + $0x198] sm:$0xff] }
 0x4b8   :  { %v6209_v29 = vrot.slane %v6040_v42, 2  ;;  %5106 = vperm.xlu0 %6994, %v10895_v16   ;;  %4626 = vperm.xlu1 %6992, %v4055_v38   ;;  %v1137_v45 = vadd.f32 %v7319_v4, %v1073_v63  ;;  %v1075_v42 = vld [vmem:[%s11383_s2 + $0x1a8] sm:$0xff] }
 0x4b9   :  { %v5752_v25 = vrot.slane %v5751_v32, 1  ;;  %v5740_v7 = vsel %vm1161_vm0, %v5388_v19, 0.0 }
 0x4ba   :  { %v11133_v28 = vsel %vm6138_vm11, %v6209_v29, %v6208_v35  ;;  %v5095_v31 = vpop.permute.xlu0 %5094  ;;  %v5741_v5 = vrot.slane %v5740_v7, 4  ;;  %v4315_v11 = vpop.permute.xlu1 %4314 }
 0x4bb   :  { %v5753_v8 = vadd.f32 %v5752_v25, %v5751_v32  ;;  %v5197_v48 = vsel %vm5145_vm3, %v4315_v11, %v4583_v13  ;;  %v7321_v25 = vld [vmem:[%s11378_s3 + $0x1a8] sm:$0xff] }
 0x4bc   :  { %5078 = vperm.xlu0 %6994, %v10569_v1   ;;  %v5742_v16 = vadd.f32 %v5741_v5, %v5740_v7  ;;  %6995 = vset.pattern.permute.xlu1 %v11432_v56  ;;  %v1139_v7 = vadd.f32 %v7321_v25, %v1075_v42 }
 0x4bd   :  { %5138 = vperm.xlu1 %6995, %v4055_v38   ;;  %v5908_v50 = vmul.f32 %v10909_v27, %v5753_v8 }
 0x4be   :  { %v5743_v23 = vrot.slane %v5742_v16, 2 }
 0x4bf   :  { %v4310_v3 = vpop.permute.xlu0 %4309  ;;  %v4839_v59 = vpop.permute.xlu1 %4838  ;;  %v5979_v56 = vadd.f32 %v10850_v24, %v5908_v50  ;;  %v1074_v50 = vld [vmem:[%s11383_s2 + $0x1a0] sm:$0xff] }
 0x4c0   :  { %v5744_v61 = vadd.f32 %v5743_v23, %v5742_v16  ;;  %5142 = vperm.xlu0 %6994, %v11093_v53   ;;  %v5262_v20 = vsel %vm5210_vm4, %v5197_v48, %v4839_v59 }
 0x4c1   :  { %v5327_v1 = vsel %vm5275_vm5, %v5262_v20, %v5095_v31  ;;  %5110 = vperm.xlu1 %6995, %v10870_v58   ;;  %v6043_v52 = vmax.f32 %v5979_v56, 0.0 }
 0x4c2   :  { %v5745_v43 = vrot.slane %v5744_v61, 1  ;;  %v5391_v21 = vmul.f32 %v5327_v1, %v1137_v45 }
 0x4c3   :  { %v6213_v54 = vrot.slane %v6043_v52, 7 }
 0x4c4   :  { %v5746_v6 = vadd.f32 %v5745_v43, %v5744_v61  ;;  %v4835_v14 = vpop.permute.xlu0 %4834  ;;  %v5761_v35 = vsel %vm1161_vm0, %v5391_v21, 0.0  ;;  %v4579_v9 = vpop.permute.xlu1 %4578  ;;  %v7322_v61 = vld [vmem:[%s11378_s3 + $0x1a0] sm:$0xff] }
 0x4c5   :  { %v5762_v53 = vrot.slane %v5761_v35, 4  ;;  %v5196_v41 = vsel %vm5145_vm3, %v4310_v3, %v4579_v9  ;;  %v1138_v20 = vadd.f32 %v7322_v61, %v1074_v50 }
 0x4c6   :  { %v5907_v60 = vmul.f32 %v10909_v27, %v5746_v6  ;;  %v5261_v58 = vsel %vm5210_vm4, %v5196_v41, %v4835_v14 }
 0x4c7   :  { %v5763_v15 = vadd.f32 %v5762_v53, %v5761_v35 }
 0x4c8   :  { %v5978_v38 = vadd.f32 %v10850_v24, %v5907_v60 }
 0x4c9   :  { %v5764_v47 = vrot.slane %v5763_v15, 2  ;;  %v4591_v0 = vpop.permute.xlu0 %4590  ;;  %v5091_v37 = vpop.permute.xlu1 %5090 }
 0x4ca   :  { %v6042_v44 = vmax.f32 %v5978_v38, 0.0  ;;  %v5326_v2 = vsel %vm5275_vm5, %v5261_v58, %v5091_v37 }
 0x4cb   :  { %v5765_v46 = vadd.f32 %v5764_v47, %v5763_v15  ;;  %v5390_v49 = vmul.f32 %v5326_v2, %v1136_v62 }
 0x4cc   :  { %v6214_v36 = vsel %vm6123_vm6, %v6213_v54, %v6042_v44 }
 0x4cd   :  { %v5766_v26 = vrot.slane %v5765_v46, 1  ;;  %v5754_v40 = vsel %vm1161_vm0, %v5390_v49, 0.0 }
 0x4ce   :  { %v4320_v39 = vpop.permute.xlu0 %4319  ;;  %v5755_v17 = vrot.slane %v5754_v40, 4  ;;  %v4325_v22 = vpop.permute.xlu1 %4324 }
 0x4cf   :  { %v5199_v30 = vsel %vm5145_vm3, %v4325_v22, %v4591_v0  ;;  %v5767_v34 = vadd.f32 %v5766_v26, %v5765_v46 }
 0x4d0   :  { %v5756_v10 = vadd.f32 %v5755_v17, %v5754_v40 }
 0x4d1   :  { %v5910_v19 = vmul.f32 %v10909_v27, %v5767_v34 }
 0x4d2   :  { %v5757_v57 = vrot.slane %v5756_v10, 2 }
 0x4d3   :  { %v4843_v13 = vpop.permute.xlu0 %4842  ;;  %v4847_v55 = vpop.permute.xlu1 %4846  ;;  %v5981_v8 = vadd.f32 %v10850_v24, %v5910_v19 }
 0x4d4   :  { %v5758_v33 = vadd.f32 %v5757_v57, %v5756_v10  ;;  %v5264_v32 = vsel %vm5210_vm4, %v5199_v30, %v4847_v55 }
 0x4d5   :  { %v6045_v45 = vmax.f32 %v5981_v8, 0.0 }
 0x4d6   :  { %v5759_v29 = vrot.slane %v5758_v33, 1 }
 0x4d7   :  { %v6217_v9 = vrot.slane %v6045_v45, 5 }
 0x4d8   :  { %v5760_v31 = vadd.f32 %v5759_v29, %v5758_v33  ;;  %v5099_v5 = vpop.permute.xlu0 %5098  ;;  %v5103_v11 = vpop.permute.xlu1 %5102 }
 0x4d9   :  { %v5329_v48 = vsel %vm5275_vm5, %v5264_v32, %v5103_v11 }
 0x4da   :  { %v5909_v63 = vmul.f32 %v10909_v27, %v5760_v31  ;;  %v5393_v16 = vmul.f32 %v5329_v48, %v1139_v7 }
 0x4dc   :  { %v5980_v23 = vadd.f32 %v10850_v24, %v5909_v63  ;;  %v5775_v4 = vsel %vm1161_vm0, %v5393_v16, 0.0 }
 0x4dd   :  { %v4599_v3 = vpop.permute.xlu0 %4598  ;;  %v5776_v59 = vrot.slane %v5775_v4, 4  ;;  %v4587_v1 = vpop.permute.xlu1 %4586 }
 0x4de   :  { %v6044_v56 = vmax.f32 %v5980_v23, 0.0  ;;  %v5198_v43 = vsel %vm5145_vm3, %v4320_v39, %v4587_v1 }
 0x4df   :  { %v5777_v21 = vadd.f32 %v5776_v59, %v5775_v4  ;;  %v5263_v6 = vsel %vm5210_vm4, %v5198_v43, %v4843_v13  ;;  %v7323_v59 = vld [vmem:[%s11378_s3 + $0x1c8] sm:$0xff] }
 0x4e0   :  { %v6215_v14 = vrot.slane %v6044_v56, 6  ;;  %v5328_v35 = vsel %vm5275_vm5, %v5263_v6, %v5099_v5 }
 0x4e1   :  { %v5778_v51 = vrot.slane %v5777_v21, 2  ;;  %v5392_v53 = vmul.f32 %v5328_v35, %v1138_v20 }
 0x4e2   :  { %v6216_v41 = vsel %vm6126_vm7, %v6215_v14, %v6214_v36  ;;  %v4330_v52 = vpop.permute.xlu0 %4329  ;;  %v4335_v60 = vpop.permute.xlu1 %4334 }
 0x4e3   :  { %v6218_v58 = vsel %vm6129_vm8, %v6217_v9, %v6216_v41  ;;  %v5779_v15 = vadd.f32 %v5778_v51, %v5777_v21  ;;  %v5768_v18 = vsel %vm1161_vm0, %v5392_v53, 0.0  ;;  %v5201_v62 = vsel %vm5145_vm3, %v4335_v60, %v4599_v3  ;;  %v1080_v21 = vld [vmem:[%s11383_s2 + $0x1d0] sm:$0xff]  ;;  %v1078_v9 = vld [vmem:[%s11383_s2 + $0x1c0] sm:$0xff]  ;;  %v1081_v60 = vld [vmem:[%s11383_s2 + $0x1d8] sm:$0xff] }
 0x4e4   :  { %v5769_v38 = vrot.slane %v5768_v18, 4  ;;  %v7324_v51 = vld [vmem:[%s11378_s3 + $0x1d0] sm:$0xff] }
 0x4e5   :  { %v5780_v47 = vrot.slane %v5779_v15, 1  ;;  %v1144_v53 = vadd.f32 %v7324_v51, %v1080_v21 }
 0x4e6   :  { %v5770_v0 = vadd.f32 %v5769_v38, %v5768_v18 }
 0x4e7   :  { %v5781_v37 = vadd.f32 %v5780_v47, %v5779_v15  ;;  %v4851_v54 = vpop.permute.xlu0 %4850  ;;  %v4855_v44 = vpop.permute.xlu1 %4854 }
 0x4e8   :  { %v5771_v2 = vrot.slane %v5770_v0, 2  ;;  %v11192_v46 = vsel %vm5210_vm4, %v5201_v62, %v4855_v44  ;;  %v7325_v62 = vld [vmem:[%s11378_s3 + $0x1c0] sm:$0xff]  ;;  %v7326_v44 = vld [vmem:[%s11378_s3 + $0x1d8] sm:$0xff] }
 0x4e9   :  { %v5912_v36 = vmul.f32 %v10909_v27, %v5781_v37  ;;  %v1142_v38 = vadd.f32 %v7325_v62, %v1078_v9 }
 0x4ea   :  { %v5772_v49 = vadd.f32 %v5771_v2, %v5770_v0  ;;  %v1145_v2 = vadd.f32 %v7326_v44, %v1081_v60  ;;  %v11274_v44 = vld [vmem:[%s11384_s9] ss:$0 sm:$0xff] }
 0x4eb   :  { %v5983_v10 = vadd.f32 %v10850_v24, %v5912_v36 }
 0x4ec   :  { %v5773_v26 = vrot.slane %v5772_v49, 1  ;;  %v4607_v40 = vpop.permute.xlu0 %4606  ;;  %v4595_v39 = vpop.permute.xlu1 %4594 }
 0x4ed   :  { %v5200_v17 = vsel %vm5145_vm3, %v4330_v52, %v4595_v39  ;;  %v6047_v42 = vmax.f32 %v5983_v10, 0.0 }
 0x4ee   :  { %v5774_v22 = vadd.f32 %v5773_v26, %v5772_v49  ;;  %v11197_v30 = vsel %vm5210_vm4, %v5200_v17, %v4851_v54 }
 0x4ef   :  { %v6221_v25 = vrot.slane %v6047_v42, 3 }
 0x4f0   :  { %v5911_v34 = vmul.f32 %v10909_v27, %v5774_v22 }
 0x4f1   :  { %v4340_v57 = vpop.permute.xlu0 %4339  ;;  %v4345_v13 = vpop.permute.xlu1 %4344 }
 0x4f2   :  { %v5982_v55 = vadd.f32 %v10850_v24, %v5911_v34  ;;  %v1079_v24 = vld [vmem:[%s11383_s2 + $0x1c8] sm:$0xff]  ;;  %v5203_v45 = vsel %vm5145_vm3, %v4345_v13, %v4607_v40 }
 0x4f3   :  { %v1143_v61 = vadd.f32 %v7323_v59, %v1079_v24 }
 0x4f4   :  { %v6046_v33 = vmax.f32 %v5982_v55, 0.0 }
 0x4f6   :  { %v6219_v32 = vrot.slane %v6046_v33, 4  ;;  %v4859_v19 = vpop.permute.xlu0 %4858  ;;  %v4863_v29 = vpop.permute.xlu1 %4862 }
 0x4f7   :  { %v5268_v3 = vsel %vm5210_vm4, %v5203_v45, %v4863_v29 }
 0x4f8   :  { %v6220_v7 = vsel %vm6132_vm9, %v6219_v32, %v6218_v58  ;;  %v7327_v32 = vld [vmem:[%s11378_s3 + $0x1e8] sm:$0xff] }
 0x4f9   :  { %v11204_v31 = vsel %vm6135_vm10, %v6221_v25, %v6220_v7  ;;  %v1082_v25 = vld [vmem:[%s11383_s2 + $0x1e0] sm:$0xff] }
 0x4fb   :  { %v4615_v5 = vpop.permute.xlu0 %4614  ;;  %v5119_v11 = vpop.permute.xlu1 %5118 }
 0x4fc   :  { %v5333_v20 = vsel %vm5275_vm5, %v5268_v3, %v5119_v11 }
 0x4fd   :  { %v5397_v43 = vmul.f32 %v5333_v20, %v1143_v61 }
 0x4ff   :  { %v5803_v41 = vsel %vm1161_vm0, %v5397_v43, 0.0 }
 0x500   :  { %v5127_v8 = vpop.permute.xlu0 %5126  ;;  %v4603_v48 = vpop.permute.xlu1 %4602  ;;  %v5804_v54 = vrot.slane %v5803_v41, 4 }
 0x501   :  { %v5202_v35 = vsel %vm5145_vm3, %v4340_v57, %v4603_v48  ;;  %v1083_v57 = vld [vmem:[%s11383_s2 + $0x1e8] sm:$0xff] }
 0x502   :  { %v5267_v47 = vsel %vm5210_vm4, %v5202_v35, %v4859_v19  ;;  %v5805_v17 = vadd.f32 %v5804_v54, %v5803_v41  ;;  %v1147_v19 = vadd.f32 %v7327_v32, %v1083_v57  ;;  %v1085_v57 = vld [vmem:[%s11383_s2 + $0x1f8] sm:$0xff] }
 0x504   :  { %v5806_v7 = vrot.slane %v5805_v17, 2 }
 0x505   :  { %v4350_v27 = vpop.permute.xlu0 %4349  ;;  %v5115_v63 = vpop.permute.xlu1 %5114 }
 0x506   :  { %v5332_v37 = vsel %vm5275_vm5, %v5267_v47, %v5115_v63  ;;  %v1076_v47 = vld [vmem:[%s11383_s2 + $0x1b0] sm:$0xff] }
 0x507   :  { %v5396_v26 = vmul.f32 %v5332_v37, %v1142_v38 }
 0x509   :  { %v5796_v55 = vsel %vm1161_vm0, %v5396_v26, 0.0  ;;  %v7330_v26 = vld [vmem:[%s11378_s3 + $0x1b0] sm:$0xff] }
 0x50a   :  { %v4867_v16 = vpop.permute.xlu0 %4866  ;;  %v4355_v50 = vpop.permute.xlu1 %4354 }
 0x50b   :  { %v5205_v52 = vsel %vm5145_vm3, %v4355_v50, %v4615_v5 }
 0x50f   :  { %v5123_v23 = vpop.permute.xlu0 %5122  ;;  %v4871_v4 = vpop.permute.xlu1 %4870 }
 0x510   :  { %v5270_v0 = vsel %vm5210_vm4, %v5205_v52, %v4871_v4 }
 0x511   :  { %v5335_v36 = vsel %vm5275_vm5, %v5270_v0, %v5127_v8  ;;  %v5797_v8 = vrot.slane %v5796_v55, 4 }
 0x512   :  { %v5399_v22 = vmul.f32 %v5335_v36, %v1145_v2 }
 0x513   :  { %v5798_v59 = vadd.f32 %v5797_v8, %v5796_v55  ;;  %v1084_v55 = vld [vmem:[%s11383_s2 + $0x1f0] sm:$0xff] }
 0x514   :  { %v4623_v1 = vpop.permute.xlu0 %4622  ;;  %v4611_v56 = vpop.permute.xlu1 %4610  ;;  %v5817_v5 = vsel %vm1161_vm0, %v5399_v22, 0.0 }
 0x515   :  { %v5204_v6 = vsel %vm5145_vm3, %v4350_v27, %v4611_v56  ;;  %v7328_v27 = vld [vmem:[%s11378_s3 + $0x1e0] sm:$0xff] }
 0x516   :  { %v5269_v14 = vsel %vm5210_vm4, %v5204_v6, %v4867_v16  ;;  %v1146_v63 = vadd.f32 %v7328_v27, %v1082_v25  ;;  %v5818_v16 = vrot.slane %v5817_v5, 4  ;;  %v1077_v25 = vld [vmem:[%s11383_s2 + $0x1b8] sm:$0xff] }
 0x517   :  { %v5334_v15 = vsel %vm5275_vm5, %v5269_v14, %v5123_v23  ;;  %v5807_v23 = vadd.f32 %v5806_v7, %v5805_v17  ;;  %v5799_v14 = vrot.slane %v5798_v59, 2  ;;  %v7333_v27 = vld [vmem:[%s11378_s3 + $0x1f8] sm:$0xff] }
 0x518   :  { %v5398_v49 = vmul.f32 %v5334_v15, %v1144_v53 }
 0x519   :  { %v5135_v58 = vpop.permute.xlu0 %5134  ;;  %v4365_v18 = vpop.permute.xlu1 %4364  ;;  %v5808_v21 = vrot.slane %v5807_v23, 1  ;;  %v5800_v15 = vadd.f32 %v5799_v14, %v5798_v59 }
 0x51a   :  { %v5810_v10 = vsel %vm1161_vm0, %v5398_v49, 0.0  ;;  %v5207_v34 = vsel %vm5145_vm3, %v4365_v18, %v4623_v1  ;;  %v5819_v1 = vadd.f32 %v5818_v16, %v5817_v5 }
 0x51b   :  { %v5811_v42 = vrot.slane %v5810_v10, 4  ;;  %v5801_v49 = vrot.slane %v5800_v15, 1 }
 0x51c   :  { %v5820_v41 = vrot.slane %v5819_v1, 2 }
 0x51d   :  { %v5812_v50 = vadd.f32 %v5811_v42, %v5810_v10  ;;  %v11292_v42 = vld [vmem:[%s11385_s10] ss:$0 sm:$0xff]  ;;  %v5802_v7 = vadd.f32 %v5801_v49, %v5800_v15 }
 0x51e   :  { %v4360_v40 = vpop.permute.xlu0 %4359  ;;  %v4879_v39 = vpop.permute.xlu1 %4878  ;;  %v5821_v37 = vadd.f32 %v5820_v41, %v5819_v1 }
 0x51f   :  { %v5272_v13 = vsel %vm5210_vm4, %v5207_v34, %v4879_v39  ;;  %v5813_v56 = vrot.slane %v5812_v50, 2  ;;  %v1069_v39 = vld [vmem:[%s11383_s2 + $0x178] sm:$0xff] }
 0x520   :  { %v5337_v11 = vsel %vm5275_vm5, %v5272_v13, %v5135_v58  ;;  %v5809_v58 = vadd.f32 %v5808_v21, %v5807_v23  ;;  %v5822_v22 = vrot.slane %v5821_v37, 1  ;;  %v5915_v21 = vmul.f32 %v11274_v44, %v5802_v7 }
 0x521   :  { %v5401_v24 = vmul.f32 %v5337_v11, %v1147_v19  ;;  %v5814_v52 = vadd.f32 %v5813_v56, %v5812_v50  ;;  %v7332_v19 = vld [vmem:[%s11378_s3 + $0x178] sm:$0xff] }
 0x522   :  { %v5916_v2 = vmul.f32 %v11274_v44, %v5809_v58  ;;  %v5823_v50 = vadd.f32 %v5822_v22, %v5821_v37 }
 0x523   :  { %v4875_v33 = vpop.permute.xlu0 %4874  ;;  %v4619_v29 = vpop.permute.xlu1 %4618  ;;  %v5831_v43 = vsel %vm1161_vm0, %v5401_v24, 0.0  ;;  %v5815_v54 = vrot.slane %v5814_v52, 1 }
 0x524   :  { %v5206_v48 = vsel %vm5145_vm3, %v4360_v40, %v4619_v29  ;;  %v5832_v53 = vrot.slane %v5831_v43, 4  ;;  %v1140_v40 = vadd.f32 %v7330_v26, %v1076_v47  ;;  %v1133_v29 = vadd.f32 %v7332_v19, %v1069_v39 }
 0x525   :  { %v5271_v3 = vsel %vm5210_vm4, %v5206_v48, %v4875_v33  ;;  %v5816_v10 = vadd.f32 %v5815_v54, %v5814_v52  ;;  %v11295_v33 = vadd.f32 %v11292_v42, %v5916_v2 }
 0x526   :  { %v5833_v62 = vadd.f32 %v5832_v53, %v5831_v43 }
 0x527   :  { %v5917_v24 = vmul.f32 %v11274_v44, %v5816_v10 }
 0x528   :  { %v11262_v4 = vpop.permute.xlu0 %4630  ;;  %v5131_v45 = vpop.permute.xlu1 %5130  ;;  %v5834_v17 = vrot.slane %v5833_v62, 2 }
 0x529   :  { %v5336_v61 = vsel %vm5275_vm5, %v5271_v3, %v5131_v45  ;;  %v7335_v3 = vld [vmem:[%s11378_s3 + $0x1b8] sm:$0xff]  ;;  %v5988_v58 = vadd.f32 %v11292_v42, %v5917_v24 }
 0x52a   :  { %v5400_v20 = vmul.f32 %v5336_v61, %v1146_v63  ;;  %v5835_v48 = vadd.f32 %v5834_v17, %v5833_v62  ;;  %v7334_v63 = vld [vmem:[%s11378_s3 + $0x1f0] sm:$0xff]  ;;  %v1141_v59 = vadd.f32 %v7335_v3, %v1077_v25  ;;  %v6051_v61 = vmax.f32 %v11295_v33, 0.0 }
 0x52b   :  { %v1148_v16 = vadd.f32 %v7334_v63, %v1084_v55  ;;  %v6052_v33 = vmax.f32 %v5988_v58, 0.0 }
 0x52c   :  { %v5824_v6 = vsel %vm1161_vm0, %v5400_v20, 0.0 }
 0x52d   :  { %v4370_v35 = vpop.permute.xlu0 %4369  ;;  %v5825_v9 = vrot.slane %v5824_v6, 4  ;;  %v4375_v51 = vpop.permute.xlu1 %4374  ;;  %v6229_v24 = vrot.slane %v6052_v33, 6 }
 0x52e   :  { %v5209_v53 = vsel %vm5145_vm3, %v4375_v51, %v11262_v4 }
 0x52f   :  { %v5826_v60 = vadd.f32 %v5825_v9, %v5824_v6  ;;  %v5836_v9 = vrot.slane %v5835_v48, 1 }
 0x531   :  { %v5827_v18 = vrot.slane %v5826_v60, 2 }
 0x532   :  { %v4883_v38 = vpop.permute.xlu0 %4882  ;;  %v4887_v0 = vpop.permute.xlu1 %4886 }
 0x533   :  { %v5828_v36 = vadd.f32 %v5827_v18, %v5826_v60  ;;  %v5918_v60 = vmul.f32 %v11274_v44, %v5823_v50  ;;  %v5274_v15 = vsel %vm5210_vm4, %v5209_v53, %v4887_v0  ;;  %v5986_v0 = vadd.f32 %v11292_v42, %v5915_v21 }
 0x535   :  { %v5829_v5 = vrot.slane %v5828_v36, 1  ;;  %v5989_v17 = vadd.f32 %v11292_v42, %v5918_v60 }
 0x537   :  { %v5107_v34 = vpop.permute.xlu0 %5106  ;;  %v4627_v13 = vpop.permute.xlu1 %4626  ;;  %v5830_v6 = vadd.f32 %v5829_v5, %v5828_v36  ;;  %v5837_v36 = vadd.f32 %v5836_v9, %v5835_v48 }
 0x538   :  { %v5330_v32 = vsel %vm5275_vm5, %v11197_v30, %v5107_v34  ;;  %v5208_v8 = vsel %vm5145_vm3, %v4370_v35, %v4627_v13  ;;  %v1149_v30 = vadd.f32 %v7333_v27, %v1085_v57 }
 0x539   :  { %v5394_v11 = vmul.f32 %v5330_v32, %v1140_v40  ;;  %v5273_v43 = vsel %vm5210_vm4, %v5208_v8, %v4883_v38  ;;  %v5919_v4 = vmul.f32 %v11274_v44, %v5830_v6  ;;  %v6050_v8 = vmax.f32 %v5986_v0, 0.0 }
 0x53b   :  { %v5782_v23 = vsel %vm1161_vm0, %v5394_v11, 0.0  ;;  %v5079_v45 = vpop.permute.xlu0 %5078  ;;  %v5990_v32 = vadd.f32 %v11292_v42, %v5919_v4  ;;  %v6227_v11 = vrot.slane %v6051_v61, 7 }
 0x53c   :  { %v5783_v20 = vrot.slane %v5782_v23, 4  ;;  %v5323_v1 = vsel %vm5275_vm5, %v11066_v12, %v5079_v45  ;;  %v5139_v56 = vpop.permute.xlu1 %5138 }
 0x53d   :  { %v5387_v14 = vmul.f32 %v5323_v1, %v1133_v29  ;;  %v5338_v35 = vsel %vm5275_vm5, %v5273_v43, %v5139_v56  ;;  %v5920_v29 = vmul.f32 %v11274_v44, %v5837_v36  ;;  %v6228_v61 = vsel %vm6123_vm6, %v6227_v11, %v6050_v8 }
 0x53e   :  { %v5784_v41 = vadd.f32 %v5783_v20, %v5782_v23  ;;  %v5402_v52 = vmul.f32 %v5338_v35, %v1148_v16  ;;  %v6054_v23 = vmax.f32 %v5990_v32, 0.0  ;;  %v6230_v53 = vsel %vm6126_vm7, %v6229_v24, %v6228_v61 }
 0x53f   :  { %v5733_v12 = vsel %vm1161_vm0, %v5387_v14, 0.0  ;;  %v5143_v18 = vpop.permute.xlu0 %5142 }
 0x540   :  { %v5785_v62 = vrot.slane %v5784_v41, 2  ;;  %v5734_v38 = vrot.slane %v5733_v12, 4  ;;  %v5339_v47 = vsel %vm5275_vm5, %v5274_v15, %v5143_v18  ;;  %v5838_v37 = vsel %vm1161_vm0, %v5402_v52, 0.0  ;;  %v5111_v54 = vpop.permute.xlu1 %5110 }
 0x541   :  { %v5403_v51 = vmul.f32 %v5339_v47, %v1149_v30  ;;  %v5839_v2 = vrot.slane %v5838_v37, 4  ;;  %v5331_v49 = vsel %vm5275_vm5, %v11192_v46, %v5111_v54  ;;  %v6053_v30 = vmax.f32 %v5989_v17, 0.0 }
 0x542   :  { %v5786_v26 = vadd.f32 %v5785_v62, %v5784_v41  ;;  %v5735_v40 = vadd.f32 %v5734_v38, %v5733_v12  ;;  %v5395_v39 = vmul.f32 %v5331_v49, %v1141_v59  ;;  %v5991_v59 = vadd.f32 %v11292_v42, %v5920_v29 }
 0x543   :  { %v5845_v22 = vsel %vm1161_vm0, %v5403_v51, 0.0  ;;  %v5840_v10 = vadd.f32 %v5839_v2, %v5838_v37  ;;  %v6231_v6 = vrot.slane %v6053_v30, 5  ;;  %v6233_v41 = vrot.slane %v6054_v23, 4 }
 0x544   :  { %v5787_v34 = vrot.slane %v5786_v26, 1  ;;  %v5736_v57 = vrot.slane %v5735_v40, 2  ;;  %v5846_v13 = vrot.slane %v5845_v22, 4  ;;  %v5789_v55 = vsel %vm1161_vm0, %v5395_v39, 0.0 }
 0x545   :  { %v5841_v46 = vrot.slane %v5840_v10, 2  ;;  %v5790_v19 = vrot.slane %v5789_v55, 4  ;;  %v6055_v58 = vmax.f32 %v5991_v59, 0.0  ;;  %v6232_v47 = vsel %vm6129_vm8, %v6231_v6, %v6230_v53 }
 0x546   :  { %v5788_v25 = vadd.f32 %v5787_v34, %v5786_v26  ;;  %v5737_v7 = vadd.f32 %v5736_v57, %v5735_v40  ;;  %v5847_v5 = vadd.f32 %v5846_v13, %v5845_v22  ;;  %v6234_v51 = vsel %vm6132_vm9, %v6233_v41, %v6232_v47 }
 0x547   :  { %v5842_v48 = vadd.f32 %v5841_v46, %v5840_v10  ;;  %v5791_v27 = vadd.f32 %v5790_v19, %v5789_v55  ;;  %v6235_v36 = vrot.slane %v6055_v58, 3 }
 0x548   :  { %v5913_v63 = vmul.f32 %v11274_v44, %v5788_v25  ;;  %v5738_v16 = vrot.slane %v5737_v7, 1  ;;  %v5848_v50 = vrot.slane %v5847_v5, 2 }
 0x549   :  { %v5843_v45 = vrot.slane %v5842_v48, 1  ;;  %v5792_v3 = vrot.slane %v5791_v27, 2 }
 0x54a   :  { %v5984_v20 = vadd.f32 %v11292_v42, %v5913_v63  ;;  %v5739_v1 = vadd.f32 %v5738_v16, %v5737_v7  ;;  %v5849_v56 = vadd.f32 %v5848_v50, %v5847_v5 }
 0x54b   :  { %v5844_v43 = vadd.f32 %v5843_v45, %v5842_v48  ;;  %v5793_v21 = vadd.f32 %v5792_v3, %v5791_v27 }
 0x54c   :  { %v6048_v14 = vmax.f32 %v5984_v20, 0.0  ;;  %v5906_v35 = vmul.f32 %v11274_v44, %v5739_v1  ;;  %v5850_v9 = vrot.slane %v5849_v56, 1 }
 0x54d   :  { %v5921_v52 = vmul.f32 %v11274_v44, %v5844_v43  ;;  %v5794_v60 = vrot.slane %v5793_v21, 1 }
 0x54e   :  { %v6223_v12 = vrot.slane %v6048_v14, 2  ;;  %v5977_v15 = vadd.f32 %v11292_v42, %v5906_v35  ;;  %v5851_v18 = vadd.f32 %v5850_v9, %v5849_v56 }
 0x54f   :  { %v5992_v62 = vadd.f32 %v11292_v42, %v5921_v52  ;;  %v5795_v38 = vadd.f32 %v5794_v60, %v5793_v21 }
 0x550   :  { %v6224_v37 = vsel %vm6138_vm11, %v6223_v12, %v11204_v31  ;;  %v6041_v54 = vmax.f32 %v5977_v15, 0.0  ;;  %v5922_v4 = vmul.f32 %v11274_v44, %v5851_v18  ;;  %v6236_v31 = vsel %vm6135_vm10, %v6235_v36, %v6234_v51 }
 0x551   :  { %v6056_v2 = vmax.f32 %v5992_v62, 0.0  ;;  %v5914_v49 = vmul.f32 %v11274_v44, %v5795_v38 }
 0x552   :  { %v6211_v26 = vrot.slane %v6041_v54, 1  ;;  %v5993_v40 = vadd.f32 %v11292_v42, %v5922_v4 }
 0x553   :  { %v6237_v39 = vrot.slane %v6056_v2, 2  ;;  %v5985_v0 = vadd.f32 %v11292_v42, %v5914_v49 }
 0x554   :  { %v6212_v17 = vsel %vm6141_vm12, %v6211_v26, %v11133_v28  ;;  %v6057_v22 = vmax.f32 %v5993_v40, 0.0 }
 0x555   :  { %6254 = vst.msk [vmem:[%s11386_s11 + $0x28] sm:$0xff] %vm1161_vm0, %v6212_v17  ;;  %v6238_v44 = vsel %vm6138_vm11, %v6237_v39, %v6236_v31  ;;  %v6049_v10 = vmax.f32 %v5985_v0, 0.0 }
 0x556   :  { %v6239_v34 = vrot.slane %v6057_v22, 1 }
 0x557   :  { %v6225_v57 = vrot.slane %v6049_v10, 1 }
 0x558   :  { %v6240_v13 = vsel %vm6141_vm12, %v6239_v34, %v6238_v44 }
 0x559   :  { %6256 = vst.msk [vmem:[%s11386_s11 + $0x38] sm:$0xff] %vm1161_vm0, %v6240_v13  ;;  %v6226_v28 = vsel %vm6141_vm12, %v6225_v57, %v6224_v37 }
 0x55a   :  { %6255 = vst.msk [vmem:[%s11386_s11 + $0x30] sm:$0xff] %vm1161_vm0, %v6226_v28 }

</bundles_post_ra>
